<compile_context>
chip_gen: v5e
topology: v5e:2x2
jax: 0.10.0
libtpu: 0.0.40
codegen_flags: <defaults>
</compile_context>

<pallas_src>
import math

import jax
import jax.numpy as jnp
from jax.experimental import pallas as pl
from jax.experimental.pallas import tpu as pltpu


_CPARAMS = pltpu.CompilerParams(
    dimension_semantics=("parallel",),          # one batch element / grid step
    vmem_limit_bytes=32 * 1024 * 1024,          # above the v5e 16 MiB default
)


# --------------------------------------------------------------------------
# BlockSpec helpers
# --------------------------------------------------------------------------
def _img_spec(H, W, C):
    return pl.BlockSpec((1, H, W, C), lambda b: (b, 0, 0, 0))


def _full_spec(shape):
    n = len(shape)
    return pl.BlockSpec(tuple(shape), lambda b, n=n: (0,) * n)


def _stack3x3(w):
    """HWIO (3,3,Cin,Cout) -> (9*Cin, Cout); row order = tap-major, then Cin."""
    return jnp.concatenate([w[dy, dx] for dy in range(3) for dx in range(3)],
                           axis=0)


# --------------------------------------------------------------------------
# In-kernel helpers (traced inside the Pallas bodies)
# --------------------------------------------------------------------------
def _zero_pad_hw(x):
    """(H, W, C) -> (H+2, W+2, C) zero pad of the spatial dims, done in VMEM
    (avoids materializing padded activation copies in HBM)."""
    H, W, C = x.shape
    zr = jnp.zeros((1, W, C), x.dtype)
    x = jnp.concatenate([zr, x, zr], axis=0)
    zc = jnp.zeros((H + 2, 1, C), x.dtype)
    return jnp.concatenate([zc, x, zc], axis=1)


def _im2col3x3(xp, H, W):
    """(H+2, W+2, C) padded image -> (H*W, 9*C) patch matrix -> single dot."""
    C = xp.shape[-1]
    cols = [xp[dy:dy + H, dx:dx + W, :].reshape(H * W, C)
            for dy in range(3) for dx in range(3)]
    return jnp.concatenate(cols, axis=1)


# --------------------------------------------------------------------------
# Kernel 1: fused stride-2 dual conv (dil=1,p=1 + dil=2,p=2) + bias + ReLU.
# Both convolutions are one stacked weight and one MXU dot per batch element.
# --------------------------------------------------------------------------
def _make_dual_s2_kernel(Ho, Wo, taps):
    def kernel(p00_ref, p01_ref, p10_ref, p11_ref, w_ref, b_ref, o_ref):
        Cin = p00_ref.shape[-1]
        Cout = o_ref.shape[-1]
        planes = (p00_ref[0], p01_ref[0], p10_ref[0], p11_ref[0])
        cols = []
        for (pi, r, c) in taps:                       # static tap list
            win = planes[pi][r:r + Ho, c:c + Wo, :]
            cols.append(win.astype(jnp.float32).reshape(Ho * Wo, Cin))
        patches = jnp.concatenate(cols, axis=1)       # (Ho*Wo, 18*Cin)
        acc = jnp.dot(patches, w_ref[...],
                      preferred_element_type=jnp.float32)
        y = jnp.maximum(acc + b_ref[...], 0.0)
        o_ref[0] = y.reshape(Ho, Wo, Cout).astype(o_ref.dtype)

    return kernel


# --------------------------------------------------------------------------
# Kernel 2/3: 1x1 conv + folded-BN affine + ReLU (optionally + residual add).
# --------------------------------------------------------------------------
def _conv1x1_affine_relu_kernel(x_ref, w_ref, s_ref, b_ref, o_ref):
    _, H, W, Cin = x_ref.shape
    Cout = o_ref.shape[-1]
    xv = x_ref[0].astype(jnp.float32).reshape(H * W, Cin)
    acc = jnp.dot(xv, w_ref[...], preferred_element_type=jnp.float32)
    y = jnp.maximum(acc * s_ref[...] + b_ref[...], 0.0)
    o_ref[0] = y.reshape(H, W, Cout).astype(o_ref.dtype)


def _conv1x1_affine_add_relu_kernel(x_ref, w_ref, s_ref, b_ref, r_ref, o_ref):
    _, H, W, Cin = x_ref.shape
    Cout = o_ref.shape[-1]
    xv = x_ref[0].astype(jnp.float32).reshape(H * W, Cin)
    res = r_ref[0].astype(jnp.float32).reshape(H * W, Cout)
    acc = jnp.dot(xv, w_ref[...], preferred_element_type=jnp.float32)
    y = jnp.maximum(acc * s_ref[...] + b_ref[...] + res, 0.0)
    o_ref[0] = y.reshape(H, W, Cout).astype(o_ref.dtype)


# --------------------------------------------------------------------------
# Kernel 4: 3x3 conv (pad=1) + folded-BN affine + ReLU.
# --------------------------------------------------------------------------
def _conv3x3_affine_relu_kernel(x_ref, w_ref, s_ref, b_ref, o_ref):
    _, H, W, _ = x_ref.shape
    Cout = o_ref.shape[-1]
    patches = _im2col3x3(_zero_pad_hw(x_ref[0].astype(jnp.float32)), H, W)
    acc = jnp.dot(patches, w_ref[...], preferred_element_type=jnp.float32)
    y = jnp.maximum(acc * s_ref[...] + b_ref[...], 0.0)
    o_ref[0] = y.reshape(H, W, Cout).astype(o_ref.dtype)


# --------------------------------------------------------------------------
# Kernel 5: 3x3 conv (pad=1) + InstanceNorm (affine, eps=1e-5) + ReLU, fused.
# The PyTorch conv bias is dropped: a per-channel constant added before the
# InstanceNorm mean subtraction cancels exactly.
# --------------------------------------------------------------------------
def _conv3x3_inorm_relu_kernel(x_ref, w_ref, g_ref, be_ref, o_ref):
    _, H, W, _ = x_ref.shape
    Cout = o_ref.shape[-1]
    patches = _im2col3x3(_zero_pad_hw(x_ref[0].astype(jnp.float32)), H, W)
    acc = jnp.dot(patches, w_ref[...], preferred_element_type=jnp.float32)
    mean = jnp.mean(acc, axis=0, keepdims=True)
    var = jnp.mean((acc - mean) ** 2, axis=0, keepdims=True)
    xhat = (acc - mean) * jax.lax.rsqrt(var + 1e-5)
    y = jnp.maximum(xhat * g_ref[...] + be_ref[...], 0.0)
    o_ref[0] = y.reshape(H, W, Cout).astype(o_ref.dtype)


# --------------------------------------------------------------------------
# Kernel 6: fused Res2Net "scale" chain of Bottle2neck:
#   3x (3x3 conv + folded-BN + ReLU) with the running sp + spx[i] adds, the
#   passthrough of the 4th chunk and the channel concat, all kept in VMEM.
# --------------------------------------------------------------------------
def _res2chain_kernel(x_ref, w_ref, s_ref, b_ref, o_ref):
    _, H, W, ws = x_ref.shape
    wdt = ws // 4
    xv = x_ref[0].astype(jnp.float32)
    parts = []
    sp = None
    for i in range(3):
        chunk = xv[:, :, i * wdt:(i + 1) * wdt]
        spin = chunk if i == 0 else chunk + sp
        patches = _im2col3x3(_zero_pad_hw(spin), H, W)
        a = jnp.dot(patches, w_ref[i], preferred_element_type=jnp.float32)
        a = jnp.maximum(a * s_ref[i] + b_ref[i], 0.0)
        sp = a.reshape(H, W, wdt)
        parts.append(sp)
    parts.append(xv[:, :, 3 * wdt:])
    o_ref[0] = jnp.concatenate(parts, axis=-1).astype(o_ref.dtype)


# --------------------------------------------------------------------------
# pallas_call wrappers
# --------------------------------------------------------------------------
def dual_stride2_conv_relu(x, w1, b1, w2, b2):
    """y0 = relu(conv3x3(x, s=2, p=1, d=1) + conv3x3(x, s=2, p=2, d=2))."""
    B, H, W, Cin = x.shape
    assert H % 2 == 0 and W % 2 == 0
    Cout = w1.shape[-1]
    Ho, Wo = H // 2, W // 2
    # Common pad-2 frame, split into 2x2 spatial parity planes on the host so
    # every stride-2 tap is a contiguous (Ho, Wo) window inside the kernel.
    xp = jnp.pad(x, ((0, 0), (2, 2), (2, 2), (0, 0)))
    planes = [xp[:, py::2, px::2, :] for py in (0, 1) for px in (0, 1)]
    Hp2, Wp2 = Ho + 2, Wo + 2
    offs = [(dy + 1, dx + 1) for dy in range(3) for dx in range(3)]     # d=1,p=1
    offs += [(2 * dy, 2 * dx) for dy in range(3) for dx in range(3)]    # d=2,p=2
    taps = [(2 * (r % 2) + (c % 2), r // 2, c // 2) for (r, c) in offs]
    wstack = jnp.concatenate(
        [w1[dy, dx] for dy in range(3) for dx in range(3)]
        + [w2[dy, dx] for dy in range(3) for dx in range(3)], axis=0)
    bsum = (b1 + b2).reshape(1, Cout)
    return pl.pallas_call(
        _make_dual_s2_kernel(Ho, Wo, taps),
        out_shape=jax.ShapeDtypeStruct((B, Ho, Wo, Cout), x.dtype),
        grid=(B,),
        in_specs=[_img_spec(Hp2, Wp2, Cin)] * 4
        + [_full_spec(wstack.shape), _full_spec((1, Cout))],
        out_specs=_img_spec(Ho, Wo, Cout),
        compiler_params=_CPARAMS,
    )(*planes, wstack, bsum)


def conv1x1_affine_relu(x, w, scale, bias):
    B, H, W, Cin = x.shape
    Cout = w.shape[-1]
    return pl.pallas_call(
        _conv1x1_affine_relu_kernel,
        out_shape=jax.ShapeDtypeStruct((B, H, W, Cout), x.dtype),
        grid=(B,),
        in_specs=[_img_spec(H, W, Cin), _full_spec(w.shape),
                  _full_spec((1, Cout)), _full_spec((1, Cout))],
        out_specs=_img_spec(H, W, Cout),
        compiler_params=_CPARAMS,
    )(x, w, scale.reshape(1, Cout), bias.reshape(1, Cout))


def conv1x1_affine_add_relu(x, w, scale, bias, residual):
    B, H, W, Cin = x.shape
    Cout = w.shape[-1]
    return pl.pallas_call(
        _conv1x1_affine_add_relu_kernel,
        out_shape=jax.ShapeDtypeStruct((B, H, W, Cout), x.dtype),
        grid=(B,),
        in_specs=[_img_spec(H, W, Cin), _full_spec(w.shape),
                  _full_spec((1, Cout)), _full_spec((1, Cout)),
                  _img_spec(H, W, Cout)],
        out_specs=_img_spec(H, W, Cout),
        compiler_params=_CPARAMS,
    )(x, w, scale.reshape(1, Cout), bias.reshape(1, Cout), residual)


def conv3x3_affine_relu(x, w, scale, bias):
    B, H, W, Cin = x.shape
    Cout = w.shape[-1]
    wstack = _stack3x3(w)
    return pl.pallas_call(
        _conv3x3_affine_relu_kernel,
        out_shape=jax.ShapeDtypeStruct((B, H, W, Cout), x.dtype),
        grid=(B,),
        in_specs=[_img_spec(H, W, Cin), _full_spec(wstack.shape),
                  _full_spec((1, Cout)), _full_spec((1, Cout))],
        out_specs=_img_spec(H, W, Cout),
        compiler_params=_CPARAMS,
    )(x, wstack, scale.reshape(1, Cout), bias.reshape(1, Cout))


def conv3x3_inorm_relu(x, w, gamma, beta):
    B, H, W, Cin = x.shape
    Cout = w.shape[-1]
    wstack = _stack3x3(w)
    return pl.pallas_call(
        _conv3x3_inorm_relu_kernel,
        out_shape=jax.ShapeDtypeStruct((B, H, W, Cout), x.dtype),
        grid=(B,),
        in_specs=[_img_spec(H, W, Cin), _full_spec(wstack.shape),
                  _full_spec((1, Cout)), _full_spec((1, Cout))],
        out_specs=_img_spec(H, W, Cout),
        compiler_params=_CPARAMS,
    )(x, wstack, gamma.reshape(1, Cout), beta.reshape(1, Cout))


def res2chain(x, wc, sc, bc):
    B, H, W, ws = x.shape
    wdt = wc.shape[-1]
    wstack = jnp.stack([_stack3x3(wc[i]) for i in range(3)], axis=0)
    return pl.pallas_call(
        _res2chain_kernel,
        out_shape=jax.ShapeDtypeStruct((B, H, W, ws), x.dtype),
        grid=(B,),
        in_specs=[_img_spec(H, W, ws), _full_spec(wstack.shape),
                  _full_spec((3, 1, wdt)), _full_spec((3, 1, wdt))],
        out_specs=_img_spec(H, W, ws),
        compiler_params=_CPARAMS,
    )(x, wstack, sc.reshape(3, 1, wdt), bc.reshape(3, 1, wdt))


# --------------------------------------------------------------------------
# Module forwards built from the fused kernels (NHWC activations).
# --------------------------------------------------------------------------
def bottle2neck_forward(z, q):
    """Bottle2neck(inplanes=planes=C, baseWidth=26, scale=4, stype='normal');
    BatchNorms are folded per-channel affines (inference mode)."""
    out_a = conv1x1_affine_relu(z, q["w1"], q["s1"], q["b1"])          # conv1+bn1
    chain = res2chain(out_a, q["wc"], q["sc"], q["bc"])                # scale chain
    resid = conv3x3_affine_relu(z, q["wd"], q["sd"], q["bd"])          # downsample
    out_b = conv1x1_affine_add_relu(chain, q["w3"], q["s3"], q["b3"], resid)
    return conv3x3_affine_relu(out_b, q["wo"], q["so"], q["bo"])       # outlay


def coord_att(y, q):
    # TODO(synk): CoordAtt is not defined in the provided source; this is the
    # canonical Coordinate Attention (Hou et al., CVPR'21), kept in plain JAX
    # since it only touches (H+W)-length pooled vectors.
    B, H, W, C = y.shape
    xh = jnp.mean(y, axis=2)                               # (B, H, C)
    xw = jnp.mean(y, axis=1)                               # (B, W, C)
    t = jnp.concatenate([xh, xw], axis=1)                  # (B, H+W, C)
    t = jnp.einsum("bnc,cm->bnm", t, q["w1"]) + q["cb1"]
    t = t * q["s1"] + q["b1"]                              # folded BN
    t = t * jnp.clip(t + 3.0, 0.0, 6.0) / 6.0              # h_swish
    ah = jax.nn.sigmoid(jnp.einsum("bnm,mc->bnc", t[:, :H], q["wh"]) + q["bh"])
    aw = jax.nn.sigmoid(jnp.einsum("bnm,mc->bnc", t[:, H:], q["ww"]) + q["bw"])
    return y * ah[:, :, None, :] * aw[:, None, :, :]


def resblock_forward(z, q):
    assert z.shape[-1] == q["w1"].shape[-1], "ResBlock requires Cin == Cout"
    y = conv3x3_inorm_relu(z, q["w1"], q["g1"], q["be1"])
    y = conv3x3_inorm_relu(y + z, q["w2"], q["g2"], q["be2"])
    y = coord_att(y, q["ca"])
    return y + z


def encoder_stage_forward(x, p):
    """EncoderStage.forward.  Tiny skip-adds between fused kernels are left to
    XLA (they fuse into a single elementwise op)."""
    y0 = dual_stride2_conv_relu(x, p["w0_1"], p["b0_1"], p["w0_2"], p["b0_2"])
    y1 = bottle2neck_forward(y0, p["bna"])
    y2 = bottle2neck_forward(y1 + y0, p["bnb"])
    return resblock_forward(y2 + y1 + y0, p["rb"])


# --------------------------------------------------------------------------
# Pure-JAX reference (verification only).  Keeps the PyTorch conv biases in
# the ResBlock path (the kernels drop them; InstanceNorm cancels them).
# --------------------------------------------------------------------------
def _conv_ref(x, w, stride, dilation, padding, bias=None):
    out = jax.lax.conv_general_dilated(
        x, w, window_strides=(stride, stride),
        padding=((padding, padding), (padding, padding)),
        rhs_dilation=(dilation, dilation),
        dimension_numbers=("NHWC", "HWIO", "NHWC"),
        precision=jax.lax.Precision.HIGHEST)
    if bias is not None:
        out = out + bias.reshape(1, 1, 1, -1)
    return out


def _aff(t, s, b):
    return t * s.reshape(1, 1, 1, -1) + b.reshape(1, 1, 1, -1)


def _ref_bottle2neck(z, q):
    wdt = q["wc"].shape[-1]
    out = jax.nn.relu(_aff(jnp.einsum("bhwi,io->bhwo", z, q["w1"]),
                           q["s1"], q["b1"]))
    spx = [out[..., i * wdt:(i + 1) * wdt] for i in range(4)]
    parts, sp = [], None
    for i in range(3):
        spin = spx[i] if i == 0 else spx[i] + sp
        sp = jax.nn.relu(_aff(_conv_ref(spin, q["wc"][i], 1, 1, 1),
                              q["sc"][i], q["bc"][i]))
        parts.append(sp)
    parts.append(spx[3])
    cat = jnp.concatenate(parts, axis=-1)
    out3 = _aff(jnp.einsum("bhwi,io->bhwo", cat, q["w3"]), q["s3"], q["b3"])
    resid = jax.nn.relu(_aff(_conv_ref(z, q["wd"], 1, 1, 1), q["sd"], q["bd"]))
    outb = jax.nn.relu(out3 + resid)
    return jax.nn.relu(_aff(_conv_ref(outb, q["wo"], 1, 1, 1), q["so"], q["bo"]))


def _ref_inorm(t, g, b):
    m = jnp.mean(t, axis=(1, 2), keepdims=True)
    v = jnp.mean((t - m) ** 2, axis=(1, 2), keepdims=True)
    return _aff((t - m) * jax.lax.rsqrt(v + 1e-5), g, b)


def _ref_resblock(z, q):
    y = jax.nn.relu(_ref_inorm(_conv_ref(z, q["w1"], 1, 1, 1, q["cb1"]),
                               q["g1"], q["be1"]))
    y = jax.nn.relu(_ref_inorm(_conv_ref(y + z, q["w2"], 1, 1, 1, q["cb2"]),
                               q["g2"], q["be2"]))
    y = coord_att(y, q["ca"])
    return y + z


def ref_forward(x, p):
    y01 = _conv_ref(x, p["w0_1"], 2, 1, 1, p["b0_1"])
    y02 = _conv_ref(x, p["w0_2"], 2, 2, 2, p["b0_2"])
    y0 = jax.nn.relu(y01 + y02)
    y1 = _ref_bottle2neck(y0, p["bna"])
    y2 = _ref_bottle2neck(y1 + y0, p["bnb"])
    return _ref_resblock(y2 + y1 + y0, p["rb"])


# --------------------------------------------------------------------------
# Deterministic parameter init (shapes follow the module __init__).
# --------------------------------------------------------------------------
def init_params(key, cin, cout):
    keys = iter(jax.random.split(key, 96))

    def nxt():
        return next(keys)

    def conv_w(ci, co):
        bound = 1.0 / math.sqrt(ci * 9)
        return jax.random.uniform(nxt(), (3, 3, ci, co), jnp.float32, -bound, bound)

    def mat(ci, co):                      # 1x1 conv stored as (Cin, Cout)
        bound = 1.0 / math.sqrt(ci)
        return jax.random.uniform(nxt(), (ci, co), jnp.float32, -bound, bound)

    def vec(co, scale=0.1):
        return scale * jax.random.normal(nxt(), (co,), jnp.float32)

    def bn_fold(co):
        # eval-mode BatchNorm2d folded to per-channel scale / bias
        s = jax.random.uniform(nxt(), (co,), jnp.float32, 0.7, 1.3)
        return s, vec(co)

    def bottle(cp):
        width = int(math.floor(cp * (26.0 / 64.0)))
        ws, pe = width * 4, cp * 4
        s1, b1 = bn_fold(ws)
        wc = jnp.stack([conv_w(width, width) for _ in range(3)])
        scbc = [bn_fold(width) for _ in range(3)]
        sc = jnp.stack([s for s, _ in scbc])
        bc = jnp.stack([b for _, b in scbc])
        s3, b3 = bn_fold(pe)
        sd, bd = bn_fold(pe)
        so, bo = bn_fold(cp)
        return dict(w1=mat(cp, ws), s1=s1, b1=b1,
                    wc=wc, sc=sc, bc=bc,
                    w3=mat(ws, pe), s3=s3, b3=b3,
                    wd=conv_w(cp, pe), sd=sd, bd=bd,
                    wo=conv_w(pe, cp), so=so, bo=bo)

    mip = max(8, cout // 32)
    cs1, cb1 = bn_fold(mip)
    ca = dict(w1=mat(cout, mip), cb1=vec(mip), s1=cs1, b1=cb1,
              wh=mat(mip, cout), bh=vec(cout),
              ww=mat(mip, cout), bw=vec(cout))
    rb = dict(w1=conv_w(cout, cout), cb1=vec(cout),
              w2=conv_w(cout, cout), cb2=vec(cout),
              g1=1.0 + vec(cout), be1=vec(cout),
              g2=1.0 + vec(cout), be2=vec(cout),
              ca=ca)
    return dict(w0_1=conv_w(cin, cout), b0_1=vec(cout),
                w0_2=conv_w(cin, cout), b0_2=vec(cout),
                bna=bottle(cout), bnb=bottle(cout), rb=rb)


if __name__ == "__main__":
    key = jax.random.PRNGKey(0)
    kx, kp = jax.random.split(key)

    B, Cin, Cout, H, W = 2, 4, 8, 16, 16              # PyTorch view: NCHW input
    x_nchw = jax.random.normal(kx, (B, Cin, H, W), jnp.float32)
    params = init_params(kp, Cin, Cout)

    x = jnp.transpose(x_nchw, (0, 2, 3, 1))           # NCHW -> NHWC

    out = jax.jit(encoder_stage_forward)(x, params)
    out = jax.block_until_ready(out)

    assert out.shape == (B, H // 2, W // 2, Cout)
    assert bool(jnp.all(jnp.isfinite(out)))

    ref = ref_forward(x, params)
    max_err = float(jnp.max(jnp.abs(out - ref)))
    assert max_err < 2e-3, f"mismatch vs reference: max abs err {max_err}"

    print("KERNEL_OK")
</pallas_src>

<mosaic_0001>
module attributes {stable_mosaic.version = 11 : i64} {
  func.func @_conv1x1_affine_relu_kernel(%arg0: i32, %arg1: memref<1x8x8x8xf32, #tpu.memory_space<vmem>>, %arg2: memref<8x12xf32, #tpu.memory_space<vmem>>, %arg3: memref<1x12xf32, #tpu.memory_space<vmem>>, %arg4: memref<1x12xf32, #tpu.memory_space<vmem>>, %arg5: memref<1x8x8x12xf32, #tpu.memory_space<vmem>>) attributes {dimension_semantics = [#tpu.dimension_semantics<parallel>], iteration_bounds = array<i64: 2>, scalar_prefetch = 0 : i64, scratch_operands = 0 : i64, tpu.core_type = #tpu.core_type<tc>, window_params = [{transform_indices = @transform_0, window_bounds = array<i64: 1, 8, 8, 8>}, {pipeline_mode = #tpu.pipeline_mode<synchronous>, transform_indices = @transform_1, window_bounds = array<i64: 8, 12>}, {pipeline_mode = #tpu.pipeline_mode<synchronous>, transform_indices = @transform_2, window_bounds = array<i64: 1, 12>}, {pipeline_mode = #tpu.pipeline_mode<synchronous>, transform_indices = @transform_3, window_bounds = array<i64: 1, 12>}, {transform_indices = @transform_4, window_bounds = array<i64: 1, 8, 8, 12>}]} {
    %c0 = arith.constant 0 : index
    %c0_0 = arith.constant 0 : index
    %c0_1 = arith.constant 0 : index
    %c0_2 = arith.constant 0 : index
    %0 = vector.load %arg1[%c0, %c0_0, %c0_1, %c0_2] : memref<1x8x8x8xf32, #tpu.memory_space<vmem>>, vector<1x8x8x8xf32>
    %1 = vector.shape_cast %0 : vector<1x8x8x8xf32> to vector<8x8x8xf32>
    %2 = vector.shape_cast %1 : vector<8x8x8xf32> to vector<64x8xf32>
    %c0_3 = arith.constant 0 : index
    %c0_4 = arith.constant 0 : index
    %3 = vector.load %arg2[%c0_3, %c0_4] : memref<8x12xf32, #tpu.memory_space<vmem>>, vector<8x12xf32>
    %cst = arith.constant dense<0.000000e+00> : vector<64x12xf32>
    %4 = tpu.matmul %2, %3, %cst {dimension_numbers = #tpu.dot_dimension_numbers<[1], [0], [0], [1], [0, 0, 1, 1], [], []>} : vector<64x8xf32>, vector<8x12xf32>, vector<64x12xf32> -> vector<64x12xf32>
    %c0_5 = arith.constant 0 : index
    %c0_6 = arith.constant 0 : index
    %5 = vector.load %arg3[%c0_5, %c0_6] : memref<1x12xf32, #tpu.memory_space<vmem>>, vector<1x12xf32>
    %6 = vector.broadcast %5 : vector<1x12xf32> to vector<64x12xf32>
    %7 = arith.mulf %4, %6 : vector<64x12xf32>
    %c0_7 = arith.constant 0 : index
    %c0_8 = arith.constant 0 : index
    %8 = vector.load %arg4[%c0_7, %c0_8] : memref<1x12xf32, #tpu.memory_space<vmem>>, vector<1x12xf32>
    %9 = vector.broadcast %8 : vector<1x12xf32> to vector<64x12xf32>
    %10 = arith.addf %7, %9 : vector<64x12xf32>
    %cst_9 = arith.constant 0.000000e+00 : f32
    %11 = vector.broadcast %cst_9 : f32 to vector<64x12xf32>
    %12 = arith.maximumf %10, %11 : vector<64x12xf32>
    %13 = vector.shape_cast %12 : vector<64x12xf32> to vector<8x8x12xf32>
    %c0_10 = arith.constant 0 : index
    %c0_11 = arith.constant 0 : index
    %c0_12 = arith.constant 0 : index
    %c0_13 = arith.constant 0 : index
    %14 = vector.load %arg5[%c0_10, %c0_11, %c0_12, %c0_13] : memref<1x8x8x12xf32, #tpu.memory_space<vmem>>, vector<1x8x8x12xf32>
    %15 = vector.shape_cast %14 : vector<1x8x8x12xf32> to vector<8x8x12xf32>
    %16 = vector.shape_cast %13 : vector<8x8x12xf32> to vector<1x8x8x12xf32>
    tpu.vector_store %arg5[%c0_10, %c0_11, %c0_12, %c0_13], %16 {strides = array<i32>} : memref<1x8x8x12xf32, #tpu.memory_space<vmem>>, vector<1x8x8x12xf32>,
    return
  }
  func.func @transform_0(%arg0: i32) -> (i32, i32, i32, i32) {
    %c0_i32 = arith.constant 0 : i32
    %c0_i32_0 = arith.constant 0 : i32
    %c0_i32_1 = arith.constant 0 : i32
    %c0_i32_2 = arith.constant 0 : i32
    return %arg0, %c0_i32, %c0_i32_0, %c0_i32_1 : i32, i32, i32, i32
  }
  func.func @transform_1(%arg0: i32) -> (i32, i32) {
    %c0_i32 = arith.constant 0 : i32
    %c0_i32_0 = arith.constant 0 : i32
    %c0_i32_1 = arith.constant 0 : i32
    return %c0_i32, %c0_i32_0 : i32, i32
  }
  func.func @transform_2(%arg0: i32) -> (i32, i32) {
    %c0_i32 = arith.constant 0 : i32
    %c0_i32_0 = arith.constant 0 : i32
    %c0_i32_1 = arith.constant 0 : i32
    return %c0_i32, %c0_i32_0 : i32, i32
  }
  func.func @transform_3(%arg0: i32) -> (i32, i32) {
    %c0_i32 = arith.constant 0 : i32
    %c0_i32_0 = arith.constant 0 : i32
    %c0_i32_1 = arith.constant 0 : i32
    return %c0_i32, %c0_i32_0 : i32, i32
  }
  func.func @transform_4(%arg0: i32) -> (i32, i32, i32, i32) {
    %c0_i32 = arith.constant 0 : i32
    %c0_i32_0 = arith.constant 0 : i32
    %c0_i32_1 = arith.constant 0 : i32
    %c0_i32_2 = arith.constant 0 : i32
    return %arg0, %c0_i32, %c0_i32_0, %c0_i32_1 : i32, i32, i32, i32
  }
}

module attributes {stable_mosaic.version = 11 : i64} {
  func.func @kernel(%arg0: i32, %arg1: memref<1x10x10x4xf32, #tpu.memory_space<vmem>>, %arg2: memref<1x10x10x4xf32, #tpu.memory_space<vmem>>, %arg3: memref<1x10x10x4xf32, #tpu.memory_space<vmem>>, %arg4: memref<1x10x10x4xf32, #tpu.memory_space<vmem>>, %arg5: memref<72x8xf32, #tpu.memory_space<vmem>>, %arg6: memref<1x8xf32, #tpu.memory_space<vmem>>, %arg7: memref<1x8x8x8xf32, #tpu.memory_space<vmem>>) attributes {dimension_semantics = [#tpu.dimension_semantics<parallel>], iteration_bounds = array<i64: 2>, scalar_prefetch = 0 : i64, scratch_operands = 0 : i64, tpu.core_type = #tpu.core_type<tc>, window_params = [{transform_indices = @transform_0, window_bounds = array<i64: 1, 10, 10, 4>}, {transform_indices = @transform_1, window_bounds = array<i64: 1, 10, 10, 4>}, {transform_indices = @transform_2, window_bounds = array<i64: 1, 10, 10, 4>}, {transform_indices = @transform_3, window_bounds = array<i64: 1, 10, 10, 4>}, {pipeline_mode = #tpu.pipeline_mode<synchronous>, transform_indices = @transform_4, window_bounds = array<i64: 72, 8>}, {pipeline_mode = #tpu.pipeline_mode<synchronous>, transform_indices = @transform_5, window_bounds = array<i64: 1, 8>}, {transform_indices = @transform_6, window_bounds = array<i64: 1, 8, 8, 8>}]} {
    %c0 = arith.constant 0 : index
    %c0_0 = arith.constant 0 : index
    %c0_1 = arith.constant 0 : index
    %c0_2 = arith.constant 0 : index
    %0 = vector.load %arg1[%c0, %c0_0, %c0_1, %c0_2] : memref<1x10x10x4xf32, #tpu.memory_space<vmem>>, vector<1x10x10x4xf32>
    %1 = vector.shape_cast %0 : vector<1x10x10x4xf32> to vector<10x10x4xf32>
    %c0_3 = arith.constant 0 : index
    %c0_4 = arith.constant 0 : index
    %c0_5 = arith.constant 0 : index
    %c0_6 = arith.constant 0 : index
    %2 = vector.load %arg2[%c0_3, %c0_4, %c0_5, %c0_6] : memref<1x10x10x4xf32, #tpu.memory_space<vmem>>, vector<1x10x10x4xf32>
    %3 = vector.shape_cast %2 : vector<1x10x10x4xf32> to vector<10x10x4xf32>
    %c0_7 = arith.constant 0 : index
    %c0_8 = arith.constant 0 : index
    %c0_9 = arith.constant 0 : index
    %c0_10 = arith.constant 0 : index
    %4 = vector.load %arg3[%c0_7, %c0_8, %c0_9, %c0_10] : memref<1x10x10x4xf32, #tpu.memory_space<vmem>>, vector<1x10x10x4xf32>
    %5 = vector.shape_cast %4 : vector<1x10x10x4xf32> to vector<10x10x4xf32>
    %c0_11 = arith.constant 0 : index
    %c0_12 = arith.constant 0 : index
    %c0_13 = arith.constant 0 : index
    %c0_14 = arith.constant 0 : index
    %6 = vector.load %arg4[%c0_11, %c0_12, %c0_13, %c0_14] : memref<1x10x10x4xf32, #tpu.memory_space<vmem>>, vector<1x10x10x4xf32>
    %7 = vector.shape_cast %6 : vector<1x10x10x4xf32> to vector<10x10x4xf32>
    %8 = vector.extract_strided_slice %7 {offsets = [0, 0, 0], sizes = [8, 8, 4], strides = [1, 1, 1]} : vector<10x10x4xf32> to vector<8x8x4xf32>
    %9 = vector.shape_cast %8 : vector<8x8x4xf32> to vector<64x4xf32>
    %10 = vector.extract_strided_slice %5 {offsets = [0, 1, 0], sizes = [8, 8, 4], strides = [1, 1, 1]} : vector<10x10x4xf32> to vector<8x8x4xf32>
    %11 = vector.shape_cast %10 : vector<8x8x4xf32> to vector<64x4xf32>
    %12 = vector.extract_strided_slice %7 {offsets = [0, 1, 0], sizes = [8, 8, 4], strides = [1, 1, 1]} : vector<10x10x4xf32> to vector<8x8x4xf32>
    %13 = vector.shape_cast %12 : vector<8x8x4xf32> to vector<64x4xf32>
    %14 = vector.extract_strided_slice %3 {offsets = [1, 0, 0], sizes = [8, 8, 4], strides = [1, 1, 1]} : vector<10x10x4xf32> to vector<8x8x4xf32>
    %15 = vector.shape_cast %14 : vector<8x8x4xf32> to vector<64x4xf32>
    %16 = vector.extract_strided_slice %1 {offsets = [1, 1, 0], sizes = [8, 8, 4], strides = [1, 1, 1]} : vector<10x10x4xf32> to vector<8x8x4xf32>
    %17 = vector.shape_cast %16 : vector<8x8x4xf32> to vector<64x4xf32>
    %18 = vector.extract_strided_slice %3 {offsets = [1, 1, 0], sizes = [8, 8, 4], strides = [1, 1, 1]} : vector<10x10x4xf32> to vector<8x8x4xf32>
    %19 = vector.shape_cast %18 : vector<8x8x4xf32> to vector<64x4xf32>
    %20 = vector.extract_strided_slice %7 {offsets = [1, 0, 0], sizes = [8, 8, 4], strides = [1, 1, 1]} : vector<10x10x4xf32> to vector<8x8x4xf32>
    %21 = vector.shape_cast %20 : vector<8x8x4xf32> to vector<64x4xf32>
    %22 = vector.extract_strided_slice %5 {offsets = [1, 1, 0], sizes = [8, 8, 4], strides = [1, 1, 1]} : vector<10x10x4xf32> to vector<8x8x4xf32>
    %23 = vector.shape_cast %22 : vector<8x8x4xf32> to vector<64x4xf32>
    %24 = vector.extract_strided_slice %7 {offsets = [1, 1, 0], sizes = [8, 8, 4], strides = [1, 1, 1]} : vector<10x10x4xf32> to vector<8x8x4xf32>
    %25 = vector.shape_cast %24 : vector<8x8x4xf32> to vector<64x4xf32>
    %26 = vector.extract_strided_slice %1 {offsets = [0, 0, 0], sizes = [8, 8, 4], strides = [1, 1, 1]} : vector<10x10x4xf32> to vector<8x8x4xf32>
    %27 = vector.shape_cast %26 : vector<8x8x4xf32> to vector<64x4xf32>
    %28 = vector.extract_strided_slice %1 {offsets = [0, 1, 0], sizes = [8, 8, 4], strides = [1, 1, 1]} : vector<10x10x4xf32> to vector<8x8x4xf32>
    %29 = vector.shape_cast %28 : vector<8x8x4xf32> to vector<64x4xf32>
    %30 = vector.extract_strided_slice %1 {offsets = [0, 2, 0], sizes = [8, 8, 4], strides = [1, 1, 1]} : vector<10x10x4xf32> to vector<8x8x4xf32>
    %31 = vector.shape_cast %30 : vector<8x8x4xf32> to vector<64x4xf32>
    %32 = vector.extract_strided_slice %1 {offsets = [1, 0, 0], sizes = [8, 8, 4], strides = [1, 1, 1]} : vector<10x10x4xf32> to vector<8x8x4xf32>
    %33 = vector.shape_cast %32 : vector<8x8x4xf32> to vector<64x4xf32>
    %34 = vector.extract_strided_slice %1 {offsets = [1, 1, 0], sizes = [8, 8, 4], strides = [1, 1, 1]} : vector<10x10x4xf32> to vector<8x8x4xf32>
    %35 = vector.shape_cast %34 : vector<8x8x4xf32> to vector<64x4xf32>
    %36 = vector.extract_strided_slice %1 {offsets = [1, 2, 0], sizes = [8, 8, 4], strides = [1, 1, 1]} : vector<10x10x4xf32> to vector<8x8x4xf32>
    %37 = vector.shape_cast %36 : vector<8x8x4xf32> to vector<64x4xf32>
    %38 = vector.extract_strided_slice %1 {offsets = [2, 0, 0], sizes = [8, 8, 4], strides = [1, 1, 1]} : vector<10x10x4xf32> to vector<8x8x4xf32>
    %39 = vector.shape_cast %38 : vector<8x8x4xf32> to vector<64x4xf32>
    %40 = vector.extract_strided_slice %1 {offsets = [2, 1, 0], sizes = [8, 8, 4], strides = [1, 1, 1]} : vector<10x10x4xf32> to vector<8x8x4xf32>
    %41 = vector.shape_cast %40 : vector<8x8x4xf32> to vector<64x4xf32>
    %42 = vector.extract_strided_slice %1 {offsets = [2, 2, 0], sizes = [8, 8, 4], strides = [1, 1, 1]} : vector<10x10x4xf32> to vector<8x8x4xf32>
    %43 = vector.shape_cast %42 : vector<8x8x4xf32> to vector<64x4xf32>
    %44 = tpu.concatenate %9, %11, %13, %15, %17, %19, %21, %23, %25, %27, %29, %31, %33, %35, %37, %39 in 1 : vector<64x4xf32>, vector<64x4xf32>, vector<64x4xf32>, vector<64x4xf32>, vector<64x4xf32>, vector<64x4xf32>, vector<64x4xf32>, vector<64x4xf32>, vector<64x4xf32>, vector<64x4xf32>, vector<64x4xf32>, vector<64x4xf32>, vector<64x4xf32>, vector<64x4xf32>, vector<64x4xf32>, vector<64x4xf32> -> vector<64x64xf32>
    %45 = tpu.concatenate %41, %43 in 1 : vector<64x4xf32>, vector<64x4xf32> -> vector<64x8xf32>
    %46 = tpu.concatenate %44, %45 in 1 : vector<64x64xf32>, vector<64x8xf32> -> vector<64x72xf32>
    %c0_15 = arith.constant 0 : index
    %c0_16 = arith.constant 0 : index
    %47 = vector.load %arg5[%c0_15, %c0_16] : memref<72x8xf32, #tpu.memory_space<vmem>>, vector<72x8xf32>
    %cst = arith.constant dense<0.000000e+00> : vector<64x8xf32>
    %48 = tpu.matmul %46, %47, %cst {dimension_numbers = #tpu.dot_dimension_numbers<[1], [0], [0], [1], [0, 0, 1, 1], [], []>} : vector<64x72xf32>, vector<72x8xf32>, vector<64x8xf32> -> vector<64x8xf32>
    %c0_17 = arith.constant 0 : index
    %c0_18 = arith.constant 0 : index
    %49 = vector.load %arg6[%c0_17, %c0_18] : memref<1x8xf32, #tpu.memory_space<vmem>>, vector<1x8xf32>
    %50 = vector.broadcast %49 : vector<1x8xf32> to vector<64x8xf32>
    %51 = arith.addf %48, %50 : vector<64x8xf32>
    %cst_19 = arith.constant 0.000000e+00 : f32
    %52 = vector.broadcast %cst_19 : f32 to vector<64x8xf32>
    %53 = arith.maximumf %51, %52 : vector<64x8xf32>
    %54 = vector.shape_cast %53 : vector<64x8xf32> to vector<8x8x8xf32>
    %c0_20 = arith.constant 0 : index
    %c0_21 = arith.constant 0 : index
    %c0_22 = arith.constant 0 : index
    %c0_23 = arith.constant 0 : index
    %55 = vector.load %arg7[%c0_20, %c0_21, %c0_22, %c0_23] : memref<1x8x8x8xf32, #tpu.memory_space<vmem>>, vector<1x8x8x8xf32>
    %56 = vector.shape_cast %55 : vector<1x8x8x8xf32> to vector<8x8x8xf32>
    %57 = vector.shape_cast %54 : vector<8x8x8xf32> to vector<1x8x8x8xf32>
    tpu.vector_store %arg7[%c0_20, %c0_21, %c0_22, %c0_23], %57 {strides = array<i32>} : memref<1x8x8x8xf32, #tpu.memory_space<vmem>>, vector<1x8x8x8xf32>,
    return
  }
  func.func @transform_0(%arg0: i32) -> (i32, i32, i32, i32) {
    %c0_i32 = arith.constant 0 : i32
    %c0_i32_0 = arith.constant 0 : i32
    %c0_i32_1 = arith.constant 0 : i32
    %c0_i32_2 = arith.constant 0 : i32
    return %arg0, %c0_i32, %c0_i32_0, %c0_i32_1 : i32, i32, i32, i32
  }
  func.func @transform_1(%arg0: i32) -> (i32, i32, i32, i32) {
    %c0_i32 = arith.constant 0 : i32
    %c0_i32_0 = arith.constant 0 : i32
    %c0_i32_1 = arith.constant 0 : i32
    %c0_i32_2 = arith.constant 0 : i32
    return %arg0, %c0_i32, %c0_i32_0, %c0_i32_1 : i32, i32, i32, i32
  }
  func.func @transform_2(%arg0: i32) -> (i32, i32, i32, i32) {
    %c0_i32 = arith.constant 0 : i32
    %c0_i32_0 = arith.constant 0 : i32
    %c0_i32_1 = arith.constant 0 : i32
    %c0_i32_2 = arith.constant 0 : i32
    return %arg0, %c0_i32, %c0_i32_0, %c0_i32_1 : i32, i32, i32, i32
  }
  func.func @transform_3(%arg0: i32) -> (i32, i32, i32, i32) {
    %c0_i32 = arith.constant 0 : i32
    %c0_i32_0 = arith.constant 0 : i32
    %c0_i32_1 = arith.constant 0 : i32
    %c0_i32_2 = arith.constant 0 : i32
    return %arg0, %c0_i32, %c0_i32_0, %c0_i32_1 : i32, i32, i32, i32
  }
  func.func @transform_4(%arg0: i32) -> (i32, i32) {
    %c0_i32 = arith.constant 0 : i32
    %c0_i32_0 = arith.constant 0 : i32
    %c0_i32_1 = arith.constant 0 : i32
    return %c0_i32, %c0_i32_0 : i32, i32
  }
  func.func @transform_5(%arg0: i32) -> (i32, i32) {
    %c0_i32 = arith.constant 0 : i32
    %c0_i32_0 = arith.constant 0 : i32
    %c0_i32_1 = arith.constant 0 : i32
    return %c0_i32, %c0_i32_0 : i32, i32
  }
  func.func @transform_6(%arg0: i32) -> (i32, i32, i32, i32) {
    %c0_i32 = arith.constant 0 : i32
    %c0_i32_0 = arith.constant 0 : i32
    %c0_i32_1 = arith.constant 0 : i32
    %c0_i32_2 = arith.constant 0 : i32
    return %arg0, %c0_i32, %c0_i32_0, %c0_i32_1 : i32, i32, i32, i32
  }
}

module attributes {stable_mosaic.version = 11 : i64} {
  func.func @_res2chain_kernel(%arg0: i32, %arg1: memref<1x8x8x12xf32, #tpu.memory_space<vmem>>, %arg2: memref<3x27x3xf32, #tpu.memory_space<vmem>>, %arg3: memref<3x1x3xf32, #tpu.memory_space<vmem>>, %arg4: memref<3x1x3xf32, #tpu.memory_space<vmem>>, %arg5: memref<1x8x8x12xf32, #tpu.memory_space<vmem>>) attributes {dimension_semantics = [#tpu.dimension_semantics<parallel>], iteration_bounds = array<i64: 2>, scalar_prefetch = 0 : i64, scratch_operands = 0 : i64, tpu.core_type = #tpu.core_type<tc>, window_params = [{transform_indices = @transform_0, window_bounds = array<i64: 1, 8, 8, 12>}, {pipeline_mode = #tpu.pipeline_mode<synchronous>, transform_indices = @transform_1, window_bounds = array<i64: 3, 27, 3>}, {pipeline_mode = #tpu.pipeline_mode<synchronous>, transform_indices = @transform_2, window_bounds = array<i64: 3, 1, 3>}, {pipeline_mode = #tpu.pipeline_mode<synchronous>, transform_indices = @transform_3, window_bounds = array<i64: 3, 1, 3>}, {transform_indices = @transform_4, window_bounds = array<i64: 1, 8, 8, 12>}]} {
    %c0 = arith.constant 0 : index
    %c0_0 = arith.constant 0 : index
    %c0_1 = arith.constant 0 : index
    %c0_2 = arith.constant 0 : index
    %0 = vector.load %arg1[%c0, %c0_0, %c0_1, %c0_2] : memref<1x8x8x12xf32, #tpu.memory_space<vmem>>, vector<1x8x8x12xf32>
    %1 = vector.shape_cast %0 : vector<1x8x8x12xf32> to vector<8x8x12xf32>
    %2 = vector.extract_strided_slice %1 {offsets = [0, 0, 0], sizes = [8, 8, 3], strides = [1, 1, 1]} : vector<8x8x12xf32> to vector<8x8x3xf32>
    %cst = arith.constant 0.000000e+00 : f32
    %3 = vector.broadcast %cst : f32 to vector<1x8x3xf32>
    %4 = tpu.concatenate %3, %2, %3 in 0 : vector<1x8x3xf32>, vector<8x8x3xf32>, vector<1x8x3xf32> -> vector<10x8x3xf32>
    %cst_3 = arith.constant 0.000000e+00 : f32
    %5 = vector.broadcast %cst_3 : f32 to vector<10x1x3xf32>
    %6 = tpu.concatenate %5, %4, %5 in 1 : vector<10x1x3xf32>, vector<10x8x3xf32>, vector<10x1x3xf32> -> vector<10x10x3xf32>
    %7 = vector.extract_strided_slice %6 {offsets = [0, 0, 0], sizes = [8, 8, 3], strides = [1, 1, 1]} : vector<10x10x3xf32> to vector<8x8x3xf32>
    %8 = vector.shape_cast %7 : vector<8x8x3xf32> to vector<64x3xf32>
    %9 = vector.extract_strided_slice %6 {offsets = [0, 1, 0], sizes = [8, 8, 3], strides = [1, 1, 1]} : vector<10x10x3xf32> to vector<8x8x3xf32>
    %10 = vector.shape_cast %9 : vector<8x8x3xf32> to vector<64x3xf32>
    %11 = vector.extract_strided_slice %6 {offsets = [0, 2, 0], sizes = [8, 8, 3], strides = [1, 1, 1]} : vector<10x10x3xf32> to vector<8x8x3xf32>
    %12 = vector.shape_cast %11 : vector<8x8x3xf32> to vector<64x3xf32>
    %13 = vector.extract_strided_slice %6 {offsets = [1, 0, 0], sizes = [8, 8, 3], strides = [1, 1, 1]} : vector<10x10x3xf32> to vector<8x8x3xf32>
    %14 = vector.shape_cast %13 : vector<8x8x3xf32> to vector<64x3xf32>
    %15 = vector.extract_strided_slice %6 {offsets = [1, 1, 0], sizes = [8, 8, 3], strides = [1, 1, 1]} : vector<10x10x3xf32> to vector<8x8x3xf32>
    %16 = vector.shape_cast %15 : vector<8x8x3xf32> to vector<64x3xf32>
    %17 = vector.extract_strided_slice %6 {offsets = [1, 2, 0], sizes = [8, 8, 3], strides = [1, 1, 1]} : vector<10x10x3xf32> to vector<8x8x3xf32>
    %18 = vector.shape_cast %17 : vector<8x8x3xf32> to vector<64x3xf32>
    %19 = vector.extract_strided_slice %6 {offsets = [2, 0, 0], sizes = [8, 8, 3], strides = [1, 1, 1]} : vector<10x10x3xf32> to vector<8x8x3xf32>
    %20 = vector.shape_cast %19 : vector<8x8x3xf32> to vector<64x3xf32>
    %21 = vector.extract_strided_slice %6 {offsets = [2, 1, 0], sizes = [8, 8, 3], strides = [1, 1, 1]} : vector<10x10x3xf32> to vector<8x8x3xf32>
    %22 = vector.shape_cast %21 : vector<8x8x3xf32> to vector<64x3xf32>
    %23 = vector.extract_strided_slice %6 {offsets = [2, 2, 0], sizes = [8, 8, 3], strides = [1, 1, 1]} : vector<10x10x3xf32> to vector<8x8x3xf32>
    %24 = vector.shape_cast %23 : vector<8x8x3xf32> to vector<64x3xf32>
    %25 = tpu.concatenate %8, %10, %12, %14, %16, %18, %20, %22, %24 in 1 : vector<64x3xf32>, vector<64x3xf32>, vector<64x3xf32>, vector<64x3xf32>, vector<64x3xf32>, vector<64x3xf32>, vector<64x3xf32>, vector<64x3xf32>, vector<64x3xf32> -> vector<64x27xf32>
    %c0_4 = arith.constant 0 : index
    %c0_5 = arith.constant 0 : index
    %c0_6 = arith.constant 0 : index
    %26 = vector.load %arg2[%c0_4, %c0_5, %c0_6] : memref<3x27x3xf32, #tpu.memory_space<vmem>>, vector<1x27x3xf32>
    %27 = vector.shape_cast %26 : vector<1x27x3xf32> to vector<27x3xf32>
    %cst_7 = arith.constant dense<0.000000e+00> : vector<64x3xf32>
    %28 = tpu.matmul %25, %27, %cst_7 {dimension_numbers = #tpu.dot_dimension_numbers<[1], [0], [0], [1], [0, 0, 1, 1], [], []>} : vector<64x27xf32>, vector<27x3xf32>, vector<64x3xf32> -> vector<64x3xf32>
    %c0_8 = arith.constant 0 : index
    %c0_9 = arith.constant 0 : index
    %c0_10 = arith.constant 0 : index
    %29 = vector.load %arg3[%c0_8, %c0_9, %c0_10] : memref<3x1x3xf32, #tpu.memory_space<vmem>>, vector<1x1x3xf32>
    %30 = vector.shape_cast %29 : vector<1x1x3xf32> to vector<1x3xf32>
    %31 = vector.broadcast %30 : vector<1x3xf32> to vector<64x3xf32>
    %32 = arith.mulf %28, %31 : vector<64x3xf32>
    %c0_11 = arith.constant 0 : index
    %c0_12 = arith.constant 0 : index
    %c0_13 = arith.constant 0 : index
    %33 = vector.load %arg4[%c0_11, %c0_12, %c0_13] : memref<3x1x3xf32, #tpu.memory_space<vmem>>, vector<1x1x3xf32>
    %34 = vector.shape_cast %33 : vector<1x1x3xf32> to vector<1x3xf32>
    %35 = vector.broadcast %34 : vector<1x3xf32> to vector<64x3xf32>
    %36 = arith.addf %32, %35 : vector<64x3xf32>
    %cst_14 = arith.constant 0.000000e+00 : f32
    %37 = vector.broadcast %cst_14 : f32 to vector<64x3xf32>
    %38 = arith.maximumf %36, %37 : vector<64x3xf32>
    %39 = vector.shape_cast %38 : vector<64x3xf32> to vector<8x8x3xf32>
    %40 = vector.extract_strided_slice %1 {offsets = [0, 0, 3], sizes = [8, 8, 3], strides = [1, 1, 1]} : vector<8x8x12xf32> to vector<8x8x3xf32>
    %41 = arith.addf %40, %39 : vector<8x8x3xf32>
    %cst_15 = arith.constant 0.000000e+00 : f32
    %42 = vector.broadcast %cst_15 : f32 to vector<1x8x3xf32>
    %43 = tpu.concatenate %42, %41, %42 in 0 : vector<1x8x3xf32>, vector<8x8x3xf32>, vector<1x8x3xf32> -> vector<10x8x3xf32>
    %cst_16 = arith.constant 0.000000e+00 : f32
    %44 = vector.broadcast %cst_16 : f32 to vector<10x1x3xf32>
    %45 = tpu.concatenate %44, %43, %44 in 1 : vector<10x1x3xf32>, vector<10x8x3xf32>, vector<10x1x3xf32> -> vector<10x10x3xf32>
    %46 = vector.extract_strided_slice %45 {offsets = [0, 0, 0], sizes = [8, 8, 3], strides = [1, 1, 1]} : vector<10x10x3xf32> to vector<8x8x3xf32>
    %47 = vector.shape_cast %46 : vector<8x8x3xf32> to vector<64x3xf32>
    %48 = vector.extract_strided_slice %45 {offsets = [0, 1, 0], sizes = [8, 8, 3], strides = [1, 1, 1]} : vector<10x10x3xf32> to vector<8x8x3xf32>
    %49 = vector.shape_cast %48 : vector<8x8x3xf32> to vector<64x3xf32>
    %50 = vector.extract_strided_slice %45 {offsets = [0, 2, 0], sizes = [8, 8, 3], strides = [1, 1, 1]} : vector<10x10x3xf32> to vector<8x8x3xf32>
    %51 = vector.shape_cast %50 : vector<8x8x3xf32> to vector<64x3xf32>
    %52 = vector.extract_strided_slice %45 {offsets = [1, 0, 0], sizes = [8, 8, 3], strides = [1, 1, 1]} : vector<10x10x3xf32> to vector<8x8x3xf32>
    %53 = vector.shape_cast %52 : vector<8x8x3xf32> to vector<64x3xf32>
    %54 = vector.extract_strided_slice %45 {offsets = [1, 1, 0], sizes = [8, 8, 3], strides = [1, 1, 1]} : vector<10x10x3xf32> to vector<8x8x3xf32>
    %55 = vector.shape_cast %54 : vector<8x8x3xf32> to vector<64x3xf32>
    %56 = vector.extract_strided_slice %45 {offsets = [1, 2, 0], sizes = [8, 8, 3], strides = [1, 1, 1]} : vector<10x10x3xf32> to vector<8x8x3xf32>
    %57 = vector.shape_cast %56 : vector<8x8x3xf32> to vector<64x3xf32>
    %58 = vector.extract_strided_slice %45 {offsets = [2, 0, 0], sizes = [8, 8, 3], strides = [1, 1, 1]} : vector<10x10x3xf32> to vector<8x8x3xf32>
    %59 = vector.shape_cast %58 : vector<8x8x3xf32> to vector<64x3xf32>
    %60 = vector.extract_strided_slice %45 {offsets = [2, 1, 0], sizes = [8, 8, 3], strides = [1, 1, 1]} : vector<10x10x3xf32> to vector<8x8x3xf32>
    %61 = vector.shape_cast %60 : vector<8x8x3xf32> to vector<64x3xf32>
    %62 = vector.extract_strided_slice %45 {offsets = [2, 2, 0], sizes = [8, 8, 3], strides = [1, 1, 1]} : vector<10x10x3xf32> to vector<8x8x3xf32>
    %63 = vector.shape_cast %62 : vector<8x8x3xf32> to vector<64x3xf32>
    %64 = tpu.concatenate %47, %49, %51, %53, %55, %57, %59, %61, %63 in 1 : vector<64x3xf32>, vector<64x3xf32>, vector<64x3xf32>, vector<64x3xf32>, vector<64x3xf32>, vector<64x3xf32>, vector<64x3xf32>, vector<64x3xf32>, vector<64x3xf32> -> vector<64x27xf32>
    %c1 = arith.constant 1 : index
    %c0_17 = arith.constant 0 : index
    %c0_18 = arith.constant 0 : index
    %65 = vector.load %arg2[%c1, %c0_17, %c0_18] : memref<3x27x3xf32, #tpu.memory_space<vmem>>, vector<1x27x3xf32>
    %66 = vector.shape_cast %65 : vector<1x27x3xf32> to vector<27x3xf32>
    %cst_19 = arith.constant dense<0.000000e+00> : vector<64x3xf32>
    %67 = tpu.matmul %64, %66, %cst_19 {dimension_numbers = #tpu.dot_dimension_numbers<[1], [0], [0], [1], [0, 0, 1, 1], [], []>} : vector<64x27xf32>, vector<27x3xf32>, vector<64x3xf32> -> vector<64x3xf32>
    %c1_20 = arith.constant 1 : index
    %c0_21 = arith.constant 0 : index
    %c0_22 = arith.constant 0 : index
    %68 = vector.load %arg3[%c1_20, %c0_21, %c0_22] : memref<3x1x3xf32, #tpu.memory_space<vmem>>, vector<1x1x3xf32>
    %69 = vector.shape_cast %68 : vector<1x1x3xf32> to vector<1x3xf32>
    %70 = vector.broadcast %69 : vector<1x3xf32> to vector<64x3xf32>
    %71 = arith.mulf %67, %70 : vector<64x3xf32>
    %c1_23 = arith.constant 1 : index
    %c0_24 = arith.constant 0 : index
    %c0_25 = arith.constant 0 : index
    %72 = vector.load %arg4[%c1_23, %c0_24, %c0_25] : memref<3x1x3xf32, #tpu.memory_space<vmem>>, vector<1x1x3xf32>
    %73 = vector.shape_cast %72 : vector<1x1x3xf32> to vector<1x3xf32>
    %74 = vector.broadcast %73 : vector<1x3xf32> to vector<64x3xf32>
    %75 = arith.addf %71, %74 : vector<64x3xf32>
    %cst_26 = arith.constant 0.000000e+00 : f32
    %76 = vector.broadcast %cst_26 : f32 to vector<64x3xf32>
    %77 = arith.maximumf %75, %76 : vector<64x3xf32>
    %78 = vector.shape_cast %77 : vector<64x3xf32> to vector<8x8x3xf32>
    %79 = vector.extract_strided_slice %1 {offsets = [0, 0, 6], sizes = [8, 8, 3], strides = [1, 1, 1]} : vector<8x8x12xf32> to vector<8x8x3xf32>
    %80 = arith.addf %79, %78 : vector<8x8x3xf32>
    %cst_27 = arith.constant 0.000000e+00 : f32
    %81 = vector.broadcast %cst_27 : f32 to vector<1x8x3xf32>
    %82 = tpu.concatenate %81, %80, %81 in 0 : vector<1x8x3xf32>, vector<8x8x3xf32>, vector<1x8x3xf32> -> vector<10x8x3xf32>
    %cst_28 = arith.constant 0.000000e+00 : f32
    %83 = vector.broadcast %cst_28 : f32 to vector<10x1x3xf32>
    %84 = tpu.concatenate %83, %82, %83 in 1 : vector<10x1x3xf32>, vector<10x8x3xf32>, vector<10x1x3xf32> -> vector<10x10x3xf32>
    %85 = vector.extract_strided_slice %84 {offsets = [0, 0, 0], sizes = [8, 8, 3], strides = [1, 1, 1]} : vector<10x10x3xf32> to vector<8x8x3xf32>
    %86 = vector.shape_cast %85 : vector<8x8x3xf32> to vector<64x3xf32>
    %87 = vector.extract_strided_slice %84 {offsets = [0, 1, 0], sizes = [8, 8, 3], strides = [1, 1, 1]} : vector<10x10x3xf32> to vector<8x8x3xf32>
    %88 = vector.shape_cast %87 : vector<8x8x3xf32> to vector<64x3xf32>
    %89 = vector.extract_strided_slice %84 {offsets = [0, 2, 0], sizes = [8, 8, 3], strides = [1, 1, 1]} : vector<10x10x3xf32> to vector<8x8x3xf32>
    %90 = vector.shape_cast %89 : vector<8x8x3xf32> to vector<64x3xf32>
    %91 = vector.extract_strided_slice %84 {offsets = [1, 0, 0], sizes = [8, 8, 3], strides = [1, 1, 1]} : vector<10x10x3xf32> to vector<8x8x3xf32>
    %92 = vector.shape_cast %91 : vector<8x8x3xf32> to vector<64x3xf32>
    %93 = vector.extract_strided_slice %84 {offsets = [1, 1, 0], sizes = [8, 8, 3], strides = [1, 1, 1]} : vector<10x10x3xf32> to vector<8x8x3xf32>
    %94 = vector.shape_cast %93 : vector<8x8x3xf32> to vector<64x3xf32>
    %95 = vector.extract_strided_slice %84 {offsets = [1, 2, 0], sizes = [8, 8, 3], strides = [1, 1, 1]} : vector<10x10x3xf32> to vector<8x8x3xf32>
    %96 = vector.shape_cast %95 : vector<8x8x3xf32> to vector<64x3xf32>
    %97 = vector.extract_strided_slice %84 {offsets = [2, 0, 0], sizes = [8, 8, 3], strides = [1, 1, 1]} : vector<10x10x3xf32> to vector<8x8x3xf32>
    %98 = vector.shape_cast %97 : vector<8x8x3xf32> to vector<64x3xf32>
    %99 = vector.extract_strided_slice %84 {offsets = [2, 1, 0], sizes = [8, 8, 3], strides = [1, 1, 1]} : vector<10x10x3xf32> to vector<8x8x3xf32>
    %100 = vector.shape_cast %99 : vector<8x8x3xf32> to vector<64x3xf32>
    %101 = vector.extract_strided_slice %84 {offsets = [2, 2, 0], sizes = [8, 8, 3], strides = [1, 1, 1]} : vector<10x10x3xf32> to vector<8x8x3xf32>
    %102 = vector.shape_cast %101 : vector<8x8x3xf32> to vector<64x3xf32>
    %103 = tpu.concatenate %86, %88, %90, %92, %94, %96, %98, %100, %102 in 1 : vector<64x3xf32>, vector<64x3xf32>, vector<64x3xf32>, vector<64x3xf32>, vector<64x3xf32>, vector<64x3xf32>, vector<64x3xf32>, vector<64x3xf32>, vector<64x3xf32> -> vector<64x27xf32>
    %c2 = arith.constant 2 : index
    %c0_29 = arith.constant 0 : index
    %c0_30 = arith.constant 0 : index
    %104 = vector.load %arg2[%c2, %c0_29, %c0_30] : memref<3x27x3xf32, #tpu.memory_space<vmem>>, vector<1x27x3xf32>
    %105 = vector.shape_cast %104 : vector<1x27x3xf32> to vector<27x3xf32>
    %cst_31 = arith.constant dense<0.000000e+00> : vector<64x3xf32>
    %106 = tpu.matmul %103, %105, %cst_31 {dimension_numbers = #tpu.dot_dimension_numbers<[1], [0], [0], [1], [0, 0, 1, 1], [], []>} : vector<64x27xf32>, vector<27x3xf32>, vector<64x3xf32> -> vector<64x3xf32>
    %c2_32 = arith.constant 2 : index
    %c0_33 = arith.constant 0 : index
    %c0_34 = arith.constant 0 : index
    %107 = vector.load %arg3[%c2_32, %c0_33, %c0_34] : memref<3x1x3xf32, #tpu.memory_space<vmem>>, vector<1x1x3xf32>
    %108 = vector.shape_cast %107 : vector<1x1x3xf32> to vector<1x3xf32>
    %109 = vector.broadcast %108 : vector<1x3xf32> to vector<64x3xf32>
    %110 = arith.mulf %106, %109 : vector<64x3xf32>
    %c2_35 = arith.constant 2 : index
    %c0_36 = arith.constant 0 : index
    %c0_37 = arith.constant 0 : index
    %111 = vector.load %arg4[%c2_35, %c0_36, %c0_37] : memref<3x1x3xf32, #tpu.memory_space<vmem>>, vector<1x1x3xf32>
    %112 = vector.shape_cast %111 : vector<1x1x3xf32> to vector<1x3xf32>
    %113 = vector.broadcast %112 : vector<1x3xf32> to vector<64x3xf32>
    %114 = arith.addf %110, %113 : vector<64x3xf32>
    %cst_38 = arith.constant 0.000000e+00 : f32
    %115 = vector.broadcast %cst_38 : f32 to vector<64x3xf32>
    %116 = arith.maximumf %114, %115 : vector<64x3xf32>
    %117 = vector.shape_cast %116 : vector<64x3xf32> to vector<8x8x3xf32>
    %118 = vector.extract_strided_slice %1 {offsets = [0, 0, 9], sizes = [8, 8, 3], strides = [1, 1, 1]} : vector<8x8x12xf32> to vector<8x8x3xf32>
    %119 = tpu.concatenate %39, %78, %117, %118 in 2 : vector<8x8x3xf32>, vector<8x8x3xf32>, vector<8x8x3xf32>, vector<8x8x3xf32> -> vector<8x8x12xf32>
    %c0_39 = arith.constant 0 : index
    %c0_40 = arith.constant 0 : index
    %c0_41 = arith.constant 0 : index
    %c0_42 = arith.constant 0 : index
    %120 = vector.load %arg5[%c0_39, %c0_40, %c0_41, %c0_42] : memref<1x8x8x12xf32, #tpu.memory_space<vmem>>, vector<1x8x8x12xf32>
    %121 = vector.shape_cast %120 : vector<1x8x8x12xf32> to vector<8x8x12xf32>
    %122 = vector.shape_cast %119 : vector<8x8x12xf32> to vector<1x8x8x12xf32>
    tpu.vector_store %arg5[%c0_39, %c0_40, %c0_41, %c0_42], %122 {strides = array<i32>} : memref<1x8x8x12xf32, #tpu.memory_space<vmem>>, vector<1x8x8x12xf32>,
    return
  }
  func.func @transform_0(%arg0: i32) -> (i32, i32, i32, i32) {
    %c0_i32 = arith.constant 0 : i32
    %c0_i32_0 = arith.constant 0 : i32
    %c0_i32_1 = arith.constant 0 : i32
    %c0_i32_2 = arith.constant 0 : i32
    return %arg0, %c0_i32, %c0_i32_0, %c0_i32_1 : i32, i32, i32, i32
  }
  func.func @transform_1(%arg0: i32) -> (i32, i32, i32) {
    %c0_i32 = arith.constant 0 : i32
    %c0_i32_0 = arith.constant 0 : i32
    %c0_i32_1 = arith.constant 0 : i32
    %c0_i32_2 = arith.constant 0 : i32
    return %c0_i32, %c0_i32_0, %c0_i32_1 : i32, i32, i32
  }
  func.func @transform_2(%arg0: i32) -> (i32, i32, i32) {
    %c0_i32 = arith.constant 0 : i32
    %c0_i32_0 = arith.constant 0 : i32
    %c0_i32_1 = arith.constant 0 : i32
    %c0_i32_2 = arith.constant 0 : i32
    return %c0_i32, %c0_i32_0, %c0_i32_1 : i32, i32, i32
  }
  func.func @transform_3(%arg0: i32) -> (i32, i32, i32) {
    %c0_i32 = arith.constant 0 : i32
    %c0_i32_0 = arith.constant 0 : i32
    %c0_i32_1 = arith.constant 0 : i32
    %c0_i32_2 = arith.constant 0 : i32
    return %c0_i32, %c0_i32_0, %c0_i32_1 : i32, i32, i32
  }
  func.func @transform_4(%arg0: i32) -> (i32, i32, i32, i32) {
    %c0_i32 = arith.constant 0 : i32
    %c0_i32_0 = arith.constant 0 : i32
    %c0_i32_1 = arith.constant 0 : i32
    %c0_i32_2 = arith.constant 0 : i32
    return %arg0, %c0_i32, %c0_i32_0, %c0_i32_1 : i32, i32, i32, i32
  }
}

module attributes {stable_mosaic.version = 11 : i64} {
  func.func @_conv3x3_affine_relu_kernel(%arg0: i32, %arg1: memref<1x8x8x8xf32, #tpu.memory_space<vmem>>, %arg2: memref<72x32xf32, #tpu.memory_space<vmem>>, %arg3: memref<1x32xf32, #tpu.memory_space<vmem>>, %arg4: memref<1x32xf32, #tpu.memory_space<vmem>>, %arg5: memref<1x8x8x32xf32, #tpu.memory_space<vmem>>) attributes {dimension_semantics = [#tpu.dimension_semantics<parallel>], iteration_bounds = array<i64: 2>, scalar_prefetch = 0 : i64, scratch_operands = 0 : i64, tpu.core_type = #tpu.core_type<tc>, window_params = [{transform_indices = @transform_0, window_bounds = array<i64: 1, 8, 8, 8>}, {pipeline_mode = #tpu.pipeline_mode<synchronous>, transform_indices = @transform_1, window_bounds = array<i64: 72, 32>}, {pipeline_mode = #tpu.pipeline_mode<synchronous>, transform_indices = @transform_2, window_bounds = array<i64: 1, 32>}, {pipeline_mode = #tpu.pipeline_mode<synchronous>, transform_indices = @transform_3, window_bounds = array<i64: 1, 32>}, {transform_indices = @transform_4, window_bounds = array<i64: 1, 8, 8, 32>}]} {
    %c0 = arith.constant 0 : index
    %c0_0 = arith.constant 0 : index
    %c0_1 = arith.constant 0 : index
    %c0_2 = arith.constant 0 : index
    %0 = vector.load %arg1[%c0, %c0_0, %c0_1, %c0_2] : memref<1x8x8x8xf32, #tpu.memory_space<vmem>>, vector<1x8x8x8xf32>
    %1 = vector.shape_cast %0 : vector<1x8x8x8xf32> to vector<8x8x8xf32>
    %cst = arith.constant 0.000000e+00 : f32
    %2 = vector.broadcast %cst : f32 to vector<1x8x8xf32>
    %3 = tpu.concatenate %2, %1, %2 in 0 : vector<1x8x8xf32>, vector<8x8x8xf32>, vector<1x8x8xf32> -> vector<10x8x8xf32>
    %cst_3 = arith.constant 0.000000e+00 : f32
    %4 = vector.broadcast %cst_3 : f32 to vector<10x1x8xf32>
    %5 = tpu.concatenate %4, %3, %4 in 1 : vector<10x1x8xf32>, vector<10x8x8xf32>, vector<10x1x8xf32> -> vector<10x10x8xf32>
    %6 = vector.extract_strided_slice %5 {offsets = [0, 0, 0], sizes = [8, 8, 8], strides = [1, 1, 1]} : vector<10x10x8xf32> to vector<8x8x8xf32>
    %7 = vector.shape_cast %6 : vector<8x8x8xf32> to vector<64x8xf32>
    %8 = vector.extract_strided_slice %5 {offsets = [0, 1, 0], sizes = [8, 8, 8], strides = [1, 1, 1]} : vector<10x10x8xf32> to vector<8x8x8xf32>
    %9 = vector.shape_cast %8 : vector<8x8x8xf32> to vector<64x8xf32>
    %10 = vector.extract_strided_slice %5 {offsets = [0, 2, 0], sizes = [8, 8, 8], strides = [1, 1, 1]} : vector<10x10x8xf32> to vector<8x8x8xf32>
    %11 = vector.shape_cast %10 : vector<8x8x8xf32> to vector<64x8xf32>
    %12 = vector.extract_strided_slice %5 {offsets = [1, 0, 0], sizes = [8, 8, 8], strides = [1, 1, 1]} : vector<10x10x8xf32> to vector<8x8x8xf32>
    %13 = vector.shape_cast %12 : vector<8x8x8xf32> to vector<64x8xf32>
    %14 = vector.extract_strided_slice %5 {offsets = [1, 1, 0], sizes = [8, 8, 8], strides = [1, 1, 1]} : vector<10x10x8xf32> to vector<8x8x8xf32>
    %15 = vector.shape_cast %14 : vector<8x8x8xf32> to vector<64x8xf32>
    %16 = vector.extract_strided_slice %5 {offsets = [1, 2, 0], sizes = [8, 8, 8], strides = [1, 1, 1]} : vector<10x10x8xf32> to vector<8x8x8xf32>
    %17 = vector.shape_cast %16 : vector<8x8x8xf32> to vector<64x8xf32>
    %18 = vector.extract_strided_slice %5 {offsets = [2, 0, 0], sizes = [8, 8, 8], strides = [1, 1, 1]} : vector<10x10x8xf32> to vector<8x8x8xf32>
    %19 = vector.shape_cast %18 : vector<8x8x8xf32> to vector<64x8xf32>
    %20 = vector.extract_strided_slice %5 {offsets = [2, 1, 0], sizes = [8, 8, 8], strides = [1, 1, 1]} : vector<10x10x8xf32> to vector<8x8x8xf32>
    %21 = vector.shape_cast %20 : vector<8x8x8xf32> to vector<64x8xf32>
    %22 = vector.extract_strided_slice %5 {offsets = [2, 2, 0], sizes = [8, 8, 8], strides = [1, 1, 1]} : vector<10x10x8xf32> to vector<8x8x8xf32>
    %23 = vector.shape_cast %22 : vector<8x8x8xf32> to vector<64x8xf32>
    %24 = tpu.concatenate %7, %9, %11, %13, %15, %17, %19, %21, %23 in 1 : vector<64x8xf32>, vector<64x8xf32>, vector<64x8xf32>, vector<64x8xf32>, vector<64x8xf32>, vector<64x8xf32>, vector<64x8xf32>, vector<64x8xf32>, vector<64x8xf32> -> vector<64x72xf32>
    %c0_4 = arith.constant 0 : index
    %c0_5 = arith.constant 0 : index
    %25 = vector.load %arg2[%c0_4, %c0_5] : memref<72x32xf32, #tpu.memory_space<vmem>>, vector<72x32xf32>
    %cst_6 = arith.constant dense<0.000000e+00> : vector<64x32xf32>
    %26 = tpu.matmul %24, %25, %cst_6 {dimension_numbers = #tpu.dot_dimension_numbers<[1], [0], [0], [1], [0, 0, 1, 1], [], []>} : vector<64x72xf32>, vector<72x32xf32>, vector<64x32xf32> -> vector<64x32xf32>
    %c0_7 = arith.constant 0 : index
    %c0_8 = arith.constant 0 : index
    %27 = vector.load %arg3[%c0_7, %c0_8] : memref<1x32xf32, #tpu.memory_space<vmem>>, vector<1x32xf32>
    %28 = vector.broadcast %27 : vector<1x32xf32> to vector<64x32xf32>
    %29 = arith.mulf %26, %28 : vector<64x32xf32>
    %c0_9 = arith.constant 0 : index
    %c0_10 = arith.constant 0 : index
    %30 = vector.load %arg4[%c0_9, %c0_10] : memref<1x32xf32, #tpu.memory_space<vmem>>, vector<1x32xf32>
    %31 = vector.broadcast %30 : vector<1x32xf32> to vector<64x32xf32>
    %32 = arith.addf %29, %31 : vector<64x32xf32>
    %cst_11 = arith.constant 0.000000e+00 : f32
    %33 = vector.broadcast %cst_11 : f32 to vector<64x32xf32>
    %34 = arith.maximumf %32, %33 : vector<64x32xf32>
    %35 = vector.shape_cast %34 : vector<64x32xf32> to vector<8x8x32xf32>
    %c0_12 = arith.constant 0 : index
    %c0_13 = arith.constant 0 : index
    %c0_14 = arith.constant 0 : index
    %c0_15 = arith.constant 0 : index
    %36 = vector.load %arg5[%c0_12, %c0_13, %c0_14, %c0_15] : memref<1x8x8x32xf32, #tpu.memory_space<vmem>>, vector<1x8x8x32xf32>
    %37 = vector.shape_cast %36 : vector<1x8x8x32xf32> to vector<8x8x32xf32>
    %38 = vector.shape_cast %35 : vector<8x8x32xf32> to vector<1x8x8x32xf32>
    tpu.vector_store %arg5[%c0_12, %c0_13, %c0_14, %c0_15], %38 {strides = array<i32>} : memref<1x8x8x32xf32, #tpu.memory_space<vmem>>, vector<1x8x8x32xf32>,
    return
  }
  func.func @transform_0(%arg0: i32) -> (i32, i32, i32, i32) {
    %c0_i32 = arith.constant 0 : i32
    %c0_i32_0 = arith.constant 0 : i32
    %c0_i32_1 = arith.constant 0 : i32
    %c0_i32_2 = arith.constant 0 : i32
    return %arg0, %c0_i32, %c0_i32_0, %c0_i32_1 : i32, i32, i32, i32
  }
  func.func @transform_1(%arg0: i32) -> (i32, i32) {
    %c0_i32 = arith.constant 0 : i32
    %c0_i32_0 = arith.constant 0 : i32
    %c0_i32_1 = arith.constant 0 : i32
    return %c0_i32, %c0_i32_0 : i32, i32
  }
  func.func @transform_2(%arg0: i32) -> (i32, i32) {
    %c0_i32 = arith.constant 0 : i32
    %c0_i32_0 = arith.constant 0 : i32
    %c0_i32_1 = arith.constant 0 : i32
    return %c0_i32, %c0_i32_0 : i32, i32
  }
  func.func @transform_3(%arg0: i32) -> (i32, i32) {
    %c0_i32 = arith.constant 0 : i32
    %c0_i32_0 = arith.constant 0 : i32
    %c0_i32_1 = arith.constant 0 : i32
    return %c0_i32, %c0_i32_0 : i32, i32
  }
  func.func @transform_4(%arg0: i32) -> (i32, i32, i32, i32) {
    %c0_i32 = arith.constant 0 : i32
    %c0_i32_0 = arith.constant 0 : i32
    %c0_i32_1 = arith.constant 0 : i32
    %c0_i32_2 = arith.constant 0 : i32
    return %arg0, %c0_i32, %c0_i32_0, %c0_i32_1 : i32, i32, i32, i32
  }
}

module attributes {stable_mosaic.version = 11 : i64} {
  func.func @_conv1x1_affine_add_relu_kernel(%arg0: i32, %arg1: memref<1x8x8x12xf32, #tpu.memory_space<vmem>>, %arg2: memref<12x32xf32, #tpu.memory_space<vmem>>, %arg3: memref<1x32xf32, #tpu.memory_space<vmem>>, %arg4: memref<1x32xf32, #tpu.memory_space<vmem>>, %arg5: memref<1x8x8x32xf32, #tpu.memory_space<vmem>>, %arg6: memref<1x8x8x32xf32, #tpu.memory_space<vmem>>) attributes {dimension_semantics = [#tpu.dimension_semantics<parallel>], iteration_bounds = array<i64: 2>, scalar_prefetch = 0 : i64, scratch_operands = 0 : i64, tpu.core_type = #tpu.core_type<tc>, window_params = [{transform_indices = @transform_0, window_bounds = array<i64: 1, 8, 8, 12>}, {pipeline_mode = #tpu.pipeline_mode<synchronous>, transform_indices = @transform_1, window_bounds = array<i64: 12, 32>}, {pipeline_mode = #tpu.pipeline_mode<synchronous>, transform_indices = @transform_2, window_bounds = array<i64: 1, 32>}, {pipeline_mode = #tpu.pipeline_mode<synchronous>, transform_indices = @transform_3, window_bounds = array<i64: 1, 32>}, {transform_indices = @transform_4, window_bounds = array<i64: 1, 8, 8, 32>}, {transform_indices = @transform_5, window_bounds = array<i64: 1, 8, 8, 32>}]} {
    %c0 = arith.constant 0 : index
    %c0_0 = arith.constant 0 : index
    %c0_1 = arith.constant 0 : index
    %c0_2 = arith.constant 0 : index
    %0 = vector.load %arg1[%c0, %c0_0, %c0_1, %c0_2] : memref<1x8x8x12xf32, #tpu.memory_space<vmem>>, vector<1x8x8x12xf32>
    %1 = vector.shape_cast %0 : vector<1x8x8x12xf32> to vector<8x8x12xf32>
    %2 = vector.shape_cast %1 : vector<8x8x12xf32> to vector<64x12xf32>
    %c0_3 = arith.constant 0 : index
    %c0_4 = arith.constant 0 : index
    %c0_5 = arith.constant 0 : index
    %c0_6 = arith.constant 0 : index
    %3 = vector.load %arg5[%c0_3, %c0_4, %c0_5, %c0_6] : memref<1x8x8x32xf32, #tpu.memory_space<vmem>>, vector<1x8x8x32xf32>
    %4 = vector.shape_cast %3 : vector<1x8x8x32xf32> to vector<8x8x32xf32>
    %5 = vector.shape_cast %4 : vector<8x8x32xf32> to vector<64x32xf32>
    %c0_7 = arith.constant 0 : index
    %c0_8 = arith.constant 0 : index
    %6 = vector.load %arg2[%c0_7, %c0_8] : memref<12x32xf32, #tpu.memory_space<vmem>>, vector<12x32xf32>
    %cst = arith.constant dense<0.000000e+00> : vector<64x32xf32>
    %7 = tpu.matmul %2, %6, %cst {dimension_numbers = #tpu.dot_dimension_numbers<[1], [0], [0], [1], [0, 0, 1, 1], [], []>} : vector<64x12xf32>, vector<12x32xf32>, vector<64x32xf32> -> vector<64x32xf32>
    %c0_9 = arith.constant 0 : index
    %c0_10 = arith.constant 0 : index
    %8 = vector.load %arg3[%c0_9, %c0_10] : memref<1x32xf32, #tpu.memory_space<vmem>>, vector<1x32xf32>
    %9 = vector.broadcast %8 : vector<1x32xf32> to vector<64x32xf32>
    %10 = arith.mulf %7, %9 : vector<64x32xf32>
    %c0_11 = arith.constant 0 : index
    %c0_12 = arith.constant 0 : index
    %11 = vector.load %arg4[%c0_11, %c0_12] : memref<1x32xf32, #tpu.memory_space<vmem>>, vector<1x32xf32>
    %12 = vector.broadcast %11 : vector<1x32xf32> to vector<64x32xf32>
    %13 = arith.addf %10, %12 : vector<64x32xf32>
    %14 = arith.addf %13, %5 : vector<64x32xf32>
    %cst_13 = arith.constant 0.000000e+00 : f32
    %15 = vector.broadcast %cst_13 : f32 to vector<64x32xf32>
    %16 = arith.maximumf %14, %15 : vector<64x32xf32>
    %17 = vector.shape_cast %16 : vector<64x32xf32> to vector<8x8x32xf32>
    %c0_14 = arith.constant 0 : index
    %c0_15 = arith.constant 0 : index
    %c0_16 = arith.constant 0 : index
    %c0_17 = arith.constant 0 : index
    %18 = vector.load %arg6[%c0_14, %c0_15, %c0_16, %c0_17] : memref<1x8x8x32xf32, #tpu.memory_space<vmem>>, vector<1x8x8x32xf32>
    %19 = vector.shape_cast %18 : vector<1x8x8x32xf32> to vector<8x8x32xf32>
    %20 = vector.shape_cast %17 : vector<8x8x32xf32> to vector<1x8x8x32xf32>
    tpu.vector_store %arg6[%c0_14, %c0_15, %c0_16, %c0_17], %20 {strides = array<i32>} : memref<1x8x8x32xf32, #tpu.memory_space<vmem>>, vector<1x8x8x32xf32>,
    return
  }
  func.func @transform_0(%arg0: i32) -> (i32, i32, i32, i32) {
    %c0_i32 = arith.constant 0 : i32
    %c0_i32_0 = arith.constant 0 : i32
    %c0_i32_1 = arith.constant 0 : i32
    %c0_i32_2 = arith.constant 0 : i32
    return %arg0, %c0_i32, %c0_i32_0, %c0_i32_1 : i32, i32, i32, i32
  }
  func.func @transform_1(%arg0: i32) -> (i32, i32) {
    %c0_i32 = arith.constant 0 : i32
    %c0_i32_0 = arith.constant 0 : i32
    %c0_i32_1 = arith.constant 0 : i32
    return %c0_i32, %c0_i32_0 : i32, i32
  }
  func.func @transform_2(%arg0: i32) -> (i32, i32) {
    %c0_i32 = arith.constant 0 : i32
    %c0_i32_0 = arith.constant 0 : i32
    %c0_i32_1 = arith.constant 0 : i32
    return %c0_i32, %c0_i32_0 : i32, i32
  }
  func.func @transform_3(%arg0: i32) -> (i32, i32) {
    %c0_i32 = arith.constant 0 : i32
    %c0_i32_0 = arith.constant 0 : i32
    %c0_i32_1 = arith.constant 0 : i32
    return %c0_i32, %c0_i32_0 : i32, i32
  }
  func.func @transform_4(%arg0: i32) -> (i32, i32, i32, i32) {
    %c0_i32 = arith.constant 0 : i32
    %c0_i32_0 = arith.constant 0 : i32
    %c0_i32_1 = arith.constant 0 : i32
    %c0_i32_2 = arith.constant 0 : i32
    return %arg0, %c0_i32, %c0_i32_0, %c0_i32_1 : i32, i32, i32, i32
  }
  func.func @transform_5(%arg0: i32) -> (i32, i32, i32, i32) {
    %c0_i32 = arith.constant 0 : i32
    %c0_i32_0 = arith.constant 0 : i32
    %c0_i32_1 = arith.constant 0 : i32
    %c0_i32_2 = arith.constant 0 : i32
    return %arg0, %c0_i32, %c0_i32_0, %c0_i32_1 : i32, i32, i32, i32
  }
}

module attributes {stable_mosaic.version = 11 : i64} {
  func.func @_conv3x3_affine_relu_kernel(%arg0: i32, %arg1: memref<1x8x8x32xf32, #tpu.memory_space<vmem>>, %arg2: memref<288x8xf32, #tpu.memory_space<vmem>>, %arg3: memref<1x8xf32, #tpu.memory_space<vmem>>, %arg4: memref<1x8xf32, #tpu.memory_space<vmem>>, %arg5: memref<1x8x8x8xf32, #tpu.memory_space<vmem>>) attributes {dimension_semantics = [#tpu.dimension_semantics<parallel>], iteration_bounds = array<i64: 2>, scalar_prefetch = 0 : i64, scratch_operands = 0 : i64, tpu.core_type = #tpu.core_type<tc>, window_params = [{transform_indices = @transform_0, window_bounds = array<i64: 1, 8, 8, 32>}, {pipeline_mode = #tpu.pipeline_mode<synchronous>, transform_indices = @transform_1, window_bounds = array<i64: 288, 8>}, {pipeline_mode = #tpu.pipeline_mode<synchronous>, transform_indices = @transform_2, window_bounds = array<i64: 1, 8>}, {pipeline_mode = #tpu.pipeline_mode<synchronous>, transform_indices = @transform_3, window_bounds = array<i64: 1, 8>}, {transform_indices = @transform_4, window_bounds = array<i64: 1, 8, 8, 8>}]} {
    %c0 = arith.constant 0 : index
    %c0_0 = arith.constant 0 : index
    %c0_1 = arith.constant 0 : index
    %c0_2 = arith.constant 0 : index
    %0 = vector.load %arg1[%c0, %c0_0, %c0_1, %c0_2] : memref<1x8x8x32xf32, #tpu.memory_space<vmem>>, vector<1x8x8x32xf32>
    %1 = vector.shape_cast %0 : vector<1x8x8x32xf32> to vector<8x8x32xf32>
    %cst = arith.constant 0.000000e+00 : f32
    %2 = vector.broadcast %cst : f32 to vector<1x8x32xf32>
    %3 = tpu.concatenate %2, %1, %2 in 0 : vector<1x8x32xf32>, vector<8x8x32xf32>, vector<1x8x32xf32> -> vector<10x8x32xf32>
    %cst_3 = arith.constant 0.000000e+00 : f32
    %4 = vector.broadcast %cst_3 : f32 to vector<10x1x32xf32>
    %5 = tpu.concatenate %4, %3, %4 in 1 : vector<10x1x32xf32>, vector<10x8x32xf32>, vector<10x1x32xf32> -> vector<10x10x32xf32>
    %6 = vector.extract_strided_slice %5 {offsets = [0, 0, 0], sizes = [8, 8, 32], strides = [1, 1, 1]} : vector<10x10x32xf32> to vector<8x8x32xf32>
    %7 = vector.shape_cast %6 : vector<8x8x32xf32> to vector<64x32xf32>
    %8 = vector.extract_strided_slice %5 {offsets = [0, 1, 0], sizes = [8, 8, 32], strides = [1, 1, 1]} : vector<10x10x32xf32> to vector<8x8x32xf32>
    %9 = vector.shape_cast %8 : vector<8x8x32xf32> to vector<64x32xf32>
    %10 = vector.extract_strided_slice %5 {offsets = [0, 2, 0], sizes = [8, 8, 32], strides = [1, 1, 1]} : vector<10x10x32xf32> to vector<8x8x32xf32>
    %11 = vector.shape_cast %10 : vector<8x8x32xf32> to vector<64x32xf32>
    %12 = vector.extract_strided_slice %5 {offsets = [1, 0, 0], sizes = [8, 8, 32], strides = [1, 1, 1]} : vector<10x10x32xf32> to vector<8x8x32xf32>
    %13 = vector.shape_cast %12 : vector<8x8x32xf32> to vector<64x32xf32>
    %14 = vector.extract_strided_slice %5 {offsets = [1, 1, 0], sizes = [8, 8, 32], strides = [1, 1, 1]} : vector<10x10x32xf32> to vector<8x8x32xf32>
    %15 = vector.shape_cast %14 : vector<8x8x32xf32> to vector<64x32xf32>
    %16 = vector.extract_strided_slice %5 {offsets = [1, 2, 0], sizes = [8, 8, 32], strides = [1, 1, 1]} : vector<10x10x32xf32> to vector<8x8x32xf32>
    %17 = vector.shape_cast %16 : vector<8x8x32xf32> to vector<64x32xf32>
    %18 = vector.extract_strided_slice %5 {offsets = [2, 0, 0], sizes = [8, 8, 32], strides = [1, 1, 1]} : vector<10x10x32xf32> to vector<8x8x32xf32>
    %19 = vector.shape_cast %18 : vector<8x8x32xf32> to vector<64x32xf32>
    %20 = vector.extract_strided_slice %5 {offsets = [2, 1, 0], sizes = [8, 8, 32], strides = [1, 1, 1]} : vector<10x10x32xf32> to vector<8x8x32xf32>
    %21 = vector.shape_cast %20 : vector<8x8x32xf32> to vector<64x32xf32>
    %22 = vector.extract_strided_slice %5 {offsets = [2, 2, 0], sizes = [8, 8, 32], strides = [1, 1, 1]} : vector<10x10x32xf32> to vector<8x8x32xf32>
    %23 = vector.shape_cast %22 : vector<8x8x32xf32> to vector<64x32xf32>
    %24 = tpu.concatenate %7, %9, %11, %13, %15, %17, %19, %21, %23 in 1 : vector<64x32xf32>, vector<64x32xf32>, vector<64x32xf32>, vector<64x32xf32>, vector<64x32xf32>, vector<64x32xf32>, vector<64x32xf32>, vector<64x32xf32>, vector<64x32xf32> -> vector<64x288xf32>
    %c0_4 = arith.constant 0 : index
    %c0_5 = arith.constant 0 : index
    %25 = vector.load %arg2[%c0_4, %c0_5] : memref<288x8xf32, #tpu.memory_space<vmem>>, vector<288x8xf32>
    %cst_6 = arith.constant dense<0.000000e+00> : vector<64x8xf32>
    %26 = tpu.matmul %24, %25, %cst_6 {dimension_numbers = #tpu.dot_dimension_numbers<[1], [0], [0], [1], [0, 0, 1, 1], [], []>} : vector<64x288xf32>, vector<288x8xf32>, vector<64x8xf32> -> vector<64x8xf32>
    %c0_7 = arith.constant 0 : index
    %c0_8 = arith.constant 0 : index
    %27 = vector.load %arg3[%c0_7, %c0_8] : memref<1x8xf32, #tpu.memory_space<vmem>>, vector<1x8xf32>
    %28 = vector.broadcast %27 : vector<1x8xf32> to vector<64x8xf32>
    %29 = arith.mulf %26, %28 : vector<64x8xf32>
    %c0_9 = arith.constant 0 : index
    %c0_10 = arith.constant 0 : index
    %30 = vector.load %arg4[%c0_9, %c0_10] : memref<1x8xf32, #tpu.memory_space<vmem>>, vector<1x8xf32>
    %31 = vector.broadcast %30 : vector<1x8xf32> to vector<64x8xf32>
    %32 = arith.addf %29, %31 : vector<64x8xf32>
    %cst_11 = arith.constant 0.000000e+00 : f32
    %33 = vector.broadcast %cst_11 : f32 to vector<64x8xf32>
    %34 = arith.maximumf %32, %33 : vector<64x8xf32>
    %35 = vector.shape_cast %34 : vector<64x8xf32> to vector<8x8x8xf32>
    %c0_12 = arith.constant 0 : index
    %c0_13 = arith.constant 0 : index
    %c0_14 = arith.constant 0 : index
    %c0_15 = arith.constant 0 : index
    %36 = vector.load %arg5[%c0_12, %c0_13, %c0_14, %c0_15] : memref<1x8x8x8xf32, #tpu.memory_space<vmem>>, vector<1x8x8x8xf32>
    %37 = vector.shape_cast %36 : vector<1x8x8x8xf32> to vector<8x8x8xf32>
    %38 = vector.shape_cast %35 : vector<8x8x8xf32> to vector<1x8x8x8xf32>
    tpu.vector_store %arg5[%c0_12, %c0_13, %c0_14, %c0_15], %38 {strides = array<i32>} : memref<1x8x8x8xf32, #tpu.memory_space<vmem>>, vector<1x8x8x8xf32>,
    return
  }
  func.func @transform_0(%arg0: i32) -> (i32, i32, i32, i32) {
    %c0_i32 = arith.constant 0 : i32
    %c0_i32_0 = arith.constant 0 : i32
    %c0_i32_1 = arith.constant 0 : i32
    %c0_i32_2 = arith.constant 0 : i32
    return %arg0, %c0_i32, %c0_i32_0, %c0_i32_1 : i32, i32, i32, i32
  }
  func.func @transform_1(%arg0: i32) -> (i32, i32) {
    %c0_i32 = arith.constant 0 : i32
    %c0_i32_0 = arith.constant 0 : i32
    %c0_i32_1 = arith.constant 0 : i32
    return %c0_i32, %c0_i32_0 : i32, i32
  }
  func.func @transform_2(%arg0: i32) -> (i32, i32) {
    %c0_i32 = arith.constant 0 : i32
    %c0_i32_0 = arith.constant 0 : i32
    %c0_i32_1 = arith.constant 0 : i32
    return %c0_i32, %c0_i32_0 : i32, i32
  }
  func.func @transform_3(%arg0: i32) -> (i32, i32) {
    %c0_i32 = arith.constant 0 : i32
    %c0_i32_0 = arith.constant 0 : i32
    %c0_i32_1 = arith.constant 0 : i32
    return %c0_i32, %c0_i32_0 : i32, i32
  }
  func.func @transform_4(%arg0: i32) -> (i32, i32, i32, i32) {
    %c0_i32 = arith.constant 0 : i32
    %c0_i32_0 = arith.constant 0 : i32
    %c0_i32_1 = arith.constant 0 : i32
    %c0_i32_2 = arith.constant 0 : i32
    return %arg0, %c0_i32, %c0_i32_0, %c0_i32_1 : i32, i32, i32, i32
  }
}

module attributes {stable_mosaic.version = 11 : i64} {
  func.func @_conv3x3_inorm_relu_kernel(%arg0: i32, %arg1: memref<1x8x8x8xf32, #tpu.memory_space<vmem>>, %arg2: memref<72x8xf32, #tpu.memory_space<vmem>>, %arg3: memref<1x8xf32, #tpu.memory_space<vmem>>, %arg4: memref<1x8xf32, #tpu.memory_space<vmem>>, %arg5: memref<1x8x8x8xf32, #tpu.memory_space<vmem>>) attributes {dimension_semantics = [#tpu.dimension_semantics<parallel>], iteration_bounds = array<i64: 2>, scalar_prefetch = 0 : i64, scratch_operands = 0 : i64, tpu.core_type = #tpu.core_type<tc>, window_params = [{transform_indices = @transform_0, window_bounds = array<i64: 1, 8, 8, 8>}, {pipeline_mode = #tpu.pipeline_mode<synchronous>, transform_indices = @transform_1, window_bounds = array<i64: 72, 8>}, {pipeline_mode = #tpu.pipeline_mode<synchronous>, transform_indices = @transform_2, window_bounds = array<i64: 1, 8>}, {pipeline_mode = #tpu.pipeline_mode<synchronous>, transform_indices = @transform_3, window_bounds = array<i64: 1, 8>}, {transform_indices = @transform_4, window_bounds = array<i64: 1, 8, 8, 8>}]} {
    %c0 = arith.constant 0 : index
    %c0_0 = arith.constant 0 : index
    %c0_1 = arith.constant 0 : index
    %c0_2 = arith.constant 0 : index
    %0 = vector.load %arg1[%c0, %c0_0, %c0_1, %c0_2] : memref<1x8x8x8xf32, #tpu.memory_space<vmem>>, vector<1x8x8x8xf32>
    %1 = vector.shape_cast %0 : vector<1x8x8x8xf32> to vector<8x8x8xf32>
    %cst = arith.constant 0.000000e+00 : f32
    %2 = vector.broadcast %cst : f32 to vector<1x8x8xf32>
    %3 = tpu.concatenate %2, %1, %2 in 0 : vector<1x8x8xf32>, vector<8x8x8xf32>, vector<1x8x8xf32> -> vector<10x8x8xf32>
    %cst_3 = arith.constant 0.000000e+00 : f32
    %4 = vector.broadcast %cst_3 : f32 to vector<10x1x8xf32>
    %5 = tpu.concatenate %4, %3, %4 in 1 : vector<10x1x8xf32>, vector<10x8x8xf32>, vector<10x1x8xf32> -> vector<10x10x8xf32>
    %6 = vector.extract_strided_slice %5 {offsets = [0, 0, 0], sizes = [8, 8, 8], strides = [1, 1, 1]} : vector<10x10x8xf32> to vector<8x8x8xf32>
    %7 = vector.shape_cast %6 : vector<8x8x8xf32> to vector<64x8xf32>
    %8 = vector.extract_strided_slice %5 {offsets = [0, 1, 0], sizes = [8, 8, 8], strides = [1, 1, 1]} : vector<10x10x8xf32> to vector<8x8x8xf32>
    %9 = vector.shape_cast %8 : vector<8x8x8xf32> to vector<64x8xf32>
    %10 = vector.extract_strided_slice %5 {offsets = [0, 2, 0], sizes = [8, 8, 8], strides = [1, 1, 1]} : vector<10x10x8xf32> to vector<8x8x8xf32>
    %11 = vector.shape_cast %10 : vector<8x8x8xf32> to vector<64x8xf32>
    %12 = vector.extract_strided_slice %5 {offsets = [1, 0, 0], sizes = [8, 8, 8], strides = [1, 1, 1]} : vector<10x10x8xf32> to vector<8x8x8xf32>
    %13 = vector.shape_cast %12 : vector<8x8x8xf32> to vector<64x8xf32>
    %14 = vector.extract_strided_slice %5 {offsets = [1, 1, 0], sizes = [8, 8, 8], strides = [1, 1, 1]} : vector<10x10x8xf32> to vector<8x8x8xf32>
    %15 = vector.shape_cast %14 : vector<8x8x8xf32> to vector<64x8xf32>
    %16 = vector.extract_strided_slice %5 {offsets = [1, 2, 0], sizes = [8, 8, 8], strides = [1, 1, 1]} : vector<10x10x8xf32> to vector<8x8x8xf32>
    %17 = vector.shape_cast %16 : vector<8x8x8xf32> to vector<64x8xf32>
    %18 = vector.extract_strided_slice %5 {offsets = [2, 0, 0], sizes = [8, 8, 8], strides = [1, 1, 1]} : vector<10x10x8xf32> to vector<8x8x8xf32>
    %19 = vector.shape_cast %18 : vector<8x8x8xf32> to vector<64x8xf32>
    %20 = vector.extract_strided_slice %5 {offsets = [2, 1, 0], sizes = [8, 8, 8], strides = [1, 1, 1]} : vector<10x10x8xf32> to vector<8x8x8xf32>
    %21 = vector.shape_cast %20 : vector<8x8x8xf32> to vector<64x8xf32>
    %22 = vector.extract_strided_slice %5 {offsets = [2, 2, 0], sizes = [8, 8, 8], strides = [1, 1, 1]} : vector<10x10x8xf32> to vector<8x8x8xf32>
    %23 = vector.shape_cast %22 : vector<8x8x8xf32> to vector<64x8xf32>
    %24 = tpu.concatenate %7, %9, %11, %13, %15, %17, %19, %21, %23 in 1 : vector<64x8xf32>, vector<64x8xf32>, vector<64x8xf32>, vector<64x8xf32>, vector<64x8xf32>, vector<64x8xf32>, vector<64x8xf32>, vector<64x8xf32>, vector<64x8xf32> -> vector<64x72xf32>
    %c0_4 = arith.constant 0 : index
    %c0_5 = arith.constant 0 : index
    %25 = vector.load %arg2[%c0_4, %c0_5] : memref<72x8xf32, #tpu.memory_space<vmem>>, vector<72x8xf32>
    %cst_6 = arith.constant dense<0.000000e+00> : vector<64x8xf32>
    %26 = tpu.matmul %24, %25, %cst_6 {dimension_numbers = #tpu.dot_dimension_numbers<[1], [0], [0], [1], [0, 0, 1, 1], [], []>} : vector<64x72xf32>, vector<72x8xf32>, vector<64x8xf32> -> vector<64x8xf32>
    %cst_7 = arith.constant dense<0.000000e+00> : vector<8xf32>
    %27 = vector.multi_reduction <add>, %26, %cst_7 [0] : vector<64x8xf32> to vector<8xf32>
    %28 = vector.shape_cast %27 : vector<8xf32> to vector<1x8xf32>
    %cst_8 = arith.constant 6.400000e+01 : f32
    %29 = vector.broadcast %cst_8 : f32 to vector<1x8xf32>
    %30 = arith.divf %28, %29 : vector<1x8xf32>
    %31 = vector.broadcast %30 : vector<1x8xf32> to vector<64x8xf32>
    %32 = arith.subf %26, %31 : vector<64x8xf32>
    %33 = arith.mulf %32, %32 : vector<64x8xf32>
    %cst_9 = arith.constant dense<0.000000e+00> : vector<8xf32>
    %34 = vector.multi_reduction <add>, %33, %cst_9 [0] : vector<64x8xf32> to vector<8xf32>
    %35 = vector.shape_cast %34 : vector<8xf32> to vector<1x8xf32>
    %cst_10 = arith.constant 6.400000e+01 : f32
    %36 = vector.broadcast %cst_10 : f32 to vector<1x8xf32>
    %37 = arith.divf %35, %36 : vector<1x8xf32>
    %38 = vector.broadcast %30 : vector<1x8xf32> to vector<64x8xf32>
    %39 = arith.subf %26, %38 : vector<64x8xf32>
    %cst_11 = arith.constant 9.99999974E-6 : f32
    %40 = vector.broadcast %cst_11 : f32 to vector<1x8xf32>
    %41 = arith.addf %37, %40 : vector<1x8xf32>
    %42 = math.rsqrt %41 : vector<1x8xf32>
    %43 = vector.broadcast %42 : vector<1x8xf32> to vector<64x8xf32>
    %44 = arith.mulf %39, %43 : vector<64x8xf32>
    %c0_12 = arith.constant 0 : index
    %c0_13 = arith.constant 0 : index
    %45 = vector.load %arg3[%c0_12, %c0_13] : memref<1x8xf32, #tpu.memory_space<vmem>>, vector<1x8xf32>
    %46 = vector.broadcast %45 : vector<1x8xf32> to vector<64x8xf32>
    %47 = arith.mulf %44, %46 : vector<64x8xf32>
    %c0_14 = arith.constant 0 : index
    %c0_15 = arith.constant 0 : index
    %48 = vector.load %arg4[%c0_14, %c0_15] : memref<1x8xf32, #tpu.memory_space<vmem>>, vector<1x8xf32>
    %49 = vector.broadcast %48 : vector<1x8xf32> to vector<64x8xf32>
    %50 = arith.addf %47, %49 : vector<64x8xf32>
    %cst_16 = arith.constant 0.000000e+00 : f32
    %51 = vector.broadcast %cst_16 : f32 to vector<64x8xf32>
    %52 = arith.maximumf %50, %51 : vector<64x8xf32>
    %53 = vector.shape_cast %52 : vector<64x8xf32> to vector<8x8x8xf32>
    %c0_17 = arith.constant 0 : index
    %c0_18 = arith.constant 0 : index
    %c0_19 = arith.constant 0 : index
    %c0_20 = arith.constant 0 : index
    %54 = vector.load %arg5[%c0_17, %c0_18, %c0_19, %c0_20] : memref<1x8x8x8xf32, #tpu.memory_space<vmem>>, vector<1x8x8x8xf32>
    %55 = vector.shape_cast %54 : vector<1x8x8x8xf32> to vector<8x8x8xf32>
    %56 = vector.shape_cast %53 : vector<8x8x8xf32> to vector<1x8x8x8xf32>
    tpu.vector_store %arg5[%c0_17, %c0_18, %c0_19, %c0_20], %56 {strides = array<i32>} : memref<1x8x8x8xf32, #tpu.memory_space<vmem>>, vector<1x8x8x8xf32>,
    return
  }
  func.func @transform_0(%arg0: i32) -> (i32, i32, i32, i32) {
    %c0_i32 = arith.constant 0 : i32
    %c0_i32_0 = arith.constant 0 : i32
    %c0_i32_1 = arith.constant 0 : i32
    %c0_i32_2 = arith.constant 0 : i32
    return %arg0, %c0_i32, %c0_i32_0, %c0_i32_1 : i32, i32, i32, i32
  }
  func.func @transform_1(%arg0: i32) -> (i32, i32) {
    %c0_i32 = arith.constant 0 : i32
    %c0_i32_0 = arith.constant 0 : i32
    %c0_i32_1 = arith.constant 0 : i32
    return %c0_i32, %c0_i32_0 : i32, i32
  }
  func.func @transform_2(%arg0: i32) -> (i32, i32) {
    %c0_i32 = arith.constant 0 : i32
    %c0_i32_0 = arith.constant 0 : i32
    %c0_i32_1 = arith.constant 0 : i32
    return %c0_i32, %c0_i32_0 : i32, i32
  }
  func.func @transform_3(%arg0: i32) -> (i32, i32) {
    %c0_i32 = arith.constant 0 : i32
    %c0_i32_0 = arith.constant 0 : i32
    %c0_i32_1 = arith.constant 0 : i32
    return %c0_i32, %c0_i32_0 : i32, i32
  }
  func.func @transform_4(%arg0: i32) -> (i32, i32, i32, i32) {
    %c0_i32 = arith.constant 0 : i32
    %c0_i32_0 = arith.constant 0 : i32
    %c0_i32_1 = arith.constant 0 : i32
    %c0_i32_2 = arith.constant 0 : i32
    return %arg0, %c0_i32, %c0_i32_0, %c0_i32_1 : i32, i32, i32, i32
  }
}

</mosaic_0001>

<bundles_post_ra>
// kernel: encoder_stage_forward.14
= control target key start
LH: loop header
LB: loop body
LE: loop exit
PB: predicated region body
PF: predicated region fallthrough
CT: control target
= control target key end

     0   :  { %s436_s15 = smov 0   ;;  %s491_s0 = inlined_call_operand.vmem [shape: f32[2,8,8,8], index: 0, kind: input, shape index: {}]   ;;  %s492_s1 = inlined_call_operand.vmem [shape: f32[8,12], index: 1, kind: input, shape index: {}]   ;;  %s493_s2 = inlined_call_operand.vmem [shape: f32[1,12], index: 2, kind: input, shape index: {}]   ;;  %s494_s3 = inlined_call_operand.vmem [shape: f32[1,12], index: 3, kind: input, shape index: {}]   ;;  %s495_s4 = inlined_call_operand.vmem [shape: f32[2,8,8,12], index: 4, kind: output, shape index: {}]  }
   0x1 LB: > { %s369_s16 = sadd.s32 4294967295, %s409_s15   ;;  %p373_p0 = scmp.ge.s32.totalorder %s409_s15, 1  ;;  %s409_s15 = sphi %s436_s15, %s14_s15  }
   0x2   : > { %p162_p1 = scmp.lt.s32.totalorder %s409_s15, 3 }
   0x4   : > { %p163_p2 = pnand %p373_p0, %p162_p1 }
   0x5   : > { %p188_p3 = scmp.lt.s32.totalorder (!%p163_p2), %s369_s16, 1 }
   0x6   : > { %166 = sbr.rel (%p163_p2) target bundleno = 163 (0xa3), region = 36 }
   0xb   : > { %v206_v0 = vld [vmem:[%s492_s1] sm:$0xff]  ;;  %s497_s16 = smov (!%p188_p3, %s369_s16), 1  ;;  %vm207_vm0 = vcmask 64512   ;;  %vm305_vm1 = vcmask 97280  }
   0xc   : > { %391 = vmatpush.msra.mxu2 %v206_v0  ;;  %392 = vmatpush.msra.mxu3 %v206_v0  ;;  %s388_s19 = sshll.u32 %s497_s16, 6  ;;  %v401_v9 = vld [vmem:[%s493_s2] ss:$0 sm:$0xff] }
   0xd   : > { %247 = vmatpush.msra.mxu0 %v206_v0  ;;  %390 = vmatpush.msra.mxu1 %v206_v0  ;;  %s192_s22 = scalar_lea.vmem %s491_s0, %s388_s19  ;;  %v402_v10 = vld [vmem:[%s494_s3] ss:$0 sm:$0xff]  ;;  %s470_s29 = scalar_lea.vmem %s495_s4, %s388_s19 }
   0xe   : > { %v202_v1 = vld [vmem:[%s192_s22 + $0x20] sm:$0xff]  ;;  %v204_v2 = vld [vmem:[%s192_s22 + $0x30] sm:$0xff]  ;;  %v203_v5 = vld [vmem:[%s192_s22 + $0x28] sm:$0xff] }
   0xf   : > { %v198_v3 = vld [vmem:[%s192_s22] sm:$0xff]  ;;  %382 = vmatmul.msk.f32.vlgmr.msra.gmra.mxu2 %vm207_vm0, %v202_v1  ;;  %384 = vmatmul.msk.f32.vlgmr.msra.gmra.mxu3 %vm207_vm0, %v204_v2  ;;  %v200_v4 = vld [vmem:[%s192_s22 + $0x10] sm:$0xff]  ;;  %v205_v6 = vld [vmem:[%s192_s22 + $0x38] sm:$0xff] }
  0x10   : > { %378 = vmatmul.msk.f32.vlgmr.msra.gmra.mxu0 %vm207_vm0, %v198_v3  ;;  %380 = vmatmul.msk.f32.vlgmr.msra.gmra.mxu1 %vm207_vm0, %v200_v4  ;;  %v199_v7 = vld [vmem:[%s192_s22 + $0x8] sm:$0xff]  ;;  %v201_v8 = vld [vmem:[%s192_s22 + $0x18] sm:$0xff] }
  0x17   : > { %383 = vmatmul.msk.f32.gmra.mxu2 %vm207_vm0, %v203_v5  ;;  %385 = vmatmul.msk.f32.gmra.mxu3 %vm207_vm0, %v205_v6 }
  0x18   : > { %379 = vmatmul.msk.f32.gmra.mxu0 %vm207_vm0, %v199_v7  ;;  %381 = vmatmul.msk.f32.gmra.mxu1 %vm207_vm0, %v201_v8 }
  0x8d   : > { %v249_v11 = vpop.f32.mrf.mxu0  ;;  %v255_v12 = vpop.f32.mrf.mxu1 }
  0x8e   : > { %v277_v13 = vmul.f32 %v401_v9, %v249_v11  ;;  %v279_v14 = vmul.f32 %v401_v9, %v255_v12 }
  0x90   : > { %v289_v15 = vadd.f32 %v402_v10, %v277_v13  ;;  %v291_v16 = vadd.f32 %v402_v10, %v279_v14 }
  0x92   : > { %v297_v17 = vmax.f32 %v289_v15, 0.0  ;;  %v299_v18 = vmax.f32 %v291_v16, 0.0  ;;  %v261_v19 = vpop.f32.mrf.mxu2  ;;  %v267_v20 = vpop.f32.mrf.mxu3 }
  0x93   : > { %v281_v21 = vmul.f32 %v401_v9, %v261_v19  ;;  %v283_v22 = vmul.f32 %v401_v9, %v267_v20 }
  0x94   : > { %306 = vst.msk [vmem:[%s470_s29] sm:$0xff] %vm305_vm1, %v297_v17 }
  0x95   : > { %308 = vst.msk [vmem:[%s470_s29 + $0x10] sm:$0xff] %vm305_vm1, %v299_v18  ;;  %v293_v23 = vadd.f32 %v402_v10, %v281_v21  ;;  %v295_v24 = vadd.f32 %v402_v10, %v283_v22  ;;  %v252_v25 = vpop.f32.mrf.mxu0  ;;  %v258_v26 = vpop.f32.mrf.mxu1 }
  0x96   : > { %v278_v27 = vmul.f32 %v401_v9, %v252_v25  ;;  %v280_v28 = vmul.f32 %v401_v9, %v258_v26 }
  0x97   : > { %v301_v29 = vmax.f32 %v293_v23, 0.0  ;;  %v303_v30 = vmax.f32 %v295_v24, 0.0 }
  0x98   : > { %v290_v31 = vadd.f32 %v402_v10, %v278_v27  ;;  %v292_v32 = vadd.f32 %v402_v10, %v280_v28 }
  0x99   : > { %310 = vst.msk [vmem:[%s470_s29 + $0x20] sm:$0xff] %vm305_vm1, %v301_v29 }
  0x9a   : > { %312 = vst.msk [vmem:[%s470_s29 + $0x30] sm:$0xff] %vm305_vm1, %v303_v30  ;;  %v298_v33 = vmax.f32 %v290_v31, 0.0  ;;  %v300_v34 = vmax.f32 %v292_v32, 0.0  ;;  %v264_v35 = vpop.f32.mrf.mxu2  ;;  %v270_v36 = vpop.f32.mrf.mxu3 }
  0x9b   : > { %v282_v37 = vmul.f32 %v401_v9, %v264_v35  ;;  %v284_v38 = vmul.f32 %v401_v9, %v270_v36 }
  0x9c   : > { %307 = vst.msk [vmem:[%s470_s29 + $0x8] sm:$0xff] %vm305_vm1, %v298_v33 }
  0x9d   : > { %309 = vst.msk [vmem:[%s470_s29 + $0x18] sm:$0xff] %vm305_vm1, %v300_v34  ;;  %v294_v39 = vadd.f32 %v402_v10, %v282_v37  ;;  %v296_v40 = vadd.f32 %v402_v10, %v284_v38 }
  0x9f   : > { %v302_v41 = vmax.f32 %v294_v39, 0.0  ;;  %v304_v42 = vmax.f32 %v296_v40, 0.0 }
  0xa1   : > { %311 = vst.msk [vmem:[%s470_s29 + $0x28] sm:$0xff] %vm305_vm1, %v302_v41 }
  0xa2   : > { %313 = vst.msk [vmem:[%s470_s29 + $0x38] sm:$0xff] %vm305_vm1, %v304_v42 }
  0xa3 PF: > { %s14_s15 = sadd.s32 1, %s409_s15  }
  0xa4   : > { %p11_p4 = scmp.ge.s32.totalorder %s14_s15, 4  }
  0xa6   :  { %13 = sbr.rel (!%p11_p4) target bundleno = 1 (0x1), region = 66 }

// kernel: encoder_stage_forward.16
= control target key start
LH: loop header
LB: loop body
LE: loop exit
PB: predicated region body
PF: predicated region fallthrough
CT: control target
= control target key end

     0   :  { %s869_s15 = smov 0   ;;  %s1287_s0 = inlined_call_operand.vmem [shape: f32[2,8,8,8], index: 0, kind: input, shape index: {}]   ;;  %s1288_s1 = inlined_call_operand.vmem [shape: f32[72,32], index: 1, kind: input, shape index: {}]   ;;  %s1289_s2 = inlined_call_operand.vmem [shape: f32[1,32], index: 2, kind: input, shape index: {}]   ;;  %s1290_s3 = inlined_call_operand.vmem [shape: f32[1,32], index: 3, kind: input, shape index: {}]   ;;  %s1291_s4 = inlined_call_operand.vmem [shape: f32[2,8,8,32], index: 4, kind: output, shape index: {}]  }
   0x1 LB: > { %s760_s16 = sadd.s32 4294967295, %s833_s15   ;;  %p764_p0 = scmp.ge.s32.totalorder %s833_s15, 1  ;;  %s833_s15 = sphi %s869_s15, %s14_s15  }
   0x2   : > { %p162_p1 = scmp.lt.s32.totalorder %s833_s15, 3 }
   0x4   : > { %p163_p2 = pnand %p764_p0, %p162_p1 }
   0x5   : > { %p188_p3 = scmp.lt.s32.totalorder (!%p163_p2), %s760_s16, 1  ;;  %s835_s21 = smov (!%p163_p2), 24  }
   0x6   : > { %166 = sbr.rel (%p163_p2) target bundleno = 438 (0x1b6), region = 36  ;;  %s836_s22 = smov (!%p163_p2), 16  }
   0x7   : > { %s837_s23 = smov (!%p163_p2), 8   ;;  %s838_s24 = smov (!%p163_p2), 40  }
   0x8   : > { %s839_s25 = smov (!%p163_p2), 32   ;;  %s841_s26 = smov (!%p163_p2), 48  }
   0x9   : > { %s842_s27 = smov (!%p163_p2), 56   ;;  %s843_s28 = smov (!%p163_p2), 64  }
   0xb   : > { %s1293_s16 = smov (!%p188_p3, %s760_s16), 1  ;;  %vm233_vm0 = vcmask 1040384   ;;  %vm293_vm1 = vcmask 1045504   ;;  %vm268_vm2 = vcmask 1046528   ;;  %v840_v43 = vmov 0.0  }
   0xc   : > { %s779_s17 = sshll.u32 %s1293_s16, 6  ;;  %v215_v44 = vrot.slane %v840_v43, 7  ;;  %v596_v43 = vld [vmem:[%s1288_s1 + $0x30] sm:$0xff]  ;;  %vm518_vm3 = vcmask 64512   ;;  %vm527_vm4 = vcmask 130048   ;;  %vm536_vm5 = vcmask 195584  }
   0xd   : > { %s885_s20 = scalar_lea.vmem %s1287_s0, %s779_s17  ;;  %vm545_vm6 = vcmask 261120   ;;  %vm554_vm7 = vcmask 326656   ;;  %vm563_vm8 = vcmask 392192   ;;  %vm572_vm9 = vcmask 457728  }
   0xe   : > { %v201_v0 = vld [vmem:[%s885_s20 + $0x18] sm:$0xff]  ;;  %v202_v1 = vld [vmem:[%s885_s20 + $0x20] sm:$0xff]  ;;  %v203_v2 = vld [vmem:[%s885_s20 + $0x28] sm:$0xff]  ;;  %v965_v47 = vsel %vm233_vm0, 0.0, %v215_v44  ;;  %v243_v48 = vsel %vm233_vm0, %v215_v44, 0.0  ;;  %vm581_vm10 = vcmask 523264  }
   0xf   : > { %v219_v3 = vrot.slane %v201_v0, 7  ;;  %v220_v4 = vrot.slane %v202_v1, 7  ;;  %v221_v5 = vrot.slane %v203_v2, 7  ;;  %v204_v6 = vld [vmem:[%s885_s20 + $0x30] sm:$0xff]  ;;  %v205_v35 = vld [vmem:[%s885_s20 + $0x38] sm:$0xff]  ;;  %v199_v39 = vld [vmem:[%s885_s20 + $0x8] sm:$0xff] }
  0x10   : > { %v222_v16 = vrot.slane %v204_v6, 7  ;;  %v223_v38 = vrot.slane %v205_v35, 7  ;;  %v217_v45 = vrot.slane %v199_v39, 7  ;;  %v200_v51 = vld [vmem:[%s885_s20 + $0x10] sm:$0xff]  ;;  %v269_v52 = vrot.slane %v965_v47, 1 }
  0x11   : > { %v892_v7 = vsel %vm233_vm0, 0.0, %v219_v3  ;;  %v247_v8 = vsel %vm233_vm0, %v219_v3, 0.0  ;;  %v896_v9 = vsel %vm233_vm0, 0.0, %v220_v4  ;;  %v903_v14 = vsel %vm233_vm0, 0.0, %v221_v5 }
  0x12   : > { %v306_v10 = vrot.slane %v892_v7, 2  ;;  %v307_v11 = vrot.slane %v247_v8, 2  ;;  %v281_v12 = vrot.slane %v892_v7, 1  ;;  %v282_v13 = vrot.slane %v247_v8, 1  ;;  %382 = vrot.lane.b32.xlu2 %v896_v9, %s835_s21 }
  0x13   : > { %v249_v15 = vsel %vm233_vm0, %v221_v5, 0.0  ;;  %v312_v19 = vrot.slane %v903_v14, 2  ;;  %v287_v21 = vrot.slane %v903_v14, 1  ;;  %v919_v23 = vsel %vm233_vm0, 0.0, %v222_v16 }
  0x14   : > { %v907_v17 = vsel %vm293_vm1, %v306_v10, %v307_v11  ;;  %v910_v18 = vsel %vm268_vm2, %v281_v12, %v282_v13  ;;  %v313_v20 = vrot.slane %v249_v15, 2  ;;  %v288_v22 = vrot.slane %v249_v15, 1 }
  0x15   : > { %358 = vrot.lane.b32.xlu1 %v907_v17, %s836_s22  ;;  %334 = vrot.lane.b32.xlu0 %v910_v18, %s837_s23  ;;  %v248_v26 = vsel %vm233_vm0, %v220_v4, 0.0  ;;  %v250_v27 = vsel %vm233_vm0, %v222_v16, 0.0  ;;  %v309_v28 = vrot.slane %v896_v9, 2  ;;  %v290_v30 = vrot.slane %v919_v23, 1 }
  0x16   : > { %v922_v24 = vsel %vm293_vm1, %v312_v19, %v313_v20  ;;  %v925_v25 = vsel %vm268_vm2, %v287_v21, %v288_v22  ;;  %v310_v29 = vrot.slane %v248_v26, 2  ;;  %v291_v31 = vrot.slane %v250_v27, 1  ;;  %v198_v21 = vld [vmem:[%s885_s20] sm:$0xff] }
  0x17   : > { %v284_v32 = vrot.slane %v896_v9, 1  ;;  %v285_v33 = vrot.slane %v248_v26, 1  ;;  %v315_v40 = vrot.slane %v919_v23, 2  ;;  %v316_v41 = vrot.slane %v250_v27, 2 }
  0x18   : > { %v939_v34 = vsel %vm293_vm1, %v309_v28, %v310_v29  ;;  %v943_v36 = vsel %vm268_vm2, %v290_v30, %v291_v31  ;;  %v957_v42 = vsel %vm233_vm0, 0.0, %v223_v38  ;;  %v969_v49 = vsel %vm233_vm0, 0.0, %v217_v45 }
  0x19   : > { %v946_v37 = vsel %vm268_vm2, %v284_v32, %v285_v33  ;;  %v960_v46 = vsel %vm293_vm1, %v315_v40, %v316_v41  ;;  %v245_v50 = vsel %vm233_vm0, %v217_v45, 0.0  ;;  %v270_v53 = vrot.slane %v243_v48, 1  ;;  %v598_v41 = vld [vmem:[%s1288_s1 + $0x40] sm:$0xff]  ;;  %v595_v45 = vld [vmem:[%s1288_s1 + $0x28] sm:$0xff] }
  0x1a   : > { %386 = vrot.lane.b32.xlu2 %v919_v23, %s835_s21  ;;  %v275_v54 = vrot.slane %v969_v49, 1  ;;  %v276_v55 = vrot.slane %v245_v50, 1  ;;  %v218_v56 = vrot.slane %v200_v51, 7  ;;  %v251_v59 = vsel %vm233_vm0, %v223_v38, 0.0  ;;  %782 = vmatpush.msra.mxu2 %v598_v41  ;;  %v594_v51 = vld [vmem:[%s1288_s1 + $0x20] sm:$0xff] }
  0x1b   : > { %v980_v57 = vsel %vm268_vm2, %v269_v52, %v270_v53  ;;  %v300_v60 = vrot.slane %v969_v49, 2  ;;  %v301_v61 = vrot.slane %v245_v50, 2  ;;  %v320_v63 = vrot.slane %v957_v42, 1  ;;  %783 = vmatpush.msra.mxu3 %v598_v41  ;;  %631 = vmatpush.msra.mxu0 %v598_v41  ;;  %v592_v52 = vld [vmem:[%s1288_s1 + $0x10] sm:$0xff] }
  0x1c   : > { %v983_v58 = vsel %vm268_vm2, %v275_v54, %v276_v55  ;;  %v990_v62 = vsel %vm233_vm0, 0.0, %v218_v56  ;;  %v246_v0 = vsel %vm233_vm0, %v218_v56, 0.0  ;;  %v321_v2 = vrot.slane %v251_v59, 1  ;;  %781 = vmatpush.msra.mxu1 %v598_v41  ;;  %v591_v54 = vld [vmem:[%s1288_s1 + $0x8] sm:$0xff]  ;;  %v590_v56 = vld [vmem:[%s1288_s1] sm:$0xff] }
  0x1d   : > { %362 = vrot.lane.b32.xlu1 %v922_v24, %s836_s22  ;;  %338 = vrot.lane.b32.xlu0 %v925_v25, %s837_s23  ;;  %v278_v1 = vrot.slane %v990_v62, 1  ;;  %v294_v3 = vrot.slane %v965_v47, 2  ;;  %v295_v4 = vrot.slane %v243_v48, 2  ;;  %v279_v5 = vrot.slane %v246_v0, 1 }
  0x1e   : > { %v1001_v6 = vsel %vm293_vm1, %v300_v60, %v301_v61  ;;  %v322_v10 = vsel %vm268_vm2, %v320_v63, %v321_v2  ;;  %v303_v12 = vrot.slane %v990_v62, 2  ;;  %v304_v13 = vrot.slane %v246_v0, 2 }
  0x1f   : > { %v1004_v8 = vsel %vm268_vm2, %v278_v1, %v279_v5  ;;  %v1008_v11 = vsel %vm293_vm1, %v294_v3, %v295_v4  ;;  %v323_v15 = vrot.slane %v957_v42, 2  ;;  %v324_v16 = vrot.slane %v251_v59, 2 }
  0x20   : > { %v1018_v19 = vsel %vm293_vm1, %v303_v12, %v304_v13  ;;  %v216_v22 = vrot.slane %v198_v21, 7  ;;  %vm599_vm11 = vcmask 588800  }
  0x21   : > { %v325_v20 = vsel %vm293_vm1, %v323_v15, %v324_v16 }
  0x22   : > { %430 = vrot.lane.b32.xlu2 %v939_v34, %s838_s24  ;;  %v244_v26 = vsel %vm233_vm0, %v216_v22, 0.0  ;;  %v1029_v27 = vsel %vm233_vm0, 0.0, %v216_v22 }
  0x23   : > { %v272_v28 = vrot.slane %v1029_v27, 1  ;;  %v273_v29 = vrot.slane %v244_v26, 1  ;;  %v297_v31 = vrot.slane %v1029_v27, 2  ;;  %v298_v32 = vrot.slane %v244_v26, 2 }
  0x25   : > { %410 = vrot.lane.b32.xlu1 %v943_v36, %s839_s25  ;;  %406 = vrot.lane.b32.xlu0 %v946_v37, %s839_s25  ;;  %v274_v30 = vsel %vm268_vm2, %v272_v28, %v273_v29  ;;  %v299_v33 = vsel %vm293_vm1, %v297_v31, %v298_v32 }
  0x2a   : > { %458 = vrot.lane.b32.xlu2 %v957_v42, %s841_s26 }
  0x2d   : > { %454 = vrot.lane.b32.xlu1 %v903_v14, %s841_s26  ;;  %434 = vrot.lane.b32.xlu0 %v960_v46, %s838_s24 }
  0x32   : > { %478 = vrot.lane.b32.xlu2 %v925_v25, %s842_s27 }
  0x35   : > { %326 = vrot.lane.b32.xlu0 %v980_v57, %s837_s23  ;;  %330 = vrot.lane.b32.xlu1 %v983_v58, %s837_s23 }
  0x3a   : > { %354 = vrot.lane.b32.xlu2 %v1001_v6, %s836_s22 }
  0x3d   : > { %482 = vrot.lane.b32.xlu0 %v322_v10, %s842_s27  ;;  %350 = vrot.lane.b32.xlu1 %v1008_v11, %s836_s22 }
  0x42   : > { %336 = vrot.lane.b32.xlu2 %v946_v37, %s837_s23 }
  0x45   : > { %502 = vrot.lane.b32.xlu0 %v922_v24, %s843_s28  ;;  %506 = vrot.lane.b32.xlu1 %v325_v20, %s843_s28 }
  0x4a   : > { %378 = vrot.lane.b32.xlu2 %v990_v62, %s835_s21 }
  0x4d   : > { %340 = vrot.lane.b32.xlu0 %v943_v36, %s837_s23  ;;  %374 = vrot.lane.b32.xlu1 %v1029_v27, %s835_s21 }
  0x52   : > { %398 = vrot.lane.b32.xlu2 %v274_v30, %s839_s25 }
  0x55   : > { %360 = vrot.lane.b32.xlu0 %v939_v34, %s836_s22  ;;  %364 = vrot.lane.b32.xlu1 %v960_v46, %s836_s22 }
  0x5a   : > { %388 = vrot.lane.b32.xlu2 %v957_v42, %s835_s21  ;;  %v597_v42 = vld [vmem:[%s1288_s1 + $0x38] sm:$0xff] }
  0x5b   : > { %785 = vmatpush.msra.mxu2 %v597_v42  ;;  %786 = vmatpush.msra.mxu3 %v597_v42 }
  0x5c   : > { %632 = vmatpush.msra.mxu0 %v597_v42  ;;  %784 = vmatpush.msra.mxu1 %v597_v42 }
  0x5d   : > { %402 = vrot.lane.b32.xlu0 %v1004_v8, %s839_s25  ;;  %384 = vrot.lane.b32.xlu1 %v903_v14, %s835_s21 }
  0x5e   : > { %788 = vmatpush.msra.mxu2 %v596_v43  ;;  %789 = vmatpush.msra.mxu3 %v596_v43 }
  0x5f   : > { %633 = vmatpush.msra.mxu0 %v596_v43  ;;  %787 = vmatpush.msra.mxu1 %v596_v43 }
  0x60   : > { %791 = vmatpush.msra.mxu2 %v595_v45  ;;  %792 = vmatpush.msra.mxu3 %v595_v45 }
  0x61   : > { %634 = vmatpush.msra.mxu0 %v595_v45  ;;  %790 = vmatpush.msra.mxu1 %v595_v45 }
  0x62   : > { %408 = vrot.lane.b32.xlu2 %v925_v25, %s839_s25  ;;  %794 = vmatpush.msra.mxu2 %v594_v51 }
  0x63   : > { %795 = vmatpush.msra.mxu3 %v594_v51  ;;  %635 = vmatpush.msra.mxu0 %v594_v51 }
  0x64   : > { %793 = vmatpush.msra.mxu1 %v594_v51 }
  0x65   : > { %426 = vrot.lane.b32.xlu1 %v1018_v19, %s838_s24  ;;  %422 = vrot.lane.b32.xlu0 %v299_v33, %s838_s24 }
  0x6a   : > { %450 = vrot.lane.b32.xlu2 %v892_v7, %s841_s26 }
  0x6c   : > { %v1059_v35 = vpop.permute.xlu2 %382 }
  0x6d   : > { %446 = vrot.lane.b32.xlu1 %v969_v49, %s841_s26  ;;  %412 = vrot.lane.b32.xlu0 %v322_v10, %s839_s25 }
  0x72   : > { %470 = vrot.lane.b32.xlu2 %v983_v58, %s842_s27 }
  0x74   : > { %v1066_v38 = vpop.permute.xlu2 %386 }
  0x75   : > { %436 = vrot.lane.b32.xlu1 %v325_v20, %s838_s24  ;;  %432 = vrot.lane.b32.xlu0 %v922_v24, %s838_s24 }
  0x7a   : > { %460 = vrot.lane.b32.xlu2 %v965_v47, %s841_s26 }
  0x7c   : > { %v1073_v25 = vpop.permute.xlu2 %430 }
  0x7d   : > { %456 = vrot.lane.b32.xlu1 %v919_v23, %s841_s26  ;;  %474 = vrot.lane.b32.xlu0 %v910_v18, %s842_s27 }
  0x82   : > { %328 = vrot.lane.b32.xlu2 %v274_v30, %s837_s23 }
  0x84   : > { %v1080_v39 = vpop.permute.xlu2 %458 }
  0x85   : > { %498 = vrot.lane.b32.xlu1 %v907_v17, %s843_s28  ;;  %494 = vrot.lane.b32.xlu0 %v1001_v6, %s843_s28 }
  0x87   : > { %v1086_v24 = vpop.permute.xlu1 %358  ;;  %v1088_v40 = vpop.permute.xlu0 %334 }
  0x88   : > { %v523_v2 = vsel %vm518_vm3, %v892_v7, %v1088_v40 }
  0x8a   : > { %484 = vrot.lane.b32.xlu2 %v980_v57, %s842_s27 }
  0x8c   : > { %v1101_v44 = vpop.permute.xlu2 %478 }
  0x8d   : > { %480 = vrot.lane.b32.xlu1 %v943_v36, %s842_s27  ;;  %332 = vrot.lane.b32.xlu0 %v1004_v8, %s837_s23  ;;  %v593_v36 = vld [vmem:[%s1288_s1 + $0x18] sm:$0xff] }
  0x8e   : > { %797 = vmatpush.msra.mxu2 %v593_v36  ;;  %798 = vmatpush.msra.mxu3 %v593_v36 }
  0x8f   : > { %v1110_v48 = vpop.permute.xlu1 %362  ;;  %v339_v50 = vpop.permute.xlu0 %338  ;;  %636 = vmatpush.msra.mxu0 %v593_v36  ;;  %796 = vmatpush.msra.mxu1 %v593_v36 }
  0x90   : > { %800 = vmatpush.msra.mxu2 %v592_v52  ;;  %801 = vmatpush.msra.mxu3 %v592_v52 }
  0x91   : > { %637 = vmatpush.msra.mxu0 %v592_v52  ;;  %799 = vmatpush.msra.mxu1 %v592_v52 }
  0x92   : > { %504 = vrot.lane.b32.xlu2 %v960_v46, %s843_s28  ;;  %803 = vmatpush.msra.mxu2 %v591_v54 }
  0x93   : > { %804 = vmatpush.msra.mxu3 %v591_v54  ;;  %638 = vmatpush.msra.mxu0 %v591_v54 }
  0x94   : > { %v355_v53 = vpop.permute.xlu2 %354  ;;  %806 = vmatpush.msra.mxu2 %v590_v56  ;;  %802 = vmatpush.msra.mxu1 %v591_v54 }
  0x95   : > { %356 = vrot.lane.b32.xlu1 %v1018_v19, %s836_s22  ;;  %352 = vrot.lane.b32.xlu0 %v299_v33, %s836_s22 }
  0x96   : > { %807 = vmatpush.msra.mxu3 %v590_v56  ;;  %639 = vmatpush.msra.mxu0 %v590_v56 }
  0x97   : > { %v411_v46 = vpop.permute.xlu1 %410  ;;  %v407_v55 = vpop.permute.xlu0 %406  ;;  %805 = vmatpush.msra.mxu1 %v590_v56 }
  0x9a   : > { %380 = vrot.lane.b32.xlu2 %v892_v7, %s835_s21 }
  0x9c   : > { %v1134_v57 = vpop.permute.xlu2 %336 }
  0x9d   : > { %376 = vrot.lane.b32.xlu1 %v969_v49, %s835_s21  ;;  %508 = vrot.lane.b32.xlu0 %v1008_v11, %s843_s28 }
  0x9f   : > { %v455_v59 = vpop.permute.xlu1 %454  ;;  %v435_v60 = vpop.permute.xlu0 %434 }
  0xa2   : > { %424 = vrot.lane.b32.xlu2 %v1001_v6, %s838_s24 }
  0xa4   : > { %v1146_v61 = vpop.permute.xlu2 %378 }
  0xa5   : > { %404 = vrot.lane.b32.xlu1 %v910_v18, %s839_s25  ;;  %400 = vrot.lane.b32.xlu0 %v983_v58, %s839_s25  ;;  %v525_v18 = vsel %vm518_vm3, %v903_v14, %v339_v50  ;;  %v532_v58 = vsel %vm527_vm4, %v523_v2, %v1086_v24 }
  0xa6   : > { %v534_v7 = vsel %vm527_vm4, %v525_v18, %v1110_v48 }
  0xa7   : > { %v327_v63 = vpop.permute.xlu0 %326  ;;  %v331_v0 = vpop.permute.xlu1 %330 }
  0xa8   : > { %v521_v1 = vsel %vm518_vm3, %v969_v49, %v331_v0  ;;  %v541_v49 = vsel %vm536_vm5, %v532_v58, %v1059_v35  ;;  %v519_v14 = vsel %vm518_vm3, %v965_v47, %v327_v63 }
  0xa9   : > { %v1154_v3 = vsel %vm527_vm4, %v521_v1, %v355_v53  ;;  %v550_v6 = vsel %vm545_vm6, %v541_v49, %v407_v55 }
  0xaa   : > { %452 = vrot.lane.b32.xlu2 %v896_v9, %s841_s26  ;;  %v559_v47 = vsel %vm554_vm7, %v550_v6, %v1073_v25  ;;  %v539_v52 = vsel %vm536_vm5, %v1154_v3, %v1146_v61  ;;  %v524_v61 = vsel %vm518_vm3, %v896_v9, %v1134_v57 }
  0xab   : > { %v568_v15 = vsel %vm563_vm8, %v559_v47, %v455_v59 }
  0xac   : > { %v399_v11 = vpop.permute.xlu2 %398  ;;  %v577_v22 = vsel %vm572_vm9, %v568_v15, %v1101_v44 }
  0xad   : > { %448 = vrot.lane.b32.xlu1 %v990_v62, %s841_s26  ;;  %428 = vrot.lane.b32.xlu0 %v907_v17, %s838_s24  ;;  %v543_v17 = vsel %vm536_vm5, %v534_v7, %v1066_v38 }
  0xae   : > { %v552_v12 = vsel %vm545_vm6, %v543_v17, %v411_v46 }
  0xaf   : > { %v483_v4 = vpop.permute.xlu0 %482  ;;  %v351_v5 = vpop.permute.xlu1 %350  ;;  %v561_v13 = vsel %vm554_vm7, %v552_v12, %v435_v60 }
  0xb0   : > { %v528_v10 = vsel %vm527_vm4, %v519_v14, %v351_v5  ;;  %v570_v16 = vsel %vm563_vm8, %v561_v13, %v1080_v39 }
  0xb2   : > { %496 = vrot.lane.b32.xlu2 %v1018_v19, %s843_s28  ;;  %v579_v19 = vsel %vm572_vm9, %v570_v16, %v483_v4 }
  0xb5   : > { %476 = vrot.lane.b32.xlu1 %v946_v37, %s842_s27  ;;  %472 = vrot.lane.b32.xlu0 %v1004_v8, %s842_s27  ;;  %v389_v37 = vpop.permute.xlu2 %388 }
  0xb7   : > { %v503_v20 = vpop.permute.xlu0 %502  ;;  %v507_v21 = vpop.permute.xlu1 %506 }
  0xb8   : > { %v586_v26 = vsel %vm581_vm10, %v577_v22, %v503_v20  ;;  %v588_v28 = vsel %vm581_vm10, %v579_v19, %v507_v21 }
  0xb9   : > { %773 = vmatmul.msk.f32.vlgmr.msra.gmra.mxu2 %vm599_vm11, %v586_v26  ;;  %775 = vmatmul.msk.f32.vlgmr.msra.gmra.mxu3 %vm599_vm11, %v588_v28 }
  0xbd   : > { %500 = vrot.lane.b32.xlu0 %v939_v34, %s843_s28  ;;  %v409_v30 = vpop.permute.xlu2 %408  ;;  %s1266_s28 = scalar_lea.vmem %s1291_s4, %s779_s17 }
  0xbf   : > { %v341_v8 = vpop.permute.xlu0 %340  ;;  %v375_v29 = vpop.permute.xlu1 %374 }
  0xc0   : > { %v526_v31 = vsel %vm518_vm3, %v919_v23, %v341_v8  ;;  %v537_v23 = vsel %vm536_vm5, %v528_v10, %v375_v29 }
  0xc1   : > { %v546_v54 = vsel %vm545_vm6, %v537_v23, %v399_v11  ;;  %v825_v23 = vld [vmem:[%s1289_s2] ss:$0 sm:$0xff] }
  0xc5   : > { %v451_v25 = vpop.permute.xlu2 %450 }
  0xc7   : > { %v361_v32 = vpop.permute.xlu0 %360  ;;  %v365_v33 = vpop.permute.xlu1 %364 }
  0xc8   : > { %v535_v35 = vsel %vm527_vm4, %v526_v31, %v365_v33  ;;  %v533_v58 = vsel %vm527_vm4, %v524_v61, %v361_v32 }
  0xc9   : > { %v544_v38 = vsel %vm536_vm5, %v535_v35, %v389_v37 }
  0xcd   : > { %v471_v42 = vpop.permute.xlu2 %470 }
  0xcf   : > { %v403_v39 = vpop.permute.xlu0 %402  ;;  %v385_v24 = vpop.permute.xlu1 %384 }
  0xd0   : > { %v548_v53 = vsel %vm545_vm6, %v539_v52, %v403_v39  ;;  %v542_v7 = vsel %vm536_vm5, %v533_v58, %v385_v24 }
  0xd1   : > { %v551_v49 = vsel %vm545_vm6, %v542_v7, %v409_v30 }
  0xd5   : > { %v461_v44 = vpop.permute.xlu2 %460 }
  0xd7   : > { %v427_v40 = vpop.permute.xlu1 %426  ;;  %v423_v41 = vpop.permute.xlu0 %422 }
  0xd8   : > { %v557_v46 = vsel %vm554_vm7, %v548_v53, %v427_v40  ;;  %v555_v55 = vsel %vm554_vm7, %v546_v54, %v423_v41 }
  0xd9   : > { %v566_v60 = vsel %vm563_vm8, %v557_v46, %v451_v25 }
  0xdd   : > { %v329_v50 = vpop.permute.xlu2 %328 }
  0xde   : > { %v520_v29 = vsel %vm518_vm3, %v1029_v27, %v329_v50 }
  0xdf   : > { %v447_v43 = vpop.permute.xlu1 %446  ;;  %v413_v34 = vpop.permute.xlu0 %412 }
  0xe0   : > { %v564_v56 = vsel %vm563_vm8, %v555_v55, %v447_v43  ;;  %v553_v12 = vsel %vm545_vm6, %v544_v38, %v413_v34 }
  0xe1   : > { %v573_v2 = vsel %vm572_vm9, %v564_v56, %v471_v42 }
  0xe5   : > { %v485_v59 = vpop.permute.xlu2 %484 }
  0xe7   : > { %v437_v45 = vpop.permute.xlu1 %436  ;;  %v433_v48 = vpop.permute.xlu0 %432 }
  0xe8   : > { %v560_v14 = vsel %vm554_vm7, %v551_v49, %v433_v48  ;;  %v562_v47 = vsel %vm554_vm7, %v553_v12, %v437_v45 }
  0xe9   : > { %v571_v15 = vsel %vm563_vm8, %v562_v47, %v461_v44 }
  0xea   : > { %v580_v16 = vsel %vm572_vm9, %v571_v15, %v485_v59 }
  0xed   : > { %v505_v4 = vpop.permute.xlu2 %504 }
  0xef   : > { %v457_v51 = vpop.permute.xlu1 %456  ;;  %v475_v36 = vpop.permute.xlu0 %474 }
  0xf0   : > { %v575_v63 = vsel %vm572_vm9, %v566_v60, %v475_v36  ;;  %v569_v5 = vsel %vm563_vm8, %v560_v14, %v457_v51  ;;  %v826_v51 = vld [vmem:[%s1290_s3] ss:$0 sm:$0xff] }
  0xf5   : > { %v381_v13 = vpop.permute.xlu2 %380 }
  0xf7   : > { %v499_v0 = vpop.permute.xlu1 %498  ;;  %v495_v1 = vpop.permute.xlu0 %494 }
  0xf8   : > { %v582_v3 = vsel %vm581_vm10, %v573_v2, %v495_v1  ;;  %v584_v18 = vsel %vm581_vm10, %v575_v63, %v499_v0 }
  0xf9   : > { %769 = vmatmul.msk.f32.vlgmr.msra.gmra.mxu0 %vm599_vm11, %v582_v3  ;;  %771 = vmatmul.msk.f32.vlgmr.msra.gmra.mxu1 %vm599_vm11, %v584_v18 }
  0xfd   : > { %v425_v22 = vpop.permute.xlu2 %424 }
  0xff   : > { %v481_v9 = vpop.permute.xlu1 %480  ;;  %v333_v57 = vpop.permute.xlu0 %332 }
 0x100   : > { %v578_v6 = vsel %vm572_vm9, %v569_v5, %v481_v9  ;;  %v522_v35 = vsel %vm518_vm3, %v990_v62, %v333_v57 }
 0x101   : > { %v587_v10 = vsel %vm581_vm10, %v578_v6, %v505_v4 }
 0x102   : > { %774 = vmatmul.msk.f32.gmra.mxu2 %vm599_vm11, %v587_v10 }
 0x105   : > { %v453_v37 = vpop.permute.xlu2 %452 }
 0x107   : > { %v357_v11 = vpop.permute.xlu1 %356  ;;  %v353_v17 = vpop.permute.xlu0 %352 }
 0x108   : > { %v529_v30 = vsel %vm527_vm4, %v520_v29, %v353_v17  ;;  %v531_v38 = vsel %vm527_vm4, %v522_v35, %v357_v11 }
 0x109   : > { %v540_v41 = vsel %vm536_vm5, %v531_v38, %v381_v13 }
 0x10d   : > { %v497_v39 = vpop.permute.xlu2 %496 }
 0x10f   : > { %v377_v19 = vpop.permute.xlu1 %376  ;;  %v509_v20 = vpop.permute.xlu0 %508 }
 0x110   : > { %v589_v21 = vsel %vm581_vm10, %v580_v16, %v509_v20  ;;  %v538_v31 = vsel %vm536_vm5, %v529_v30, %v377_v19 }
 0x111   : > { %776 = vmatmul.msk.f32.gmra.mxu3 %vm599_vm11, %v589_v21 }
 0x117   : > { %v401_v26 = vpop.permute.xlu0 %400  ;;  %v405_v28 = vpop.permute.xlu1 %404 }
 0x118   : > { %v547_v33 = vsel %vm545_vm6, %v538_v31, %v401_v26  ;;  %v549_v43 = vsel %vm545_vm6, %v540_v41, %v405_v28 }
 0x119   : > { %v556_v25 = vsel %vm554_vm7, %v547_v33, %v425_v22 }
 0x11f   : > { %v429_v8 = vpop.permute.xlu0 %428  ;;  %v449_v32 = vpop.permute.xlu1 %448 }
 0x120   : > { %v565_v24 = vsel %vm563_vm8, %v556_v25, %v449_v32  ;;  %v558_v62 = vsel %vm554_vm7, %v549_v43, %v429_v8 }
 0x121   : > { %v567_v44 = vsel %vm563_vm8, %v558_v62, %v453_v37 }
 0x127   : > { %v473_v40 = vpop.permute.xlu0 %472  ;;  %v477_v34 = vpop.permute.xlu1 %476 }
 0x128   : > { %v574_v27 = vsel %vm572_vm9, %v565_v24, %v473_v40  ;;  %v576_v45 = vsel %vm572_vm9, %v567_v44, %v477_v34 }
 0x129   : > { %v583_v42 = vsel %vm581_vm10, %v574_v27, %v497_v39 }
 0x12a   : > { %770 = vmatmul.msk.f32.gmra.mxu0 %vm599_vm11, %v583_v42 }
 0x12f   : > { %v501_v48 = vpop.permute.xlu0 %500 }
 0x130   : > { %v585_v50 = vsel %vm581_vm10, %v576_v45, %v501_v48 }
 0x131   : > { %772 = vmatmul.msk.f32.gmra.mxu1 %vm599_vm11, %v585_v50 }
 0x13c   : > { %v653_v36 = vpop.f32.mrf.mxu2  ;;  %v659_v52 = vpop.f32.mrf.mxu3 }
 0x13d   : > { %v673_v53 = vmul.f32 %v825_v23, %v653_v36  ;;  %v675_v54 = vmul.f32 %v825_v23, %v659_v52 }
 0x13f   : > { %v685_v46 = vadd.f32 %v826_v51, %v673_v53  ;;  %v687_v55 = vadd.f32 %v826_v51, %v675_v54 }
 0x141   : > { %v693_v56 = vmax.f32 %v685_v46, 0.0  ;;  %v695_v59 = vmax.f32 %v687_v55, 0.0 }
 0x143   : > { %701 = vst.msk [vmem:[%s1266_s28 + $0x20] sm:$0xff] %vm545_vm6, %v693_v56 }
 0x144   : > { %703 = vst.msk [vmem:[%s1266_s28 + $0x30] sm:$0xff] %vm545_vm6, %v695_v59 }
 0x176   : > { %v641_v60 = vpop.f32.mrf.mxu0  ;;  %v647_v63 = vpop.f32.mrf.mxu1 }
 0x177   : > { %v669_v0 = vmul.f32 %v825_v23, %v641_v60  ;;  %v671_v1 = vmul.f32 %v825_v23, %v647_v63 }
 0x179   : > { %v681_v2 = vadd.f32 %v826_v51, %v669_v0  ;;  %v683_v61 = vadd.f32 %v826_v51, %v671_v1 }
 0x17b   : > { %v689_v3 = vmax.f32 %v681_v2, 0.0  ;;  %v691_v18 = vmax.f32 %v683_v61, 0.0 }
 0x17d   : > { %697 = vst.msk [vmem:[%s1266_s28] sm:$0xff] %vm545_vm6, %v689_v3 }
 0x17e   : > { %699 = vst.msk [vmem:[%s1266_s28 + $0x10] sm:$0xff] %vm545_vm6, %v691_v18 }
 0x185   : > { %v656_v58 = vpop.f32.mrf.mxu2 }
 0x186   : > { %v674_v7 = vmul.f32 %v825_v23, %v656_v58 }
 0x188   : > { %v686_v49 = vadd.f32 %v826_v51, %v674_v7 }
 0x18a   : > { %v694_v14 = vmax.f32 %v686_v49, 0.0 }
 0x18c   : > { %702 = vst.msk [vmem:[%s1266_s28 + $0x28] sm:$0xff] %vm545_vm6, %v694_v14 }
 0x194   : > { %v662_v4 = vpop.f32.mrf.mxu3 }
 0x195   : > { %v676_v5 = vmul.f32 %v825_v23, %v662_v4 }
 0x197   : > { %v688_v9 = vadd.f32 %v826_v51, %v676_v5 }
 0x199   : > { %v696_v57 = vmax.f32 %v688_v9, 0.0 }
 0x19b   : > { %704 = vst.msk [vmem:[%s1266_s28 + $0x38] sm:$0xff] %vm545_vm6, %v696_v57 }
 0x1a7   : > { %v644_v6 = vpop.f32.mrf.mxu0 }
 0x1a8   : > { %v670_v10 = vmul.f32 %v825_v23, %v644_v6 }
 0x1aa   : > { %v682_v11 = vadd.f32 %v826_v51, %v670_v10 }
 0x1ac   : > { %v690_v17 = vmax.f32 %v682_v11, 0.0 }
 0x1ae   : > { %698 = vst.msk [vmem:[%s1266_s28 + $0x8] sm:$0xff] %vm545_vm6, %v690_v17  ;;  %v650_v12 = vpop.f32.mrf.mxu1 }
 0x1af   : > { %v672_v47 = vmul.f32 %v825_v23, %v650_v12 }
 0x1b1   : > { %v684_v13 = vadd.f32 %v826_v51, %v672_v47 }
 0x1b3   : > { %v692_v15 = vmax.f32 %v684_v13, 0.0 }
 0x1b5   : > { %700 = vst.msk [vmem:[%s1266_s28 + $0x18] sm:$0xff] %vm545_vm6, %v692_v15 }
 0x1b6 PF: > { %s14_s15 = sadd.s32 1, %s833_s15  }
 0x1b7   : > { %p11_p4 = scmp.ge.s32.totalorder %s14_s15, 4  }
 0x1b9   :  { %13 = sbr.rel (!%p11_p4) target bundleno = 1 (0x1), region = 66 }

// kernel: encoder_stage_forward.13
= control target key start
LH: loop header
LB: loop body
LE: loop exit
PB: predicated region body
PF: predicated region fallthrough
CT: control target
= control target key end

     0   :  { %s1492_s21 = smov 0   ;;  %s2373_s0 = inlined_call_operand.vmem [shape: f32[2,10,10,4], index: 0, kind: input, shape index: {}]   ;;  %s2374_s1 = inlined_call_operand.vmem [shape: f32[2,10,10,4], index: 1, kind: input, shape index: {}]   ;;  %s2375_s2 = inlined_call_operand.vmem [shape: f32[2,10,10,4], index: 2, kind: input, shape index: {}]   ;;  %s2376_s3 = inlined_call_operand.vmem [shape: f32[2,10,10,4], index: 3, kind: input, shape index: {}]   ;;  %s2377_s4 = inlined_call_operand.vmem [shape: f32[72,8], index: 4, kind: input, shape index: {}]   ;;  %s2378_s5 = inlined_call_operand.vmem [shape: f32[1,8], index: 5, kind: input, shape index: {}]   ;;  %s2379_s6 = inlined_call_operand.vmem [shape: f32[2,8,8,8], index: 6, kind: output, shape index: {}]  }
   0x1 LB: > { %s1358_s22 = sadd.s32 4294967295, %s1439_s21   ;;  %p1362_p0 = scmp.ge.s32.totalorder %s1439_s21, 1  ;;  %s1439_s21 = sphi %s1492_s21, %s16_s21  }
   0x2   : > { %p242_p1 = scmp.lt.s32.totalorder %s1439_s21, 3 }
   0x4   : > { %p243_p2 = pnand %p1362_p0, %p242_p1 }
   0x6   : > { %246 = sbr.rel (%p243_p2) target bundleno = 667 (0x29b), region = 44 }
   0xb   : > { %p287_p3 = scmp.lt.s32.totalorder %s1358_s22, 1  ;;  %vm400_vm0 = vcmask 1046528   ;;  %s1441_s27 = smov 4   ;;  %vm964_vm1 = vcmask 31744   ;;  %vm973_vm2 = vcmask 64512   ;;  %vm982_vm3 = vcmask 97280  }
   0xc   : > { %s1442_s7 = smov 8   ;;  %s1443_s11 = smov 12   ;;  %vm560_vm4 = vcmask 1045504   ;;  %vm991_vm5 = vcmask 130048   ;;  %vm1000_vm6 = vcmask 162816   ;;  %vm1009_vm7 = vcmask 195584  }
   0xd   : > { %s2388_s22 = smov (!%p287_p3, %s1358_s22), 1  ;;  %s1444_s15 = smov 16   ;;  %vm1018_vm8 = vcmask 228352   ;;  %vm1027_vm9 = vcmask 261120   ;;  %vm1036_vm10 = vcmask 293888   ;;  %vm1045_vm11 = vcmask 326656  }
   0xe   : > { %s1503_s23 = smul.u32 160, %s2388_s22  ;;  %s1445_s16 = smov 20   ;;  %vm1054_vm12 = vcmask 359424   ;;  %vm1063_vm13 = vcmask 392192   ;;  %vm1072_vm14 = vcmask 424960   ;;  %vm1081_vm15 = vcmask 457728  }
   0xf   : > { %s1446_s17 = smov 24   ;;  %s1447_s18 = smov 28  }
  0x10   : > { %s1509_s26 = scalar_lea.vmem %s2375_s2, %s1503_s23  ;;  %s1539_s30 = scalar_lea.vmem %s2376_s3, %s1503_s23 }
  0x11   : > { %v356_v0 = vld [vmem:[%s1509_s26 + $0x40] sm:$0xff]  ;;  %v357_v1 = vld [vmem:[%s1509_s26 + $0x48] sm:$0x3]  ;;  %v358_v11 = vld [vmem:[%s1509_s26 + $0x50] sm:$0xff]  ;;  %s1645_s10 = scalar_lea.vmem %s2374_s1, %s1503_s23  ;;  %s1677_s14 = scalar_lea.vmem %s2373_s0, %s1503_s23 }
  0x12   : > { %v352_v2 = vld [vmem:[%s1509_s26 + $0x20] sm:$0xff]  ;;  %v413_v3 = vrot.slane %v356_v0, 1  ;;  %v414_v4 = vrot.slane %v357_v1, 1  ;;  %v353_v5 = vld [vmem:[%s1509_s26 + $0x28] sm:$0x3]  ;;  %v354_v15 = vld [vmem:[%s1509_s26 + $0x30] sm:$0xff] }
  0x13   : > { %v407_v6 = vrot.slane %v352_v2, 1  ;;  %v348_v7 = vld [vmem:[%s1509_s26] sm:$0xff]  ;;  %v408_v8 = vrot.slane %v353_v5, 1  ;;  %v349_v9 = vld [vmem:[%s1509_s26 + $0x8] sm:$0x3]  ;;  %v350_v18 = vld [vmem:[%s1509_s26 + $0x10] sm:$0xff] }
  0x14   : > { %v401_v10 = vrot.slane %v348_v7, 1  ;;  %v1519_v12 = vsel %vm400_vm0, %v413_v3, %v414_v4  ;;  %v402_v13 = vrot.slane %v349_v9, 1  ;;  %v359_v14 = vld [vmem:[%s1509_s26 + $0x58] sm:$0x3]  ;;  %v416_v21 = vrot.slane %v358_v11, 1  ;;  %v1548_v29 = vld [vmem:[%s1539_s30] sm:$0xff] }
  0x15   : > { %v355_v16 = vld [vmem:[%s1509_s26 + $0x38] sm:$0x3]  ;;  %612 = vrot.lane.b32.xlu2 %v1519_v12, %s1441_s27  ;;  %v1527_v17 = vsel %vm400_vm0, %v407_v6, %v408_v8  ;;  %v417_v22 = vrot.slane %v359_v14, 1  ;;  %v410_v23 = vrot.slane %v354_v15, 1  ;;  %v404_v25 = vrot.slane %v350_v18, 1  ;;  %v362_v32 = vld [vmem:[%s1509_s26 + $0x70] sm:$0xff] }
  0x16   : > { %v351_v19 = vld [vmem:[%s1509_s26 + $0x18] sm:$0x3]  ;;  %608 = vrot.lane.b32.xlu1 %v1527_v17, %s1441_s27  ;;  %v403_v20 = vsel %vm400_vm0, %v401_v10, %v402_v13  ;;  %v411_v24 = vrot.slane %v355_v16, 1  ;;  %v367_v30 = vld [vmem:[%s1539_s30 + $0x8] sm:$0x3]  ;;  %v360_v34 = vld [vmem:[%s1509_s26 + $0x60] sm:$0xff] }
  0x17   : > { %604 = vrot.lane.b32.xlu0 %v403_v20, %s1441_s27  ;;  %v405_v26 = vrot.slane %v351_v19, 1  ;;  %v1542_v27 = vsel %vm400_vm0, %v416_v21, %v417_v22  ;;  %v363_v33 = vld [vmem:[%s1509_s26 + $0x78] sm:$0x3]  ;;  %v361_v35 = vld [vmem:[%s1509_s26 + $0x68] sm:$0x3]  ;;  %v441_v36 = vrot.slane %v1548_v29, 1 }
  0x18   : > { %v1545_v28 = vsel %vm400_vm0, %v410_v23, %v411_v24  ;;  %v442_v37 = vrot.slane %v367_v30, 1  ;;  %v422_v38 = vrot.slane %v362_v32, 1  ;;  %v423_v39 = vrot.slane %v363_v33, 1  ;;  %v1570_v44 = vld [vmem:[%s1539_s30 + $0x30] sm:$0xff]  ;;  %v373_v45 = vld [vmem:[%s1539_s30 + $0x38] sm:$0x3] }
  0x19   : > { %v1552_v31 = vsel %vm400_vm0, %v404_v25, %v405_v26  ;;  %v419_v40 = vrot.slane %v360_v34, 1  ;;  %v420_v41 = vrot.slane %v361_v35, 1  ;;  %v1577_v47 = vld [vmem:[%s1539_s30 + $0x20] sm:$0xff]  ;;  %v371_v48 = vld [vmem:[%s1539_s30 + $0x28] sm:$0x3]  ;;  %v1582_v49 = vld [vmem:[%s1539_s30 + $0x10] sm:$0xff] }
  0x1a   : > { %v443_v42 = vsel %vm400_vm0, %v441_v36, %v442_v37  ;;  %v1567_v43 = vsel %vm400_vm0, %v422_v38, %v423_v39  ;;  %v369_v50 = vld [vmem:[%s1539_s30 + $0x18] sm:$0x3]  ;;  %v450_v51 = vrot.slane %v1570_v44, 1  ;;  %v451_v52 = vrot.slane %v373_v45, 1  ;;  %v1599_v59 = vld [vmem:[%s1539_s30 + $0x60] sm:$0xff]  ;;  %v1606_v62 = vld [vmem:[%s1539_s30 + $0x50] sm:$0xff] }
  0x1b   : > { %v1574_v46 = vsel %vm400_vm0, %v419_v40, %v420_v41  ;;  %v447_v53 = vrot.slane %v1577_v47, 1  ;;  %v448_v54 = vrot.slane %v371_v48, 1  ;;  %v444_v55 = vrot.slane %v1582_v49, 1  ;;  %v379_v60 = vld [vmem:[%s1539_s30 + $0x68] sm:$0x3]  ;;  %v1612_v0 = vld [vmem:[%s1539_s30 + $0x40] sm:$0xff] }
  0x1c   : > { %v445_v56 = vrot.slane %v369_v50, 1  ;;  %v1593_v57 = vsel %vm400_vm0, %v450_v51, %v451_v52  ;;  %v377_v63 = vld [vmem:[%s1539_s30 + $0x58] sm:$0x3]  ;;  %v375_v1 = vld [vmem:[%s1539_s30 + $0x48] sm:$0x3]  ;;  %v459_v2 = vrot.slane %v1599_v59, 1 }
  0x1d   : > { %614 = vrot.lane.b32.xlu2 %v1542_v27, %s1441_s27  ;;  %v1596_v58 = vsel %vm400_vm0, %v447_v53, %v448_v54  ;;  %v460_v3 = vrot.slane %v379_v60, 1  ;;  %v456_v4 = vrot.slane %v1606_v62, 1  ;;  %v457_v5 = vrot.slane %v377_v63, 1  ;;  %v1634_v11 = vld [vmem:[%s1539_s30 + $0x70] sm:$0xff]  ;;  %v381_v13 = vld [vmem:[%s1539_s30 + $0x78] sm:$0x3] }
  0x1e   : > { %610 = vrot.lane.b32.xlu1 %v1545_v28, %s1441_s27  ;;  %v1603_v61 = vsel %vm400_vm0, %v444_v55, %v445_v56  ;;  %v453_v6 = vrot.slane %v1612_v0, 1  ;;  %v454_v7 = vrot.slane %v375_v1, 1  ;;  %v462_v14 = vrot.slane %v1634_v11, 1  ;;  %v1649_v16 = vld [vmem:[%s1645_s10 + $0x20] sm:$0xff]  ;;  %v1652_v18 = vld [vmem:[%s1645_s10 + $0x10] sm:$0xff]  ;;  %s1448_s19 = smov 32  }
  0x1f   : > { %606 = vrot.lane.b32.xlu0 %v1552_v31, %s1441_s27  ;;  %v1623_v8 = vsel %vm400_vm0, %v459_v2, %v460_v3  ;;  %v1626_v9 = vsel %vm400_vm0, %v456_v4, %v457_v5  ;;  %v463_v15 = vrot.slane %v381_v13, 1  ;;  %v1662_v20 = vld [vmem:[%s1645_s10 + $0x50] sm:$0xff]  ;;  %v1665_v21 = vld [vmem:[%s1645_s10 + $0x40] sm:$0xff]  ;;  %v1689_v26 = vld [vmem:[%s1677_s14 + $0x38] sm:$0x3]  ;;  %s1449_s20 = smov 36  }
  0x20   : > { %v1629_v10 = vsel %vm400_vm0, %v453_v6, %v454_v7  ;;  %v1668_v22 = vld [vmem:[%s1645_s10 + $0x30] sm:$0xff]  ;;  %v1680_v23 = vld [vmem:[%s1645_s10 + $0x80] sm:$0xff]  ;;  %v1698_v33 = vld [vmem:[%s1677_s14 + $0x28] sm:$0x3]  ;;  %v488_v37 = vrot.slane %v1689_v26, 1  ;;  %s1450_s23 = smov 44  }
  0x21   : > { %v1655_v19 = vsel %vm400_vm0, %v462_v14, %v463_v15  ;;  %v1683_v24 = vld [vmem:[%s1645_s10 + $0x70] sm:$0xff]  ;;  %v1692_v30 = vld [vmem:[%s1645_s10 + $0x60] sm:$0xff]  ;;  %v1705_v35 = vld [vmem:[%s1677_s14 + $0x18] sm:$0x3]  ;;  %v485_v39 = vrot.slane %v1698_v33, 1  ;;  %s1451_s24 = smov 40  }
  0x22   : > { %v1686_v25 = vld [vmem:[%s1677_s14 + $0x30] sm:$0xff]  ;;  %v1695_v32 = vld [vmem:[%s1677_s14 + $0x20] sm:$0xff]  ;;  %2383 = vst [vmem:[#allocation2_spill] sm:$0xff] %v1705_v35  ;;  %v482_v41 = vrot.slane %v1705_v35, 1  ;;  %v1725_v50 = vld [vmem:[%s1677_s14 + $0x68] sm:$0x3] }
  0x23   : > { %v1702_v34 = vld [vmem:[%s1677_s14 + $0x10] sm:$0xff]  ;;  %v487_v36 = vrot.slane %v1686_v25, 1  ;;  %v484_v38 = vrot.slane %v1695_v32, 1  ;;  %v1722_v48 = vld [vmem:[%s1677_s14 + $0x60] sm:$0xff]  ;;  %v1734_v53 = vld [vmem:[%s1677_s14 + $0x58] sm:$0x3] }
  0x24   : > { %v481_v40 = vrot.slane %v1702_v34, 1  ;;  %v1731_v52 = vld [vmem:[%s1677_s14 + $0x50] sm:$0xff]  ;;  %v1739_v54 = vld [vmem:[%s1677_s14 + $0x40] sm:$0xff]  ;;  %v1742_v55 = vld [vmem:[%s1677_s14 + $0x48] sm:$0x3]  ;;  %v496_v56 = vrot.slane %v1722_v48, 1 }
  0x25   : > { %628 = vrot.lane.b32.xlu2 %v443_v42, %s1442_s7  ;;  %v1716_v42 = vsel %vm400_vm0, %v487_v36, %v488_v37  ;;  %v1719_v45 = vsel %vm400_vm0, %v484_v38, %v485_v39  ;;  %v497_v60 = vrot.slane %v1725_v50, 1  ;;  %v493_v63 = vrot.slane %v1731_v52, 1  ;;  %v333_v6 = vld [vmem:[%s1645_s10 + $0x18] sm:$0x3]  ;;  %v1765_v13 = vld [vmem:[%s1677_s14 + $0x80] sm:$0xff]  ;;  %v1773_v15 = vld [vmem:[%s1677_s14 + $0x70] sm:$0xff] }
  0x26   : > { %618 = vrot.lane.b32.xlu1 %v1567_v43, %s1441_s27  ;;  %2384 = vst [vmem:[#allocation3_spill] sm:$0xff] %v1716_v42  ;;  %v1728_v51 = vsel %vm400_vm0, %v481_v40, %v482_v41  ;;  %v494_v1 = vrot.slane %v1734_v53, 1  ;;  %v490_v2 = vrot.slane %v1739_v54, 1  ;;  %v491_v3 = vrot.slane %v1742_v55, 1  ;;  %v1768_v14 = vld [vmem:[%s1677_s14 + $0x88] sm:$0x3] }
  0x27   : > { %616 = vrot.lane.b32.xlu0 %v1574_v46, %s1441_s27  ;;  %v1755_v4 = vsel %vm400_vm0, %v496_v56, %v497_v60  ;;  %v1776_v36 = vld [vmem:[%s1677_s14 + $0x78] sm:$0x3]  ;;  %v521_v37 = vrot.slane %v1652_v18, 1  ;;  %v522_v38 = vrot.slane %v333_v6, 1  ;;  %v502_v39 = vrot.slane %v1765_v13, 1  ;;  %s1452_s25 = smov 48  }
  0x28   : > { %v1758_v5 = vsel %vm400_vm0, %v493_v63, %v494_v1  ;;  %v1762_v7 = vsel %vm400_vm0, %v490_v2, %v491_v3  ;;  %v503_v40 = vrot.slane %v1768_v14, 1  ;;  %v499_v41 = vrot.slane %v1773_v15, 1  ;;  %v337_v2 = vld [vmem:[%s1645_s10 + $0x38] sm:$0x3]  ;;  %v335_v3 = vld [vmem:[%s1645_s10 + $0x28] sm:$0x3] }
  0x29   : > { %v500_v56 = vrot.slane %v1776_v36, 1  ;;  %v523_v60 = vsel %vm400_vm0, %v521_v37, %v522_v38  ;;  %v530_v6 = vrot.slane %v1665_v21, 1  ;;  %v527_v38 = vrot.slane %v1668_v22, 1  ;;  %v345_v35 = vld [vmem:[%s1645_s10 + $0x78] sm:$0x3]  ;;  %s1455_s28 = smov 60  }
  0x2a   : > { %v1789_v63 = vsel %vm400_vm0, %v502_v39, %v503_v40  ;;  %v528_v39 = vrot.slane %v337_v2, 1  ;;  %v524_v40 = vrot.slane %v1649_v16, 1  ;;  %v540_v2 = vrot.slane %v345_v35, 1  ;;  %s1456_s29 = smov 64  }
  0x2b   : > { %v1793_v1 = vsel %vm400_vm0, %v499_v41, %v500_v56  ;;  %v525_v41 = vrot.slane %v335_v3, 1  ;;  %v542_v35 = vrot.slane %v1680_v23, 1 }
  0x2d   : > { %634 = vrot.lane.b32.xlu2 %v1593_v57, %s1442_s7 }
  0x2e   : > { %632 = vrot.lane.b32.xlu1 %v1596_v58, %s1442_s7 }
  0x2f   : > { %630 = vrot.lane.b32.xlu0 %v1603_v61, %s1442_s7 }
  0x35   : > { %640 = vrot.lane.b32.xlu2 %v1623_v8, %s1442_s7 }
  0x36   : > { %638 = vrot.lane.b32.xlu1 %v1626_v9, %s1442_s7 }
  0x37   : > { %636 = vrot.lane.b32.xlu0 %v1629_v10, %s1442_s7 }
  0x3d   : > { %654 = vrot.lane.b32.xlu2 %v1649_v16, %s1443_s11  ;;  %v536_v16 = vrot.slane %v1692_v30, 1 }
  0x3e   : > { %652 = vrot.lane.b32.xlu1 %v1652_v18, %s1443_s11  ;;  %v339_v18 = vld [vmem:[%s1645_s10 + $0x48] sm:$0x3] }
  0x3f   : > { %642 = vrot.lane.b32.xlu0 %v1655_v19, %s1442_s7  ;;  %v531_v37 = vrot.slane %v339_v18, 1  ;;  %v341_v18 = vld [vmem:[%s1645_s10 + $0x58] sm:$0x3] }
  0x41   : > { %v532_v56 = vsel %vm400_vm0, %v530_v6, %v531_v37  ;;  %v533_v37 = vrot.slane %v1662_v20, 1 }
  0x45   : > { %660 = vrot.lane.b32.xlu2 %v1662_v20, %s1443_s11 }
  0x46   : > { %658 = vrot.lane.b32.xlu1 %v1665_v21, %s1443_s11  ;;  %v526_v21 = vsel %vm400_vm0, %v524_v40, %v525_v41 }
  0x47   : > { %656 = vrot.lane.b32.xlu0 %v1668_v22, %s1443_s11  ;;  %v539_v22 = vrot.slane %v1683_v24, 1 }
  0x4d   : > { %666 = vrot.lane.b32.xlu2 %v1680_v23, %s1443_s11 }
  0x4e   : > { %664 = vrot.lane.b32.xlu1 %v1683_v24, %s1443_s11  ;;  %v347_v24 = vld [vmem:[%s1645_s10 + $0x88] sm:$0x3] }
  0x4f   : > { %662 = vrot.lane.b32.xlu0 %v1692_v30, %s1443_s11 }
  0x55   : > { %680 = vrot.lane.b32.xlu2 %v1716_v42, %s1444_s15  ;;  %v343_v42 = vld [vmem:[%s1645_s10 + $0x68] sm:$0x3] }
  0x56   : > { %678 = vrot.lane.b32.xlu1 %v1719_v45, %s1444_s15  ;;  %v537_v6 = vrot.slane %v343_v42, 1  ;;  %v543_v42 = vrot.slane %v347_v24, 1 }
  0x57   : > { %676 = vrot.lane.b32.xlu0 %v1728_v51, %s1444_s15 }
  0x58   : > { %v538_v40 = vsel %vm400_vm0, %v536_v16, %v537_v6  ;;  %v544_v20 = vsel %vm400_vm0, %v542_v35, %v543_v42  ;;  %v365_v42 = vld [vmem:[%s1509_s26 + $0x88] sm:$0x3] }
  0x5d   : > { %686 = vrot.lane.b32.xlu2 %v1755_v4, %s1444_s15 }
  0x5e   : > { %684 = vrot.lane.b32.xlu1 %v1758_v5, %s1444_s15 }
  0x5f   : > { %682 = vrot.lane.b32.xlu0 %v1762_v7, %s1444_s15 }
  0x65   : > { %700 = vrot.lane.b32.xlu2 %v523_v60, %s1445_s16  ;;  %v529_v60 = vsel %vm400_vm0, %v527_v38, %v528_v39  ;;  %v534_v38 = vrot.slane %v341_v18, 1  ;;  %v541_v39 = vsel %vm400_vm0, %v539_v22, %v540_v2  ;;  %v1837_v22 = vld [vmem:[%s1539_s30 + $0x80] sm:$0xff] }
  0x66   : > { %690 = vrot.lane.b32.xlu1 %v1789_v63, %s1444_s15 }
  0x67   : > { %688 = vrot.lane.b32.xlu0 %v1793_v1, %s1444_s15  ;;  %v535_v41 = vsel %vm400_vm0, %v533_v37, %v534_v38 }
  0x6d   : > { %706 = vrot.lane.b32.xlu2 %v532_v56, %s1445_s16 }
  0x6e   : > { %704 = vrot.lane.b32.xlu1 %v529_v60, %s1445_s16 }
  0x6f   : > { %702 = vrot.lane.b32.xlu0 %v526_v21, %s1445_s16  ;;  %v1816_v3 = vpop.permute.xlu2 %612 }
  0x75   : > { %712 = vrot.lane.b32.xlu2 %v541_v39, %s1445_s16 }
  0x76   : > { %710 = vrot.lane.b32.xlu1 %v538_v40, %s1445_s16 }
  0x77   : > { %708 = vrot.lane.b32.xlu0 %v535_v41, %s1445_s16  ;;  %v615_v30 = vpop.permute.xlu2 %614 }
  0x7d   : > { %726 = vrot.lane.b32.xlu2 %v1577_v47, %s1446_s17 }
  0x7e   : > { %724 = vrot.lane.b32.xlu1 %v1582_v49, %s1446_s17 }
  0x7f   : > { %714 = vrot.lane.b32.xlu0 %v544_v20, %s1445_s16  ;;  %v629_v56 = vpop.permute.xlu2 %628  ;;  %v548_v20 = vrot.slane %v365_v42, 1  ;;  %v586_v42 = vrot.slane %v1768_v14, 2  ;;  %v1930_v14 = vld [vmem:[%s1677_s14 + $0x90] sm:$0xff] }
  0x85   : > { %732 = vrot.lane.b32.xlu2 %v1606_v62, %s1446_s17 }
  0x86   : > { %730 = vrot.lane.b32.xlu1 %v1612_v0, %s1446_s17 }
  0x87   : > { %728 = vrot.lane.b32.xlu0 %v1570_v44, %s1446_s17  ;;  %v635_v23 = vpop.permute.xlu2 %634 }
  0x88   : > { %v609_v60 = vpop.permute.xlu1 %608 }
  0x89   : > { %v605_v21 = vpop.permute.xlu0 %604 }
  0x8a   : > { %v965_v18 = vsel %vm964_vm1, %v1548_v29, %v605_v21 }
  0x8b   : > { %v974_v2 = vsel %vm973_vm2, %v965_v18, %v629_v56 }
  0x8d   : > { %738 = vrot.lane.b32.xlu2 %v1837_v22, %s1446_s17 }
  0x8e   : > { %736 = vrot.lane.b32.xlu1 %v1634_v11, %s1446_s17 }
  0x8f   : > { %734 = vrot.lane.b32.xlu0 %v1599_v59, %s1446_s17  ;;  %v641_v16 = vpop.permute.xlu2 %640 }
  0x90   : > { %v611_v6 = vpop.permute.xlu1 %610 }
  0x91   : > { %v968_v37 = vsel %vm964_vm1, %v1570_v44, %v611_v6  ;;  %v607_v38 = vpop.permute.xlu0 %606  ;;  %v364_v44 = vld [vmem:[%s1509_s26 + $0x80] sm:$0xff]  ;;  %s1453_s26 = smov 56  }
  0x92   : > { %v1846_v29 = vsel %vm973_vm2, %v968_v37, %v635_v23 }
  0x95   : > { %752 = vrot.lane.b32.xlu2 %v1545_v28, %s1447_s18  ;;  %v967_v28 = vsel %vm964_vm1, %v1577_v47, %v609_v60  ;;  %v969_v60 = vsel %vm964_vm1, %v1612_v0, %v1816_v3 }
  0x96   : > { %750 = vrot.lane.b32.xlu1 %v1527_v17, %s1447_s18 }
  0x97   : > { %748 = vrot.lane.b32.xlu0 %v1552_v31, %s1447_s18  ;;  %v655_v39 = vpop.permute.xlu2 %654  ;;  %v547_v31 = vrot.slane %v364_v44, 1  ;;  %v585_v44 = vrot.slane %v1765_v13, 2 }
  0x98   : > { %v619_v40 = vpop.permute.xlu1 %618 }
  0x99   : > { %v617_v41 = vpop.permute.xlu0 %616  ;;  %v549_v18 = vsel %vm400_vm0, %v547_v31, %v548_v20  ;;  %v1927_v31 = vsel %vm560_vm4, %v585_v44, %v586_v42  ;;  %v1933_v20 = vld [vmem:[%s1677_s14 + $0x98] sm:$0x3]  ;;  %v1985_v44 = vld [vmem:[%s1677_s14] sm:$0xff] }
  0x9a   : > { %v971_v24 = vsel %vm964_vm1, %v1599_v59, %v617_v41  ;;  %v966_v59 = vsel %vm964_vm1, %v1582_v49, %v607_v38 }
  0x9b   : > { %v1854_v35 = vsel %vm973_vm2, %v971_v24, %v641_v16 }
  0x9d   : > { %758 = vrot.lane.b32.xlu2 %v1574_v46, %s1447_s18 }
  0x9e   : > { %756 = vrot.lane.b32.xlu1 %v1542_v27, %s1447_s18  ;;  %v970_v27 = vsel %vm964_vm1, %v1606_v62, %v615_v30  ;;  %v972_v62 = vsel %vm964_vm1, %v1634_v11, %v619_v40  ;;  %v574_v11 = vrot.slane %v1742_v55, 2  ;;  %v568_v40 = vrot.slane %v1698_v33, 2 }
  0x9f   : > { %754 = vrot.lane.b32.xlu0 %v1519_v12, %s1447_s18  ;;  %v661_v17 = vpop.permute.xlu2 %660 }
  0xa0   : > { %v633_v56 = vpop.permute.xlu1 %632 }
  0xa1   : > { %v976_v23 = vsel %vm973_vm2, %v967_v28, %v633_v56  ;;  %v631_v21 = vpop.permute.xlu0 %630  ;;  %v571_v56 = vrot.slane %v1689_v26, 2 }
  0xa2   : > { %v975_v46 = vsel %vm973_vm2, %v966_v59, %v631_v21  ;;  %v602_v21 = vrot.slane %v1933_v20, 2 }
  0xa3   : > { %v1869_v47 = vsel %vm982_vm3, %v975_v46, %v655_v39 }
  0xa5   : > { %772 = vrot.lane.b32.xlu2 %v1603_v61, %s1448_s19  ;;  %v580_v61 = vrot.slane %v1725_v50, 2 }
  0xa6   : > { %762 = vrot.lane.b32.xlu1 %v549_v18, %s1447_s18  ;;  %v582_v18 = vrot.slane %v1773_v15, 2 }
  0xa7   : > { %760 = vrot.lane.b32.xlu0 %v1567_v43, %s1447_s18  ;;  %v667_v12 = vpop.permute.xlu2 %666  ;;  %v579_v43 = vrot.slane %v1722_v48, 2 }
  0xa8   : > { %v639_v49 = vpop.permute.xlu1 %638 }
  0xa9   : > { %v979_v16 = vsel %vm973_vm2, %v970_v27, %v639_v49  ;;  %v637_v6 = vpop.permute.xlu0 %636 }
  0xaa   : > { %v978_v37 = vsel %vm973_vm2, %v969_v60, %v637_v6 }
  0xab   : > { %v1882_v38 = vsel %vm982_vm3, %v978_v37, %v661_v17  ;;  %v383_v37 = vld [vmem:[%s1539_s30 + $0x88] sm:$0x3] }
  0xad   : > { %778 = vrot.lane.b32.xlu2 %v1629_v10, %s1448_s19 }
  0xae   : > { %776 = vrot.lane.b32.xlu1 %v1593_v57, %s1448_s19  ;;  %v1897_v57 = vsel %vm560_vm4, %v579_v43, %v580_v61 }
  0xaf   : > { %774 = vrot.lane.b32.xlu0 %v1596_v58, %s1448_s19  ;;  %v681_v0 = vpop.permute.xlu2 %680  ;;  %v573_v58 = vrot.slane %v1739_v54, 2 }
  0xb0   : > { %v653_v3 = vpop.permute.xlu1 %652 }
  0xb1   : > { %v643_v30 = vpop.permute.xlu0 %642  ;;  %v983_v39 = vsel %vm982_vm3, %v974_v2, %v653_v3  ;;  %v567_v2 = vrot.slane %v1695_v32, 2  ;;  %v577_v3 = vrot.slane %v1734_v53, 2 }
  0xb2   : > { %v981_v10 = vsel %vm973_vm2, %v972_v62, %v643_v30 }
  0xb3   : > { %v1900_v41 = vsel %vm982_vm3, %v981_v10, %v667_v12  ;;  %v1921_v17 = vsel %vm560_vm4, %v567_v2, %v568_v40  ;;  %v583_v12 = vrot.slane %v1776_v36, 2  ;;  %v552_v36 = vrot.slane %v1837_v22, 1 }
  0xb5   : > { %1107 = vrot.lane.b32.xlu2 %v1897_v57, %s1441_s27  ;;  %v1957_v61 = vsel %vm560_vm4, %v582_v18, %v583_v12 }
  0xb6   : > { %782 = vrot.lane.b32.xlu1 %v1623_v8, %s1448_s19 }
  0xb7   : > { %780 = vrot.lane.b32.xlu0 %v1626_v9, %s1448_s19  ;;  %v687_v50 = vpop.permute.xlu2 %686  ;;  %v1918_v9 = vsel %vm560_vm4, %v573_v58, %v574_v11 }
  0xb8   : > { %v659_v24 = vpop.permute.xlu1 %658 }
  0xb9   : > { %v657_v8 = vpop.permute.xlu0 %656  ;;  %v986_v55 = vsel %vm982_vm3, %v1846_v29, %v659_v24  ;;  %v570_v29 = vrot.slane %v1686_v25, 2 }
  0xba   : > { %v985_v28 = vsel %vm982_vm3, %v976_v23, %v657_v8  ;;  %v601_v23 = vrot.slane %v1930_v14, 2 }
  0xbb   : > { %v1924_v33 = vsel %vm991_vm5, %v985_v28, %v681_v0  ;;  %v1951_v26 = vsel %vm560_vm4, %v570_v29, %v571_v56  ;;  %v576_v0 = vrot.slane %v1731_v52, 2 }
  0xbc   : > { %v603_v6 = vsel %vm560_vm4, %v601_v23, %v602_v21 }
  0xbd   : > { %1103 = vrot.lane.b32.xlu2 %v1918_v9, %s1441_s27 }
  0xbe   : > { %1099 = vrot.lane.b32.xlu1 %v1921_v17, %s1441_s27 }
  0xbf   : > { %1111 = vrot.lane.b32.xlu0 %v1927_v31, %s1441_s27  ;;  %v701_v59 = vpop.permute.xlu2 %700 }
  0xc0   : > { %v665_v46 = vpop.permute.xlu1 %664 }
  0xc1   : > { %v663_v27 = vpop.permute.xlu0 %662  ;;  %v989_v49 = vsel %vm982_vm3, %v1854_v35, %v665_v46  ;;  %v553_v35 = vrot.slane %v383_v37, 1 }
  0xc2   : > { %v988_v60 = vsel %vm982_vm3, %v979_v16, %v663_v27  ;;  %vm1163_vm3 = vcmask 523264  }
  0xc3   : > { %v997_v43 = vsel %vm991_vm5, %v988_v60, %v687_v50  ;;  %v554_v58 = vsel %vm400_vm0, %v552_v36, %v553_v35  ;;  %v1973_v50 = vsel %vm560_vm4, %v576_v0, %v577_v3 }
  0xc5   : > { %1101 = vrot.lane.b32.xlu2 %v1951_v26, %s1441_s27 }
  0xc6   : > { %1113 = vrot.lane.b32.xlu1 %v603_v6, %s1441_s27 }
  0xc7   : > { %1109 = vrot.lane.b32.xlu0 %v1957_v61, %s1441_s27  ;;  %v707_v16 = vpop.permute.xlu2 %706 }
  0xc8   : > { %v679_v62 = vpop.permute.xlu1 %678 }
  0xc9   : > { %v993_v30 = vsel %vm991_vm5, %v1869_v47, %v679_v62  ;;  %v677_v10 = vpop.permute.xlu0 %676  ;;  %v557_v62 = vrot.slane %v1985_v44, 1 }
  0xca   : > { %v992_v22 = vsel %vm991_vm5, %v983_v39, %v677_v10 }
  0xcb   : > { %v1001_v11 = vsel %vm1000_vm6, %v992_v22, %v701_v59 }
  0xcd   : > { %786 = vrot.lane.b32.xlu2 %v554_v58, %s1448_s19 }
  0xce   : > { %784 = vrot.lane.b32.xlu1 %v1655_v19, %s1448_s19 }
  0xcf   : > { %1105 = vrot.lane.b32.xlu0 %v1973_v50, %s1441_s27  ;;  %v713_v53 = vpop.permute.xlu2 %712  ;;  %s1454_s27 = smov 52  }
  0xd0   : > { %v685_v47 = vpop.permute.xlu1 %684 }
  0xd1   : > { %v996_v39 = vsel %vm991_vm5, %v1882_v38, %v685_v47  ;;  %v683_v2 = vpop.permute.xlu0 %682 }
  0xd2   : > { %v995_v40 = vsel %vm991_vm5, %v986_v55, %v683_v2 }
  0xd3   : > { %v1004_v24 = vsel %vm1000_vm6, %v995_v40, %v707_v16  ;;  %v2026_v16 = vld [vmem:[%s1677_s14 + $0x8] sm:$0x3] }
  0xd4   : > { %v558_v3 = vrot.slane %v2026_v16, 1 }
  0xd5   : > { %808 = vrot.lane.b32.xlu2 %v1722_v48, %s1449_s20 }
  0xd6   : > { %804 = vrot.lane.b32.xlu1 %v1739_v54, %s1449_s20 }
  0xd7   : > { %796 = vrot.lane.b32.xlu0 %v1985_v44, %s1449_s20  ;;  %v727_v19 = vpop.permute.xlu2 %726 }
  0xd8   : > { %v691_v42 = vpop.permute.xlu1 %690 }
  0xd9   : > { %v999_v38 = vsel %vm991_vm5, %v1900_v41, %v691_v42  ;;  %v689_v8 = vpop.permute.xlu0 %688 }
  0xda   : > { %v998_v55 = vsel %vm991_vm5, %v989_v49, %v689_v8 }
  0xdb   : > { %v1007_v28 = vsel %vm1000_vm6, %v998_v55, %v713_v53 }
  0xdd   : > { %852 = vrot.lane.b32.xlu2 %v1918_v9, %s1450_s23 }
  0xde   : > { %832 = vrot.lane.b32.xlu1 %v1755_v4, %s1451_s24 }
  0xdf   : > { %828 = vrot.lane.b32.xlu0 %v1762_v7, %s1451_s24  ;;  %v733_v29 = vpop.permute.xlu2 %732 }
  0xe0   : > { %v705_v56 = vpop.permute.xlu1 %704 }
  0xe1   : > { %v1003_v41 = vsel %vm1000_vm6, %v1924_v33, %v705_v56  ;;  %v703_v59 = vpop.permute.xlu0 %702 }
  0xe2   : > { %v1002_v23 = vsel %vm1000_vm6, %v993_v30, %v703_v59 }
  0xe3   : > { %v1011_v21 = vsel %vm1009_vm7, %v1002_v23, %v727_v19 }
  0xe5   : > { %880 = vrot.lane.b32.xlu2 %v1773_v15, %s1452_s25 }
  0xe6   : > { %876 = vrot.lane.b32.xlu1 %v1731_v52, %s1452_s25 }
  0xe7   : > { %856 = vrot.lane.b32.xlu0 %v1897_v57, %s1450_s23  ;;  %v739_v46 = vpop.permute.xlu2 %738 }
  0xe8   : > { %v711_v18 = vpop.permute.xlu1 %710 }
  0xe9   : > { %v1006_v33 = vsel %vm1000_vm6, %v997_v43, %v711_v18  ;;  %v709_v12 = vpop.permute.xlu0 %708 }
  0xea   : > { %v1005_v27 = vsel %vm1000_vm6, %v996_v39, %v709_v12 }
  0xeb   : > { %v1014_v49 = vsel %vm1009_vm7, %v1005_v27, %v733_v29 }
  0xed   : > { %924 = vrot.lane.b32.xlu2 %v1973_v50, %s1453_s26 }
  0xee   : > { %904 = vrot.lane.b32.xlu1 %v1793_v1, %s1454_s27 }
  0xef   : > { %900 = vrot.lane.b32.xlu0 %v1758_v5, %s1454_s27  ;;  %v753_v60 = vpop.permute.xlu2 %752 }
  0xf0   : > { %v725_v6 = vpop.permute.xlu1 %724 }
  0xf1   : > { %v1010_v37 = vsel %vm1009_vm7, %v1001_v11, %v725_v6  ;;  %v715_v43 = vpop.permute.xlu0 %714  ;;  %v559_v11 = vsel %vm400_vm0, %v557_v62, %v558_v3 }
  0xf2   : > { %v1008_v36 = vsel %vm1000_vm6, %v999_v38, %v715_v43 }
  0xf3   : > { %v1017_v35 = vsel %vm1009_vm7, %v1008_v36, %v739_v46 }
  0xf5   : > { %948 = vrot.lane.b32.xlu2 %v1722_v48, %s1455_s28 }
  0xf6   : > { %800 = vrot.lane.b32.xlu1 %v1695_v32, %s1449_s20 }
  0xf7   : > { %928 = vrot.lane.b32.xlu0 %v1957_v61, %s1453_s26  ;;  %v759_v0 = vpop.permute.xlu2 %758 }
  0xf8   : > { %v731_v30 = vpop.permute.xlu1 %730 }
  0xf9   : > { %v1013_v10 = vsel %vm1009_vm7, %v1004_v24, %v731_v30  ;;  %v729_v22 = vpop.permute.xlu0 %728 }
  0xfa   : > { %v1012_v58 = vsel %vm1009_vm7, %v1003_v41, %v729_v22 }
  0xfb   : > { %v1021_v53 = vsel %vm1018_vm8, %v1012_v58, %v753_v60 }
  0xfd   : > { %824 = vrot.lane.b32.xlu2 %v1719_v45, %s1451_s24 }
  0xfe   : > { %820 = vrot.lane.b32.xlu1 %v559_v11, %s1451_s24 }
  0xff   : > { %952 = vrot.lane.b32.xlu0 %v1765_v13, %s1455_s28  ;;  %v773_v47 = vpop.permute.xlu2 %772 }
 0x100   : > { %v737_v39 = vpop.permute.xlu1 %736 }
 0x101   : > { %v1016_v2 = vsel %vm1009_vm7, %v1007_v28, %v737_v39  ;;  %v735_v40 = vpop.permute.xlu0 %734 }
 0x102   : > { %v1015_v24 = vsel %vm1009_vm7, %v1006_v33, %v735_v40 }
 0x103   : > { %v1024_v19 = vsel %vm1018_vm8, %v1015_v24, %v759_v0 }
 0x105   : > { %806 = vrot.lane.b32.xlu2 %v1731_v52, %s1449_s20 }
 0x107   : > { %v779_v42 = vpop.permute.xlu2 %778 }
 0x108   : > { %v751_v38 = vpop.permute.xlu1 %750 }
 0x109   : > { %v1020_v8 = vsel %vm1018_vm8, %v1011_v21, %v751_v38  ;;  %v749_v55 = vpop.permute.xlu0 %748 }
 0x10a   : > { %v1019_v29 = vsel %vm1018_vm8, %v1010_v37, %v749_v55 }
 0x10b   : > { %v1028_v56 = vsel %vm1027_vm9, %v1019_v29, %v773_v47  ;;  %v562_v47 = vrot.slane %v2026_v16, 2 }
 0x10d   : > { %848 = vrot.lane.b32.xlu2 %v1921_v17, %s1450_s23 }
 0x10f   : > { %v1108_v28 = vpop.permute.xlu2 %1107 }
 0x110   : > { %v757_v41 = vpop.permute.xlu1 %756  ;;  %v1127_v59 = vsel %vm964_vm1, %v1755_v4, %v1108_v28  ;;  %v2385_v28 = vld [vmem:[#allocation3_spill] sm:$0xff] }
 0x111   : > { %v1023_v23 = vsel %vm1018_vm8, %v1014_v49, %v757_v41  ;;  %v755_v46 = vpop.permute.xlu0 %754  ;;  %1147 = vrot.lane.b32.xlu0 %v1127_v59, %s1456_s29  ;;  %v564_v41 = vrot.slane %v1702_v34, 2  ;;  %v2386_v59 = vld [vmem:[#allocation2_spill] sm:$0xff] }
 0x112   : > { %v1022_v21 = vsel %vm1018_vm8, %v1013_v10, %v755_v46 }
 0x113   : > { %v2061_v18 = vsel %vm1027_vm9, %v1022_v21, %v779_v42  ;;  %v1178_v21 = vld [vmem:[%s2377_s4 + $0x30] sm:$0xff] }
 0x115   : > { %868 = vrot.lane.b32.xlu2 %v1702_v34, %s1452_s25 }
 0x117   : > { %v2065_v33 = vpop.permute.xlu2 %1103 }
 0x118   : > { %v763_v12 = vpop.permute.xlu1 %762 }
 0x119   : > { %v1026_v27 = vsel %vm1018_vm8, %v1017_v35, %v763_v12  ;;  %v761_v60 = vpop.permute.xlu0 %760  ;;  %810 = vrot.lane.b32.xlu0 %v1773_v15, %s1449_s20 }
 0x11a   : > { %v2071_v49 = vsel %vm1018_vm8, %v1016_v2, %v761_v60  ;;  %v1176_v60 = vld [vmem:[%s2377_s4 + $0x20] sm:$0xff] }
 0x11d   : > { %858 = vrot.lane.b32.xlu2 %v1957_v61, %s1450_s23 }
 0x11f   : > { %v2075_v6 = vpop.permute.xlu2 %1101 }
 0x120   : > { %v777_v37 = vpop.permute.xlu1 %776 }
 0x121   : > { %v2078_v43 = vsel %vm1027_vm9, %v1021_v53, %v777_v37  ;;  %v775_v36 = vpop.permute.xlu0 %774  ;;  %830 = vrot.lane.b32.xlu0 %v1758_v5, %s1451_s24  ;;  %v561_v53 = vrot.slane %v1985_v44, 2 }
 0x122   : > { %v2083_v35 = vsel %vm1027_vm9, %v1020_v8, %v775_v36  ;;  %v1175_v36 = vld [vmem:[%s2377_s4 + $0x18] sm:$0xff] }
 0x123   : > { %v563_v40 = vsel %vm560_vm4, %v561_v53, %v562_v47 }
 0x125   : > { %878 = vrot.lane.b32.xlu2 %v1722_v48, %s1452_s25 }
 0x127   : > { %v787_v62 = vpop.permute.xlu2 %786 }
 0x128   : > { %v2088_v0 = vsel %vm1027_vm9, %v1026_v27, %v787_v62  ;;  %v783_v61 = vpop.permute.xlu1 %782  ;;  %v1177_v27 = vld [vmem:[%s2377_s4 + $0x28] sm:$0xff] }
 0x129   : > { %v2091_v3 = vsel %vm1027_vm9, %v1024_v19, %v783_v61  ;;  %v781_v30 = vpop.permute.xlu0 %780  ;;  %872 = vrot.lane.b32.xlu0 %v1686_v25, %s1452_s25  ;;  %v1174_v61 = vld [vmem:[%s2377_s4 + $0x10] sm:$0xff] }
 0x12a   : > { %v2096_v10 = vsel %vm1027_vm9, %v1023_v23, %v781_v30  ;;  %v565_v23 = vrot.slane %v2386_v59, 2 }
 0x12c   : > { %v2174_v12 = vsel %vm560_vm4, %v564_v41, %v565_v23  ;;  %vm1185_vm4 = vcmask 588800  }
 0x12d   : > { %920 = vrot.lane.b32.xlu2 %v1951_v26, %s1453_s26 }
 0x12f   : > { %v2100_v22 = vpop.permute.xlu2 %808 }
 0x130   : > { %v1100_v48 = vpop.permute.xlu1 %1099 }
 0x131   : > { %v1112_v58 = vpop.permute.xlu0 %1111  ;;  %892 = vrot.lane.b32.xlu0 %v1728_v51, %s1454_s27 }
 0x132   : > { %v1129_v11 = vsel %vm964_vm1, %v1789_v63, %v1112_v58  ;;  %v590_v58 = vrot.slane %v1930_v14, 1 }
 0x133   : > { %1151 = vrot.lane.b32.xlu1 %v1129_v11, %s1456_s29  ;;  %v1172_v11 = vld [vmem:[%s2377_s4] sm:$0xff] }
 0x135   : > { %940 = vrot.lane.b32.xlu2 %v1695_v32, %s1455_s28 }
 0x137   : > { %v2111_v39 = vpop.permute.xlu2 %852 }
 0x138   : > { %v2113_v2 = vpop.permute.xlu1 %1113 }
 0x139   : > { %v1110_v24 = vpop.permute.xlu0 %1109  ;;  %882 = vrot.lane.b32.xlu0 %v1765_v13, %s1452_s25 }
 0x13a   : > { %v1128_v29 = vsel %vm964_vm1, %v1793_v1, %v1110_v24 }
 0x13b   : > { %844 = vrot.lane.b32.xlu1 %v563_v40, %s1450_s23 }
 0x13d   : > { %930 = vrot.lane.b32.xlu2 %v1927_v31, %s1453_s26 }
 0x13f   : > { %v2121_v44 = vpop.permute.xlu2 %880 }
 0x140   : > { %v2123_v16 = vpop.permute.xlu1 %784 }
 0x141   : > { %v2125_v19 = vpop.permute.xlu0 %1105  ;;  %902 = vrot.lane.b32.xlu0 %v1755_v4, %s1454_s27  ;;  %v1123_v4 = vsel %vm964_vm1, %v1719_v45, %v1100_v48 }
 0x143   : > { %834 = vrot.lane.b32.xlu1 %v1793_v1, %s1451_s24  ;;  %v1179_v1 = vld [vmem:[%s2377_s4 + $0x38] sm:$0xff] }
 0x145   : > { %798 = vrot.lane.b32.xlu2 %v1702_v34, %s1449_s20 }
 0x147   : > { %v2133_v13 = vpop.permute.xlu2 %924 }
 0x148   : > { %v2135_v42 = vpop.permute.xlu1 %804 }
 0x149   : > { %v797_v31 = vpop.permute.xlu0 %796  ;;  %944 = vrot.lane.b32.xlu0 %v1739_v54, %s1455_s28 }
 0x14a   : > { %v2140_v38 = vsel %vm1036_vm10, %v1028_v56, %v797_v31 }
 0x14b   : > { %854 = vrot.lane.b32.xlu1 %v1973_v50, %s1450_s23  ;;  %v1180_v50 = vld [vmem:[%s2377_s4 + $0x40] sm:$0xff] }
 0x14c   : > { %1381 = vmatpush.msra.mxu2 %v1180_v50  ;;  %1382 = vmatpush.msra.mxu3 %v1180_v50 }
 0x14d   : > { %954 = vrot.lane.b32.xlu2 %v1930_v14, %s1455_s28  ;;  %1217 = vmatpush.msra.mxu0 %v1180_v50 }
 0x14e   : > { %1384 = vmatpush.msra.mxu2 %v1179_v1  ;;  %1385 = vmatpush.msra.mxu3 %v1179_v1 }
 0x14f   : > { %v2148_v8 = vpop.permute.xlu2 %948  ;;  %1218 = vmatpush.msra.mxu0 %v1179_v1  ;;  %1380 = vmatpush.msra.mxu1 %v1180_v50 }
 0x150   : > { %v2150_v55 = vpop.permute.xlu1 %832  ;;  %1387 = vmatpush.msra.mxu2 %v1178_v21  ;;  %1388 = vmatpush.msra.mxu3 %v1178_v21 }
 0x151   : > { %1139 = vrot.lane.b32.xlu0 %v1123_v4, %s1456_s29  ;;  %v2155_v56 = vpop.permute.xlu0 %828  ;;  %1219 = vmatpush.msra.mxu0 %v1178_v21 }
 0x152   : > { %1383 = vmatpush.msra.mxu1 %v1179_v1  ;;  %1390 = vmatpush.msra.mxu2 %v1177_v27 }
 0x153   : > { %896 = vrot.lane.b32.xlu1 %v2385_v28, %s1454_s27  ;;  %1391 = vmatpush.msra.mxu3 %v1177_v27 }
 0x154   : > { %1220 = vmatpush.msra.mxu0 %v1177_v27  ;;  %1393 = vmatpush.msra.mxu2 %v1176_v60 }
 0x155   : > { %1149 = vrot.lane.b32.xlu2 %v1128_v29, %s1456_s29  ;;  %1394 = vmatpush.msra.mxu3 %v1176_v60 }
 0x156   : > { %1221 = vmatpush.msra.mxu0 %v1176_v60  ;;  %1386 = vmatpush.msra.mxu1 %v1178_v21 }
 0x157   : > { %v825_v46 = vpop.permute.xlu2 %824  ;;  %1396 = vmatpush.msra.mxu2 %v1175_v36  ;;  %1397 = vmatpush.msra.mxu3 %v1175_v36 }
 0x158   : > { %v2171_v34 = vpop.permute.xlu1 %876  ;;  %1222 = vmatpush.msra.mxu0 %v1175_v36  ;;  %1389 = vmatpush.msra.mxu1 %v1177_v27 }
 0x159   : > { %802 = vrot.lane.b32.xlu0 %v1686_v25, %s1449_s20  ;;  %v2186_v37 = vpop.permute.xlu0 %856  ;;  %1399 = vmatpush.msra.mxu2 %v1174_v61 }
 0x15a   : > { %1400 = vmatpush.msra.mxu3 %v1174_v61  ;;  %1223 = vmatpush.msra.mxu0 %v1174_v61 }
 0x15b   : > { %916 = vrot.lane.b32.xlu1 %v2174_v12, %s1453_s26  ;;  %1392 = vmatpush.msra.mxu1 %v1176_v60 }
 0x15d   : > { %850 = vrot.lane.b32.xlu2 %v1951_v26, %s1450_s23  ;;  %v591_v26 = vrot.slane %v1933_v20, 1  ;;  %1395 = vmatpush.msra.mxu1 %v1175_v36 }
 0x15f   : > { %v807_v62 = vpop.permute.xlu2 %806  ;;  %1398 = vmatpush.msra.mxu1 %v1174_v61 }
 0x160   : > { %v2198_v30 = vsel %vm1036_vm10, %v2091_v3, %v807_v62  ;;  %v2200_v48 = vpop.permute.xlu1 %904  ;;  %v1173_v3 = vld [vmem:[%s2377_s4 + $0x8] sm:$0xff] }
 0x161   : > { %822 = vrot.lane.b32.xlu0 %v1728_v51, %s1451_s24  ;;  %1402 = vmatpush.msra.mxu2 %v1173_v3  ;;  %v592_v51 = vsel %vm400_vm0, %v590_v58, %v591_v26  ;;  %vm1090_vm0 = vcmask 490496  }
 0x162   : > { %1403 = vmatpush.msra.mxu3 %v1173_v3  ;;  %1224 = vmatpush.msra.mxu0 %v1173_v3  ;;  %v1130_v20 = vsel %vm964_vm1, %v592_v51, %v2113_v2 }
 0x163   : > { %906 = vrot.lane.b32.xlu1 %v1789_v63, %s1454_s27  ;;  %1405 = vmatpush.msra.mxu2 %v1172_v11  ;;  %v901_v63 = vpop.permute.xlu0 %900 }
 0x164   : > { %1406 = vmatpush.msra.mxu3 %v1172_v11  ;;  %1225 = vmatpush.msra.mxu0 %v1172_v11 }
 0x165   : > { %894 = vrot.lane.b32.xlu2 %v1719_v45, %s1454_s27  ;;  %1401 = vmatpush.msra.mxu1 %v1173_v3 }
 0x167   : > { %v849_v45 = vpop.permute.xlu2 %848  ;;  %1404 = vmatpush.msra.mxu1 %v1172_v11 }
 0x168   : > { %v801_v14 = vpop.permute.xlu1 %800 }
 0x169   : > { %v1039_v53 = vsel %vm1036_vm10, %v2078_v43, %v801_v14  ;;  %1153 = vrot.lane.b32.xlu0 %v1130_v20, %s1456_s29  ;;  %v1125_v43 = vsel %vm964_vm1, %v1762_v7, %v2065_v33 }
 0x16a   : > { %v1048_v47 = vsel %vm1045_vm11, %v1039_v53, %v825_v46 }
 0x16b   : > { %926 = vrot.lane.b32.xlu1 %v1897_v57, %s1453_s26  ;;  %v1057_v40 = vsel %vm1054_vm12, %v1048_v47, %v849_v45  ;;  %v929_v2 = vpop.permute.xlu0 %928  ;;  %v1124_v57 = vsel %vm964_vm1, %v2385_v28, %v2075_v6 }
 0x16d   : > { %922 = vrot.lane.b32.xlu2 %v1918_v9, %s1453_s26  ;;  %v1041_v9 = vsel %vm1036_vm10, %v2096_v10, %v2135_v42 }
 0x171   : > { %870 = vrot.lane.b32.xlu0 %v1695_v32, %s1452_s25  ;;  %v1050_v32 = vsel %vm1045_vm11, %v1041_v9, %v2155_v56 }
 0x172   : > { %v1059_v33 = vsel %vm1054_vm12, %v1050_v32, %v2111_v39 }
 0x173   : > { %1143 = vrot.lane.b32.xlu1 %v1125_v43, %s1456_s29  ;;  %v953_v24 = vpop.permute.xlu0 %952  ;;  %v1068_v6 = vsel %vm1063_vm13, %v1059_v33, %v2171_v34 }
 0x174   : > { %v1077_v10 = vsel %vm1072_vm14, %v1068_v6, %v901_v63 }
 0x175   : > { %1141 = vrot.lane.b32.xlu2 %v1124_v57, %s1456_s29  ;;  %v1086_v42 = vsel %vm1081_vm15, %v1077_v10, %v2133_v13  ;;  %v1126_v13 = vsel %vm964_vm1, %v1758_v5, %v2125_v19  ;;  %v1034_v5 = vsel %vm1027_vm9, %v2071_v49, %v2123_v16 }
 0x179   : > { %898 = vrot.lane.b32.xlu0 %v1762_v7, %s1454_s27 }
 0x17b   : > { %950 = vrot.lane.b32.xlu1 %v1773_v15, %s1455_s28  ;;  %v1095_v15 = vsel %vm1090_vm0, %v1086_v42, %v2148_v8  ;;  %v869_v8 = vpop.permute.xlu2 %868 }
 0x181   : > { %942 = vrot.lane.b32.xlu0 %v1686_v25, %s1455_s28 }
 0x183   : > { %826 = vrot.lane.b32.xlu1 %v2385_v28, %s1451_s24  ;;  %v1148_v7 = vpop.permute.xlu0 %1147  ;;  %v821_v28 = vpop.permute.xlu1 %820 }
 0x184   : > { %v1168_v39 = vsel %vm1163_vm3, %v1095_v15, %v1148_v7  ;;  %v859_v50 = vpop.permute.xlu2 %858  ;;  %v1046_v62 = vsel %vm1045_vm11, %v2140_v38, %v821_v28 }
 0x185   : > { %1373 = vmatmul.msk.f32.vlgmr.msra.gmra.mxu2 %vm1185_vm4, %v1168_v39 }
 0x189   : > { %1145 = vrot.lane.b32.xlu0 %v1126_v13, %s1456_s29 }
 0x18b   : > { %846 = vrot.lane.b32.xlu1 %v2174_v12, %s1450_s23  ;;  %v811_v25 = vpop.permute.xlu0 %810 }
 0x18c   : > { %v1044_v31 = vsel %vm1036_vm10, %v2088_v0, %v811_v25  ;;  %v1043_v0 = vsel %vm1036_vm10, %v1034_v5, %v2100_v22  ;;  %v879_v1 = vpop.permute.xlu2 %878 }
 0x193   : > { %874 = vrot.lane.b32.xlu1 %v1739_v54, %s1452_s25  ;;  %v831_v4 = vpop.permute.xlu0 %830  ;;  %v1052_v54 = vsel %vm1045_vm11, %v1043_v0, %v2150_v55  ;;  %s1379_s25 = sshll.u32 %s2388_s22, 6 }
 0x194   : > { %v1051_v29 = vsel %vm1045_vm11, %v2198_v30, %v831_v4  ;;  %v1061_v41 = vsel %vm1054_vm12, %v1052_v54, %v2186_v37 }
 0x195   : > { %v1070_v49 = vsel %vm1063_vm13, %v1061_v41, %v2121_v44  ;;  %v921_v44 = vpop.permute.xlu2 %920 }
 0x19b   : > { %918 = vrot.lane.b32.xlu1 %v1921_v17, %s1453_s26  ;;  %v873_v19 = vpop.permute.xlu0 %872  ;;  %v1079_v17 = vsel %vm1072_vm14, %v1070_v49, %v2200_v48 }
 0x19c   : > { %v1066_v56 = vsel %vm1063_vm13, %v1057_v40, %v873_v19  ;;  %v1088_v22 = vsel %vm1081_vm15, %v1079_v17, %v929_v2  ;;  %v1432_v17 = vld [vmem:[%s2378_s5] ss:$0 sm:$0xff] }
 0x19d   : > { %v1097_v59 = vsel %vm1090_vm0, %v1088_v22, %v953_v24  ;;  %v941_v60 = vpop.permute.xlu2 %940 }
 0x1a3   : > { %946 = vrot.lane.b32.xlu1 %v1731_v52, %s1455_s28  ;;  %v893_v16 = vpop.permute.xlu0 %892  ;;  %s2339_s28 = scalar_lea.vmem %s2379_s6, %s1379_s25 }
 0x1a5   : > { %v1152_v23 = vpop.permute.xlu1 %1151  ;;  %v931_v61 = vpop.permute.xlu2 %930 }
 0x1a6   : > { %v1170_v55 = vsel %vm1163_vm3, %v1097_v59, %v1152_v23 }
 0x1a7   : > { %1375 = vmatmul.msk.f32.vlgmr.msra.gmra.mxu3 %vm1185_vm4, %v1170_v55 }
 0x1ab   : > { %v883_v46 = vpop.permute.xlu0 %882 }
 0x1ad   : > { %v845_v21 = vpop.permute.xlu1 %844  ;;  %v799_v20 = vpop.permute.xlu2 %798 }
 0x1ae   : > { %v1055_v30 = vsel %vm1054_vm12, %v1046_v62, %v845_v21 }
 0x1af   : > { %v1064_v48 = vsel %vm1063_vm13, %v1055_v30, %v869_v8 }
 0x1b0   : > { %v1073_v3 = vsel %vm1072_vm14, %v1064_v48, %v893_v16 }
 0x1b3   : > { %v903_v34 = vpop.permute.xlu0 %902 }
 0x1b5   : > { %v835_v12 = vpop.permute.xlu1 %834  ;;  %v955_v43 = vpop.permute.xlu2 %954 }
 0x1b6   : > { %v1053_v63 = vsel %vm1045_vm11, %v1044_v31, %v835_v12 }
 0x1b7   : > { %v1062_v53 = vsel %vm1054_vm12, %v1053_v63, %v859_v50  ;;  %v1038_v50 = vsel %vm1036_vm10, %v2083_v35, %v799_v20 }
 0x1b8   : > { %v1071_v47 = vsel %vm1063_vm13, %v1062_v53, %v883_v46 }
 0x1bb   : > { %v945_v27 = vpop.permute.xlu0 %944 }
 0x1bd   : > { %v855_v37 = vpop.permute.xlu1 %854  ;;  %v1150_v39 = vpop.permute.xlu2 %1149 }
 0x1be   : > { %v1060_v7 = vsel %vm1054_vm12, %v1051_v29, %v855_v37 }
 0x1bf   : > { %v1069_v13 = vsel %vm1063_vm13, %v1060_v7, %v879_v1 }
 0x1c0   : > { %v1078_v25 = vsel %vm1072_vm14, %v1069_v13, %v903_v34 }
 0x1c3   : > { %v1140_v52 = vpop.permute.xlu0 %1139 }
 0x1c5   : > { %v897_v36 = vpop.permute.xlu1 %896  ;;  %v851_v29 = vpop.permute.xlu2 %850 }
 0x1c6   : > { %v1075_v24 = vsel %vm1072_vm14, %v1066_v56, %v897_v36 }
 0x1c7   : > { %v1084_v6 = vsel %vm1081_vm15, %v1075_v24, %v921_v44 }
 0x1c8   : > { %v1093_v42 = vsel %vm1090_vm0, %v1084_v6, %v945_v27 }
 0x1cb   : > { %v803_v26 = vpop.permute.xlu0 %802 }
 0x1cc   : > { %v1040_v58 = vsel %vm1036_vm10, %v2061_v18, %v803_v26 }
 0x1cd   : > { %v917_v11 = vpop.permute.xlu1 %916  ;;  %v895_v0 = vpop.permute.xlu2 %894 }
 0x1ce   : > { %v1082_v51 = vsel %vm1081_vm15, %v1073_v3, %v917_v11 }
 0x1cf   : > { %v1091_v14 = vsel %vm1090_vm0, %v1082_v51, %v941_v60 }
 0x1d0   : > { %v1164_v38 = vsel %vm1163_vm3, %v1091_v14, %v1140_v52 }
 0x1d1   : > { %1369 = vmatmul.msk.f32.vlgmr.msra.gmra.mxu0 %vm1185_vm4, %v1164_v38 }
 0x1d3   : > { %v823_v45 = vpop.permute.xlu0 %822 }
 0x1d4   : > { %v1047_v16 = vsel %vm1045_vm11, %v1038_v50, %v823_v45 }
 0x1d5   : > { %v907_v18 = vpop.permute.xlu1 %906  ;;  %v923_v41 = vpop.permute.xlu2 %922 }
 0x1d6   : > { %v1080_v40 = vsel %vm1072_vm14, %v1071_v47, %v907_v18 }
 0x1d7   : > { %v1089_v2 = vsel %vm1081_vm15, %v1080_v40, %v931_v61 }
 0x1d8   : > { %v1098_v9 = vsel %vm1090_vm0, %v1089_v2, %v955_v43 }
 0x1db   : > { %v1154_v57 = vpop.permute.xlu0 %1153 }
 0x1dc   : > { %v1171_v32 = vsel %vm1163_vm3, %v1098_v9, %v1154_v57 }
 0x1dd   : > { %v927_v33 = vpop.permute.xlu1 %926  ;;  %1376 = vmatmul.msk.f32.gmra.mxu3 %vm1185_vm4, %v1171_v32  ;;  %v1142_v27 = vpop.permute.xlu2 %1141 }
 0x1de   : > { %v1087_v31 = vsel %vm1081_vm15, %v1078_v25, %v927_v33 }
 0x1e3   : > { %v871_v56 = vpop.permute.xlu0 %870 }
 0x1e5   : > { %v1144_v10 = vpop.permute.xlu1 %1143 }
 0x1e6   : > { %v1166_v15 = vsel %vm1163_vm3, %v1093_v42, %v1144_v10 }
 0x1e7   : > { %1371 = vmatmul.msk.f32.vlgmr.msra.gmra.mxu1 %vm1185_vm4, %v1166_v15 }
 0x1eb   : > { %v899_v54 = vpop.permute.xlu0 %898 }
 0x1ed   : > { %v951_v4 = vpop.permute.xlu1 %950 }
 0x1ee   : > { %v1096_v8 = vsel %vm1090_vm0, %v1087_v31, %v951_v4 }
 0x1ef   : > { %v1169_v5 = vsel %vm1163_vm3, %v1096_v8, %v1150_v39 }
 0x1f0   : > { %1374 = vmatmul.msk.f32.gmra.mxu2 %vm1185_vm4, %v1169_v5 }
 0x1f3   : > { %v943_v46 = vpop.permute.xlu0 %942 }
 0x1f5   : > { %v827_v19 = vpop.permute.xlu1 %826 }
 0x1f6   : > { %v1049_v35 = vsel %vm1045_vm11, %v1040_v58, %v827_v19 }
 0x1f7   : > { %v1058_v34 = vsel %vm1054_vm12, %v1049_v35, %v851_v29 }
 0x1fb   : > { %v1146_v30 = vpop.permute.xlu0 %1145 }
 0x1fd   : > { %v847_v28 = vpop.permute.xlu1 %846 }
 0x1fe   : > { %v1056_v22 = vsel %vm1054_vm12, %v1047_v16, %v847_v28 }
 0x1ff   : > { %v1065_v55 = vsel %vm1063_vm13, %v1056_v22, %v871_v56 }
 0x200   : > { %v1074_v21 = vsel %vm1072_vm14, %v1065_v55, %v895_v0 }
 0x205   : > { %v875_v49 = vpop.permute.xlu1 %874 }
 0x206   : > { %v1067_v60 = vsel %vm1063_vm13, %v1058_v34, %v875_v49 }
 0x207   : > { %v1076_v36 = vsel %vm1072_vm14, %v1067_v60, %v899_v54 }
 0x208   : > { %v1239_v59 = vpop.f32.mrf.mxu2  ;;  %v1085_v62 = vsel %vm1081_vm15, %v1076_v36, %v923_v41 }
 0x209   : > { %v1240_v23 = vadd.f32 %v1432_v17, %v1239_v59 }
 0x20b   : > { %v1255_v1 = vmax.f32 %v1240_v23, 0.0 }
 0x20d   : > { %1263 = vst.msk [vmem:[%s2339_s28 + $0x20] sm:$0xff] %vm973_vm2, %v1255_v1  ;;  %v919_v44 = vpop.permute.xlu1 %918 }
 0x20e   : > { %v1083_v12 = vsel %vm1081_vm15, %v1074_v21, %v919_v44 }
 0x20f   : > { %v1092_v37 = vsel %vm1090_vm0, %v1083_v12, %v943_v46 }
 0x210   : > { %v1165_v52 = vsel %vm1163_vm3, %v1092_v37, %v1142_v27 }
 0x211   : > { %1370 = vmatmul.msk.f32.gmra.mxu0 %vm1185_vm4, %v1165_v52 }
 0x215   : > { %v947_v61 = vpop.permute.xlu1 %946 }
 0x216   : > { %v1094_v48 = vsel %vm1090_vm0, %v1085_v62, %v947_v61 }
 0x217   : > { %v1167_v26 = vsel %vm1163_vm3, %v1094_v48, %v1146_v30 }
 0x218   : > { %1372 = vmatmul.msk.f32.gmra.mxu1 %vm1185_vm4, %v1167_v26 }
 0x22a   : > { %v1245_v58 = vpop.f32.mrf.mxu3 }
 0x22b   : > { %v1246_v3 = vadd.f32 %v1432_v17, %v1245_v58 }
 0x22d   : > { %v1257_v11 = vmax.f32 %v1246_v3, 0.0 }
 0x22f   : > { %1265 = vst.msk [vmem:[%s2339_s28 + $0x30] sm:$0xff] %vm973_vm2, %v1257_v11 }
 0x24e   : > { %v1227_v51 = vpop.f32.mrf.mxu0 }
 0x24f   : > { %v1228_v63 = vadd.f32 %v1432_v17, %v1227_v51 }
 0x251   : > { %v1251_v14 = vmax.f32 %v1228_v63, 0.0 }
 0x253   : > { %1259 = vst.msk [vmem:[%s2339_s28] sm:$0xff] %vm973_vm2, %v1251_v14 }
 0x260   : > { %v1248_v20 = vpop.f32.mrf.mxu3 }
 0x261   : > { %v1249_v38 = vadd.f32 %v1432_v17, %v1248_v20 }
 0x263   : > { %v1258_v53 = vmax.f32 %v1249_v38, 0.0 }
 0x264   : > { %v1233_v45 = vpop.f32.mrf.mxu1 }
 0x265   : > { %1266 = vst.msk [vmem:[%s2339_s28 + $0x38] sm:$0xff] %vm973_vm2, %v1258_v53  ;;  %v1234_v47 = vadd.f32 %v1432_v17, %v1233_v45 }
 0x267   : > { %v1253_v18 = vmax.f32 %v1234_v47, 0.0 }
 0x269   : > { %1261 = vst.msk [vmem:[%s2339_s28 + $0x10] sm:$0xff] %vm973_vm2, %v1253_v18 }
 0x273   : > { %v1242_v40 = vpop.f32.mrf.mxu2 }
 0x274   : > { %v1243_v2 = vadd.f32 %v1432_v17, %v1242_v40 }
 0x276   : > { %v1256_v43 = vmax.f32 %v1243_v2, 0.0 }
 0x278   : > { %1264 = vst.msk [vmem:[%s2339_s28 + $0x28] sm:$0xff] %vm973_vm2, %v1256_v43 }
 0x28e   : > { %v1230_v57 = vpop.f32.mrf.mxu0 }
 0x28f   : > { %v1231_v9 = vadd.f32 %v1432_v17, %v1230_v57 }
 0x291   : > { %v1252_v32 = vmax.f32 %v1231_v9, 0.0 }
 0x293   : > { %1260 = vst.msk [vmem:[%s2339_s28 + $0x8] sm:$0xff] %vm973_vm2, %v1252_v32 }
 0x295   : > { %v1236_v33 = vpop.f32.mrf.mxu1 }
 0x296   : > { %v1237_v24 = vadd.f32 %v1432_v17, %v1236_v33 }
 0x298   : > { %v1254_v6 = vmax.f32 %v1237_v24, 0.0 }
 0x29a   : > { %1262 = vst.msk [vmem:[%s2339_s28 + $0x18] sm:$0xff] %vm973_vm2, %v1254_v6 }
 0x29b PF: > { %s16_s21 = sadd.s32 1, %s1439_s21  }
 0x29c   : > { %p13_p4 = scmp.ge.s32.totalorder %s16_s21, 4  }
 0x29e   :  { %15 = sbr.rel (!%p13_p4) target bundleno = 1 (0x1), region = 83 }

// kernel: encoder_stage_forward.15
= control target key start
LH: loop header
LB: loop body
LE: loop exit
PB: predicated region body
PF: predicated region fallthrough
CT: control target
= control target key end

     0   :  { %s1992_s15 = smov 0   ;;  %s3139_s0 = inlined_call_operand.vmem [shape: f32[2,8,8,12], index: 0, kind: input, shape index: {}]   ;;  %s3140_s1 = inlined_call_operand.vmem [shape: f32[3,27,3], index: 1, kind: input, shape index: {}]   ;;  %s3141_s2 = inlined_call_operand.vmem [shape: f32[3,1,3], index: 2, kind: input, shape index: {}]   ;;  %s3142_s3 = inlined_call_operand.vmem [shape: f32[3,1,3], index: 3, kind: input, shape index: {}]   ;;  %s3143_s4 = inlined_call_operand.vmem [shape: f32[2,8,8,12], index: 4, kind: output, shape index: {}]  }
   0x1 LB: > { %s1851_s16 = sadd.s32 4294967295, %s1954_s15   ;;  %p1855_p0 = scmp.ge.s32.totalorder %s1954_s15, 1  ;;  %s1954_s15 = sphi %s1992_s15, %s14_s15  }
   0x2   : > { %p162_p1 = scmp.lt.s32.totalorder %s1954_s15, 3 }
   0x4   : > { %p163_p2 = pnand %p1855_p0, %p162_p1 }
   0x5   : > { %p188_p3 = scmp.lt.s32.totalorder (!%p163_p2), %s1851_s16, 1  ;;  %s1957_s21 = smov (!%p163_p2), 3  }
   0x6   : > { %166 = sbr.rel (%p163_p2) target bundleno = 1670 (0x686), region = 36  ;;  %s1958_s22 = smov (!%p163_p2), 9  }
   0x7   : > { %s1959_s23 = smov (!%p163_p2), 18   ;;  %s1960_s24 = smov (!%p163_p2), 6  }
   0x8   : > { %s1961_s25 = smov (!%p163_p2), 12   ;;  %s1962_s26 = smov (!%p163_p2), 15  }
   0x9   : > { %s1963_s27 = smov (!%p163_p2), 21   ;;  %s1964_s28 = smov (!%p163_p2), 24  }
   0xa   : > { %s1965_s18 = smov (!%p163_p2), 125   ;;  %s1966_s14 = smov (!%p163_p2), 122  }
   0xb   : > { %vm233_vm0 = vcmask 1040384   ;;  %v1956_v0 = vmov 0.0   ;;  %s3163_s16 = smov (!%p188_p3, %s1851_s16), 1  ;;  %vm268_vm1 = vcmask 1046528   ;;  %vm293_vm2 = vcmask 1045504  }
   0xc   : > { %v215_v1 = vrot.slane %v1956_v0, 7  ;;  %s1901_s17 = sshll.u32 %s3163_s16, 6  ;;  %vm619_vm3 = vcmask 1042432   ;;  %vm518_vm4 = vcmask 23552   ;;  %vm527_vm5 = vcmask 48128  }
   0xd   : > { %s2013_s20 = scalar_lea.vmem %s3139_s0, %s1901_s17  ;;  %vm536_vm6 = vcmask 72704   ;;  %vm545_vm7 = vcmask 97280   ;;  %vm554_vm8 = vcmask 121856   ;;  %vm563_vm9 = vcmask 146432  }
   0xe   : > { %v2003_v2 = vsel %vm233_vm0, 0.0, %v215_v1  ;;  %v243_v3 = vsel %vm233_vm0, %v215_v1, 0.0  ;;  %v2019_v7 = vld [vmem:[%s2013_s20] sm:$0xff]  ;;  %v2022_v8 = vld [vmem:[%s2013_s20 + $0x8] sm:$0xff]  ;;  %v2060_v30 = vld [vmem:[%s2013_s20 + $0x10] sm:$0xff]  ;;  %vm572_vm10 = vcmask 171008  }
   0xf   : > { %v269_v4 = vrot.slane %v2003_v2, 1  ;;  %v270_v5 = vrot.slane %v243_v3, 1  ;;  %v216_v9 = vrot.slane %v2019_v7, 7  ;;  %v217_v10 = vrot.slane %v2022_v8, 7  ;;  %v2081_v40 = vld [vmem:[%s2013_s20 + $0x18] sm:$0xff]  ;;  %v2103_v50 = vld [vmem:[%s2013_s20 + $0x20] sm:$0xff] }
  0x10   : > { %v294_v11 = vrot.slane %v2003_v2, 2  ;;  %v295_v12 = vrot.slane %v243_v3, 2  ;;  %v218_v31 = vrot.slane %v2060_v30, 7  ;;  %v219_v41 = vrot.slane %v2081_v40, 7  ;;  %v2115_v54 = vld [vmem:[%s2013_s20 + $0x28] sm:$0xff] }
  0x11   : > { %v2016_v6 = vsel %vm268_vm1, %v269_v4, %v270_v5  ;;  %v2030_v13 = vsel %vm233_vm0, 0.0, %v216_v9  ;;  %v244_v14 = vsel %vm233_vm0, %v216_v9, 0.0  ;;  %v2034_v15 = vsel %vm233_vm0, 0.0, %v217_v10 }
  0x12   : > { %326 = vrot.lane.b32.xlu0 %v2016_v6, %s1957_s21  ;;  %374 = vrot.lane.b32.xlu1 %v2030_v13, %s1958_s22  ;;  %v272_v16 = vrot.slane %v2030_v13, 1  ;;  %v273_v17 = vrot.slane %v244_v14, 1  ;;  %v2042_v18 = vsel %vm293_vm2, %v294_v11, %v295_v12  ;;  %v245_v19 = vsel %vm233_vm0, %v217_v10, 0.0  ;;  %v2150_v10 = vld [vmem:[%s2013_s20 + $0x30] sm:$0xff] }
  0x13   : > { %446 = vrot.lane.b32.xlu2 %v2034_v15, %s1959_s23  ;;  %v297_v20 = vrot.slane %v2030_v13, 2  ;;  %v298_v21 = vrot.slane %v244_v14, 2  ;;  %v275_v23 = vrot.slane %v2034_v15, 1  ;;  %v276_v24 = vrot.slane %v245_v19, 1 }
  0x14   : > { %v274_v22 = vsel %vm268_vm1, %v272_v16, %v273_v17  ;;  %v300_v26 = vrot.slane %v2034_v15, 2  ;;  %v301_v27 = vrot.slane %v245_v19, 2  ;;  %v2068_v32 = vsel %vm233_vm0, 0.0, %v218_v31  ;;  %v593_v16 = vld [vmem:[%s3140_s1 + $0x18] sm:$0x7]  ;;  %v592_v19 = vld [vmem:[%s3140_s1 + $0x10] sm:$0xff] }
  0x15   : > { %v299_v25 = vsel %vm293_vm2, %v297_v20, %v298_v21  ;;  %v277_v28 = vsel %vm268_vm1, %v275_v23, %v276_v24  ;;  %v246_v33 = vsel %vm233_vm0, %v218_v31, 0.0  ;;  %v278_v34 = vrot.slane %v2068_v32, 1  ;;  %1860 = vmatpush.msk.msra.mxu0 %vm619_vm3, %v593_v16  ;;  %1903 = vmatpush.msk.msra.mxu3 %vm619_vm3, %v593_v16 }
  0x16   : > { %v302_v29 = vsel %vm293_vm2, %v300_v26, %v301_v27  ;;  %v279_v35 = vrot.slane %v246_v33, 1  ;;  %v303_v36 = vrot.slane %v2068_v32, 2  ;;  %v304_v37 = vrot.slane %v246_v33, 2  ;;  %v590_v27 = vld [vmem:[%s3140_s1] sm:$0xff] }
  0x17   : > { %v2089_v42 = vsel %vm233_vm0, 0.0, %v219_v41  ;;  %v247_v43 = vsel %vm233_vm0, %v219_v41, 0.0  ;;  %v220_v51 = vrot.slane %v2103_v50, 7  ;;  %v221_v57 = vrot.slane %v2115_v54, 7  ;;  %636 = vmatpush.msra.mxu0 %v592_v19  ;;  %1904 = vmatpush.msra.mxu3 %v592_v19 }
  0x18   : > { %v280_v38 = vsel %vm268_vm1, %v278_v34, %v279_v35  ;;  %v305_v39 = vsel %vm293_vm2, %v303_v36, %v304_v37  ;;  %v281_v44 = vrot.slane %v2089_v42, 1  ;;  %v282_v45 = vrot.slane %v247_v43, 1 }
  0x19   : > { %v306_v46 = vrot.slane %v2089_v42, 2  ;;  %v307_v47 = vrot.slane %v247_v43, 2  ;;  %v2111_v52 = vsel %vm233_vm0, 0.0, %v220_v51  ;;  %v248_v53 = vsel %vm233_vm0, %v220_v51, 0.0 }
  0x1a   : > { %350 = vrot.lane.b32.xlu0 %v2042_v18, %s1960_s24  ;;  %398 = vrot.lane.b32.xlu1 %v274_v22, %s1961_s25  ;;  %v283_v48 = vsel %vm268_vm1, %v281_v44, %v282_v45  ;;  %v284_v55 = vrot.slane %v2111_v52, 1  ;;  %v285_v56 = vrot.slane %v248_v53, 1  ;;  %v309_v58 = vrot.slane %v2111_v52, 2 }
  0x1b   : > { %422 = vrot.lane.b32.xlu2 %v299_v25, %s1962_s26  ;;  %v308_v49 = vsel %vm293_vm2, %v306_v46, %v307_v47  ;;  %v310_v59 = vrot.slane %v248_v53, 2  ;;  %v2128_v61 = vsel %vm233_vm0, 0.0, %v221_v57  ;;  %v249_v62 = vsel %vm233_vm0, %v221_v57, 0.0 }
  0x1c   : > { %v2125_v60 = vsel %vm268_vm1, %v284_v55, %v285_v56  ;;  %v287_v0 = vrot.slane %v2128_v61, 1  ;;  %v288_v1 = vrot.slane %v249_v62, 1  ;;  %v312_v3 = vrot.slane %v2128_v61, 2 }
  0x1d   : > { %v2134_v63 = vsel %vm293_vm2, %v309_v58, %v310_v59  ;;  %v313_v4 = vrot.slane %v249_v62, 2  ;;  %v222_v11 = vrot.slane %v2150_v10, 7  ;;  %vm581_vm11 = vcmask 195584  }
  0x1e   : > { %v2142_v5 = vsel %vm268_vm1, %v287_v0, %v288_v1  ;;  %vm594_vm12 = vcmask 220160  }
  0x1f   : > { %v2147_v9 = vsel %vm293_vm2, %v312_v3, %v313_v4  ;;  %v250_v14 = vsel %vm233_vm0, %v222_v11, 0.0  ;;  %v2165_v17 = vsel %vm233_vm0, 0.0, %v222_v11 }
  0x20   : > { %v290_v20 = vrot.slane %v2165_v17, 1  ;;  %v291_v21 = vrot.slane %v250_v14, 1  ;;  %v315_v23 = vrot.slane %v2165_v17, 2  ;;  %v316_v24 = vrot.slane %v250_v14, 2 }
  0x22   : > { %470 = vrot.lane.b32.xlu0 %v277_v28, %s1963_s27  ;;  %494 = vrot.lane.b32.xlu1 %v302_v29, %s1964_s28 }
  0x23   : > { %328 = vrot.lane.b32.xlu2 %v274_v22, %s1957_s21  ;;  %v591_v22 = vld [vmem:[%s3140_s1 + $0x8] sm:$0xff] }
  0x24   : > { %637 = vmatpush.msra.mxu0 %v591_v22  ;;  %1905 = vmatpush.msra.mxu3 %v591_v22 }
  0x26   : > { %638 = vmatpush.msra.mxu0 %v590_v27  ;;  %1906 = vmatpush.msra.mxu3 %v590_v27 }
  0x2a   : > { %352 = vrot.lane.b32.xlu0 %v299_v25, %s1960_s24  ;;  %376 = vrot.lane.b32.xlu1 %v2034_v15, %s1958_s22  ;;  %v2182_v25 = vsel %vm268_vm1, %v290_v20, %v291_v21 }
  0x2b   : > { %400 = vrot.lane.b32.xlu2 %v277_v28, %s1961_s25 }
  0x32   : > { %424 = vrot.lane.b32.xlu0 %v302_v29, %s1962_s26  ;;  %448 = vrot.lane.b32.xlu1 %v2068_v32, %s1959_s23 }
  0x33   : > { %472 = vrot.lane.b32.xlu2 %v280_v38, %s1963_s27 }
  0x3a   : > { %496 = vrot.lane.b32.xlu0 %v305_v39, %s1964_s28  ;;  %330 = vrot.lane.b32.xlu1 %v277_v28, %s1957_s21  ;;  %v2190_v28 = vsel %vm293_vm2, %v315_v23, %v316_v24 }
  0x3b   : > { %354 = vrot.lane.b32.xlu2 %v302_v29, %s1960_s24  ;;  %v2193_v29 = vld [vmem:[%s2013_s20 + $0x38] sm:$0xff] }
  0x3c   : > { %v223_v31 = vrot.slane %v2193_v29, 7 }
  0x3e   : > { %v251_v34 = vsel %vm233_vm0, %v223_v31, 0.0  ;;  %v242_v35 = vsel %vm233_vm0, 0.0, %v223_v31 }
  0x3f   : > { %v320_v36 = vrot.slane %v242_v35, 1  ;;  %v321_v37 = vrot.slane %v251_v34, 1  ;;  %v324_v41 = vrot.slane %v251_v34, 2 }
  0x41   : > { %v322_v44 = vsel %vm268_vm1, %v320_v36, %v321_v37 }
  0x42   : > { %378 = vrot.lane.b32.xlu0 %v2068_v32, %s1958_s22  ;;  %402 = vrot.lane.b32.xlu1 %v280_v38, %s1961_s25 }
  0x43   : > { %426 = vrot.lane.b32.xlu2 %v305_v39, %s1962_s26 }
  0x4a   : > { %450 = vrot.lane.b32.xlu0 %v2089_v42, %s1959_s23  ;;  %474 = vrot.lane.b32.xlu1 %v283_v48, %s1963_s27 }
  0x4b   : > { %498 = vrot.lane.b32.xlu2 %v308_v49, %s1964_s28 }
  0x52   : > { %332 = vrot.lane.b32.xlu0 %v280_v38, %s1957_s21  ;;  %356 = vrot.lane.b32.xlu1 %v305_v39, %s1960_s24  ;;  %v323_v39 = vrot.slane %v242_v35, 2 }
  0x53   : > { %380 = vrot.lane.b32.xlu2 %v2089_v42, %s1958_s22 }
  0x54   : > { %v325_v46 = vsel %vm293_vm2, %v323_v39, %v324_v41 }
  0x5a   : > { %404 = vrot.lane.b32.xlu0 %v283_v48, %s1961_s25  ;;  %428 = vrot.lane.b32.xlu1 %v308_v49, %s1962_s26 }
  0x5b   : > { %452 = vrot.lane.b32.xlu2 %v2111_v52, %s1959_s23 }
  0x62   : > { %476 = vrot.lane.b32.xlu0 %v2125_v60, %s1963_s27  ;;  %500 = vrot.lane.b32.xlu1 %v2134_v63, %s1964_s28 }
  0x63   : > { %334 = vrot.lane.b32.xlu2 %v283_v48, %s1957_s21 }
  0x6a   : > { %338 = vrot.lane.b32.xlu0 %v2142_v5, %s1957_s21  ;;  %358 = vrot.lane.b32.xlu1 %v308_v49, %s1960_s24 }
  0x6b   : > { %362 = vrot.lane.b32.xlu2 %v2147_v9, %s1960_s24 }
  0x6d   : > { %v2156_v12 = vpop.permute.xlu2 %446 }
  0x72   : > { %382 = vrot.lane.b32.xlu0 %v2111_v52, %s1958_s22  ;;  %386 = vrot.lane.b32.xlu1 %v2165_v17, %s1958_s22 }
  0x73   : > { %406 = vrot.lane.b32.xlu2 %v2125_v60, %s1961_s25 }
  0x75   : > { %v423_v26 = vpop.permute.xlu2 %422 }
  0x7a   : > { %410 = vrot.lane.b32.xlu0 %v2182_v25, %s1961_s25  ;;  %430 = vrot.lane.b32.xlu1 %v2134_v63, %s1962_s26 }
  0x7b   : > { %434 = vrot.lane.b32.xlu2 %v2190_v28, %s1962_s26 }
  0x7d   : > { %v329_v33 = vpop.permute.xlu2 %328 }
  0x7e   : > { %v520_v11 = vsel %vm518_vm4, %v2030_v13, %v329_v33 }
  0x82   : > { %454 = vrot.lane.b32.xlu0 %v2128_v61, %s1959_s23  ;;  %458 = vrot.lane.b32.xlu1 %v242_v35, %s1959_s23 }
  0x83   : > { %478 = vrot.lane.b32.xlu2 %v2142_v5, %s1963_s27 }
  0x84   : > { %v327_v38 = vpop.permute.xlu0 %326  ;;  %v375_v43 = vpop.permute.xlu1 %374 }
  0x85   : > { %v401_v45 = vpop.permute.xlu2 %400  ;;  %v519_v47 = vsel %vm518_vm4, %v2003_v2, %v327_v38 }
  0x8a   : > { %482 = vrot.lane.b32.xlu0 %v322_v44, %s1963_s27  ;;  %502 = vrot.lane.b32.xlu1 %v2147_v9, %s1964_s28 }
  0x8b   : > { %506 = vrot.lane.b32.xlu2 %v325_v46, %s1964_s28 }
  0x8c   : > { %v351_v48 = vpop.permute.xlu0 %350  ;;  %v399_v53 = vpop.permute.xlu1 %398 }
  0x8d   : > { %v2213_v49 = vsel %vm527_vm5, %v519_v47, %v351_v48  ;;  %v473_v55 = vpop.permute.xlu2 %472 }
  0x8e   : > { %v537_v51 = vsel %vm536_vm6, %v2213_v49, %v375_v43 }
  0x8f   : > { %v546_v56 = vsel %vm545_vm7, %v537_v51, %v399_v53 }
  0x90   : > { %v555_v57 = vsel %vm554_vm8, %v546_v56, %v423_v26 }
  0x91   : > { %v564_v59 = vsel %vm563_vm9, %v555_v57, %v2156_v12 }
  0x92   : > { %336 = vrot.lane.b32.xlu0 %v2125_v60, %s1957_s21  ;;  %340 = vrot.lane.b32.xlu1 %v2182_v25, %s1957_s21 }
  0x93   : > { %360 = vrot.lane.b32.xlu2 %v2134_v63, %s1960_s24 }
  0x94   : > { %v471_v58 = vpop.permute.xlu0 %470  ;;  %v495_v0 = vpop.permute.xlu1 %494 }
  0x95   : > { %v573_v62 = vsel %vm572_vm10, %v564_v59, %v471_v58  ;;  %v355_v60 = vpop.permute.xlu2 %354 }
  0x96   : > { %v582_v1 = vsel %vm581_vm11, %v573_v62, %v495_v0 }
  0x97   : > { %1861 = vmatmul.msk.f32.vlgmr.msra.gmra.mxu0 %vm594_vm12, %v582_v1 }
  0x9a   : > { %364 = vrot.lane.b32.xlu0 %v2190_v28, %s1960_s24  ;;  %384 = vrot.lane.b32.xlu1 %v2128_v61, %s1958_s22 }
  0x9b   : > { %388 = vrot.lane.b32.xlu2 %v242_v35, %s1958_s22 }
  0x9c   : > { %v353_v3 = vpop.permute.xlu0 %352  ;;  %v377_v63 = vpop.permute.xlu1 %376 }
  0x9d   : > { %v427_v4 = vpop.permute.xlu2 %426  ;;  %v529_v12 = vsel %vm527_vm5, %v520_v11, %v353_v3 }
  0x9e   : > { %v538_v14 = vsel %vm536_vm6, %v529_v12, %v377_v63 }
  0x9f   : > { %v547_v19 = vsel %vm545_vm7, %v538_v14, %v401_v45 }
  0xa2   : > { %408 = vrot.lane.b32.xlu0 %v2142_v5, %s1961_s25  ;;  %412 = vrot.lane.b32.xlu1 %v322_v44, %s1961_s25 }
  0xa3   : > { %432 = vrot.lane.b32.xlu2 %v2147_v9, %s1962_s26 }
  0xa4   : > { %v425_v16 = vpop.permute.xlu0 %424  ;;  %v449_v20 = vpop.permute.xlu1 %448 }
  0xa5   : > { %v499_v21 = vpop.permute.xlu2 %498  ;;  %v556_v22 = vsel %vm554_vm8, %v547_v19, %v425_v16 }
  0xa6   : > { %v565_v13 = vsel %vm563_vm9, %v556_v22, %v449_v20 }
  0xa7   : > { %v574_v23 = vsel %vm572_vm10, %v565_v13, %v473_v55 }
  0xaa   : > { %436 = vrot.lane.b32.xlu0 %v325_v46, %s1962_s26  ;;  %456 = vrot.lane.b32.xlu1 %v2165_v17, %s1959_s23 }
  0xab   : > { %460 = vrot.lane.b32.xlu2 %v2003_v2, %s1959_s23 }
  0xac   : > { %v497_v5 = vpop.permute.xlu0 %496  ;;  %v331_v9 = vpop.permute.xlu1 %330 }
  0xad   : > { %v583_v24 = vsel %vm581_vm11, %v574_v23, %v497_v5  ;;  %v381_v26 = vpop.permute.xlu2 %380  ;;  %v521_v31 = vsel %vm518_vm4, %v2034_v15, %v331_v9 }
  0xae   : > { %1862 = vmatmul.msk.f32.gmra.mxu0 %vm594_vm12, %v583_v24  ;;  %v530_v2 = vsel %vm527_vm5, %v521_v31, %v355_v60 }
  0xb2   : > { %480 = vrot.lane.b32.xlu0 %v2182_v25, %s1963_s27  ;;  %484 = vrot.lane.b32.xlu1 %v2016_v6, %s1963_s27 }
  0xb3   : > { %504 = vrot.lane.b32.xlu2 %v2190_v28, %s1964_s28 }
  0xb4   : > { %v379_v27 = vpop.permute.xlu0 %378  ;;  %v403_v33 = vpop.permute.xlu1 %402 }
  0xb5   : > { %v453_v34 = vpop.permute.xlu2 %452  ;;  %v539_v35 = vsel %vm536_vm6, %v530_v2, %v379_v27 }
  0xb6   : > { %v548_v25 = vsel %vm545_vm7, %v539_v35, %v403_v33 }
  0xb7   : > { %v557_v6 = vsel %vm554_vm8, %v548_v25, %v427_v4 }
  0xba   : > { %508 = vrot.lane.b32.xlu0 %v2042_v18, %s1964_s28 }
  0xbc   : > { %v451_v36 = vpop.permute.xlu0 %450  ;;  %v475_v28 = vpop.permute.xlu1 %474 }
  0xbd   : > { %v566_v37 = vsel %vm563_vm9, %v557_v6, %v451_v36  ;;  %v335_v38 = vpop.permute.xlu2 %334 }
  0xbe   : > { %v575_v15 = vsel %vm572_vm10, %v566_v37, %v475_v28  ;;  %v523_v19 = vsel %vm518_vm4, %v2089_v42, %v335_v38 }
  0xbf   : > { %v584_v39 = vsel %vm581_vm11, %v575_v15, %v499_v21 }
  0xc0   : > { %1863 = vmatmul.msk.f32.gmra.mxu0 %vm594_vm12, %v584_v39  ;;  %v2309_v39 = vld [vmem:[%s3141_s2] ss:$0 sm:$0xff] }
  0xc4   : > { %v333_v41 = vpop.permute.xlu0 %332  ;;  %v357_v43 = vpop.permute.xlu1 %356 }
  0xc5   : > { %v363_v44 = vpop.permute.xlu2 %362  ;;  %v522_v18 = vsel %vm518_vm4, %v2068_v32, %v333_v41 }
  0xc6   : > { %v531_v46 = vsel %vm527_vm5, %v522_v18, %v357_v43  ;;  %v2314_v43 = vld [vmem:[%s3142_s3] ss:$0 sm:$0xff] }
  0xc7   : > { %v540_v48 = vsel %vm536_vm6, %v531_v46, %v381_v26 }
  0xcc   : > { %v405_v45 = vpop.permute.xlu0 %404  ;;  %v429_v47 = vpop.permute.xlu1 %428 }
  0xcd   : > { %v549_v51 = vsel %vm545_vm7, %v540_v48, %v405_v45  ;;  %v407_v55 = vpop.permute.xlu2 %406 }
  0xce   : > { %v558_v53 = vsel %vm554_vm8, %v549_v51, %v429_v47 }
  0xcf   : > { %v567_v57 = vsel %vm563_vm9, %v558_v53, %v453_v34 }
  0xd4   : > { %v477_v56 = vpop.permute.xlu0 %476  ;;  %v501_v59 = vpop.permute.xlu1 %500 }
  0xd5   : > { %v576_v58 = vsel %vm572_vm10, %v567_v57, %v477_v56  ;;  %v435_v0 = vpop.permute.xlu2 %434 }
  0xd6   : > { %v585_v62 = vsel %vm581_vm11, %v576_v58, %v501_v59 }
  0xd7   : > { %1864 = vmatmul.msk.f32.gmra.mxu0 %vm594_vm12, %v585_v62 }
  0xdc   : > { %v339_v32 = vpop.permute.xlu0 %338  ;;  %v359_v60 = vpop.permute.xlu1 %358 }
  0xdd   : > { %v479_v63 = vpop.permute.xlu2 %478  ;;  %v525_v14 = vsel %vm518_vm4, %v2128_v61, %v339_v32  ;;  %v532_v21 = vsel %vm527_vm5, %v523_v19, %v359_v60 }
  0xde   : > { %v534_v20 = vsel %vm527_vm5, %v525_v14, %v363_v44 }
  0xe4   : > { %v383_v1 = vpop.permute.xlu0 %382  ;;  %v387_v3 = vpop.permute.xlu1 %386 }
  0xe5   : > { %v507_v12 = vpop.permute.xlu2 %506  ;;  %v541_v22 = vsel %vm536_vm6, %v532_v21, %v383_v1  ;;  %v543_v13 = vsel %vm536_vm6, %v534_v20, %v387_v3 }
  0xe6   : > { %v550_v24 = vsel %vm545_vm7, %v541_v22, %v407_v55 }
  0xec   : > { %v411_v4 = vpop.permute.xlu0 %410  ;;  %v431_v11 = vpop.permute.xlu1 %430 }
  0xed   : > { %v552_v23 = vsel %vm545_vm7, %v543_v13, %v411_v4  ;;  %v559_v61 = vsel %vm554_vm8, %v550_v24, %v431_v11  ;;  %v361_v26 = vpop.permute.xlu2 %360 }
  0xee   : > { %v561_v9 = vsel %vm554_vm8, %v552_v23, %v435_v0 }
  0xf4   : > { %v455_v16 = vpop.permute.xlu0 %454  ;;  %v459_v5 = vpop.permute.xlu1 %458 }
  0xf5   : > { %v568_v42 = vsel %vm563_vm9, %v559_v61, %v455_v16  ;;  %v570_v27 = vsel %vm563_vm9, %v561_v9, %v459_v5  ;;  %v389_v6 = vpop.permute.xlu2 %388 }
  0xf6   : > { %v577_v2 = vsel %vm572_vm10, %v568_v42, %v479_v63 }
  0xfc   : > { %v483_v31 = vpop.permute.xlu0 %482  ;;  %v503_v35 = vpop.permute.xlu1 %502 }
  0xfd   : > { %v579_v33 = vsel %vm572_vm10, %v570_v27, %v483_v31  ;;  %v586_v25 = vsel %vm581_vm11, %v577_v2, %v503_v35  ;;  %v433_v15 = vpop.permute.xlu2 %432 }
  0xfe   : > { %v588_v34 = vsel %vm581_vm11, %v579_v33, %v507_v12  ;;  %1865 = vmatmul.msk.f32.gmra.mxu0 %vm594_vm12, %v586_v25 }
  0xff   : > { %1867 = vmatmul.msk.f32.vlgmr.msra.gmra.mxu3 %vm594_vm12, %v588_v34 }
 0x104   : > { %v337_v36 = vpop.permute.xlu0 %336  ;;  %v341_v37 = vpop.permute.xlu1 %340 }
 0x105   : > { %v524_v45 = vsel %vm518_vm4, %v2111_v52, %v337_v36  ;;  %v2322_v48 = vpop.permute.xlu2 %460  ;;  %v526_v55 = vsel %vm518_vm4, %v2165_v17, %v341_v37 }
 0x106   : > { %v533_v51 = vsel %vm527_vm5, %v524_v45, %v361_v26 }
 0x10c   : > { %v365_v28 = vpop.permute.xlu0 %364  ;;  %v385_v38 = vpop.permute.xlu1 %384 }
 0x10d   : > { %v542_v57 = vsel %vm536_vm6, %v533_v51, %v385_v38  ;;  %v535_v52 = vsel %vm527_vm5, %v526_v55, %v365_v28  ;;  %v505_v0 = vpop.permute.xlu2 %504 }
 0x10e   : > { %v544_v62 = vsel %vm536_vm6, %v535_v52, %v389_v6 }
 0x114   : > { %v409_v41 = vpop.permute.xlu0 %408  ;;  %v640_v44 = vpop.f32.mrf.mxu0 }
 0x115   : > { %v668_v18 = vmul.f32 %v2309_v39, %v640_v44  ;;  %v413_v46 = vpop.permute.xlu1 %412  ;;  %v551_v59 = vsel %vm545_vm7, %v542_v57, %v409_v41 }
 0x116   : > { %v560_v32 = vsel %vm554_vm8, %v551_v59, %v433_v15  ;;  %v553_v1 = vsel %vm545_vm7, %v544_v62, %v413_v46 }
 0x117   : > { %v2320_v47 = vadd.f32 %v2314_v43, %v668_v18 }
 0x119   : > { %v3151_v53 = vmax.f32 %v2320_v47, 0.0 }
 0x11b   : > { %704 = vrot.lane.b32.xlu1 %v3151_v53, %s1957_s21 }
 0x11c   : > { %v437_v56 = vpop.permute.xlu0 %436 }
 0x11d   : > { %v457_v58 = vpop.permute.xlu1 %456  ;;  %v562_v4 = vsel %vm554_vm8, %v553_v1, %v437_v56 }
 0x11e   : > { %v569_v60 = vsel %vm563_vm9, %v560_v32, %v457_v58  ;;  %v571_v12 = vsel %vm563_vm9, %v562_v4, %v2322_v48 }
 0x124   : > { %v481_v17 = vpop.permute.xlu0 %480 }
 0x125   : > { %v578_v3 = vsel %vm572_vm10, %v569_v60, %v481_v17  ;;  %v2342_v11 = vpop.permute.xlu1 %484 }
 0x126   : > { %v587_v63 = vsel %vm581_vm11, %v578_v3, %v505_v0  ;;  %v580_v20 = vsel %vm572_vm10, %v571_v12, %v2342_v11 }
 0x127   : > { %1866 = vmatmul.msk.f32.gmra.mxu0 %vm594_vm12, %v587_v63 }
 0x12b   : > { %v643_v14 = vpop.f32.mrf.mxu0 }
 0x12c   : > { %v669_v16 = vmul.f32 %v2309_v39, %v643_v14  ;;  %v2347_v19 = vpop.permute.xlu0 %508 }
 0x12d   : > { %v589_v21 = vsel %vm581_vm11, %v580_v20, %v2347_v19 }
 0x12e   : > { %v2354_v22 = vadd.f32 %v2314_v43, %v669_v16  ;;  %1868 = vmatmul.msk.f32.gmra.mxu3 %vm594_vm12, %v589_v21 }
 0x130   : > { %v3150_v13 = vmax.f32 %v2354_v22, 0.0 }
 0x132   : > { %706 = vrot.lane.b32.xlu2 %v3150_v13, %s1957_s21 }
 0x13d   : > { %v646_v5 = vpop.f32.mrf.mxu0 }
 0x13e   : > { %v670_v23 = vmul.f32 %v2309_v39, %v646_v5 }
 0x140   : > { %v2363_v24 = vadd.f32 %v2314_v43, %v670_v23 }
 0x142   : > { %v3149_v9 = vmax.f32 %v2363_v24, 0.0 }
 0x144   : > { %708 = vrot.lane.b32.xlu0 %v3149_v9, %s1957_s21 }
 0x154   : > { %v649_v42 = vpop.f32.mrf.mxu0 }
 0x155   : > { %v671_v31 = vmul.f32 %v2309_v39, %v649_v42 }
 0x157   : > { %v2379_v34 = vadd.f32 %v2314_v43, %v671_v31 }
 0x159   : > { %v3148_v2 = vmax.f32 %v2379_v34, 0.0 }
 0x17b   : > { %v652_v36 = vpop.f32.mrf.mxu0 }
 0x17c   : > { %v672_v18 = vmul.f32 %v2309_v39, %v652_v36 }
 0x17e   : > { %v2407_v51 = vadd.f32 %v2314_v43, %v672_v18 }
 0x182   : > { %v658_v61 = vpop.f32.mrf.mxu3 }
 0x183   : > { %v674_v26 = vmul.f32 %v2309_v39, %v658_v61 }
 0x185   : > { %v2371_v27 = vadd.f32 %v2314_v43, %v674_v26 }
 0x187   : > { %v3145_v33 = vmax.f32 %v2371_v27, 0.0 }
 0x189   : > { %716 = vrot.lane.b32.xlu1 %v3145_v33, %s1957_s21 }
 0x18c   : > { %v707_v35 = vpop.permute.xlu2 %706 }
 0x18d   : > { %v729_v25 = vadd.f32 %v707_v35, %v2022_v8  ;;  %v705_v15 = vpop.permute.xlu1 %704 }
 0x18e   : > { %v728_v41 = vadd.f32 %v705_v15, %v2019_v7  ;;  %v3147_v7 = vmax.f32 %v2407_v51, 0.0 }
 0x191   : > { %710 = vrot.lane.b32.xlu1 %v3148_v2, %s1957_s21 }
 0x199   : > { %746 = vrot.lane.b32.xlu1 %v729_v25, %s1965_s18 }
 0x1a4   : > { %v655_v6 = vpop.f32.mrf.mxu0 }
 0x1a5   : > { %v673_v37 = vmul.f32 %v2309_v39, %v655_v6 }
 0x1a7   : > { %v2389_v28 = vadd.f32 %v2314_v43, %v673_v37 }
 0x1a9   : > { %v3146_v38 = vmax.f32 %v2389_v28, 0.0 }
 0x1ab   : > { %714 = vrot.lane.b32.xlu0 %v3146_v38, %s1957_s21 }
 0x1b1   : > { %v661_v8 = vpop.f32.mrf.mxu3 }
 0x1b2   : > { %v675_v44 = vmul.f32 %v2309_v39, %v661_v8 }
 0x1b3   : > { %744 = vrot.lane.b32.xlu0 %v728_v41, %s1965_s18 }
 0x1b4   : > { %v2399_v45 = vadd.f32 %v2314_v43, %v675_v44 }
 0x1b6   : > { %v3144_v46 = vmax.f32 %v2399_v45, 0.0  ;;  %v709_v55 = vpop.permute.xlu0 %708 }
 0x1b7   : > { %v730_v56 = vadd.f32 %v709_v55, %v2060_v30 }
 0x1b8   : > { %718 = vrot.lane.b32.xlu2 %v3144_v46, %s1957_s21 }
 0x1c0   : > { %712 = vrot.lane.b32.xlu2 %v3147_v7, %s1957_s21 }
 0x1c8   : > { %748 = vrot.lane.b32.xlu2 %v730_v56, %s1965_s18 }
 0x1fb   : > { %v717_v39 = vpop.permute.xlu1 %716 }
 0x1fc   : > { %v734_v57 = vadd.f32 %v717_v39, %v2150_v10 }
 0x1fe   : > { %756 = vrot.lane.b32.xlu0 %v734_v57, %s1965_s18 }
 0x203   : > { %v711_v52 = vpop.permute.xlu1 %710 }
 0x204   : > { %v731_v43 = vadd.f32 %v711_v52, %v2081_v40 }
 0x206   : > { %750 = vrot.lane.b32.xlu0 %v731_v43, %s1965_s18 }
 0x20b   : > { %v747_v4 = vpop.permute.xlu1 %746 }
 0x20c   : > { %v761_v12 = vrot.slane %v747_v4, 7 }
 0x20e   : > { %v2439_v14 = vsel %vm233_vm0, 0.0, %v761_v12  ;;  %v785_v16 = vsel %vm233_vm0, %v761_v12, 0.0 }
 0x20f   : > { %v810_v20 = vrot.slane %v785_v16, 1  ;;  %v809_v21 = vrot.slane %v2439_v14, 1  ;;  %v831_v23 = vrot.slane %v785_v16, 2  ;;  %v830_v61 = vrot.slane %v2439_v14, 2 }
 0x211   : > { %v811_v5 = vsel %vm268_vm1, %v809_v21, %v810_v20  ;;  %v832_v26 = vsel %vm293_vm2, %v830_v61, %v831_v23 }
 0x212   : > { %v719_v58 = vpop.permute.xlu2 %718 }
 0x213   : > { %v735_v59 = vadd.f32 %v719_v58, %v2193_v29 }
 0x215   : > { %758 = vrot.lane.b32.xlu1 %v735_v59, %s1965_s18 }
 0x21a   : > { %v713_v62 = vpop.permute.xlu2 %712 }
 0x21b   : > { %v732_v30 = vadd.f32 %v713_v62, %v2103_v50 }
 0x21d   : > { %v715_v32 = vpop.permute.xlu0 %714  ;;  %752 = vrot.lane.b32.xlu1 %v732_v30, %s1965_s18 }
 0x21e   : > { %v733_v10 = vadd.f32 %v715_v32, %v2115_v54 }
 0x220   : > { %754 = vrot.lane.b32.xlu2 %v733_v10, %s1965_s18 }
 0x222   : > { %v749_v44 = vpop.permute.xlu2 %748 }
 0x223   : > { %v762_v18 = vrot.slane %v749_v44, 7 }
 0x225   : > { %v745_v0 = vpop.permute.xlu0 %744  ;;  %v2478_v55 = vsel %vm233_vm0, 0.0, %v762_v18  ;;  %v786_v56 = vsel %vm233_vm0, %v762_v18, 0.0 }
 0x226   : > { %v760_v60 = vrot.slane %v745_v0, 7  ;;  %v834_v52 = vrot.slane %v786_v56, 2  ;;  %v833_v58 = vrot.slane %v2478_v55, 2  ;;  %v813_v59 = vrot.slane %v786_v56, 1 }
 0x227   : > { %v812_v30 = vrot.slane %v2478_v55, 1 }
 0x228   : > { %v784_v40 = vsel %vm233_vm0, %v760_v60, 0.0  ;;  %v2427_v17 = vsel %vm233_vm0, 0.0, %v760_v60  ;;  %v835_v62 = vsel %vm293_vm2, %v833_v58, %v834_v52 }
 0x229   : > { %v807_v29 = vrot.slane %v784_v40, 1  ;;  %v828_v1 = vrot.slane %v784_v40, 2  ;;  %898 = vrot.lane.b32.xlu2 %v2427_v17, %s1958_s22  ;;  %v827_v50 = vrot.slane %v2427_v17, 2  ;;  %v806_v3 = vrot.slane %v2427_v17, 1 }
 0x22a   : > { %v814_v32 = vsel %vm268_vm1, %v812_v30, %v813_v59  ;;  %v1869_v30 = vld [vmem:[%s3140_s1 + $0x20] sm:$0xff] }
 0x22b   : > { %v829_v54 = vsel %vm293_vm2, %v827_v50, %v828_v1  ;;  %v808_v63 = vsel %vm268_vm1, %v806_v3, %v807_v29 }
 0x22c   : > { %946 = vrot.lane.b32.xlu1 %v829_v54, %s1962_s26  ;;  %922 = vrot.lane.b32.xlu0 %v808_v63, %s1961_s25 }
 0x231   : > { %856 = vrot.lane.b32.xlu2 %v808_v63, %s1957_s21 }
 0x234   : > { %877 = vrot.lane.b32.xlu0 %v829_v54, %s1960_s24  ;;  %900 = vrot.lane.b32.xlu1 %v2439_v14, %s1958_s22 }
 0x239   : > { %970 = vrot.lane.b32.xlu2 %v2439_v14, %s1959_s23 }
 0x23c   : > { %991 = vrot.lane.b32.xlu0 %v811_v5, %s1963_s27 }
 0x241   : > { %924 = vrot.lane.b32.xlu2 %v811_v5, %s1961_s25 }
 0x244   : > { %948 = vrot.lane.b32.xlu0 %v832_v26, %s1962_s26 }
 0x249   : > { %879 = vrot.lane.b32.xlu2 %v832_v26, %s1960_s24 }
 0x270   : > { %v757_v42 = vpop.permute.xlu0 %756 }
 0x271   : > { %v766_v31 = vrot.slane %v757_v42, 7 }
 0x273   : > { %v2456_v35 = vsel %vm233_vm0, 0.0, %v766_v31  ;;  %v790_v25 = vsel %vm233_vm0, %v766_v31, 0.0 }
 0x274   : > { %v825_v36 = vrot.slane %v790_v25, 1  ;;  %v846_v6 = vrot.slane %v790_v25, 2  ;;  %910 = vrot.lane.b32.xlu1 %v2456_v35, %s1958_s22  ;;  %v845_v37 = vrot.slane %v2456_v35, 2  ;;  %v824_v15 = vrot.slane %v2456_v35, 1 }
 0x276   : > { %v2464_v41 = vsel %vm293_vm2, %v845_v37, %v846_v6  ;;  %v2467_v8 = vsel %vm268_vm1, %v824_v15, %v825_v36 }
 0x277   : > { %958 = vrot.lane.b32.xlu2 %v2464_v41, %s1962_s26  ;;  %934 = vrot.lane.b32.xlu0 %v2467_v8, %s1961_s25 }
 0x278   : > { %v751_v3 = vpop.permute.xlu0 %750 }
 0x279   : > { %v763_v63 = vrot.slane %v751_v3, 7 }
 0x27a   : > { %v755_v54 = vpop.permute.xlu2 %754 }
 0x27b   : > { %v2506_v4 = vsel %vm233_vm0, 0.0, %v763_v63  ;;  %v787_v12 = vsel %vm233_vm0, %v763_v63, 0.0 }
 0x27c   : > { %1012 = vrot.lane.b32.xlu1 %v832_v26, %s1964_s28  ;;  %v837_v20 = vrot.slane %v787_v12, 2  ;;  %v836_v21 = vrot.slane %v2506_v4, 2  ;;  %v815_v61 = vrot.slane %v2506_v4, 1 }
 0x27e   : > { %v838_v23 = vsel %vm293_vm2, %v836_v21, %v837_v20 }
 0x27f   : > { %889 = vrot.lane.b32.xlu0 %v2464_v41, %s1960_s24 }
 0x283   : > { %v2512_v16 = vpop.permute.xlu2 %898 }
 0x284   : > { %858 = vrot.lane.b32.xlu1 %v811_v5, %s1957_s21  ;;  %v816_v5 = vrot.slane %v787_v12, 1 }
 0x286   : > { %v817_v26 = vsel %vm268_vm1, %v815_v61, %v816_v5 }
 0x287   : > { %902 = vrot.lane.b32.xlu0 %v2478_v55, %s1958_s22  ;;  %v759_v39 = vpop.permute.xlu1 %758 }
 0x288   : > { %v767_v57 = vrot.slane %v759_v39, 7  ;;  %v1872_v39 = vld [vmem:[%s3140_s1 + $0x38] sm:$0x7] }
 0x289   : > { %1873 = vmatpush.msk.msra.mxu1 %vm619_vm3, %v1872_v39  ;;  %1907 = vmatpush.msk.msrb.mxu3 %vm619_vm3, %v1872_v39 }
 0x28a   : > { %v783_v43 = vsel %vm233_vm0, 0.0, %v767_v57  ;;  %v791_v10 = vsel %vm233_vm0, %v767_v57, 0.0  ;;  %v1871_v57 = vld [vmem:[%s3140_s1 + $0x30] sm:$0xff] }
 0x28b   : > { %912 = vrot.lane.b32.xlu2 %v783_v43, %s1958_s22  ;;  %v851_v0 = vrot.slane %v791_v10, 1  ;;  %v850_v60 = vrot.slane %v783_v43, 1  ;;  %v854_v40 = vrot.slane %v791_v10, 2  ;;  %v853_v1 = vrot.slane %v783_v43, 2  ;;  %v2522_v42 = vpop.permute.xlu2 %856  ;;  %1140 = vmatpush.msra.mxu1 %v1871_v57 }
 0x28c   : > { %868 = vrot.lane.b32.xlu1 %v2467_v8, %s1957_s21  ;;  %1908 = vmatpush.msrb.mxu3 %v1871_v57 }
 0x28d   : > { %v852_v29 = vsel %vm268_vm1, %v850_v60, %v851_v0  ;;  %v855_v50 = vsel %vm293_vm2, %v853_v1, %v854_v40 }
 0x28f   : > { %1014 = vrot.lane.b32.xlu0 %v835_v62, %s1964_s28  ;;  %v753_v31 = vpop.permute.xlu1 %752 }
 0x290   : > { %v764_v25 = vrot.slane %v753_v31, 7 }
 0x292   : > { %v2528_v36 = vsel %vm233_vm0, 0.0, %v764_v25  ;;  %v788_v6 = vsel %vm233_vm0, %v764_v25, 0.0 }
 0x293   : > { %993 = vrot.lane.b32.xlu2 %v814_v32, %s1963_s27  ;;  %v971_v37 = vpop.permute.xlu2 %970  ;;  %v819_v15 = vrot.slane %v788_v6, 1  ;;  %v818_v44 = vrot.slane %v2528_v36, 1  ;;  %v840_v59 = vrot.slane %v788_v6, 2 }
 0x294   : > { %972 = vrot.lane.b32.xlu1 %v2478_v55, %s1959_s23 }
 0x295   : > { %v820_v56 = vsel %vm268_vm1, %v818_v44, %v819_v15 }
 0x297   : > { %860 = vrot.lane.b32.xlu0 %v814_v32, %s1957_s21 }
 0x29b   : > { %950 = vrot.lane.b32.xlu2 %v835_v62, %s1962_s26  ;;  %v2547_v52 = vpop.permute.xlu2 %924 }
 0x29c   : > { %982 = vrot.lane.b32.xlu1 %v783_v43, %s1959_s23  ;;  %v1870_v43 = vld [vmem:[%s3140_s1 + $0x28] sm:$0xff] }
 0x29d   : > { %1141 = vmatpush.msra.mxu1 %v1870_v43  ;;  %1909 = vmatpush.msrb.mxu3 %v1870_v43 }
 0x29e   : > { %v923_v18 = vpop.permute.xlu0 %922  ;;  %v947_v40 = vpop.permute.xlu1 %946 }
 0x29f   : > { %1003 = vrot.lane.b32.xlu0 %v852_v29, %s1963_s27  ;;  %1142 = vmatpush.msra.mxu1 %v1869_v30 }
 0x2a0   : > { %1910 = vmatpush.msrb.mxu3 %v1869_v30 }
 0x2a3   : > { %1024 = vrot.lane.b32.xlu2 %v855_v50, %s1964_s28 }
 0x2a4   : > { %926 = vrot.lane.b32.xlu1 %v814_v32, %s1961_s25  ;;  %v765_v32 = vrot.slane %v755_v54, 7 }
 0x2a6   : > { %v878_v58 = vpop.permute.xlu0 %877  ;;  %v2561_v0 = vsel %vm233_vm0, 0.0, %v765_v32  ;;  %v789_v60 = vsel %vm233_vm0, %v765_v32, 0.0  ;;  %v901_v21 = vpop.permute.xlu1 %900 }
 0x2a7   : > { %960 = vrot.lane.b32.xlu0 %v855_v50, %s1962_s26  ;;  %v843_v1 = vrot.slane %v789_v60, 2  ;;  %v842_v50 = vrot.slane %v2561_v0, 2  ;;  %v822_v54 = vrot.slane %v789_v60, 1  ;;  %v821_v12 = vrot.slane %v2561_v0, 1 }
 0x2a9   : > { %v844_v63 = vsel %vm293_vm2, %v842_v50, %v843_v1  ;;  %v823_v5 = vsel %vm268_vm1, %v821_v12, %v822_v54 }
 0x2ab   : > { %904 = vrot.lane.b32.xlu2 %v2506_v4, %s1958_s22 }
 0x2ac   : > { %881 = vrot.lane.b32.xlu1 %v835_v62, %s1960_s24  ;;  %v839_v62 = vrot.slane %v2528_v36, 2 }
 0x2ae   : > { %v841_v10 = vsel %vm293_vm2, %v839_v62, %v840_v59  ;;  %v992_v3 = vpop.permute.xlu0 %991  ;;  %v1033_v62 = vsel %vm518_vm4, %v2427_v17, %v2522_v42 }
 0x2af   : > { %974 = vrot.lane.b32.xlu0 %v2506_v4, %s1959_s23 }
 0x2b3   : > { %1016 = vrot.lane.b32.xlu2 %v838_v23, %s1964_s28 }
 0x2b4   : > { %936 = vrot.lane.b32.xlu1 %v852_v29, %s1961_s25  ;;  %v2566_v29 = vpop.permute.xlu2 %879 }
 0x2b7   : > { %928 = vrot.lane.b32.xlu0 %v817_v26, %s1961_s25 }
 0x2bb   : > { %862 = vrot.lane.b32.xlu2 %v817_v26, %s1957_s21 }
 0x2bc   : > { %995 = vrot.lane.b32.xlu1 %v817_v26, %s1963_s27  ;;  %v1047_v26 = vsel %vm536_vm6, %v2213_v49, %v2512_v16 }
 0x2bd   : > { %v1055_v25 = vsel %vm545_vm7, %v1047_v26, %v923_v18 }
 0x2be   : > { %v1063_v15 = vsel %vm554_vm8, %v1055_v25, %v947_v40 }
 0x2bf   : > { %906 = vrot.lane.b32.xlu0 %v2528_v36, %s1958_s22  ;;  %v1071_v44 = vsel %vm563_vm9, %v1063_v15, %v971_v37 }
 0x2c3   : > { %976 = vrot.lane.b32.xlu2 %v2528_v36, %s1959_s23 }
 0x2c4   : > { %952 = vrot.lane.b32.xlu1 %v838_v23, %s1962_s26 }
 0x2c7   : > { %997 = vrot.lane.b32.xlu0 %v820_v56, %s1963_s27 }
 0x2cb   : > { %930 = vrot.lane.b32.xlu2 %v820_v56, %s1961_s25 }
 0x2cc   : > { %883 = vrot.lane.b32.xlu1 %v838_v23, %s1960_s24  ;;  %v949_v23 = vpop.permute.xlu0 %948 }
 0x2cf   : > { %864 = vrot.lane.b32.xlu0 %v820_v56, %s1957_s21  ;;  %v1079_v56 = vsel %vm572_vm10, %v1071_v44, %v992_v3 }
 0x2d1   : > { %v2575_v20 = vpop.permute.xlu2 %958 }
 0x2d3   : > { %885 = vrot.lane.b32.xlu2 %v841_v10, %s1960_s24 }
 0x2d4   : > { %1018 = vrot.lane.b32.xlu1 %v841_v10, %s1964_s28 }
 0x2d7   : > { %978 = vrot.lane.b32.xlu0 %v2561_v0, %s1959_s23 }
 0x2db   : > { %887 = vrot.lane.b32.xlu2 %v844_v63, %s1960_s24 }
 0x2dc   : > { %954 = vrot.lane.b32.xlu1 %v841_v10, %s1962_s26 }
 0x2df   : > { %866 = vrot.lane.b32.xlu0 %v823_v5, %s1957_s21 }
 0x2e3   : > { %999 = vrot.lane.b32.xlu2 %v823_v5, %s1963_s27 }
 0x2e4   : > { %908 = vrot.lane.b32.xlu1 %v2561_v0, %s1958_s22 }
 0x2e5   : > { %v913_v61 = vpop.permute.xlu2 %912 }
 0x2e6   : > { %v2585_v31 = vpop.permute.xlu1 %910 }
 0x2e7   : > { %932 = vrot.lane.b32.xlu0 %v823_v5, %s1961_s25 }
 0x2e9   : > { %v2589_v6 = vpop.permute.xlu0 %934 }
 0x2eb   : > { %956 = vrot.lane.b32.xlu2 %v844_v63, %s1962_s26 }
 0x2ec   : > { %1020 = vrot.lane.b32.xlu1 %v844_v63, %s1964_s28 }
 0x2ed   : > { %v994_v16 = vpop.permute.xlu2 %993 }
 0x2ee   : > { %v1013_v39 = vpop.permute.xlu1 %1012 }
 0x2ef   : > { %1022 = vrot.lane.b32.xlu0 %v2464_v41, %s1964_s28  ;;  %v1087_v18 = vsel %vm581_vm11, %v1079_v56, %v1013_v39  ;;  %v1040_v41 = vsel %vm527_vm5, %v1033_v62, %v878_v58 }
 0x2f0   : > { %1874 = vmatmul.msk.f32.vlgmr.msra.gmra.mxu1 %vm594_vm12, %v1087_v18  ;;  %v1048_v40 = vsel %vm536_vm6, %v1040_v41, %v901_v21 }
 0x2f1   : > { %v890_v57 = vpop.permute.xlu0 %889  ;;  %v1056_v50 = vsel %vm545_vm7, %v1048_v40, %v2547_v52 }
 0x2f2   : > { %v1064_v17 = vsel %vm554_vm8, %v1056_v50, %v949_v23 }
 0x2f3   : > { %1001 = vrot.lane.b32.xlu2 %v2467_v8, %s1963_s27 }
 0x2f4   : > { %980 = vrot.lane.b32.xlu1 %v2456_v35, %s1959_s23 }
 0x2f5   : > { %v951_v37 = vpop.permute.xlu2 %950 }
 0x2f6   : > { %v859_v43 = vpop.permute.xlu1 %858 }
 0x2f7   : > { %v1034_v23 = vsel %vm518_vm4, %v2439_v14, %v859_v43 }
 0x2f8   : > { %v1041_v44 = vsel %vm527_vm5, %v1034_v23, %v2566_v29 }
 0x2f9   : > { %v903_v59 = vpop.permute.xlu0 %902 }
 0x2fa   : > { %v1049_v18 = vsel %vm536_vm6, %v1041_v44, %v903_v59 }
 0x2fd   : > { %v2613_v1 = vpop.permute.xlu2 %1024 }
 0x2fe   : > { %v869_v30 = vpop.permute.xlu1 %868 }
 0x2ff   : > { %v1039_v32 = vsel %vm518_vm4, %v2456_v35, %v869_v30 }
 0x300   : > { %v1046_v10 = vsel %vm527_vm5, %v1039_v32, %v890_v57 }
 0x301   : > { %v1015_v60 = vpop.permute.xlu0 %1014  ;;  %v1054_v8 = vsel %vm536_vm6, %v1046_v10, %v913_v61 }
 0x305   : > { %v905_v63 = vpop.permute.xlu2 %904 }
 0x306   : > { %v973_v42 = vpop.permute.xlu1 %972 }
 0x307   : > { %v1072_v58 = vsel %vm563_vm9, %v1064_v17, %v973_v42 }
 0x308   : > { %v1080_v3 = vsel %vm572_vm10, %v1072_v58, %v994_v16 }
 0x309   : > { %v861_v35 = vpop.permute.xlu0 %860  ;;  %v1088_v54 = vsel %vm581_vm11, %v1080_v3, %v1015_v60 }
 0x30a   : > { %1875 = vmatmul.msk.f32.gmra.mxu1 %vm594_vm12, %v1088_v54  ;;  %v1035_v59 = vsel %vm518_vm4, %v2478_v55, %v861_v35 }
 0x30d   : > { %v1017_v61 = vpop.permute.xlu2 %1016 }
 0x30e   : > { %v983_v12 = vpop.permute.xlu1 %982 }
 0x311   : > { %v1004_v21 = vpop.permute.xlu0 %1003 }
 0x315   : > { %v863_v52 = vpop.permute.xlu2 %862 }
 0x316   : > { %v927_v5 = vpop.permute.xlu1 %926 }
 0x317   : > { %v1057_v62 = vsel %vm545_vm7, %v1049_v18, %v927_v5 }
 0x318   : > { %v1065_v41 = vsel %vm554_vm8, %v1057_v62, %v951_v37 }
 0x319   : > { %v961_v26 = vpop.permute.xlu0 %960 }
 0x31d   : > { %v977_v30 = vpop.permute.xlu2 %976 }
 0x31e   : > { %v882_v25 = vpop.permute.xlu1 %881 }
 0x31f   : > { %v1042_v50 = vsel %vm527_vm5, %v1035_v59, %v882_v25 }
 0x320   : > { %v1050_v37 = vsel %vm536_vm6, %v1042_v50, %v905_v63  ;;  %v1036_v63 = vsel %vm518_vm4, %v2506_v4, %v863_v52 }
 0x321   : > { %v975_v15 = vpop.permute.xlu0 %974 }
 0x322   : > { %v1073_v32 = vsel %vm563_vm9, %v1065_v41, %v975_v15 }
 0x325   : > { %v931_v60 = vpop.permute.xlu2 %930 }
 0x326   : > { %v937_v56 = vpop.permute.xlu1 %936 }
 0x327   : > { %v1062_v39 = vsel %vm545_vm7, %v1054_v8, %v937_v56 }
 0x328   : > { %v1070_v16 = vsel %vm554_vm8, %v1062_v39, %v961_v26 }
 0x329   : > { %v929_v57 = vpop.permute.xlu0 %928 }
 0x32a   : > { %v1058_v42 = vsel %vm545_vm7, %v1050_v37, %v929_v57 }
 0x32d   : > { %v886_v58 = vpop.permute.xlu2 %885 }
 0x32e   : > { %v996_v10 = vpop.permute.xlu1 %995 }
 0x32f   : > { %v1081_v14 = vsel %vm572_vm10, %v1073_v32, %v996_v10 }
 0x330   : > { %v1089_v29 = vsel %vm581_vm11, %v1081_v14, %v1017_v61 }
 0x331   : > { %v907_v43 = vpop.permute.xlu0 %906  ;;  %1876 = vmatmul.msk.f32.gmra.mxu1 %vm594_vm12, %v1089_v29 }
 0x335   : > { %v888_v55 = vpop.permute.xlu2 %887 }
 0x336   : > { %v953_v8 = vpop.permute.xlu1 %952 }
 0x337   : > { %v1066_v3 = vsel %vm554_vm8, %v1058_v42, %v953_v8 }
 0x338   : > { %v1074_v5 = vsel %vm563_vm9, %v1066_v3, %v977_v30 }
 0x339   : > { %v998_v40 = vpop.permute.xlu0 %997 }
 0x33a   : > { %v1082_v61 = vsel %vm572_vm10, %v1074_v5, %v998_v40  ;;  %v1937_v5 = vld [vmem:[%s3142_s3 + $0x1] ss:$0 sm:$0xff] }
 0x33d   : > { %v1000_v39 = vpop.permute.xlu2 %999 }
 0x33e   : > { %v884_v17 = vpop.permute.xlu1 %883 }
 0x33f   : > { %v1043_v23 = vsel %vm527_vm5, %v1036_v63, %v884_v17 }
 0x340   : > { %v1051_v57 = vsel %vm536_vm6, %v1043_v23, %v907_v43 }
 0x341   : > { %v865_v54 = vpop.permute.xlu0 %864  ;;  %v1059_v52 = vsel %vm545_vm7, %v1051_v57, %v931_v60 }
 0x345   : > { %v957_v29 = vpop.permute.xlu2 %956 }
 0x346   : > { %v1019_v26 = vpop.permute.xlu1 %1018 }
 0x347   : > { %v1090_v15 = vsel %vm581_vm11, %v1082_v61, %v1019_v26 }
 0x348   : > { %1877 = vmatmul.msk.f32.gmra.mxu1 %vm594_vm12, %v1090_v15 }
 0x349   : > { %v979_v35 = vpop.permute.xlu0 %978 }
 0x34d   : > { %v1002_v37 = vpop.permute.xlu2 %1001 }
 0x34e   : > { %v955_v25 = vpop.permute.xlu1 %954 }
 0x351   : > { %v867_v44 = vpop.permute.xlu0 %866 }
 0x352   : > { %v1038_v56 = vsel %vm518_vm4, %v2561_v0, %v867_v44  ;;  %v1067_v0 = vsel %vm554_vm8, %v1059_v52, %v955_v25 }
 0x353   : > { %v1045_v18 = vsel %vm527_vm5, %v1038_v56, %v888_v55 }
 0x354   : > { %v1053_v62 = vsel %vm536_vm6, %v1045_v18, %v2585_v31  ;;  %v1075_v31 = vsel %vm563_vm9, %v1067_v0, %v979_v35 }
 0x355   : > { %v1061_v30 = vsel %vm545_vm7, %v1053_v62, %v2589_v6  ;;  %v1078_v6 = vsel %vm563_vm9, %v1070_v16, %v2322_v48  ;;  %v1083_v60 = vsel %vm572_vm10, %v1075_v31, %v1000_v39 }
 0x356   : > { %v909_v41 = vpop.permute.xlu1 %908  ;;  %v1069_v4 = vsel %vm554_vm8, %v1061_v30, %v2575_v20  ;;  %v1037_v20 = vsel %vm518_vm4, %v2528_v36, %v865_v54  ;;  %v1936_v54 = vld [vmem:[%s3141_s2 + $0x1] ss:$0 sm:$0xff] }
 0x357   : > { %v1077_v32 = vsel %vm563_vm9, %v1069_v4, %v983_v12  ;;  %v1044_v8 = vsel %vm527_vm5, %v1037_v20, %v886_v58 }
 0x358   : > { %v1085_v10 = vsel %vm572_vm10, %v1077_v32, %v1004_v21  ;;  %v1086_v21 = vsel %vm572_vm10, %v1078_v6, %v2342_v11  ;;  %v1052_v40 = vsel %vm536_vm6, %v1044_v8, %v909_v41 }
 0x359   : > { %v1093_v14 = vsel %vm581_vm11, %v1085_v10, %v2613_v1  ;;  %v933_v43 = vpop.permute.xlu0 %932  ;;  %v1094_v16 = vsel %vm581_vm11, %v1086_v21, %v2347_v19 }
 0x35a   : > { %1880 = vmatmul.msk.f32.vlgmr.msrb.gmra.mxu3 %vm594_vm12, %v1093_v14  ;;  %v1060_v36 = vsel %vm545_vm7, %v1052_v40, %v933_v43 }
 0x35b   : > { %v1068_v59 = vsel %vm554_vm8, %v1060_v36, %v957_v29 }
 0x35e   : > { %v1021_v12 = vpop.permute.xlu1 %1020 }
 0x35f   : > { %v1091_v1 = vsel %vm581_vm11, %v1083_v60, %v1021_v12 }
 0x360   : > { %1878 = vmatmul.msk.f32.gmra.mxu1 %vm594_vm12, %v1091_v1  ;;  %v2731_v1 = vld [vmem:[%s2013_s20 + $0x8] sm:$0xff] }
 0x361   : > { %v1023_v42 = vpop.permute.xlu0 %1022 }
 0x362   : > { %1881 = vmatmul.msk.f32.gmra.mxu3 %vm594_vm12, %v1094_v16 }
 0x366   : > { %v981_v50 = vpop.permute.xlu1 %980 }
 0x367   : > { %v1076_v17 = vsel %vm563_vm9, %v1068_v59, %v981_v50  ;;  %v2746_v50 = vld [vmem:[%s2013_s20] sm:$0xff] }
 0x368   : > { %v1084_v3 = vsel %vm572_vm10, %v1076_v17, %v1002_v37 }
 0x369   : > { %v1092_v58 = vsel %vm581_vm11, %v1084_v3, %v1023_v42  ;;  %v2751_v42 = vld [vmem:[%s2013_s20 + $0x10] sm:$0xff] }
 0x36a   : > { %1879 = vmatmul.msk.f32.gmra.mxu1 %vm594_vm12, %v1092_v58 }
 0x36d   : > { %v1144_v61 = vpop.f32.mrf.mxu1 }
 0x36e   : > { %v1173_v26 = vmul.f32 %v1936_v54, %v1144_v61 }
 0x370   : > { %v2692_v15 = vadd.f32 %v1937_v5, %v1173_v26  ;;  %v2760_v26 = vld [vmem:[%s2013_s20 + $0x18] sm:$0xff] }
 0x372   : > { %v1194_v55 = vmax.f32 %v2692_v15, 0.0 }
 0x374   : > { %1210 = vrot.lane.b32.xlu1 %v1194_v55, %s1960_s24 }
 0x387   : > { %v1147_v35 = vpop.f32.mrf.mxu1 }
 0x388   : > { %v1174_v25 = vmul.f32 %v1936_v54, %v1147_v35 }
 0x38a   : > { %v2698_v63 = vadd.f32 %v1937_v5, %v1174_v25 }
 0x38c   : > { %v1195_v23 = vmax.f32 %v2698_v63, 0.0 }
 0x38e   : > { %1212 = vrot.lane.b32.xlu2 %v1195_v23, %s1960_s24 }
 0x3ae   : > { %v1150_v44 = vpop.f32.mrf.mxu1 }
 0x3af   : > { %v1175_v56 = vmul.f32 %v1936_v54, %v1150_v44  ;;  %v2766_v44 = vld [vmem:[%s2013_s20 + $0x38] sm:$0xff] }
 0x3b1   : > { %v2704_v39 = vadd.f32 %v1937_v5, %v1175_v56 }
 0x3b3   : > { %v1196_v18 = vmax.f32 %v2704_v39, 0.0 }
 0x3b5   : > { %1214 = vrot.lane.b32.xlu0 %v1196_v18, %s1960_s24 }
 0x3c5   : > { %v1153_v57 = vpop.f32.mrf.mxu1 }
 0x3c6   : > { %v1176_v62 = vmul.f32 %v1936_v54, %v1153_v57 }
 0x3c8   : > { %v2710_v30 = vadd.f32 %v1937_v5, %v1176_v62  ;;  %v2771_v62 = vld [vmem:[%s2013_s20 + $0x30] sm:$0xff] }
 0x3ca   : > { %v1197_v41 = vmax.f32 %v2710_v30, 0.0 }
 0x3cc   : > { %1216 = vrot.lane.b32.xlu1 %v1197_v41, %s1960_s24 }
 0x3dd   : > { %v1156_v4 = vpop.f32.mrf.mxu1  ;;  %v1162_v52 = vpop.f32.mrf.mxu3 }
 0x3de   : > { %v1177_v32 = vmul.f32 %v1936_v54, %v1156_v4  ;;  %v1179_v0 = vmul.f32 %v1936_v54, %v1162_v52 }
 0x3e0   : > { %v2716_v10 = vadd.f32 %v1937_v5, %v1177_v32  ;;  %v2718_v14 = vadd.f32 %v1937_v5, %v1179_v0  ;;  %v2776_v32 = vld [vmem:[%s2013_s20 + $0x28] sm:$0xff] }
 0x3e2   : > { %v1198_v31 = vmax.f32 %v2716_v10, 0.0  ;;  %v1200_v6 = vmax.f32 %v2718_v14, 0.0 }
 0x3e4   : > { %1222 = vrot.lane.b32.xlu1 %v1200_v6, %s1960_s24  ;;  %1218 = vrot.lane.b32.xlu2 %v1198_v31, %s1960_s24 }
 0x3e5   : > { %v1165_v29 = vpop.f32.mrf.mxu3 }
 0x3e6   : > { %v1180_v20 = vmul.f32 %v1936_v54, %v1165_v29  ;;  %v1211_v59 = vpop.permute.xlu1 %1210 }
 0x3e7   : > { %v1159_v43 = vpop.f32.mrf.mxu1  ;;  %v1234_v37 = vadd.f32 %v2746_v50, %v1211_v59 }
 0x3e8   : > { %v2728_v12 = vadd.f32 %v1937_v5, %v1180_v20  ;;  %v1178_v60 = vmul.f32 %v1936_v54, %v1159_v43  ;;  %v1213_v21 = vpop.permute.xlu2 %1212 }
 0x3e9   : > { %v1235_v8 = vadd.f32 %v2731_v1, %v1213_v21 }
 0x3ea   : > { %v3152_v16 = vmax.f32 %v2728_v12, 0.0  ;;  %v2735_v40 = vadd.f32 %v1937_v5, %v1178_v60  ;;  %v2756_v5 = vld [vmem:[%s2013_s20 + $0x20] sm:$0xff] }
 0x3ec   : > { %v1199_v36 = vmax.f32 %v2735_v40, 0.0  ;;  %1252 = vrot.lane.b32.xlu1 %v1235_v8, %s1966_s14  ;;  %1224 = vrot.lane.b32.xlu2 %v3152_v16, %s1960_s24 }
 0x3ee   : > { %1220 = vrot.lane.b32.xlu0 %v1199_v36, %s1960_s24 }
 0x3f6   : > { %1250 = vrot.lane.b32.xlu0 %v1234_v37, %s1966_s14 }
 0x427   : > { %v1215_v17 = vpop.permute.xlu0 %1214 }
 0x428   : > { %v1236_v3 = vadd.f32 %v2751_v42, %v1215_v17 }
 0x42a   : > { %1254 = vrot.lane.b32.xlu2 %v1236_v3, %s1966_s14 }
 0x43e   : > { %v1219_v58 = vpop.permute.xlu2 %1218  ;;  %v1217_v54 = vpop.permute.xlu1 %1216 }
 0x43f   : > { %v1238_v61 = vadd.f32 %v2756_v5, %v1219_v58  ;;  %v1237_v35 = vadd.f32 %v2760_v26, %v1217_v54 }
 0x441   : > { %1258 = vrot.lane.b32.xlu1 %v1238_v61, %s1966_s14  ;;  %1256 = vrot.lane.b32.xlu0 %v1237_v35, %s1966_s14 }
 0x446   : > { %v1225_v25 = vpop.permute.xlu2 %1224 }
 0x447   : > { %v1241_v56 = vadd.f32 %v2766_v44, %v1225_v25 }
 0x449   : > { %1264 = vrot.lane.b32.xlu1 %v1241_v56, %s1966_s14 }
 0x456   : > { %v1223_v57 = vpop.permute.xlu1 %1222 }
 0x457   : > { %v1240_v4 = vadd.f32 %v2771_v62, %v1223_v57 }
 0x459   : > { %1262 = vrot.lane.b32.xlu0 %v1240_v4, %s1966_s14 }
 0x45e   : > { %v1253_v58 = vpop.permute.xlu1 %1252 }
 0x45f   : > { %v1267_v54 = vrot.slane %v1253_v58, 7 }
 0x460   : > { %v1221_v52 = vpop.permute.xlu0 %1220 }
 0x461   : > { %v1239_v0 = vadd.f32 %v2776_v32, %v1221_v52  ;;  %v2794_v61 = vsel %vm233_vm0, 0.0, %v1267_v54  ;;  %v1291_v35 = vsel %vm233_vm0, %v1267_v54, 0.0 }
 0x462   : > { %v1316_v25 = vrot.slane %v1291_v35, 1  ;;  %v1337_v56 = vrot.slane %v1291_v35, 2  ;;  %v1336_v57 = vrot.slane %v2794_v61, 2  ;;  %v1315_v4 = vrot.slane %v2794_v61, 1 }
 0x463   : > { %1260 = vrot.lane.b32.xlu2 %v1239_v0, %s1966_s14 }
 0x464   : > { %v1338_v52 = vsel %vm293_vm2, %v1336_v57, %v1337_v56  ;;  %v1317_v0 = vsel %vm268_vm1, %v1315_v4, %v1316_v25 }
 0x468   : > { %v1251_v29 = vpop.permute.xlu0 %1250 }
 0x469   : > { %v1266_v20 = vrot.slane %v1251_v29, 7 }
 0x46b   : > { %v2781_v43 = vsel %vm233_vm0, 0.0, %v1266_v20  ;;  %v1290_v60 = vsel %vm233_vm0, %v1266_v20, 0.0 }
 0x46c   : > { %v1312_v21 = vrot.slane %v2781_v43, 1  ;;  %v1313_v8 = vrot.slane %v1290_v60, 1  ;;  %v1333_v59 = vrot.slane %v2781_v43, 2  ;;  %v1334_v37 = vrot.slane %v1290_v60, 2  ;;  %1404 = vrot.lane.b32.xlu2 %v2781_v43, %s1958_s22 }
 0x46e   : > { %v1335_v17 = vsel %vm293_vm2, %v1333_v59, %v1334_v37  ;;  %v1314_v3 = vsel %vm268_vm1, %v1312_v21, %v1313_v8 }
 0x46f   : > { %1452 = vrot.lane.b32.xlu1 %v1335_v17, %s1962_s26  ;;  %1428 = vrot.lane.b32.xlu0 %v1314_v3, %s1961_s25 }
 0x474   : > { %1362 = vrot.lane.b32.xlu2 %v1314_v3, %s1957_s21 }
 0x477   : > { %1383 = vrot.lane.b32.xlu0 %v1335_v17, %s1960_s24  ;;  %1406 = vrot.lane.b32.xlu1 %v2794_v61, %s1958_s22 }
 0x47c   : > { %1476 = vrot.lane.b32.xlu2 %v2794_v61, %s1959_s23 }
 0x47f   : > { %1518 = vrot.lane.b32.xlu1 %v1338_v52, %s1964_s28  ;;  %1497 = vrot.lane.b32.xlu0 %v1317_v0, %s1963_s27 }
 0x484   : > { %1430 = vrot.lane.b32.xlu2 %v1317_v0, %s1961_s25  ;;  %v1255_v29 = vpop.permute.xlu2 %1254 }
 0x485   : > { %v1268_v20 = vrot.slane %v1255_v29, 7 }
 0x487   : > { %1364 = vrot.lane.b32.xlu1 %v1317_v0, %s1957_s21  ;;  %1454 = vrot.lane.b32.xlu0 %v1338_v52, %s1962_s26  ;;  %v2812_v60 = vsel %vm233_vm0, 0.0, %v1268_v20  ;;  %v1292_v21 = vsel %vm233_vm0, %v1268_v20, 0.0 }
 0x488   : > { %v1319_v8 = vrot.slane %v1292_v21, 1  ;;  %v1318_v59 = vrot.slane %v2812_v60, 1  ;;  %v1340_v37 = vrot.slane %v1292_v21, 2  ;;  %v1339_v17 = vrot.slane %v2812_v60, 2 }
 0x48a   : > { %v1320_v3 = vsel %vm268_vm1, %v1318_v59, %v1319_v8  ;;  %v1341_v58 = vsel %vm293_vm2, %v1339_v17, %v1340_v37 }
 0x48c   : > { %1385 = vrot.lane.b32.xlu2 %v1338_v52, %s1960_s24 }
 0x48f   : > { %1478 = vrot.lane.b32.xlu1 %v2812_v60, %s1959_s23  ;;  %1408 = vrot.lane.b32.xlu0 %v2812_v60, %s1958_s22 }
 0x494   : > { %1499 = vrot.lane.b32.xlu2 %v1320_v3, %s1963_s27 }
 0x497   : > { %1432 = vrot.lane.b32.xlu1 %v1320_v3, %s1961_s25  ;;  %1520 = vrot.lane.b32.xlu0 %v1341_v58, %s1964_s28 }
 0x49c   : > { %1456 = vrot.lane.b32.xlu2 %v1341_v58, %s1962_s26 }
 0x49f   : > { %1387 = vrot.lane.b32.xlu1 %v1341_v58, %s1960_s24  ;;  %1366 = vrot.lane.b32.xlu0 %v1320_v3, %s1957_s21 }
 0x4b3   : > { %v1257_v54 = vpop.permute.xlu0 %1256  ;;  %v1259_v21 = vpop.permute.xlu1 %1258 }
 0x4b4   : > { %v1269_v35 = vrot.slane %v1257_v54, 7  ;;  %v1270_v8 = vrot.slane %v1259_v21, 7  ;;  %v1887_v54 = vld [vmem:[%s3140_s1 + $0x58] sm:$0x7] }
 0x4b5   : > { %1888 = vmatpush.msk.msra.mxu2 %vm619_vm3, %v1887_v54  ;;  %1911 = vmatpush.msk.msra.mxu3 %vm619_vm3, %v1887_v54 }
 0x4b6   : > { %v2831_v25 = vsel %vm233_vm0, 0.0, %v1269_v35  ;;  %v1293_v56 = vsel %vm233_vm0, %v1269_v35, 0.0  ;;  %v2847_v37 = vsel %vm233_vm0, 0.0, %v1270_v8  ;;  %v1294_v17 = vsel %vm233_vm0, %v1270_v8, 0.0 }
 0x4b7   : > { %v1322_v57 = vrot.slane %v1293_v56, 1  ;;  %1410 = vrot.lane.b32.xlu2 %v2831_v25, %s1958_s22  ;;  %1480 = vrot.lane.b32.xlu0 %v2831_v25, %s1959_s23  ;;  %v1321_v4 = vrot.slane %v2831_v25, 1  ;;  %v1343_v52 = vrot.slane %v1293_v56, 2  ;;  %v1342_v29 = vrot.slane %v2831_v25, 2 }
 0x4b8   : > { %v1325_v3 = vrot.slane %v1294_v17, 1  ;;  %v1324_v58 = vrot.slane %v2847_v37, 1  ;;  %v1346_v56 = vrot.slane %v1294_v17, 2 }
 0x4b9   : > { %v1323_v0 = vsel %vm268_vm1, %v1321_v4, %v1322_v57  ;;  %v1344_v20 = vsel %vm293_vm2, %v1342_v29, %v1343_v52  ;;  %v1345_v4 = vrot.slane %v2847_v37, 2  ;;  %v1886_v52 = vld [vmem:[%s3140_s1 + $0x50] sm:$0xff] }
 0x4ba   : > { %1501 = vrot.lane.b32.xlu1 %v1323_v0, %s1963_s27  ;;  %v1326_v57 = vsel %vm268_vm1, %v1324_v58, %v1325_v3  ;;  %1646 = vmatpush.msra.mxu2 %v1886_v52 }
 0x4bb   : > { %1912 = vmatpush.msra.mxu3 %v1886_v52  ;;  %v1347_v29 = vsel %vm293_vm2, %v1345_v4, %v1346_v56  ;;  %v1265_v8 = vpop.permute.xlu1 %1264 }
 0x4bd   : > { %v1261_v59 = vpop.permute.xlu2 %1260 }
 0x4be   : > { %v1271_v3 = vrot.slane %v1261_v59, 7 }
 0x4bf   : > { %1522 = vrot.lane.b32.xlu2 %v1344_v20, %s1964_s28  ;;  %1434 = vrot.lane.b32.xlu0 %v1323_v0, %s1961_s25 }
 0x4c0   : > { %v2880_v58 = vsel %vm233_vm0, 0.0, %v1271_v3  ;;  %v1295_v54 = vsel %vm233_vm0, %v1271_v3, 0.0 }
 0x4c1   : > { %v1327_v59 = vrot.slane %v2880_v58, 1 }
 0x4c2   : > { %1458 = vrot.lane.b32.xlu1 %v1344_v20, %s1962_s26 }
 0x4c6   : > { %v1405_v35 = vpop.permute.xlu2 %1404 }
 0x4c7   : > { %1368 = vrot.lane.b32.xlu2 %v1323_v0, %s1957_s21  ;;  %1412 = vrot.lane.b32.xlu0 %v2847_v37, %s1958_s22  ;;  %v1885_v0 = vld [vmem:[%s3140_s1 + $0x48] sm:$0xff] }
 0x4c8   : > { %1647 = vmatpush.msra.mxu2 %v1885_v0  ;;  %1913 = vmatpush.msra.mxu3 %v1885_v0  ;;  %v1328_v0 = vrot.slane %v1295_v54, 1 }
 0x4ca   : > { %1389 = vrot.lane.b32.xlu1 %v1344_v20, %s1960_s24  ;;  %v1884_v20 = vld [vmem:[%s3140_s1 + $0x40] sm:$0xff]  ;;  %v1329_v3 = vsel %vm268_vm1, %v1327_v59, %v1328_v0 }
 0x4cb   : > { %1648 = vmatpush.msra.mxu2 %v1884_v20  ;;  %1914 = vmatpush.msra.mxu3 %v1884_v20  ;;  %v1263_v17 = vpop.permute.xlu0 %1262  ;;  %v1348_v20 = vrot.slane %v2880_v58, 2 }
 0x4cc   : > { %v1272_v38 = vrot.slane %v1263_v17, 7 }
 0x4ce   : > { %v1363_v21 = vpop.permute.xlu2 %1362  ;;  %v1296_v0 = vsel %vm233_vm0, %v1272_v38, 0.0 }
 0x4cf   : > { %1482 = vrot.lane.b32.xlu2 %v2847_v37, %s1959_s23  ;;  %1503 = vrot.lane.b32.xlu0 %v1326_v57, %s1963_s27  ;;  %v1331_v17 = vrot.slane %v1296_v0, 1 }
 0x4d2   : > { %1524 = vrot.lane.b32.xlu1 %v1347_v29, %s1964_s28 }
 0x4d6   : > { %v1477_v56 = vpop.permute.xlu2 %1476 }
 0x4d7   : > { %1436 = vrot.lane.b32.xlu2 %v1326_v57, %s1961_s25  ;;  %1370 = vrot.lane.b32.xlu0 %v1326_v57, %s1957_s21  ;;  %v1349_v57 = vrot.slane %v1295_v54, 2  ;;  %v1553_v54 = vsel %vm536_vm6, %v2213_v49, %v1405_v35 }
 0x4d9   : > { %v1350_v46 = vsel %vm293_vm2, %v1348_v20, %v1349_v57  ;;  %v2900_v57 = vsel %vm233_vm0, 0.0, %v1272_v38 }
 0x4da   : > { %1460 = vrot.lane.b32.xlu1 %v1347_v29, %s1962_s26  ;;  %v1330_v59 = vrot.slane %v2900_v57, 1 }
 0x4de   : > { %v1431_v7 = vpop.permute.xlu2 %1430 }
 0x4df   : > { %1391 = vrot.lane.b32.xlu2 %v1347_v29, %s1960_s24  ;;  %1484 = vrot.lane.b32.xlu0 %v2880_v58, %s1959_s23 }
 0x4e1   : > { %v1429_v4 = vpop.permute.xlu0 %1428  ;;  %v1453_v52 = vpop.permute.xlu1 %1452 }
 0x4e2   : > { %1414 = vrot.lane.b32.xlu1 %v2880_v58, %s1958_s22  ;;  %v1561_v2 = vsel %vm545_vm7, %v1553_v54, %v1429_v4  ;;  %v1351_v54 = vrot.slane %v2900_v57, 2 }
 0x4e3   : > { %v1569_v9 = vsel %vm554_vm8, %v1561_v2, %v1453_v52  ;;  %v1332_v52 = vsel %vm268_vm1, %v1330_v59, %v1331_v17 }
 0x4e4   : > { %v1577_v49 = vsel %vm563_vm9, %v1569_v9, %v1477_v56 }
 0x4e6   : > { %v1386_v38 = vpop.permute.xlu2 %1385 }
 0x4e7   : > { %1393 = vrot.lane.b32.xlu2 %v1350_v46, %s1960_s24  ;;  %1372 = vrot.lane.b32.xlu0 %v1329_v3, %s1957_s21 }
 0x4e9   : > { %v1384_v29 = vpop.permute.xlu0 %1383  ;;  %v1407_v33 = vpop.permute.xlu1 %1406 }
 0x4ea   : > { %1526 = vrot.lane.b32.xlu1 %v1350_v46, %s1964_s28 }
 0x4ee   : > { %v1500_v59 = vpop.permute.xlu2 %1499 }
 0x4ef   : > { %1505 = vrot.lane.b32.xlu2 %v1329_v3, %s1963_s27  ;;  %1438 = vrot.lane.b32.xlu0 %v1329_v3, %s1961_s25  ;;  %v1352_v3 = vrot.slane %v1296_v0, 2 }
 0x4f1   : > { %v1498_v20 = vpop.permute.xlu0 %1497  ;;  %v1519_v35 = vpop.permute.xlu1 %1518 }
 0x4f2   : > { %v1585_v4 = vsel %vm572_vm10, %v1577_v49, %v1498_v20  ;;  %1416 = vrot.lane.b32.xlu1 %v2900_v57, %s1958_s22  ;;  %v1273_v20 = vrot.slane %v1265_v8, 7  ;;  %v1539_v49 = vsel %vm518_vm4, %v2781_v43, %v1363_v21 }
 0x4f3   : > { %v1593_v2 = vsel %vm581_vm11, %v1585_v4, %v1519_v35  ;;  %v1546_v35 = vsel %vm527_vm5, %v1539_v49, %v1384_v29  ;;  %v1353_v4 = vsel %vm293_vm2, %v1351_v54, %v1352_v3 }
 0x4f4   : > { %1889 = vmatmul.msk.f32.vlgmr.msra.gmra.mxu2 %vm594_vm12, %v1593_v2  ;;  %v1289_v17 = vsel %vm233_vm0, 0.0, %v1273_v20  ;;  %v1554_v8 = vsel %vm536_vm6, %v1546_v35, %v1407_v33 }
 0x4f5   : > { %v1356_v2 = vrot.slane %v1289_v17, 1  ;;  %v1562_v43 = vsel %vm545_vm7, %v1554_v8, %v1431_v7  ;;  %v1359_v49 = vrot.slane %v1289_v17, 2 }
 0x4f6   : > { %v1457_v54 = vpop.permute.xlu2 %1456 }
 0x4f7   : > { %1462 = vrot.lane.b32.xlu2 %v1350_v46, %s1962_s26  ;;  %1440 = vrot.lane.b32.xlu0 %v1332_v52, %s1961_s25  ;;  %v1297_v46 = vsel %vm233_vm0, %v1273_v20, 0.0 }
 0x4f8   : > { %v1357_v13 = vrot.slane %v1297_v46, 1  ;;  %v1360_v35 = vrot.slane %v1297_v46, 2 }
 0x4f9   : > { %v1455_v9 = vpop.permute.xlu0 %1454  ;;  %v1365_v56 = vpop.permute.xlu1 %1364 }
 0x4fa   : > { %1374 = vrot.lane.b32.xlu1 %v1332_v52, %s1957_s21  ;;  %v1570_v21 = vsel %vm554_vm8, %v1562_v43, %v1455_v9  ;;  %v1358_v3 = vsel %vm268_vm1, %v1356_v2, %v1357_v13 }
 0x4ff   : > { %1464 = vrot.lane.b32.xlu2 %v1353_v4, %s1962_s26  ;;  %1395 = vrot.lane.b32.xlu0 %v1353_v4, %s1960_s24 }
 0x501   : > { %v1409_v0 = vpop.permute.xlu0 %1408  ;;  %v1479_v53 = vpop.permute.xlu1 %1478 }
 0x502   : > { %1488 = vrot.lane.b32.xlu1 %v1289_v17, %s1959_s23  ;;  %v1578_v29 = vsel %vm563_vm9, %v1570_v21, %v1479_v53  ;;  %v1361_v53 = vsel %vm293_vm2, %v1359_v49, %v1360_v35 }
 0x503   : > { %v1586_v20 = vsel %vm572_vm10, %v1578_v29, %v1500_v59 }
 0x507   : > { %1418 = vrot.lane.b32.xlu2 %v1289_v17, %s1958_s22  ;;  %1509 = vrot.lane.b32.xlu0 %v1358_v3, %s1963_s27 }
 0x509   : > { %v1521_v33 = vpop.permute.xlu0 %1520  ;;  %v1433_v9 = vpop.permute.xlu1 %1432 }
 0x50a   : > { %v1594_v16 = vsel %vm581_vm11, %v1586_v20, %v1521_v33  ;;  %1442 = vrot.lane.b32.xlu1 %v1358_v3, %s1961_s25 }
 0x50b   : > { %1890 = vmatmul.msk.f32.gmra.mxu2 %vm594_vm12, %v1594_v16 }
 0x50f   : > { %1530 = vrot.lane.b32.xlu2 %v1361_v53, %s1964_s28  ;;  %1466 = vrot.lane.b32.xlu0 %v1361_v53, %s1962_s26 }
 0x511   : > { %v1411_v13 = vpop.permute.xlu2 %1410  ;;  %v1367_v16 = vpop.permute.xlu0 %1366 }
 0x512   : > { %1486 = vrot.lane.b32.xlu1 %v2900_v57, %s1959_s23  ;;  %v1541_v14 = vsel %vm518_vm4, %v2812_v60, %v1367_v16 }
 0x517   : > { %1507 = vrot.lane.b32.xlu2 %v1332_v52, %s1963_s27  ;;  %1528 = vrot.lane.b32.xlu0 %v1353_v4, %s1964_s28  ;;  %v1540_v52 = vsel %vm518_vm4, %v2794_v61, %v1365_v56  ;;  %v1388_v4 = vpop.permute.xlu1 %1387  ;;  %s3064_s28 = scalar_lea.vmem %s3143_s4, %s1901_s17 }
 0x518   : > { %v1547_v15 = vsel %vm527_vm5, %v1540_v52, %v1386_v38  ;;  %v1548_v56 = vsel %vm527_vm5, %v1541_v14, %v1388_v4 }
 0x519   : > { %v1523_v7 = vpop.permute.xlu2 %1522  ;;  %v1556_v8 = vsel %vm536_vm6, %v1548_v56, %v1411_v13 }
 0x51a   : > { %1708 = vrot.lane.b32.xlu1 %v1194_v55, %s1957_s21  ;;  %v1555_v55 = vsel %vm536_vm6, %v1547_v15, %v1409_v0 }
 0x51b   : > { %v1563_v63 = vsel %vm545_vm7, %v1555_v55, %v1433_v9 }
 0x51f   : > { %1710 = vrot.lane.b32.xlu2 %v1195_v23, %s1957_s21  ;;  %1712 = vrot.lane.b32.xlu0 %v1196_v18, %s1957_s21  ;;  %v1571_v18 = vsel %vm554_vm8, %v1563_v63, %v1457_v54 }
 0x521   : > { %v1369_v17 = vpop.permute.xlu2 %1368 }
 0x522   : > { %1714 = vrot.lane.b32.xlu1 %v1197_v41, %s1957_s21  ;;  %v1542_v20 = vsel %vm518_vm4, %v2831_v25, %v1369_v17 }
 0x527   : > { %1716 = vrot.lane.b32.xlu2 %v1198_v31, %s1957_s21  ;;  %1718 = vrot.lane.b32.xlu0 %v1199_v36, %s1957_s21  ;;  %v3153_v31 = vmax.f32 %v2728_v12, 0.0 }
 0x529   : > { %v1481_v23 = vpop.permute.xlu0 %1480  ;;  %v1483_v39 = vpop.permute.xlu2 %1482 }
 0x52a   : > { %1720 = vrot.lane.b32.xlu1 %v1200_v6, %s1957_s21  ;;  %v1579_v30 = vsel %vm563_vm9, %v1571_v18, %v1481_v23 }
 0x52c   : > { %v1502_v41 = vpop.permute.xlu1 %1501 }
 0x52d   : > { %v1587_v10 = vsel %vm572_vm10, %v1579_v30, %v1502_v41 }
 0x52e   : > { %v1595_v40 = vsel %vm581_vm11, %v1587_v10, %v1523_v7 }
 0x52f   : > { %1722 = vrot.lane.b32.xlu2 %v3153_v31, %s1957_s21  ;;  %1891 = vmatmul.msk.f32.gmra.mxu2 %vm594_vm12, %v1595_v40 }
 0x531   : > { %v1435_v36 = vpop.permute.xlu0 %1434  ;;  %v1437_v61 = vpop.permute.xlu2 %1436 }
 0x532   : > { %v1564_v12 = vsel %vm545_vm7, %v1556_v8, %v1435_v36 }
 0x534   : > { %v1459_v38 = vpop.permute.xlu1 %1458 }
 0x535   : > { %v1572_v0 = vsel %vm554_vm8, %v1564_v12, %v1459_v38 }
 0x536   : > { %v1580_v43 = vsel %vm563_vm9, %v1572_v0, %v1483_v39 }
 0x539   : > { %v1413_v6 = vpop.permute.xlu0 %1412  ;;  %v1392_v59 = vpop.permute.xlu2 %1391 }
 0x53c   : > { %v1390_v46 = vpop.permute.xlu1 %1389 }
 0x53d   : > { %v1549_v35 = vsel %vm527_vm5, %v1542_v20, %v1390_v46 }
 0x53e   : > { %v1557_v13 = vsel %vm536_vm6, %v1549_v35, %v1413_v6  ;;  %v3011_v6 = vld [vmem:[%s3142_s3 + $0x2] ss:$0 sm:$0xff] }
 0x53f   : > { %v1565_v9 = vsel %vm545_vm7, %v1557_v13, %v1437_v61  ;;  %v3005_v61 = vld [vmem:[%s3141_s2 + $0x2] ss:$0 sm:$0xff] }
 0x541   : > { %v1504_v2 = vpop.permute.xlu0 %1503  ;;  %v1394_v60 = vpop.permute.xlu2 %1393 }
 0x542   : > { %v1588_v21 = vsel %vm572_vm10, %v1580_v43, %v1504_v2 }
 0x544   : > { %v1525_v29 = vpop.permute.xlu1 %1524 }
 0x545   : > { %v1596_v3 = vsel %vm581_vm11, %v1588_v21, %v1525_v29 }
 0x546   : > { %1892 = vmatmul.msk.f32.gmra.mxu2 %vm594_vm12, %v1596_v3 }
 0x549   : > { %v1371_v54 = vpop.permute.xlu0 %1370  ;;  %v1506_v53 = vpop.permute.xlu2 %1505 }
 0x54c   : > { %v1461_v33 = vpop.permute.xlu1 %1460 }
 0x54d   : > { %v1573_v16 = vsel %vm554_vm8, %v1565_v9, %v1461_v33 }
 0x551   : > { %v1485_v49 = vpop.permute.xlu0 %1484  ;;  %v1463_v15 = vpop.permute.xlu2 %1462 }
 0x552   : > { %v1581_v4 = vsel %vm563_vm9, %v1573_v16, %v1485_v49 }
 0x553   : > { %v1589_v63 = vsel %vm572_vm10, %v1581_v4, %v1506_v53 }
 0x554   : > { %v1415_v7 = vpop.permute.xlu1 %1414 }
 0x559   : > { %v1373_v52 = vpop.permute.xlu0 %1372  ;;  %v1465_v39 = vpop.permute.xlu2 %1464 }
 0x55a   : > { %v1544_v41 = vsel %vm518_vm4, %v2880_v58, %v1373_v52 }
 0x55b   : > { %v1551_v40 = vsel %vm527_vm5, %v1544_v41, %v1394_v60  ;;  %v1543_v60 = vsel %vm518_vm4, %v2847_v37, %v1371_v54 }
 0x55c   : > { %v1527_v55 = vpop.permute.xlu1 %1526  ;;  %v1550_v49 = vsel %vm527_vm5, %v1543_v60, %v1392_v59 }
 0x55d   : > { %v1597_v25 = vsel %vm581_vm11, %v1589_v63, %v1527_v55  ;;  %v1558_v53 = vsel %vm536_vm6, %v1550_v49, %v1415_v7 }
 0x55e   : > { %1893 = vmatmul.msk.f32.gmra.mxu2 %vm594_vm12, %v1597_v25 }
 0x561   : > { %v1439_v17 = vpop.permute.xlu0 %1438  ;;  %v1419_v10 = vpop.permute.xlu2 %1418 }
 0x562   : > { %v1566_v9 = vsel %vm545_vm7, %v1558_v53, %v1439_v17  ;;  %v3155_v53 = vmax.f32 %v2354_v22, 0.0 }
 0x563   : > { %v1574_v52 = vsel %vm554_vm8, %v1566_v9, %v1463_v15 }
 0x564   : > { %v1417_v23 = vpop.permute.xlu1 %1416 }
 0x565   : > { %v1559_v36 = vsel %vm536_vm6, %v1551_v40, %v1417_v23 }
 0x569   : > { %v1441_v18 = vpop.permute.xlu0 %1440  ;;  %v1531_v0 = vpop.permute.xlu2 %1530 }
 0x56a   : > { %v1567_v38 = vsel %vm545_vm7, %v1559_v36, %v1441_v18 }
 0x56b   : > { %v1575_v56 = vsel %vm554_vm8, %v1567_v38, %v1465_v39 }
 0x56c   : > { %v1375_v30 = vpop.permute.xlu1 %1374 }
 0x56d   : > { %v1545_v29 = vsel %vm518_vm4, %v2900_v57, %v1375_v30 }
 0x571   : > { %v1396_v31 = vpop.permute.xlu0 %1395  ;;  %v1508_v55 = vpop.permute.xlu2 %1507 }
 0x572   : > { %v1552_v33 = vsel %vm527_vm5, %v1545_v29, %v1396_v31 }
 0x573   : > { %v1560_v35 = vsel %vm536_vm6, %v1552_v33, %v1419_v10 }
 0x574   : > { %v1489_v14 = vpop.permute.xlu1 %1488 }
 0x575   : > { %v1583_v8 = vsel %vm563_vm9, %v1575_v56, %v1489_v14 }
 0x577   : > { %v1650_v58 = vpop.f32.mrf.mxu2 }
 0x578   : > { %v1679_v46 = vmul.f32 %v3005_v61, %v1650_v58 }
 0x579   : > { %v1510_v12 = vpop.permute.xlu0 %1509 }
 0x57a   : > { %v1692_v2 = vadd.f32 %v3011_v6, %v1679_v46  ;;  %v1591_v43 = vsel %vm572_vm10, %v1583_v8, %v1510_v12  ;;  %v3154_v12 = vmax.f32 %v2320_v47, 0.0  ;;  %v1711_v47 = vpop.permute.xlu2 %1710 }
 0x57b   : > { %v1599_v21 = vsel %vm581_vm11, %v1591_v43, %v1531_v0 }
 0x57c   : > { %v1700_v3 = vmax.f32 %v1692_v2, 0.0  ;;  %1895 = vmatmul.msk.f32.vlgmr.msra.gmra.mxu3 %vm594_vm12, %v1599_v21  ;;  %v1443_v20 = vpop.permute.xlu1 %1442 }
 0x57d   : > { %v1568_v13 = vsel %vm545_vm7, %v1560_v35, %v1443_v20 }
 0x57e   : > { %1740 = vrot.lane.b32.xlu0 %v1700_v3, %s1960_s24 }
 0x581   : > { %v1467_v57 = vpop.permute.xlu0 %1466 }
 0x582   : > { %v1576_v16 = vsel %vm554_vm8, %v1568_v13, %v1467_v57  ;;  %v1717_v20 = vpop.permute.xlu2 %1716  ;;  %v1765_v13 = vsel %vm518_vm4, %v3155_v53, %v1711_v47 }
 0x583   : > { %v1584_v37 = vsel %vm563_vm9, %v1576_v16, %v2322_v48 }
 0x584   : > { %v1592_v54 = vsel %vm572_vm10, %v1584_v37, %v2342_v11  ;;  %v1487_v59 = vpop.permute.xlu1 %1486 }
 0x585   : > { %v1600_v4 = vsel %vm581_vm11, %v1592_v54, %v2347_v19  ;;  %v1582_v7 = vsel %vm563_vm9, %v1574_v52, %v1487_v59 }
 0x586   : > { %1896 = vmatmul.msk.f32.gmra.mxu3 %vm594_vm12, %v1600_v4  ;;  %v1590_v25 = vsel %vm572_vm10, %v1582_v7, %v1508_v55 }
 0x589   : > { %v1529_v63 = vpop.permute.xlu0 %1528 }
 0x58a   : > { %v1598_v17 = vsel %vm581_vm11, %v1590_v25, %v1529_v63  ;;  %v1723_v54 = vpop.permute.xlu2 %1722 }
 0x58b   : > { %1894 = vmatmul.msk.f32.gmra.mxu2 %vm594_vm12, %v1598_v17 }
 0x58c   : > { %v1709_v8 = vpop.permute.xlu1 %1708 }
 0x58d   : > { %v1764_v0 = vsel %vm518_vm4, %v3154_v12, %v1709_v8 }
 0x58e   : > { %v1653_v48 = vpop.f32.mrf.mxu2 }
 0x58f   : > { %v1680_v11 = vmul.f32 %v3005_v61, %v1653_v48 }
 0x591   : > { %v1693_v15 = vadd.f32 %v3011_v6, %v1680_v11  ;;  %v1713_v36 = vpop.permute.xlu0 %1712 }
 0x593   : > { %v1701_v23 = vmax.f32 %v1693_v15, 0.0 }
 0x594   : > { %v1715_v29 = vpop.permute.xlu1 %1714 }
 0x595   : > { %1742 = vrot.lane.b32.xlu1 %v1701_v23, %s1960_s24  ;;  %v3158_v23 = vmax.f32 %v2407_v51, 0.0 }
 0x599   : > { %v1719_v46 = vpop.permute.xlu0 %1718 }
 0x59c   : > { %v1721_v3 = vpop.permute.xlu1 %1720 }
 0x5b2   : > { %v1656_v19 = vpop.f32.mrf.mxu2 }
 0x5b3   : > { %v1681_v39 = vmul.f32 %v3005_v61, %v1656_v19 }
 0x5b5   : > { %v1694_v18 = vadd.f32 %v3011_v6, %v1681_v39 }
 0x5b7   : > { %v1702_v30 = vmax.f32 %v1694_v18, 0.0  ;;  %v3159_v18 = vmax.f32 %v2389_v28, 0.0 }
 0x5b9   : > { %1744 = vrot.lane.b32.xlu2 %v1702_v30, %s1960_s24 }
 0x5c9   : > { %v1659_v41 = vpop.f32.mrf.mxu2 }
 0x5ca   : > { %v1682_v10 = vmul.f32 %v3005_v61, %v1659_v41 }
 0x5cc   : > { %v1695_v31 = vadd.f32 %v3011_v6, %v1682_v10  ;;  %v3160_v10 = vmax.f32 %v2371_v27, 0.0 }
 0x5ce   : > { %v1703_v40 = vmax.f32 %v1695_v31, 0.0  ;;  %v1770_v31 = vsel %vm518_vm4, %v3160_v10, %v1721_v3 }
 0x5d0   : > { %1746 = vrot.lane.b32.xlu0 %v1703_v40, %s1960_s24 }
 0x5e1   : > { %v1662_v38 = vpop.f32.mrf.mxu2 }
 0x5e2   : > { %v1683_v14 = vmul.f32 %v3005_v61, %v1662_v38 }
 0x5e4   : > { %v1696_v58 = vadd.f32 %v3011_v6, %v1683_v14 }
 0x5e6   : > { %v1704_v56 = vmax.f32 %v1696_v58, 0.0 }
 0x5e8   : > { %1748 = vrot.lane.b32.xlu1 %v1704_v56, %s1960_s24 }
 0x5f0   : > { %v1741_v2 = vpop.permute.xlu0 %1740 }
 0x5f1   : > { %v1772_v43 = vsel %vm527_vm5, %v1764_v0, %v1741_v2 }
 0x5f2   : > { %v1780_v21 = vsel %vm536_vm6, %v1772_v43, %v2746_v50 }
 0x5f3   : > { %1788 = vst.msk [vmem:[%s3064_s28] sm:$0xff] %vm545_vm7, %v1780_v21 }
 0x5ff   : > { %v1668_v60 = vpop.f32.mrf.mxu3 }
 0x600   : > { %v1685_v33 = vmul.f32 %v3005_v61, %v1668_v60 }
 0x602   : > { %v1698_v49 = vadd.f32 %v3011_v6, %v1685_v33 }
 0x604   : > { %v1706_v35 = vmax.f32 %v1698_v49, 0.0 }
 0x606   : > { %1752 = vrot.lane.b32.xlu0 %v1706_v35, %s1960_s24 }
 0x607   : > { %v1743_v50 = vpop.permute.xlu1 %1742 }
 0x608   : > { %v1773_v57 = vsel %vm527_vm5, %v1765_v13, %v1743_v50 }
 0x609   : > { %v1781_v9 = vsel %vm536_vm6, %v1773_v57, %v2731_v1  ;;  %v1671_v16 = vpop.f32.mrf.mxu3  ;;  %v3156_v1 = vmax.f32 %v2363_v24, 0.0 }
 0x60a   : > { %1789 = vst.msk [vmem:[%s3064_s28 + $0x8] sm:$0xff] %vm545_vm7, %v1781_v9  ;;  %v1686_v37 = vmul.f32 %v3005_v61, %v1671_v16 }
 0x60b   : > { %v1766_v63 = vsel %vm518_vm4, %v3156_v1, %v1713_v36  ;;  %v3161_v36 = vmax.f32 %v2399_v45, 0.0 }
 0x60c   : > { %v1699_v52 = vadd.f32 %v3011_v6, %v1686_v37 }
 0x60d   : > { %v1771_v38 = vsel %vm518_vm4, %v3161_v36, %v1723_v54 }
 0x60e   : > { %v1707_v59 = vmax.f32 %v1699_v52, 0.0  ;;  %v1665_v22 = vpop.f32.mrf.mxu2 }
 0x60f   : > { %v1684_v4 = vmul.f32 %v3005_v61, %v1665_v22  ;;  %v3157_v61 = vmax.f32 %v2379_v34, 0.0 }
 0x610   : > { %1754 = vrot.lane.b32.xlu1 %v1707_v59, %s1960_s24 }
 0x611   : > { %v1697_v7 = vadd.f32 %v3011_v6, %v1684_v4  ;;  %v1767_v6 = vsel %vm518_vm4, %v3157_v61, %v1715_v29 }
 0x613   : > { %v1705_v55 = vmax.f32 %v1697_v7, 0.0  ;;  %v1745_v25 = vpop.permute.xlu2 %1744 }
 0x614   : > { %v1774_v17 = vsel %vm527_vm5, %v1766_v63, %v1745_v25 }
 0x615   : > { %1750 = vrot.lane.b32.xlu2 %v1705_v55, %s1960_s24  ;;  %v1782_v48 = vsel %vm536_vm6, %v1774_v17, %v2751_v42  ;;  %v1768_v42 = vsel %vm518_vm4, %v3158_v23, %v1717_v20 }
 0x616   : > { %1790 = vst.msk [vmem:[%s3064_s28 + $0x10] sm:$0xff] %vm545_vm7, %v1782_v48 }
 0x642   : > { %v1747_v11 = vpop.permute.xlu0 %1746 }
 0x643   : > { %v1775_v24 = vsel %vm527_vm5, %v1767_v6, %v1747_v11 }
 0x644   : > { %v1783_v15 = vsel %vm536_vm6, %v1775_v24, %v2760_v26  ;;  %v1769_v26 = vsel %vm518_vm4, %v3159_v18, %v1719_v46 }
 0x645   : > { %1791 = vst.msk [vmem:[%s3064_s28 + $0x18] sm:$0xff] %vm545_vm7, %v1783_v15 }
 0x65a   : > { %v1749_v19 = vpop.permute.xlu1 %1748 }
 0x65b   : > { %v1776_v39 = vsel %vm527_vm5, %v1768_v42, %v1749_v19 }
 0x65c   : > { %v1784_v34 = vsel %vm536_vm6, %v1776_v39, %v2756_v5 }
 0x65d   : > { %1792 = vst.msk [vmem:[%s3064_s28 + $0x20] sm:$0xff] %vm545_vm7, %v1784_v34 }
 0x66f   : > { %v1751_v30 = vpop.permute.xlu2 %1750 }
 0x670   : > { %v1777_v41 = vsel %vm527_vm5, %v1769_v26, %v1751_v30 }
 0x671   : > { %v1785_v51 = vsel %vm536_vm6, %v1777_v41, %v2776_v32 }
 0x672   : > { %1793 = vst.msk [vmem:[%s3064_s28 + $0x28] sm:$0xff] %vm545_vm7, %v1785_v51 }
 0x678   : > { %v1753_v5 = vpop.permute.xlu0 %1752 }
 0x679   : > { %v1778_v40 = vsel %vm527_vm5, %v1770_v31, %v1753_v5 }
 0x67a   : > { %v1786_v28 = vsel %vm536_vm6, %v1778_v40, %v2771_v62 }
 0x67b   : > { %1794 = vst.msk [vmem:[%s3064_s28 + $0x30] sm:$0xff] %vm545_vm7, %v1786_v28 }
 0x682   : > { %v1755_v14 = vpop.permute.xlu1 %1754 }
 0x683   : > { %v1779_v32 = vsel %vm527_vm5, %v1771_v38, %v1755_v14 }
 0x684   : > { %v1787_v27 = vsel %vm536_vm6, %v1779_v32, %v2766_v44 }
 0x685   : > { %1795 = vst.msk [vmem:[%s3064_s28 + $0x38] sm:$0xff] %vm545_vm7, %v1787_v27 }
 0x686 PF: > { %s14_s15 = sadd.s32 1, %s1954_s15  }
 0x687   : > { %p11_p4 = scmp.ge.s32.totalorder %s14_s15, 4  }
 0x689   :  { %13 = sbr.rel (!%p11_p4) target bundleno = 1 (0x1), region = 72 }

// kernel: encoder_stage_forward.17
= control target key start
LH: loop header
LB: loop body
LE: loop exit
PB: predicated region body
PF: predicated region fallthrough
CT: control target
= control target key end

     0   :  { %s528_s18 = smov 0   ;;  %s601_s0 = inlined_call_operand.vmem [shape: f32[2,8,8,12], index: 0, kind: input, shape index: {}]   ;;  %s602_s1 = inlined_call_operand.vmem [shape: f32[12,32], index: 1, kind: input, shape index: {}]   ;;  %s603_s2 = inlined_call_operand.vmem [shape: f32[1,32], index: 2, kind: input, shape index: {}]   ;;  %s604_s3 = inlined_call_operand.vmem [shape: f32[1,32], index: 3, kind: input, shape index: {}]   ;;  %s605_s4 = inlined_call_operand.vmem [shape: f32[2,8,8,32], index: 4, kind: input, shape index: {}]   ;;  %s606_s5 = inlined_call_operand.vmem [shape: f32[2,8,8,32], index: 5, kind: output, shape index: {}]  }
   0x1 LB: > { %s449_s19 = sadd.s32 4294967295, %s496_s18   ;;  %p453_p0 = scmp.ge.s32.totalorder %s496_s18, 1  ;;  %s496_s18 = sphi %s528_s18, %s15_s18  }
   0x2   : > { %p197_p1 = scmp.lt.s32.totalorder %s496_s18, 3 }
   0x4   : > { %p198_p2 = pnand %p453_p0, %p197_p1 }
   0x5   : > { %p230_p3 = scmp.lt.s32.totalorder (!%p198_p2), %s449_s19, 1 }
   0x6   : > { %201 = sbr.rel (%p198_p2) target bundleno = 166 (0xa6), region = 40 }
   0xb   : > { %v262_v0 = vld [vmem:[%s602_s1 + $0x8] sm:$0xf]  ;;  %vm288_vm0 = vcmask 1043456   ;;  %v261_v1 = vld [vmem:[%s602_s1] sm:$0xff]  ;;  %s608_s19 = smov (!%p230_p3, %s449_s19), 1  ;;  %vm263_vm1 = vcmask 97280  }
   0xc   : > { %475 = vmatpush.msk.msra.mxu2 %vm288_vm0, %v262_v0  ;;  %476 = vmatpush.msk.msra.mxu3 %vm288_vm0, %v262_v0  ;;  %s542_s24 = sshll.u32 %s608_s19, 6  ;;  %v488_v10 = vld [vmem:[%s603_s2] ss:$0 sm:$0xff]  ;;  %vm373_vm2 = vcmask 261120  }
   0xd   : > { %460 = vmatpush.msk.msra.mxu0 %vm288_vm0, %v262_v0  ;;  %474 = vmatpush.msk.msra.mxu1 %vm288_vm0, %v262_v0  ;;  %s234_s27 = scalar_lea.vmem %s601_s0, %s542_s24  ;;  %s563_s7 = scalar_lea.vmem %s605_s4, %s542_s24  ;;  %v489_v11 = vld [vmem:[%s604_s3] ss:$0 sm:$0xff] }
   0xe   : > { %478 = vmatpush.msra.mxu2 %v261_v1  ;;  %479 = vmatpush.msra.mxu3 %v261_v1  ;;  %v249_v2 = vld [vmem:[%s234_s27 + $0x20] sm:$0xff]  ;;  %v251_v3 = vld [vmem:[%s234_s27 + $0x30] sm:$0xff]  ;;  %v250_v6 = vld [vmem:[%s234_s27 + $0x28] sm:$0xff]  ;;  %s574_s12 = scalar_lea.vmem %s606_s5, %s542_s24 }
   0xf   : > { %307 = vmatpush.msra.mxu0 %v261_v1  ;;  %477 = vmatpush.msra.mxu1 %v261_v1  ;;  %v245_v4 = vld [vmem:[%s234_s27] sm:$0xff]  ;;  %v247_v5 = vld [vmem:[%s234_s27 + $0x10] sm:$0xff]  ;;  %v252_v7 = vld [vmem:[%s234_s27 + $0x38] sm:$0xff] }
  0x10   : > { %465 = vmatmul.msk.f32.vlgmr.msra.gmra.mxu2 %vm263_vm1, %v249_v2  ;;  %467 = vmatmul.msk.f32.vlgmr.msra.gmra.mxu3 %vm263_vm1, %v251_v3  ;;  %v246_v8 = vld [vmem:[%s234_s27 + $0x8] sm:$0xff]  ;;  %v248_v9 = vld [vmem:[%s234_s27 + $0x18] sm:$0xff]  ;;  %v253_v16 = vld [vmem:[%s563_s7] sm:$0xff] }
  0x11   : > { %461 = vmatmul.msk.f32.vlgmr.msra.gmra.mxu0 %vm263_vm1, %v245_v4  ;;  %463 = vmatmul.msk.f32.vlgmr.msra.gmra.mxu1 %vm263_vm1, %v247_v5  ;;  %v255_v17 = vld [vmem:[%s563_s7 + $0x10] sm:$0xff]  ;;  %v257_v28 = vld [vmem:[%s563_s7 + $0x20] sm:$0xff]  ;;  %v254_v38 = vld [vmem:[%s563_s7 + $0x8] sm:$0xff] }
  0x12   : > { %v259_v29 = vld [vmem:[%s563_s7 + $0x30] sm:$0xff]  ;;  %v256_v39 = vld [vmem:[%s563_s7 + $0x18] sm:$0xff]  ;;  %v258_v52 = vld [vmem:[%s563_s7 + $0x28] sm:$0xff] }
  0x13   : > { %v260_v53 = vld [vmem:[%s563_s7 + $0x38] sm:$0xff] }
  0x18   : > { %466 = vmatmul.msk.f32.gmra.mxu2 %vm263_vm1, %v250_v6  ;;  %468 = vmatmul.msk.f32.gmra.mxu3 %vm263_vm1, %v252_v7 }
  0x19   : > { %462 = vmatmul.msk.f32.gmra.mxu0 %vm263_vm1, %v246_v8  ;;  %464 = vmatmul.msk.f32.gmra.mxu1 %vm263_vm1, %v248_v9 }
  0x8e   : > { %v309_v12 = vpop.f32.mrf.mxu0  ;;  %v315_v13 = vpop.f32.mrf.mxu1 }
  0x8f   : > { %v337_v14 = vmul.f32 %v488_v10, %v309_v12  ;;  %v339_v15 = vmul.f32 %v488_v10, %v315_v13 }
  0x91   : > { %v349_v18 = vadd.f32 %v489_v11, %v337_v14  ;;  %v351_v19 = vadd.f32 %v489_v11, %v339_v15 }
  0x93   : > { %v357_v20 = vadd.f32 %v349_v18, %v253_v16  ;;  %v359_v21 = vadd.f32 %v351_v19, %v255_v17  ;;  %v321_v22 = vpop.f32.mrf.mxu2  ;;  %v327_v23 = vpop.f32.mrf.mxu3 }
  0x94   : > { %v341_v24 = vmul.f32 %v488_v10, %v321_v22  ;;  %v343_v25 = vmul.f32 %v488_v10, %v327_v23 }
  0x95   : > { %v365_v26 = vmax.f32 %v357_v20, 0.0  ;;  %v367_v27 = vmax.f32 %v359_v21, 0.0 }
  0x96   : > { %v353_v30 = vadd.f32 %v489_v11, %v341_v24  ;;  %v355_v31 = vadd.f32 %v489_v11, %v343_v25  ;;  %v312_v32 = vpop.f32.mrf.mxu0  ;;  %v318_v33 = vpop.f32.mrf.mxu1 }
  0x97   : > { %374 = vst.msk [vmem:[%s574_s12] sm:$0xff] %vm373_vm2, %v365_v26  ;;  %v338_v34 = vmul.f32 %v488_v10, %v312_v32  ;;  %v340_v35 = vmul.f32 %v488_v10, %v318_v33 }
  0x98   : > { %376 = vst.msk [vmem:[%s574_s12 + $0x10] sm:$0xff] %vm373_vm2, %v367_v27  ;;  %v361_v36 = vadd.f32 %v353_v30, %v257_v28  ;;  %v363_v37 = vadd.f32 %v355_v31, %v259_v29 }
  0x99   : > { %v350_v40 = vadd.f32 %v489_v11, %v338_v34  ;;  %v352_v41 = vadd.f32 %v489_v11, %v340_v35 }
  0x9a   : > { %v369_v42 = vmax.f32 %v361_v36, 0.0  ;;  %v371_v43 = vmax.f32 %v363_v37, 0.0 }
  0x9b   : > { %v358_v44 = vadd.f32 %v350_v40, %v254_v38  ;;  %v360_v45 = vadd.f32 %v352_v41, %v256_v39  ;;  %v324_v46 = vpop.f32.mrf.mxu2  ;;  %v330_v47 = vpop.f32.mrf.mxu3 }
  0x9c   : > { %378 = vst.msk [vmem:[%s574_s12 + $0x20] sm:$0xff] %vm373_vm2, %v369_v42  ;;  %v342_v48 = vmul.f32 %v488_v10, %v324_v46  ;;  %v344_v49 = vmul.f32 %v488_v10, %v330_v47 }
  0x9d   : > { %380 = vst.msk [vmem:[%s574_s12 + $0x30] sm:$0xff] %vm373_vm2, %v371_v43  ;;  %v366_v50 = vmax.f32 %v358_v44, 0.0  ;;  %v368_v51 = vmax.f32 %v360_v45, 0.0 }
  0x9e   : > { %v354_v54 = vadd.f32 %v489_v11, %v342_v48  ;;  %v356_v55 = vadd.f32 %v489_v11, %v344_v49 }
  0x9f   : > { %375 = vst.msk [vmem:[%s574_s12 + $0x8] sm:$0xff] %vm373_vm2, %v366_v50 }
  0xa0   : > { %377 = vst.msk [vmem:[%s574_s12 + $0x18] sm:$0xff] %vm373_vm2, %v368_v51  ;;  %v362_v56 = vadd.f32 %v354_v54, %v258_v52  ;;  %v364_v57 = vadd.f32 %v356_v55, %v260_v53 }
  0xa2   : > { %v370_v58 = vmax.f32 %v362_v56, 0.0  ;;  %v372_v59 = vmax.f32 %v364_v57, 0.0 }
  0xa4   : > { %379 = vst.msk [vmem:[%s574_s12 + $0x28] sm:$0xff] %vm373_vm2, %v370_v58 }
  0xa5   : > { %381 = vst.msk [vmem:[%s574_s12 + $0x38] sm:$0xff] %vm373_vm2, %v372_v59 }
  0xa6 PF: > { %s15_s18 = sadd.s32 1, %s496_s18  }
  0xa7   : > { %p12_p4 = scmp.ge.s32.totalorder %s15_s18, 4  }
  0xa9   :  { %14 = sbr.rel (!%p12_p4) target bundleno = 1 (0x1), region = 73 }

// kernel: encoder_stage_forward.18
= control target key start
LH: loop header
LB: loop body
LE: loop exit
PB: predicated region body
PF: predicated region fallthrough
CT: control target
= control target key end

     0   :  { %s1024_s15 = smov 0   ;;  %s1504_s0 = inlined_call_operand.vmem [shape: f32[2,8,8,32], index: 0, kind: input, shape index: {}]   ;;  %s1505_s1 = inlined_call_operand.vmem [shape: f32[288,8], index: 1, kind: input, shape index: {}]   ;;  %s1506_s2 = inlined_call_operand.vmem [shape: f32[1,8], index: 2, kind: input, shape index: {}]   ;;  %s1507_s3 = inlined_call_operand.vmem [shape: f32[1,8], index: 3, kind: input, shape index: {}]   ;;  %s1508_s4 = inlined_call_operand.vmem [shape: f32[2,8,8,8], index: 4, kind: output, shape index: {}]  }
   0x1 LB: > { %s800_s16 = sadd.s32 4294967295, %s993_s15   ;;  %p804_p0 = scmp.ge.s32.totalorder %s993_s15, 1  ;;  %s993_s15 = sphi %s1024_s15, %s14_s15  }
   0x2   : > { %p162_p1 = scmp.lt.s32.totalorder %s993_s15, 3 }
   0x4   : > { %p163_p2 = pnand %p804_p0, %p162_p1 }
   0x5   : > { %p188_p3 = scmp.lt.s32.totalorder (!%p163_p2), %s800_s16, 1  ;;  %s996_s21 = smov (!%p163_p2), 64  }
   0x6   : > { %166 = sbr.rel (%p163_p2) target bundleno = 335 (0x14f), region = 36  ;;  %s997_s22 = smov (!%p163_p2), 96  }
   0x7   : > { %s998_s23 = smov (!%p163_p2), 32  }
   0xb   : > { %vm233_vm0 = vcmask 1040384   ;;  %v995_v0 = vmov 0.0   ;;  %s1510_s16 = smov (!%p188_p3, %s800_s16), 1  ;;  %vm293_vm1 = vcmask 1045504   ;;  %vm268_vm2 = vcmask 1046528  }
   0xc   : > { %v215_v1 = vrot.slane %v995_v0, 7  ;;  %s819_s17 = sshll.u32 %s1510_s16, 6  ;;  %vm478_vm3 = vcmask 261120   ;;  %vm487_vm4 = vcmask 523264   ;;  %vm496_vm5 = vcmask 785408  }
   0xd   : > { %s1045_s20 = scalar_lea.vmem %s1504_s0, %s819_s17  ;;  %s1469_s10 = scalar_lea.vmem %s1508_s4, %s819_s17  ;;  %vm736_vm6 = vcmask 64512  }
   0xe   : > { %v1035_v2 = vsel %vm233_vm0, 0.0, %v215_v1  ;;  %v243_v3 = vsel %vm233_vm0, %v215_v1, 0.0  ;;  %v199_v6 = vld [vmem:[%s1045_s20 + $0x8] sm:$0xff]  ;;  %v198_v7 = vld [vmem:[%s1045_s20] sm:$0xff]  ;;  %v200_v8 = vld [vmem:[%s1045_s20 + $0x10] sm:$0xff] }
   0xf   : > { %v294_v4 = vrot.slane %v1035_v2, 2  ;;  %v295_v5 = vrot.slane %v243_v3, 2  ;;  %v217_v9 = vrot.slane %v199_v6, 7  ;;  %v216_v11 = vrot.slane %v198_v7, 7  ;;  %v203_v22 = vld [vmem:[%s1045_s20 + $0x28] sm:$0xff]  ;;  %v204_v34 = vld [vmem:[%s1045_s20 + $0x30] sm:$0xff] }
  0x10   : > { %v270_v12 = vrot.slane %v243_v3, 1  ;;  %v269_v13 = vrot.slane %v1035_v2, 1  ;;  %v218_v17 = vrot.slane %v200_v8, 7  ;;  %v221_v33 = vrot.slane %v203_v22, 7  ;;  %v201_v61 = vld [vmem:[%s1045_s20 + $0x18] sm:$0xff] }
  0x11   : > { %v1051_v10 = vsel %vm293_vm1, %v294_v4, %v295_v5  ;;  %v1055_v14 = vsel %vm233_vm0, 0.0, %v217_v9  ;;  %v244_v15 = vsel %vm233_vm0, %v216_v11, 0.0  ;;  %v245_v16 = vsel %vm233_vm0, %v217_v9, 0.0 }
  0x12   : > { %v865_v18 = vpack.i.bf16 %v1055_v14, %v1051_v10  ;;  %v1062_v19 = vsel %vm233_vm0, 0.0, %v216_v11  ;;  %v275_v20 = vrot.slane %v1055_v14, 1  ;;  %v276_v21 = vrot.slane %v245_v16, 1 }
  0x13   : > { %v301_v23 = vrot.slane %v245_v16, 2  ;;  %v297_v24 = vrot.slane %v1062_v19, 2  ;;  %v298_v25 = vrot.slane %v244_v15, 2  ;;  %v272_v27 = vrot.slane %v1062_v19, 1 }
  0x14   : > { %866 = vrot.lane.b32.xlu0 %v865_v18, %s996_s21  ;;  %v1069_v26 = vsel %vm268_vm2, %v275_v20, %v276_v21  ;;  %v273_v28 = vrot.slane %v244_v15, 1  ;;  %v300_v29 = vrot.slane %v1055_v14, 2  ;;  %v1076_v31 = vsel %vm268_vm2, %v269_v13, %v270_v12  ;;  %v202_v13 = vld [vmem:[%s1045_s20 + $0x20] sm:$0xff]  ;;  %v205_v15 = vld [vmem:[%s1045_s20 + $0x38] sm:$0xff] }
  0x15   : > { %v875_v30 = vpack.i.bf16 %v1069_v26, %v1062_v19  ;;  %v299_v32 = vsel %vm293_vm1, %v297_v24, %v298_v25  ;;  %v1081_v35 = vsel %vm233_vm0, 0.0, %v218_v17  ;;  %v246_v36 = vsel %vm233_vm0, %v218_v17, 0.0 }
  0x16   : > { %v870_v37 = vpack.i.bf16 %v299_v32, %v1076_v31  ;;  %v1087_v38 = vsel %vm268_vm2, %v272_v27, %v273_v28  ;;  %v1090_v39 = vsel %vm293_vm1, %v300_v29, %v301_v23  ;;  %v222_v40 = vrot.slane %v204_v34, 7 }
  0x17   : > { %876 = vrot.lane.b32.xlu1 %v875_v30, %s997_s22  ;;  %v278_v41 = vrot.slane %v1081_v35, 1  ;;  %v279_v42 = vrot.slane %v246_v36, 1  ;;  %v1094_v43 = vsel %vm233_vm0, 0.0, %v221_v33  ;;  %v249_v44 = vsel %vm233_vm0, %v221_v33, 0.0 }
  0x18   : > { %v880_v45 = vpack.i.bf16 %v1090_v39, %v1087_v38  ;;  %v885_v46 = vpack.i.bf16 %v1081_v35, %v299_v32  ;;  %v312_v47 = vrot.slane %v1094_v43, 2  ;;  %v313_v48 = vrot.slane %v249_v44, 2 }
  0x19   : > { %v1103_v49 = vsel %vm268_vm2, %v278_v41, %v279_v42  ;;  %v1106_v50 = vsel %vm233_vm0, 0.0, %v222_v40  ;;  %v287_v51 = vrot.slane %v1094_v43, 1  ;;  %v250_v52 = vsel %vm233_vm0, %v222_v40, 0.0  ;;  %v543_v40 = vld [vmem:[%s1505_s1 + $0x70] sm:$0xff] }
  0x1a   : > { %886 = vrot.lane.b32.xlu2 %v885_v46, %s996_s21  ;;  %v288_v53 = vrot.slane %v249_v44, 1  ;;  %v895_v54 = vpack.i.bf16 %v1103_v49, %v1055_v14  ;;  %v1115_v55 = vsel %vm293_vm1, %v312_v47, %v313_v48  ;;  %v290_v56 = vrot.slane %v1106_v50, 1  ;;  %v1192_v42 = vld [vmem:[%s1505_s1 + $0xf0] sm:$0xff]  ;;  %v542_v44 = vld [vmem:[%s1505_s1 + $0x68] sm:$0xff] }
  0x1b   : > { %v291_v58 = vrot.slane %v250_v52, 1  ;;  %v303_v59 = vrot.slane %v1081_v35, 2  ;;  %v304_v60 = vrot.slane %v246_v36, 2  ;;  %v900_v63 = vpack.i.bf16 %v1090_v39, %v1115_v55  ;;  %v544_v36 = vld [vmem:[%s1505_s1 + $0x78] sm:$0xff] }
  0x1c   : > { %871 = vrot.lane.b32.xlu0 %v870_v37, %s998_s23  ;;  %v1119_v57 = vsel %vm268_vm2, %v287_v51, %v288_v53  ;;  %v219_v0 = vrot.slane %v201_v61, 7  ;;  %v315_v1 = vrot.slane %v1106_v50, 2  ;;  %v316_v3 = vrot.slane %v250_v52, 2  ;;  %v1182_v37 = vld [vmem:[%s1505_s1 + $0xf8] sm:$0xff]  ;;  %581 = vmatpush.msra.mxu0 %v544_v36  ;;  %v1222_v61 = vld [vmem:[%s1505_s1 + $0xe0] sm:$0xff] }
  0x1d   : > { %v890_v62 = vpack.i.bf16 %v1069_v26, %v1119_v57  ;;  %v1130_v4 = vsel %vm268_vm2, %v290_v56, %v291_v58  ;;  %v1133_v5 = vsel %vm293_vm1, %v303_v59, %v304_v60  ;;  %v905_v16 = vpack.i.bf16 %v1081_v35, %v1106_v50  ;;  %622 = vmatpush.msra.mxu1 %v1182_v37  ;;  %v541_v56 = vld [vmem:[%s1505_s1 + $0x60] sm:$0xff]  ;;  %v564_v58 = vld [vmem:[%s1505_s1 + $0x118] sm:$0xff] }
  0x1e   : > { %v247_v6 = vsel %vm233_vm0, %v219_v0, 0.0  ;;  %v910_v7 = vpack.i.bf16 %v1130_v4, %v1133_v5  ;;  %v1141_v8 = vsel %vm233_vm0, 0.0, %v219_v0  ;;  %v1144_v9 = vsel %vm293_vm1, %v315_v1, %v316_v3  ;;  %821 = vmatpush.msra.mxu3 %v544_v36  ;;  %582 = vmatpush.msra.mxu0 %v543_v40  ;;  %v1232_v0 = vld [vmem:[%s1505_s1 + $0xd8] sm:$0xff]  ;;  %v561_v36 = vld [vmem:[%s1505_s1 + $0x100] sm:$0xff] }
  0x1f   : > { %881 = vrot.lane.b32.xlu1 %v880_v45, %s998_s23  ;;  %v306_v11 = vrot.slane %v1141_v8, 2  ;;  %v307_v12 = vrot.slane %v247_v6, 2  ;;  %v915_v17 = vpack.i.bf16 %v1144_v9, %v1141_v8  ;;  %v220_v18 = vrot.slane %v202_v13, 7  ;;  %v1201_v45 = vld [vmem:[%s1505_s1 + $0xe8] sm:$0xff]  ;;  %623 = vmatpush.msra.mxu1 %v1192_v42 }
  0x20   : > { %v281_v20 = vrot.slane %v1141_v8, 1  ;;  %v282_v21 = vrot.slane %v247_v6, 1  ;;  %v223_v22 = vrot.slane %v205_v15, 7  ;;  %822 = vmatpush.msra.mxu3 %v543_v40  ;;  %583 = vmatpush.msra.mxu0 %v542_v44  ;;  %v539_v6 = vld [vmem:[%s1505_s1 + $0x50] sm:$0xff]  ;;  %v538_v13 = vld [vmem:[%s1505_s1 + $0x48] sm:$0xff] }
  0x21   : > { %v1156_v23 = vsel %vm293_vm1, %v306_v11, %v307_v12  ;;  %v1163_v25 = vsel %vm233_vm0, 0.0, %v220_v18  ;;  %v248_v32 = vsel %vm233_vm0, %v220_v18, 0.0  ;;  %624 = vmatpush.msra.mxu1 %v1201_v45  ;;  %675 = vmatpush.msra.mxu2 %v564_v58  ;;  %v1251_v11 = vld [vmem:[%s1505_s1 + $0xd0] sm:$0xff]  ;;  %v534_v40 = vld [vmem:[%s1505_s1 + $0x28] sm:$0xff]  ;;  %v545_v58 = vld [vmem:[%s1505_s1 + $0x80] sm:$0xff] }
  0x22   : > { %891 = vrot.lane.b32.xlu2 %v890_v62, %s998_s23  ;;  %v925_v24 = vpack.i.bf16 %v1156_v23, %v1103_v49  ;;  %v1166_v27 = vsel %vm268_vm2, %v281_v20, %v282_v21  ;;  %v242_v28 = vsel %vm233_vm0, 0.0, %v223_v22  ;;  %v930_v30 = vpack.i.bf16 %v1163_v25, %v1133_v5  ;;  %823 = vmatpush.msra.mxu3 %v542_v44  ;;  %v563_v12 = vld [vmem:[%s1505_s1 + $0x110] sm:$0xff]  ;;  %v537_v20 = vld [vmem:[%s1505_s1 + $0x40] sm:$0xff] }
  0x23   : > { %v920_v29 = vpack.i.bf16 %v242_v28, %v1166_v27  ;;  %v284_v33 = vrot.slane %v1163_v25, 1  ;;  %v285_v34 = vrot.slane %v248_v32, 1  ;;  %v251_v41 = vsel %vm233_vm0, %v223_v22, 0.0  ;;  %584 = vmatpush.msra.mxu0 %v541_v56  ;;  %625 = vmatpush.msra.mxu1 %v1222_v61  ;;  %v1280_v21 = vld [vmem:[%s1505_s1 + $0xc0] sm:$0xff] }
  0x24   : > { %896 = vrot.lane.b32.xlu0 %v895_v54, %s997_s22  ;;  %v940_v46 = vpack.i.bf16 %v1166_v27, %v1144_v9  ;;  %v309_v47 = vrot.slane %v1163_v25, 2  ;;  %v310_v51 = vrot.slane %v248_v32, 2  ;;  %v331_v52 = vrot.slane %v242_v28, 2  ;;  %824 = vmatpush.msra.mxu3 %v541_v56  ;;  %v533_v44 = vld [vmem:[%s1505_s1 + $0x20] sm:$0xff] }
  0x25   : > { %v1207_v48 = vsel %vm268_vm2, %v284_v33, %v285_v34  ;;  %v332_v53 = vrot.slane %v251_v41, 2  ;;  %v320_v59 = vrot.slane %v242_v28, 1  ;;  %v321_v60 = vrot.slane %v251_v41, 1  ;;  %626 = vmatpush.msra.mxu1 %v1232_v0  ;;  %676 = vmatpush.msra.mxu2 %v563_v12  ;;  %v535_v34 = vld [vmem:[%s1505_s1 + $0x30] sm:$0xff]  ;;  %v550_v41 = vld [vmem:[%s1505_s1 + $0xa8] sm:$0xff]  ;;  %v529_v56 = vld [vmem:[%s1505_s1] sm:$0xff] }
  0x26   : > { %v935_v54 = vpack.i.bf16 %v1207_v48, %v1141_v8  ;;  %v945_v62 = vpack.i.bf16 %v1156_v23, %v242_v28  ;;  %v1235_v1 = vsel %vm293_vm1, %v309_v47, %v310_v51  ;;  %v960_v22 = vpack.i.bf16 %v1035_v2, %v1094_v43  ;;  %v1292_v28 = vld [vmem:[%s1505_s1 + $0xb8] sm:$0xff]  ;;  %v531_v51 = vld [vmem:[%s1505_s1 + $0x10] sm:$0xff] }
  0x27   : > { %901 = vrot.lane.b32.xlu1 %v900_v63, %s996_s21  ;;  %v540_v63 = vld [vmem:[%s1505_s1 + $0x58] sm:$0xff]  ;;  %v1238_v3 = vsel %vm293_vm1, %v331_v52, %v332_v53  ;;  %627 = vmatpush.msra.mxu1 %v1251_v11  ;;  %v975_v32 = vpack.i.bf16 %v1106_v50, %v1235_v1  ;;  %v980_v33 = vpack.i.bf16 %v1130_v4, %v1094_v43  ;;  %v547_v52 = vld [vmem:[%s1505_s1 + $0x90] sm:$0xff]  ;;  %v530_v53 = vld [vmem:[%s1505_s1 + $0x8] sm:$0xff] }
  0x28   : > { %585 = vmatpush.msra.mxu0 %v540_v63  ;;  %v955_v15 = vpack.i.bf16 %v1238_v3, %v1235_v1  ;;  %825 = vmatpush.msra.mxu3 %v540_v63  ;;  %v532_v47 = vld [vmem:[%s1505_s1 + $0x18] sm:$0xff] }
  0x2a   : > { %906 = vrot.lane.b32.xlu2 %v905_v16, %s997_s22  ;;  %586 = vmatpush.msra.mxu0 %v539_v6  ;;  %v1266_v16 = vld [vmem:[%s1505_s1 + $0xc8] sm:$0xff] }
  0x2b   : > { %826 = vmatpush.msra.mxu3 %v539_v6  ;;  %628 = vmatpush.msra.mxu1 %v1266_v16 }
  0x2c   : > { %911 = vrot.lane.b32.xlu0 %v910_v7, %s998_s23  ;;  %v1246_v7 = vsel %vm268_vm2, %v320_v59, %v321_v60  ;;  %587 = vmatpush.msra.mxu0 %v538_v13 }
  0x2d   : > { %v950_v18 = vpack.i.bf16 %v1163_v25, %v1246_v7  ;;  %629 = vmatpush.msra.mxu1 %v1280_v21  ;;  %827 = vmatpush.msra.mxu3 %v538_v13 }
  0x2e   : > { %588 = vmatpush.msra.mxu0 %v537_v20 }
  0x2f   : > { %916 = vrot.lane.b32.xlu1 %v915_v17, %s996_s21  ;;  %v562_v17 = vld [vmem:[%s1505_s1 + $0x108] sm:$0xff]  ;;  %630 = vmatpush.msra.mxu1 %v1292_v28 }
  0x30   : > { %677 = vmatpush.msra.mxu2 %v562_v17  ;;  %828 = vmatpush.msra.mxu3 %v537_v20 }
  0x32   : > { %921 = vrot.lane.b32.xlu2 %v920_v29, %s997_s22  ;;  %v970_v29 = vpack.i.bf16 %v1115_v55, %v1207_v48  ;;  %678 = vmatpush.msra.mxu2 %v561_v36 }
  0x33   : > { %809 = vmatmul.msk.f32.vlgmr.msra.gmra.mxu2 %vm478_vm3, %v1090_v39  ;;  %v548_v39 = vld [vmem:[%s1505_s1 + $0x98] sm:$0xff] }
  0x34   : > { %926 = vrot.lane.b32.xlu0 %v925_v24, %s998_s23  ;;  %v536_v24 = vld [vmem:[%s1505_s1 + $0x38] sm:$0xff] }
  0x35   : > { %589 = vmatpush.msra.mxu0 %v536_v24  ;;  %829 = vmatpush.msra.mxu3 %v536_v24 }
  0x37   : > { %931 = vrot.lane.b32.xlu1 %v930_v30, %s996_s21  ;;  %v965_v30 = vpack.i.bf16 %v1076_v31, %v1119_v57  ;;  %v551_v31 = vld [vmem:[%s1505_s1 + $0xb0] sm:$0xff]  ;;  %590 = vmatpush.msra.mxu0 %v535_v34 }
  0x38   : > { %631 = vmatpush.msra.mxu1 %v551_v31  ;;  %830 = vmatpush.msra.mxu3 %v535_v34 }
  0x39   : > { %591 = vmatpush.msra.mxu0 %v534_v40 }
  0x3a   : > { %936 = vrot.lane.b32.xlu2 %v935_v54, %s997_s22  ;;  %632 = vmatpush.msra.mxu1 %v550_v41  ;;  %v546_v54 = vld [vmem:[%s1505_s1 + $0x88] sm:$0xff] }
  0x3b   : > { %831 = vmatpush.msra.mxu3 %v534_v40  ;;  %592 = vmatpush.msra.mxu0 %v533_v44 }
  0x3c   : > { %941 = vrot.lane.b32.xlu0 %v940_v46, %s998_s23  ;;  %v549_v46 = vld [vmem:[%s1505_s1 + $0xa0] sm:$0xff]  ;;  %810 = vmatmul.msk.f32.gmra.mxu2 %vm478_vm3, %v1133_v5 }
  0x3d   : > { %633 = vmatpush.msra.mxu1 %v549_v46  ;;  %832 = vmatpush.msra.mxu3 %v533_v44 }
  0x3e   : > { %593 = vmatpush.msra.mxu0 %v532_v47 }
  0x3f   : > { %946 = vrot.lane.b32.xlu1 %v945_v62, %s996_s21  ;;  %634 = vmatpush.msra.mxu1 %v548_v39 }
  0x40   : > { %833 = vmatpush.msra.mxu3 %v532_v47  ;;  %594 = vmatpush.msra.mxu0 %v531_v51 }
  0x41   : > { %635 = vmatpush.msra.mxu1 %v547_v52 }
  0x42   : > { %951 = vrot.lane.b32.xlu2 %v950_v18, %s997_s22  ;;  %834 = vmatpush.msra.mxu3 %v531_v51 }
  0x43   : > { %595 = vmatpush.msra.mxu0 %v530_v53  ;;  %636 = vmatpush.msra.mxu1 %v546_v54 }
  0x44   : > { %956 = vrot.lane.b32.xlu0 %v955_v15, %s998_s23  ;;  %835 = vmatpush.msra.mxu3 %v530_v53 }
  0x45   : > { %596 = vmatpush.msra.mxu0 %v529_v56  ;;  %637 = vmatpush.msra.mxu1 %v545_v58 }
  0x46   : > { %836 = vmatpush.msra.mxu3 %v529_v56  ;;  %811 = vmatmul.msk.f32.gmra.mxu2 %vm478_vm3, %v1156_v23 }
  0x47   : > { %961 = vrot.lane.b32.xlu1 %v960_v22, %s996_s21 }
  0x48   : > { %837 = vmatpush.msrb.mxu3 %v1182_v37 }
  0x4a   : > { %966 = vrot.lane.b32.xlu2 %v965_v30, %s997_s22  ;;  %838 = vmatpush.msrb.mxu3 %v1192_v42 }
  0x4c   : > { %971 = vrot.lane.b32.xlu0 %v970_v29, %s998_s23  ;;  %839 = vmatpush.msrb.mxu3 %v1201_v45 }
  0x4e   : > { %840 = vmatpush.msrb.mxu3 %v1222_v61  ;;  %812 = vmatmul.msk.f32.gmra.mxu2 %vm478_vm3, %v1235_v1 }
  0x4f   : > { %976 = vrot.lane.b32.xlu1 %v975_v32, %s996_s21 }
  0x50   : > { %841 = vmatpush.msrb.mxu3 %v1232_v0 }
  0x52   : > { %981 = vrot.lane.b32.xlu2 %v980_v33, %s997_s22  ;;  %842 = vmatpush.msrb.mxu3 %v1251_v11 }
  0x54   : > { %843 = vmatpush.msrb.mxu3 %v1266_v16 }
  0x56   : > { %844 = vmatpush.msrb.mxu3 %v1280_v21  ;;  %813 = vmatmul.msk.f32.gmra.mxu2 %vm478_vm3, %v1115_v55 }
  0x58   : > { %845 = vmatpush.msrb.mxu3 %v1292_v28 }
  0x5a   : > { %846 = vmatpush.msrb.mxu3 %v551_v31 }
  0x5c   : > { %847 = vmatpush.msrb.mxu3 %v550_v41 }
  0x5e   : > { %848 = vmatpush.msrb.mxu3 %v549_v46  ;;  %814 = vmatmul.msk.f32.gmra.mxu2 %vm478_vm3, %v1144_v9 }
  0x60   : > { %849 = vmatpush.msrb.mxu3 %v548_v39 }
  0x62   : > { %850 = vmatpush.msrb.mxu3 %v547_v52 }
  0x64   : > { %851 = vmatpush.msrb.mxu3 %v546_v54 }
  0x66   : > { %852 = vmatpush.msrb.mxu3 %v545_v58  ;;  %815 = vmatmul.msk.f32.gmra.mxu2 %vm478_vm3, %v1238_v3 }
  0x6e   : > { %816 = vmatmul.msk.f32.gmra.mxu2 %vm478_vm3, %v1051_v10 }
  0x74   : > { %v887_v59 = vpop.permute.xlu2 %886 }
  0x75   : > { %v889_v28 = vunpack.i.h.bf16 %v887_v59  ;;  %v888_v29 = vunpack.i.l.bf16 %v887_v59 }
  0x7c   : > { %v1370_v5 = vpop.permute.xlu2 %891 }
  0x7d   : > { %v894_v36 = vunpack.i.h.bf16 %v1370_v5 }
  0x7f   : > { %v481_v52 = vsel %vm478_vm3, %v1055_v14, %v894_v36 }
  0x84   : > { %v1376_v42 = vpop.permute.xlu2 %906 }
  0x85   : > { %v908_v32 = vunpack.i.l.bf16 %v1376_v42  ;;  %v909_v47 = vunpack.i.h.bf16 %v1376_v42 }
  0x86   : > { %v867_v23 = vpop.permute.xlu0 %866 }
  0x87   : > { %v869_v62 = vunpack.i.h.bf16 %v867_v23  ;;  %v868_v63 = vunpack.i.l.bf16 %v867_v23 }
  0x89   : > { %v877_v37 = vpop.permute.xlu1 %876 }
  0x8a   : > { %v879_v0 = vunpack.i.h.bf16 %v877_v37  ;;  %v878_v1 = vunpack.i.l.bf16 %v877_v37 }
  0x8c   : > { %v922_v20 = vpop.permute.xlu2 %921 }
  0x8d   : > { %v924_v56 = vunpack.i.h.bf16 %v922_v20  ;;  %v923_v58 = vunpack.i.l.bf16 %v922_v20 }
  0x8e   : > { %v872_v45 = vpop.permute.xlu0 %871 }
  0x8f   : > { %v874_v60 = vunpack.i.h.bf16 %v872_v45  ;;  %v873_v61 = vunpack.i.l.bf16 %v872_v45 }
  0x91   : > { %v882_v6 = vpop.permute.xlu1 %881  ;;  %v479_v11 = vsel %vm478_vm3, %v1035_v2, %v873_v61  ;;  %v505_v55 = vsel %vm478_vm3, %v1087_v38, %v874_v60  ;;  %v893_v2 = vunpack.i.l.bf16 %v1370_v5 }
  0x92   : > { %v488_v12 = vsel %vm487_vm4, %v479_v11, %v868_v63  ;;  %v513_v13 = vsel %vm487_vm4, %v505_v55, %v869_v62  ;;  %v884_v15 = vunpack.i.h.bf16 %v882_v6  ;;  %v883_v16 = vunpack.i.l.bf16 %v882_v6 }
  0x93   : > { %v497_v17 = vsel %vm496_vm5, %v488_v12, %v878_v1  ;;  %v521_v18 = vsel %vm496_vm5, %v513_v13, %v879_v0 }
  0x94   : > { %597 = vmatmul.f32.vlgmr.msra.gmra.mxu0 %v497_v17  ;;  %638 = vmatmul.f32.vlgmr.msra.gmra.mxu1 %v521_v18  ;;  %v480_v22 = vsel %vm478_vm3, %v1062_v19, %v883_v16  ;;  %v506_v24 = vsel %vm478_vm3, %v1069_v26, %v884_v15  ;;  %v485_v26 = vsel %vm478_vm3, %v1094_v43, %v893_v2  ;;  %v937_v54 = vpop.permute.xlu2 %936 }
  0x95   : > { %v489_v34 = vsel %vm487_vm4, %v480_v22, %v888_v29  ;;  %v514_v31 = vsel %vm487_vm4, %v506_v24, %v889_v28  ;;  %v939_v10 = vunpack.i.h.bf16 %v937_v54  ;;  %v938_v0 = vunpack.i.l.bf16 %v937_v54 }
  0x96   : > { %v897_v38 = vpop.permute.xlu0 %896 }
  0x97   : > { %v899_v21 = vunpack.i.h.bf16 %v897_v38  ;;  %v898_v9 = vunpack.i.l.bf16 %v897_v38 }
  0x99   : > { %v902_v30 = vpop.permute.xlu1 %901  ;;  %v498_v19 = vsel %vm496_vm5, %v489_v34, %v898_v9  ;;  %v522_v40 = vsel %vm496_vm5, %v514_v31, %v899_v21 }
  0x9a   : > { %v903_v33 = vunpack.i.l.bf16 %v902_v30  ;;  %v904_v41 = vunpack.i.h.bf16 %v902_v30 }
  0x9c   : > { %600 = vmatmul.f32.gmra.mxu0 %v498_v19  ;;  %641 = vmatmul.f32.gmra.mxu1 %v522_v40  ;;  %v494_v44 = vsel %vm487_vm4, %v485_v26, %v903_v33  ;;  %v490_v53 = vsel %vm487_vm4, %v481_v52, %v904_v41  ;;  %v952_v12 = vpop.permute.xlu2 %951 }
  0x9d   : > { %v503_v3 = vsel %vm496_vm5, %v494_v44, %v908_v32  ;;  %v499_v42 = vsel %vm496_vm5, %v490_v53, %v909_v47  ;;  %v954_v20 = vunpack.i.h.bf16 %v952_v12  ;;  %v953_v21 = vunpack.i.l.bf16 %v952_v12 }
  0x9e   : > { %615 = vmatmul.f32.vlgmr.msra.gmra.mxu3 %v503_v3  ;;  %v912_v46 = vpop.permute.xlu0 %911 }
  0x9f   : > { %v914_v39 = vunpack.i.h.bf16 %v912_v46  ;;  %v913_v51 = vunpack.i.l.bf16 %v912_v46 }
  0xa1   : > { %v917_v43 = vpop.permute.xlu1 %916  ;;  %v486_v59 = vsel %vm478_vm3, %v1106_v50, %v914_v39  ;;  %v507_v5 = vsel %vm478_vm3, %v1103_v49, %v913_v51 }
  0xa2   : > { %v919_v23 = vunpack.i.h.bf16 %v917_v43  ;;  %v918_v37 = vunpack.i.l.bf16 %v917_v43 }
  0xa4   : > { %603 = vmatmul.f32.gmra.mxu0 %v499_v42  ;;  %v495_v14 = vsel %vm487_vm4, %v486_v59, %v919_v23  ;;  %v515_v45 = vsel %vm487_vm4, %v507_v5, %v918_v37  ;;  %v967_v30 = vpop.permute.xlu2 %966 }
  0xa5   : > { %v504_v60 = vsel %vm496_vm5, %v495_v14, %v924_v56  ;;  %v523_v61 = vsel %vm496_vm5, %v515_v45, %v923_v58  ;;  %v969_v19 = vunpack.i.h.bf16 %v967_v30  ;;  %v968_v40 = vunpack.i.l.bf16 %v967_v30 }
  0xa6   : > { %618 = vmatmul.f32.gmra.mxu3 %v504_v60  ;;  %644 = vmatmul.f32.gmra.mxu1 %v523_v61  ;;  %v927_v50 = vpop.permute.xlu0 %926 }
  0xa7   : > { %v929_v49 = vunpack.i.h.bf16 %v927_v50  ;;  %v928_v62 = vunpack.i.l.bf16 %v927_v50 }
  0xa9   : > { %v932_v63 = vpop.permute.xlu1 %931  ;;  %v482_v1 = vsel %vm478_vm3, %v1081_v35, %v928_v62  ;;  %v508_v6 = vsel %vm478_vm3, %v1166_v27, %v929_v49 }
  0xaa   : > { %v934_v11 = vunpack.i.h.bf16 %v932_v63  ;;  %v933_v55 = vunpack.i.l.bf16 %v932_v63  ;;  %v1460_v63 = vld [vmem:[%s1507_s3] ss:$0 sm:$0xff] }
  0xac   : > { %v491_v13 = vsel %vm487_vm4, %v482_v1, %v933_v55  ;;  %v516_v15 = vsel %vm487_vm4, %v508_v6, %v934_v11  ;;  %v982_v52 = vpop.permute.xlu2 %981 }
  0xad   : > { %v500_v16 = vsel %vm496_vm5, %v491_v13, %v938_v0  ;;  %v524_v17 = vsel %vm496_vm5, %v516_v15, %v939_v10  ;;  %v984_v43 = vunpack.i.h.bf16 %v982_v52  ;;  %v983_v56 = vunpack.i.l.bf16 %v982_v52 }
  0xae   : > { %606 = vmatmul.f32.gmra.mxu0 %v500_v16  ;;  %647 = vmatmul.f32.gmra.mxu1 %v524_v17  ;;  %v942_v18 = vpop.permute.xlu0 %941 }
  0xaf   : > { %v944_v2 = vunpack.i.h.bf16 %v942_v18  ;;  %v943_v38 = vunpack.i.l.bf16 %v942_v18 }
  0xb1   : > { %v947_v35 = vpop.permute.xlu1 %946  ;;  %v483_v27 = vsel %vm478_vm3, %v1141_v8, %v944_v2  ;;  %v511_v9 = vsel %vm478_vm3, %v1130_v4, %v943_v38 }
  0xb2   : > { %v949_v22 = vunpack.i.h.bf16 %v947_v35  ;;  %v948_v24 = vunpack.i.l.bf16 %v947_v35 }
  0xb4   : > { %v492_v28 = vsel %vm487_vm4, %v483_v27, %v949_v22  ;;  %v519_v29 = vsel %vm487_vm4, %v511_v9, %v948_v24 }
  0xb5   : > { %v501_v32 = vsel %vm496_vm5, %v492_v28, %v954_v20  ;;  %v527_v33 = vsel %vm496_vm5, %v519_v29, %v953_v21 }
  0xb6   : > { %609 = vmatmul.f32.gmra.mxu0 %v501_v32  ;;  %656 = vmatmul.f32.vlgmr.msrb.gmra.mxu3 %v527_v33  ;;  %v957_v34 = vpop.permute.xlu0 %956  ;;  %v680_v45 = vpop.f32.mrf.mxu2 }
  0xb7   : > { %v959_v31 = vunpack.i.h.bf16 %v957_v34  ;;  %v958_v36 = vunpack.i.l.bf16 %v957_v34 }
  0xb9   : > { %v962_v8 = vpop.permute.xlu1 %961  ;;  %v509_v4 = vsel %vm478_vm3, %v1207_v48, %v958_v36  ;;  %v512_v26 = vsel %vm478_vm3, %v1246_v7, %v959_v31 }
  0xba   : > { %v964_v41 = vunpack.i.h.bf16 %v962_v8  ;;  %v963_v44 = vunpack.i.l.bf16 %v962_v8 }
  0xbc   : > { %v517_v3 = vsel %vm487_vm4, %v509_v4, %v963_v44  ;;  %v520_v46 = vsel %vm487_vm4, %v512_v26, %v964_v41 }
  0xbd   : > { %v525_v47 = vsel %vm496_vm5, %v517_v3, %v968_v40  ;;  %v528_v39 = vsel %vm496_vm5, %v520_v46, %v969_v19 }
  0xbe   : > { %650 = vmatmul.f32.gmra.mxu1 %v525_v47  ;;  %659 = vmatmul.f32.gmra.mxu3 %v528_v39  ;;  %v972_v51 = vpop.permute.xlu0 %971 }
  0xbf   : > { %v974_v53 = vunpack.i.h.bf16 %v972_v51  ;;  %v973_v54 = vunpack.i.l.bf16 %v972_v51  ;;  %v683_v60 = vpop.f32.mrf.mxu2 }
  0xc1   : > { %v977_v48 = vpop.permute.xlu1 %976  ;;  %v484_v7 = vsel %vm478_vm3, %v1163_v25, %v973_v54  ;;  %v510_v58 = vsel %vm478_vm3, %v1119_v57, %v974_v53  ;;  %v1455_v57 = vld [vmem:[%s1506_s2] ss:$0 sm:$0xff] }
  0xc2   : > { %v979_v59 = vunpack.i.h.bf16 %v977_v48  ;;  %v978_v5 = vunpack.i.l.bf16 %v977_v48 }
  0xc4   : > { %v493_v23 = vsel %vm487_vm4, %v484_v7, %v978_v5  ;;  %v518_v37 = vsel %vm487_vm4, %v510_v58, %v979_v59 }
  0xc5   : > { %v502_v42 = vsel %vm496_vm5, %v493_v23, %v983_v56  ;;  %v526_v14 = vsel %vm496_vm5, %v518_v37, %v984_v43 }
  0xc6   : > { %612 = vmatmul.f32.gmra.mxu0 %v502_v42  ;;  %653 = vmatmul.f32.gmra.mxu1 %v526_v14 }
  0xc9   : > { %v686_v61 = vpop.f32.mrf.mxu2 }
  0xd1   : > { %v689_v1 = vpop.f32.mrf.mxu2 }
  0xd9   : > { %v692_v18 = vpop.f32.mrf.mxu2 }
  0xe1   : > { %v695_v30 = vpop.f32.mrf.mxu2 }
  0xe9   : > { %v698_v8 = vpop.f32.mrf.mxu2 }
  0xf1   : > { %v701_v52 = vpop.f32.mrf.mxu2 }
 0x111   : > { %v598_v25 = vpop.f32.mrf.mxu0  ;;  %v639_v50 = vpop.f32.mrf.mxu1 }
 0x112   : > { %v640_v49 = vadd.f32 %v639_v50, %v598_v25 }
 0x114   : > { %v681_v62 = vadd.f32 %v680_v45, %v640_v49 }
 0x116   : > { %v708_v10 = vmul.f32 %v1455_v57, %v681_v62 }
 0x118   : > { %v720_v0 = vadd.f32 %v1460_v63, %v708_v10 }
 0x119   : > { %v601_v6 = vpop.f32.mrf.mxu0  ;;  %v642_v11 = vpop.f32.mrf.mxu1 }
 0x11a   : > { %v728_v55 = vmax.f32 %v720_v0, 0.0  ;;  %v643_v12 = vadd.f32 %v642_v11, %v601_v6 }
 0x11c   : > { %737 = vst.msk [vmem:[%s1469_s10] sm:$0xff] %vm736_vm6, %v728_v55  ;;  %v684_v13 = vadd.f32 %v683_v60, %v643_v12 }
 0x11e   : > { %v709_v15 = vmul.f32 %v1455_v57, %v684_v13 }
 0x120   : > { %v721_v16 = vadd.f32 %v1460_v63, %v709_v15 }
 0x121   : > { %v604_v2 = vpop.f32.mrf.mxu0  ;;  %v616_v21 = vpop.f32.mrf.mxu3 }
 0x122   : > { %v729_v17 = vmax.f32 %v721_v16, 0.0 }
 0x123   : > { %v645_v38 = vpop.f32.mrf.mxu1 }
 0x124   : > { %738 = vst.msk [vmem:[%s1469_s10 + $0x8] sm:$0xff] %vm736_vm6, %v729_v17  ;;  %v646_v35 = vadd.f32 %v645_v38, %v604_v2 }
 0x126   : > { %v687_v20 = vadd.f32 %v686_v61, %v646_v35 }
 0x128   : > { %v710_v27 = vmul.f32 %v1455_v57, %v687_v20 }
 0x129   : > { %v619_v34 = vpop.f32.mrf.mxu3 }
 0x12a   : > { %v722_v9 = vadd.f32 %v1460_v63, %v710_v27 }
 0x12b   : > { %v607_v22 = vpop.f32.mrf.mxu0  ;;  %v648_v24 = vpop.f32.mrf.mxu1 }
 0x12c   : > { %v730_v28 = vmax.f32 %v722_v9, 0.0  ;;  %v649_v29 = vadd.f32 %v648_v24, %v607_v22 }
 0x12e   : > { %739 = vst.msk [vmem:[%s1469_s10 + $0x10] sm:$0xff] %vm736_vm6, %v730_v28  ;;  %v690_v32 = vadd.f32 %v689_v1, %v649_v29 }
 0x130   : > { %v711_v33 = vmul.f32 %v1455_v57, %v690_v32 }
 0x132   : > { %v723_v31 = vadd.f32 %v1460_v63, %v711_v33 }
 0x133   : > { %v610_v4 = vpop.f32.mrf.mxu0 }
 0x134   : > { %v731_v36 = vmax.f32 %v723_v31, 0.0 }
 0x136   : > { %740 = vst.msk [vmem:[%s1469_s10 + $0x18] sm:$0xff] %vm736_vm6, %v731_v36 }
 0x139   : > { %v657_v19 = vpop.f32.mrf.mxu3 }
 0x13a   : > { %v658_v40 = vadd.f32 %v657_v19, %v616_v21 }
 0x13b   : > { %v651_v26 = vpop.f32.mrf.mxu1 }
 0x13c   : > { %v652_v41 = vadd.f32 %v651_v26, %v610_v4  ;;  %v699_v44 = vadd.f32 %v698_v8, %v658_v40 }
 0x13e   : > { %v693_v3 = vadd.f32 %v692_v18, %v652_v41  ;;  %v714_v46 = vmul.f32 %v1455_v57, %v699_v44 }
 0x140   : > { %v712_v47 = vmul.f32 %v1455_v57, %v693_v3  ;;  %v726_v39 = vadd.f32 %v1460_v63, %v714_v46 }
 0x141   : > { %v660_v51 = vpop.f32.mrf.mxu3 }
 0x142   : > { %v724_v53 = vadd.f32 %v1460_v63, %v712_v47  ;;  %v734_v54 = vmax.f32 %v726_v39, 0.0  ;;  %v661_v48 = vadd.f32 %v660_v51, %v619_v34 }
 0x143   : > { %v613_v43 = vpop.f32.mrf.mxu0  ;;  %v654_v56 = vpop.f32.mrf.mxu1 }
 0x144   : > { %v732_v7 = vmax.f32 %v724_v53, 0.0  ;;  %743 = vst.msk [vmem:[%s1469_s10 + $0x30] sm:$0xff] %vm736_vm6, %v734_v54  ;;  %v655_v58 = vadd.f32 %v654_v56, %v613_v43  ;;  %v702_v59 = vadd.f32 %v701_v52, %v661_v48 }
 0x146   : > { %741 = vst.msk [vmem:[%s1469_s10 + $0x20] sm:$0xff] %vm736_vm6, %v732_v7  ;;  %v696_v5 = vadd.f32 %v695_v30, %v655_v58  ;;  %v715_v23 = vmul.f32 %v1455_v57, %v702_v59 }
 0x148   : > { %v713_v37 = vmul.f32 %v1455_v57, %v696_v5  ;;  %v727_v42 = vadd.f32 %v1460_v63, %v715_v23 }
 0x14a   : > { %v725_v14 = vadd.f32 %v1460_v63, %v713_v37  ;;  %v735_v45 = vmax.f32 %v727_v42, 0.0 }
 0x14c   : > { %v733_v60 = vmax.f32 %v725_v14, 0.0  ;;  %744 = vst.msk [vmem:[%s1469_s10 + $0x38] sm:$0xff] %vm736_vm6, %v735_v45 }
 0x14e   : > { %742 = vst.msk [vmem:[%s1469_s10 + $0x28] sm:$0xff] %vm736_vm6, %v733_v60 }
 0x14f PF: > { %s14_s15 = sadd.s32 1, %s993_s15  }
 0x150   : > { %p11_p4 = scmp.ge.s32.totalorder %s14_s15, 4  }
 0x152   :  { %13 = sbr.rel (!%p11_p4) target bundleno = 1 (0x1), region = 66 }

// kernel: encoder_stage_forward.24
= control target key start
LH: loop header
LB: loop body
LE: loop exit
PB: predicated region body
PF: predicated region fallthrough
CT: control target
= control target key end

     0   :  { %s961_s15 = smov 0   ;;  %s1399_s0 = inlined_call_operand.vmem [shape: f32[2,8,8,8], index: 0, kind: input, shape index: {}]   ;;  %s1400_s1 = inlined_call_operand.vmem [shape: f32[72,8], index: 1, kind: input, shape index: {}]   ;;  %s1401_s2 = inlined_call_operand.vmem [shape: f32[1,8], index: 2, kind: input, shape index: {}]   ;;  %s1402_s3 = inlined_call_operand.vmem [shape: f32[1,8], index: 3, kind: input, shape index: {}]   ;;  %s1403_s4 = inlined_call_operand.vmem [shape: f32[2,8,8,8], index: 4, kind: output, shape index: {}]  }
   0x1 LB: > { %s846_s16 = sadd.s32 4294967295, %s924_s15   ;;  %p850_p0 = scmp.ge.s32.totalorder %s924_s15, 1  ;;  %s924_s15 = sphi %s961_s15, %s14_s15  }
   0x2   : > { %p162_p1 = scmp.lt.s32.totalorder %s924_s15, 3 }
   0x4   : > { %p163_p2 = pnand %p850_p0, %p162_p1 }
   0x5   : > { %p188_p3 = scmp.lt.s32.totalorder (!%p163_p2), %s846_s16, 1  ;;  %s927_s21 = smov (!%p163_p2), 8  }
   0x6   : > { %166 = sbr.rel (%p163_p2) target bundleno = 520 (0x208), region = 36  ;;  %s928_s22 = smov (!%p163_p2), 24  }
   0x7   : > { %s929_s23 = smov (!%p163_p2), 16   ;;  %s930_s24 = smov (!%p163_p2), 32  }
   0x8   : > { %s931_s25 = smov (!%p163_p2), 40   ;;  %s932_s26 = smov (!%p163_p2), 48  }
   0x9   : > { %s933_s27 = smov (!%p163_p2), 56   ;;  %s934_s28 = smov (!%p163_p2), 64  }
   0xb   : > { %vm233_vm0 = vcmask 1040384   ;;  %v926_v0 = vmov 0.0   ;;  %s1405_s16 = smov (!%p188_p3, %s846_s16), 1  ;;  %vm268_vm1 = vcmask 1046528   ;;  %vm293_vm2 = vcmask 1045504  }
   0xc   : > { %v215_v1 = vrot.slane %v926_v0, 7  ;;  %s865_s17 = sshll.u32 %s1405_s16, 6  ;;  %vm518_vm3 = vcmask 64512   ;;  %vm527_vm4 = vcmask 130048   ;;  %vm536_vm5 = vcmask 195584  }
   0xd   : > { %s982_s20 = scalar_lea.vmem %s1399_s0, %s865_s17  ;;  %vm545_vm6 = vcmask 261120   ;;  %vm554_vm7 = vcmask 326656   ;;  %vm563_vm8 = vcmask 392192   ;;  %vm572_vm9 = vcmask 457728   ;;  %s197_s30 = scalar_lea.vmem %s1403_s4, %s865_s17 }
   0xe   : > { %v972_v2 = vsel %vm233_vm0, 0.0, %v215_v1  ;;  %v243_v3 = vsel %vm233_vm0, %v215_v1, 0.0  ;;  %v198_v7 = vld [vmem:[%s982_s20] sm:$0xff]  ;;  %v201_v8 = vld [vmem:[%s982_s20 + $0x18] sm:$0xff]  ;;  %v199_v9 = vld [vmem:[%s982_s20 + $0x8] sm:$0xff]  ;;  %vm581_vm10 = vcmask 523264  }
   0xf   : > { %v269_v4 = vrot.slane %v972_v2, 1  ;;  %v270_v5 = vrot.slane %v243_v3, 1  ;;  %v216_v10 = vrot.slane %v198_v7, 7  ;;  %v219_v11 = vrot.slane %v201_v8, 7  ;;  %v202_v32 = vld [vmem:[%s982_s20 + $0x20] sm:$0xff]  ;;  %v203_v38 = vld [vmem:[%s982_s20 + $0x28] sm:$0xff] }
  0x10   : > { %v294_v12 = vrot.slane %v972_v2, 2  ;;  %v295_v13 = vrot.slane %v243_v3, 2  ;;  %v217_v17 = vrot.slane %v199_v9, 7  ;;  %v220_v34 = vrot.slane %v202_v32, 7  ;;  %v200_v53 = vld [vmem:[%s982_s20 + $0x10] sm:$0xff] }
  0x11   : > { %v985_v6 = vsel %vm268_vm1, %v269_v4, %v270_v5  ;;  %v994_v14 = vsel %vm233_vm0, 0.0, %v216_v10  ;;  %v997_v15 = vsel %vm233_vm0, 0.0, %v219_v11  ;;  %v247_v16 = vsel %vm233_vm0, %v219_v11, 0.0  ;;  %v204_v4 = vld [vmem:[%s982_s20 + $0x30] sm:$0xff] }
  0x12   : > { %326 = vrot.lane.b32.xlu0 %v985_v6, %s927_s21  ;;  %374 = vrot.lane.b32.xlu1 %v994_v14, %s928_s22  ;;  %v306_v18 = vrot.slane %v997_v15, 2  ;;  %v307_v19 = vrot.slane %v247_v16, 2  ;;  %v281_v20 = vrot.slane %v997_v15, 1  ;;  %v282_v21 = vrot.slane %v247_v16, 1 }
  0x13   : > { %v244_v22 = vsel %vm233_vm0, %v216_v10, 0.0  ;;  %v1009_v24 = vsel %vm293_vm2, %v294_v12, %v295_v13  ;;  %v1014_v25 = vsel %vm233_vm0, 0.0, %v217_v17  ;;  %v245_v26 = vsel %vm233_vm0, %v217_v17, 0.0 }
  0x14   : > { %v1006_v23 = vsel %vm293_vm2, %v306_v18, %v307_v19  ;;  %v272_v27 = vrot.slane %v994_v14, 1  ;;  %v273_v28 = vrot.slane %v244_v22, 1  ;;  %v1021_v29 = vsel %vm268_vm1, %v281_v20, %v282_v21  ;;  %v205_v20 = vld [vmem:[%s982_s20 + $0x38] sm:$0xff] }
  0x15   : > { %358 = vrot.lane.b32.xlu2 %v1006_v23, %s929_s23  ;;  %v275_v30 = vrot.slane %v1014_v25, 1  ;;  %v276_v31 = vrot.slane %v245_v26, 1  ;;  %v297_v36 = vrot.slane %v994_v14, 2  ;;  %v298_v37 = vrot.slane %v244_v22, 2 }
  0x16   : > { %v274_v33 = vsel %vm268_vm1, %v272_v27, %v273_v28  ;;  %v1037_v39 = vsel %vm233_vm0, 0.0, %v220_v34  ;;  %v300_v40 = vrot.slane %v1014_v25, 2  ;;  %v301_v41 = vrot.slane %v245_v26, 2 }
  0x17   : > { %v1029_v35 = vsel %vm268_vm1, %v275_v30, %v276_v31  ;;  %v248_v42 = vsel %vm233_vm0, %v220_v34, 0.0  ;;  %v221_v43 = vrot.slane %v203_v38, 7  ;;  %v299_v44 = vsel %vm293_vm2, %v297_v36, %v298_v37 }
  0x18   : > { %v284_v45 = vrot.slane %v1037_v39, 1  ;;  %v285_v46 = vrot.slane %v248_v42, 1  ;;  %v1046_v47 = vsel %vm293_vm2, %v300_v40, %v301_v41  ;;  %v218_v54 = vrot.slane %v200_v53, 7  ;;  %v598_v40 = vld [vmem:[%s1400_s1 + $0x40] sm:$0xff]  ;;  %v597_v41 = vld [vmem:[%s1400_s1 + $0x38] sm:$0xff] }
  0x19   : > { %v1050_v48 = vsel %vm233_vm0, 0.0, %v221_v43  ;;  %v249_v49 = vsel %vm233_vm0, %v221_v43, 0.0  ;;  %v309_v56 = vrot.slane %v1037_v39, 2  ;;  %v310_v57 = vrot.slane %v248_v42, 2  ;;  %631 = vmatpush.msra.mxu0 %v598_v40  ;;  %868 = vmatpush.msra.mxu2 %v598_v40  ;;  %v596_v43 = vld [vmem:[%s1400_s1 + $0x30] sm:$0xff] }
  0x1a   : > { %350 = vrot.lane.b32.xlu0 %v1009_v24, %s929_s23  ;;  %334 = vrot.lane.b32.xlu1 %v1021_v29, %s927_s21  ;;  %v1056_v50 = vsel %vm268_vm1, %v284_v45, %v285_v46  ;;  %v287_v51 = vrot.slane %v1050_v48, 1  ;;  %v288_v52 = vrot.slane %v249_v49, 1  ;;  %v1071_v58 = vsel %vm233_vm0, 0.0, %v218_v54  ;;  %v595_v45 = vld [vmem:[%s1400_s1 + $0x28] sm:$0xff] }
  0x1b   : > { %v1076_v59 = vsel %vm293_vm2, %v309_v56, %v310_v57  ;;  %v312_v60 = vrot.slane %v1050_v48, 2  ;;  %v313_v61 = vrot.slane %v249_v49, 2  ;;  %v246_v62 = vsel %vm233_vm0, %v218_v54, 0.0  ;;  %867 = vmatpush.msra.mxu1 %v598_v40  ;;  %632 = vmatpush.msra.mxu0 %v597_v41  ;;  %v593_v49 = vld [vmem:[%s1400_s1 + $0x18] sm:$0xff]  ;;  %v591_v54 = vld [vmem:[%s1400_s1 + $0x8] sm:$0xff]  ;;  %v590_v56 = vld [vmem:[%s1400_s1] sm:$0xff] }
  0x1c   : > { %v1063_v55 = vsel %vm268_vm1, %v287_v51, %v288_v52  ;;  %v278_v63 = vrot.slane %v1071_v58, 1  ;;  %v279_v0 = vrot.slane %v246_v62, 1  ;;  %v222_v5 = vrot.slane %v204_v4, 7  ;;  %871 = vmatpush.msra.mxu2 %v597_v41  ;;  %869 = vmatpush.msra.mxu3 %v598_v40  ;;  %v592_v52 = vld [vmem:[%s1400_s1 + $0x10] sm:$0xff] }
  0x1d   : > { %398 = vrot.lane.b32.xlu2 %v274_v33, %s930_s24  ;;  %v1086_v1 = vsel %vm293_vm2, %v312_v60, %v313_v61  ;;  %v303_v7 = vrot.slane %v1071_v58, 2  ;;  %v304_v8 = vrot.slane %v246_v62, 2  ;;  %v223_v21 = vrot.slane %v205_v20, 7  ;;  %870 = vmatpush.msra.mxu1 %v597_v41 }
  0x1e   : > { %v1091_v3 = vsel %vm268_vm1, %v278_v63, %v279_v0  ;;  %v1102_v9 = vsel %vm233_vm0, 0.0, %v222_v5  ;;  %v250_v11 = vsel %vm233_vm0, %v222_v5, 0.0  ;;  %633 = vmatpush.msra.mxu0 %v596_v43  ;;  %874 = vmatpush.msra.mxu2 %v596_v43  ;;  %vm599_vm11 = vcmask 588800  }
  0x1f   : > { %v1108_v10 = vsel %vm293_vm2, %v303_v7, %v304_v8  ;;  %v290_v12 = vrot.slane %v1102_v9, 1  ;;  %v291_v13 = vrot.slane %v250_v11, 1  ;;  %v315_v17 = vrot.slane %v1102_v9, 2  ;;  %873 = vmatpush.msra.mxu1 %v596_v43  ;;  %872 = vmatpush.msra.mxu3 %v597_v41 }
  0x20   : > { %v316_v18 = vrot.slane %v250_v11, 2  ;;  %v1144_v22 = vsel %vm233_vm0, 0.0, %v223_v21  ;;  %v251_v26 = vsel %vm233_vm0, %v223_v21, 0.0  ;;  %634 = vmatpush.msra.mxu0 %v595_v45  ;;  %877 = vmatpush.msra.mxu2 %v595_v45 }
  0x21   : > { %v1118_v16 = vsel %vm268_vm1, %v290_v12, %v291_v13  ;;  %v320_v28 = vrot.slane %v1144_v22, 1  ;;  %v321_v30 = vrot.slane %v251_v26, 1  ;;  %v324_v34 = vrot.slane %v251_v26, 2  ;;  %876 = vmatpush.msra.mxu1 %v595_v45  ;;  %875 = vmatpush.msra.mxu3 %v596_v43 }
  0x22   : > { %330 = vrot.lane.b32.xlu0 %v1029_v35, %s927_s21  ;;  %382 = vrot.lane.b32.xlu1 %v1037_v39, %s928_s22  ;;  %v1130_v19 = vsel %vm293_vm2, %v315_v17, %v316_v18 }
  0x23   : > { %v1159_v31 = vsel %vm268_vm1, %v320_v28, %v321_v30  ;;  %878 = vmatpush.msra.mxu3 %v595_v45 }
  0x25   : > { %422 = vrot.lane.b32.xlu2 %v299_v44, %s931_s25 }
  0x2a   : > { %354 = vrot.lane.b32.xlu0 %v1046_v47, %s929_s23  ;;  %406 = vrot.lane.b32.xlu1 %v1056_v50, %s930_s24 }
  0x2d   : > { %446 = vrot.lane.b32.xlu2 %v1014_v25, %s932_s26 }
  0x32   : > { %338 = vrot.lane.b32.xlu0 %v1063_v55, %s927_s21  ;;  %378 = vrot.lane.b32.xlu1 %v1071_v58, %s928_s22 }
  0x35   : > { %430 = vrot.lane.b32.xlu2 %v1076_v59, %s931_s25 }
  0x3a   : > { %470 = vrot.lane.b32.xlu0 %v1029_v35, %s933_s27  ;;  %362 = vrot.lane.b32.xlu1 %v1086_v1, %s929_s23 }
  0x3d   : > { %402 = vrot.lane.b32.xlu2 %v1091_v3, %s930_s24 }
  0x42   : > { %454 = vrot.lane.b32.xlu0 %v1050_v48, %s932_s26  ;;  %494 = vrot.lane.b32.xlu1 %v1046_v47, %s934_s28 }
  0x45   : > { %328 = vrot.lane.b32.xlu2 %v274_v33, %s927_s21  ;;  %v323_v33 = vrot.slane %v1144_v22, 2 }
  0x47   : > { %v1177_v36 = vsel %vm293_vm2, %v323_v33, %v324_v34 }
  0x4a   : > { %386 = vrot.lane.b32.xlu0 %v1102_v9, %s928_s22  ;;  %426 = vrot.lane.b32.xlu1 %v1108_v10, %s931_s25 }
  0x4d   : > { %478 = vrot.lane.b32.xlu2 %v1063_v55, %s933_s27 }
  0x52   : > { %352 = vrot.lane.b32.xlu0 %v299_v44, %s929_s23  ;;  %410 = vrot.lane.b32.xlu1 %v1118_v16, %s930_s24 }
  0x55   : > { %450 = vrot.lane.b32.xlu2 %v997_v15, %s932_s26 }
  0x5a   : > { %502 = vrot.lane.b32.xlu0 %v1086_v1, %s934_s28  ;;  %336 = vrot.lane.b32.xlu1 %v1056_v50, %s927_s21 }
  0x5d   : > { %376 = vrot.lane.b32.xlu2 %v1014_v25, %s928_s22 }
  0x62   : > { %434 = vrot.lane.b32.xlu0 %v1130_v19, %s931_s25  ;;  %474 = vrot.lane.b32.xlu1 %v1021_v29, %s933_s27 }
  0x65   : > { %360 = vrot.lane.b32.xlu2 %v1076_v59, %s929_s23 }
  0x6a   : > { %400 = vrot.lane.b32.xlu0 %v1029_v35, %s930_s24  ;;  %458 = vrot.lane.b32.xlu1 %v1144_v22, %s932_s26 }
  0x6d   : > { %498 = vrot.lane.b32.xlu2 %v1006_v23, %s934_s28 }
  0x6f   : > { %v1151_v27 = vpop.permute.xlu2 %358 }
  0x72   : > { %332 = vrot.lane.b32.xlu0 %v1091_v3, %s927_s21  ;;  %384 = vrot.lane.b32.xlu1 %v1050_v48, %s928_s22 }
  0x75   : > { %424 = vrot.lane.b32.xlu2 %v1046_v47, %s931_s25  ;;  %v594_v47 = vld [vmem:[%s1400_s1 + $0x20] sm:$0xff] }
  0x76   : > { %635 = vmatpush.msra.mxu0 %v594_v47  ;;  %880 = vmatpush.msra.mxu2 %v594_v47 }
  0x77   : > { %v1165_v32 = vpop.permute.xlu2 %398  ;;  %879 = vmatpush.msra.mxu1 %v594_v47  ;;  %881 = vmatpush.msra.mxu3 %v594_v47 }
  0x78   : > { %636 = vmatpush.msra.mxu0 %v593_v49  ;;  %883 = vmatpush.msra.mxu2 %v593_v49 }
  0x79   : > { %882 = vmatpush.msra.mxu1 %v593_v49  ;;  %884 = vmatpush.msra.mxu3 %v593_v49 }
  0x7a   : > { %482 = vrot.lane.b32.xlu0 %v1159_v31, %s933_s27  ;;  %356 = vrot.lane.b32.xlu1 %v1108_v10, %s929_s23 }
  0x7b   : > { %637 = vmatpush.msra.mxu0 %v592_v52  ;;  %886 = vmatpush.msra.mxu2 %v592_v52 }
  0x7c   : > { %885 = vmatpush.msra.mxu1 %v592_v52  ;;  %887 = vmatpush.msra.mxu3 %v592_v52 }
  0x7d   : > { %408 = vrot.lane.b32.xlu2 %v1063_v55, %s930_s24  ;;  %638 = vmatpush.msra.mxu0 %v591_v54 }
  0x7e   : > { %889 = vmatpush.msra.mxu2 %v591_v54  ;;  %888 = vmatpush.msra.mxu1 %v591_v54 }
  0x7f   : > { %v1174_v35 = vpop.permute.xlu2 %422  ;;  %639 = vmatpush.msra.mxu0 %v590_v56  ;;  %890 = vmatpush.msra.mxu3 %v591_v54 }
  0x80   : > { %892 = vmatpush.msra.mxu2 %v590_v56  ;;  %891 = vmatpush.msra.mxu1 %v590_v56 }
  0x81   : > { %893 = vmatpush.msra.mxu3 %v590_v56 }
  0x82   : > { %448 = vrot.lane.b32.xlu0 %v1071_v58, %s932_s26  ;;  %506 = vrot.lane.b32.xlu1 %v1177_v36, %s934_s28 }
  0x84   : > { %v1179_v37 = vpop.permute.xlu0 %326  ;;  %v1183_v38 = vpop.permute.xlu1 %374 }
  0x85   : > { %340 = vrot.lane.b32.xlu2 %v1118_v16, %s927_s21 }
  0x87   : > { %v1195_v42 = vpop.permute.xlu2 %446 }
  0x8a   : > { %380 = vrot.lane.b32.xlu0 %v997_v15, %s928_s22  ;;  %432 = vrot.lane.b32.xlu1 %v1086_v1, %s931_s25 }
  0x8c   : > { %v1200_v44 = vpop.permute.xlu0 %350  ;;  %v1207_v46 = vpop.permute.xlu1 %334 }
  0x8d   : > { %472 = vrot.lane.b32.xlu2 %v1091_v3, %s933_s27 }
  0x8f   : > { %v1219_v51 = vpop.permute.xlu2 %430 }
  0x92   : > { %364 = vrot.lane.b32.xlu0 %v1130_v19, %s929_s23  ;;  %404 = vrot.lane.b32.xlu1 %v1021_v29, %s930_s24 }
  0x94   : > { %v1224_v53 = vpop.permute.xlu0 %330  ;;  %v1231_v55 = vpop.permute.xlu1 %382 }
  0x95   : > { %456 = vrot.lane.b32.xlu2 %v1102_v9, %s932_s26 }
  0x97   : > { %v1240_v29 = vpop.permute.xlu2 %402 }
  0x9a   : > { %496 = vrot.lane.b32.xlu0 %v1108_v10, %s934_s28  ;;  %388 = vrot.lane.b32.xlu1 %v1144_v22, %s928_s22 }
  0x9c   : > { %v1242_v57 = vpop.permute.xlu0 %354  ;;  %v407_v60 = vpop.permute.xlu1 %406 }
  0x9d   : > { %428 = vrot.lane.b32.xlu2 %v1006_v23, %s931_s25  ;;  %v519_v23 = vsel %vm518_vm3, %v972_v2, %v1179_v37 }
  0x9e   : > { %v528_v0 = vsel %vm527_vm4, %v519_v23, %v1200_v44 }
  0x9f   : > { %v329_v61 = vpop.permute.xlu2 %328  ;;  %v537_v4 = vsel %vm536_vm5, %v528_v0, %v1183_v38 }
  0xa0   : > { %v546_v8 = vsel %vm545_vm6, %v537_v4, %v1165_v32 }
  0xa1   : > { %v555_v11 = vsel %vm554_vm7, %v546_v8, %v1174_v35 }
  0xa2   : > { %480 = vrot.lane.b32.xlu0 %v1118_v16, %s933_s27  ;;  %412 = vrot.lane.b32.xlu1 %v1159_v31, %s930_s24  ;;  %v564_v13 = vsel %vm563_vm8, %v555_v11, %v1195_v42 }
  0xa4   : > { %v339_v62 = vpop.permute.xlu0 %338  ;;  %v379_v63 = vpop.permute.xlu1 %378 }
  0xa5   : > { %452 = vrot.lane.b32.xlu2 %v1037_v39, %s932_s26  ;;  %v525_v5 = vsel %vm518_vm3, %v1050_v48, %v339_v62 }
  0xa7   : > { %v479_v1 = vpop.permute.xlu2 %478 }
  0xaa   : > { %504 = vrot.lane.b32.xlu0 %v1130_v19, %s934_s28  ;;  %436 = vrot.lane.b32.xlu1 %v1177_v36, %s931_s25  ;;  %v523_v19 = vsel %vm518_vm3, %v997_v15, %v1207_v46 }
  0xab   : > { %v532_v20 = vsel %vm527_vm4, %v523_v19, %v1151_v27 }
  0xac   : > { %v471_v3 = vpop.permute.xlu0 %470  ;;  %v363_v7 = vpop.permute.xlu1 %362  ;;  %v541_v21 = vsel %vm536_vm5, %v532_v20, %v1231_v55 }
  0xad   : > { %v534_v10 = vsel %vm527_vm4, %v525_v5, %v363_v7  ;;  %476 = vrot.lane.b32.xlu2 %v1056_v50, %s933_s27  ;;  %v573_v50 = vsel %vm572_vm9, %v564_v13, %v471_v3  ;;  %v550_v26 = vsel %vm545_vm6, %v541_v21, %v407_v60 }
  0xae   : > { %v559_v31 = vsel %vm554_vm7, %v550_v26, %v1219_v51 }
  0xaf   : > { %v451_v12 = vpop.permute.xlu2 %450 }
  0xb2   : > { %460 = vrot.lane.b32.xlu0 %v972_v2, %s932_s26  ;;  %500 = vrot.lane.b32.xlu1 %v1076_v59, %s934_s28 }
  0xb4   : > { %v455_v48 = vpop.permute.xlu0 %454  ;;  %v495_v16 = vpop.permute.xlu1 %494 }
  0xb5   : > { %v582_v2 = vsel %vm581_vm10, %v573_v50, %v495_v16  ;;  %484 = vrot.lane.b32.xlu2 %v985_v6, %s933_s27  ;;  %v520_v6 = vsel %vm518_vm3, %v994_v14, %v329_v61  ;;  %v568_v15 = vsel %vm563_vm8, %v559_v31, %v455_v48  ;;  %v521_v14 = vsel %vm518_vm3, %v1014_v25, %v1224_v53 }
  0xb6   : > { %855 = vmatmul.msk.f32.vlgmr.msra.gmra.mxu0 %vm599_vm11, %v582_v2  ;;  %v577_v27 = vsel %vm572_vm9, %v568_v15, %v479_v1  ;;  %v530_v34 = vsel %vm527_vm4, %v521_v14, %v1242_v57 }
  0xb7   : > { %v377_v59 = vpop.permute.xlu2 %376  ;;  %v539_v36 = vsel %vm536_vm5, %v530_v34, %v379_v63 }
  0xb8   : > { %v548_v41 = vsel %vm545_vm6, %v539_v36, %v1240_v29 }
  0xba   : > { %508 = vrot.lane.b32.xlu0 %v1009_v24, %s934_s28 }
  0xbc   : > { %v387_v17 = vpop.permute.xlu0 %386  ;;  %v427_v18 = vpop.permute.xlu1 %426 }
  0xbd   : > { %v557_v42 = vsel %vm554_vm7, %v548_v41, %v427_v18  ;;  %v543_v29 = vsel %vm536_vm5, %v534_v10, %v387_v17 }
  0xbe   : > { %v566_v44 = vsel %vm563_vm8, %v557_v42, %v451_v12 }
  0xbf   : > { %v361_v28 = vpop.permute.xlu2 %360 }
  0xc4   : > { %v353_v22 = vpop.permute.xlu0 %352  ;;  %v411_v30 = vpop.permute.xlu1 %410 }
  0xc5   : > { %v529_v24 = vsel %vm527_vm4, %v520_v6, %v353_v22  ;;  %v552_v57 = vsel %vm545_vm6, %v543_v29, %v411_v30 }
  0xc6   : > { %v538_v7 = vsel %vm536_vm5, %v529_v24, %v377_v59 }
  0xc7   : > { %v499_v38 = vpop.permute.xlu2 %498 }
  0xcc   : > { %v503_v32 = vpop.permute.xlu0 %502  ;;  %v337_v35 = vpop.permute.xlu1 %336 }
  0xcd   : > { %v586_v33 = vsel %vm581_vm10, %v577_v27, %v503_v32  ;;  %v524_v37 = vsel %vm518_vm3, %v1037_v39, %v337_v35 }
  0xce   : > { %859 = vmatmul.msk.f32.vlgmr.msra.gmra.mxu2 %vm599_vm11, %v586_v33  ;;  %v533_v40 = vsel %vm527_vm4, %v524_v37, %v361_v28 }
  0xcf   : > { %v425_v47 = vpop.permute.xlu2 %424 }
  0xd4   : > { %v435_v25 = vpop.permute.xlu0 %434  ;;  %v475_v43 = vpop.permute.xlu1 %474 }
  0xd5   : > { %v575_v45 = vsel %vm572_vm9, %v566_v44, %v475_v43  ;;  %v561_v61 = vsel %vm554_vm7, %v552_v57, %v435_v25 }
  0xd6   : > { %v584_v46 = vsel %vm581_vm10, %v575_v45, %v499_v38 }
  0xd7   : > { %857 = vmatmul.msk.f32.vlgmr.msra.gmra.mxu1 %vm599_vm11, %v584_v46  ;;  %v409_v52 = vpop.permute.xlu2 %408 }
  0xdc   : > { %v401_v39 = vpop.permute.xlu0 %400  ;;  %v459_v49 = vpop.permute.xlu1 %458 }
  0xdd   : > { %v570_v62 = vsel %vm563_vm8, %v561_v61, %v459_v49  ;;  %v547_v10 = vsel %vm545_vm6, %v538_v7, %v401_v39 }
  0xde   : > { %v556_v12 = vsel %vm554_vm7, %v547_v10, %v425_v47 }
  0xdf   : > { %v341_v55 = vpop.permute.xlu2 %340 }
  0xe4   : > { %v333_v51 = vpop.permute.xlu0 %332  ;;  %v385_v53 = vpop.permute.xlu1 %384 }
  0xe5   : > { %v542_v18 = vsel %vm536_vm5, %v533_v40, %v385_v53  ;;  %v522_v22 = vsel %vm518_vm3, %v1071_v58, %v333_v51  ;;  %v526_v58 = vsel %vm518_vm3, %v1102_v9, %v341_v55 }
  0xe6   : > { %v551_v19 = vsel %vm545_vm6, %v542_v18, %v409_v52 }
  0xe7   : > { %v473_v1 = vpop.permute.xlu2 %472 }
  0xec   : > { %v483_v54 = vpop.permute.xlu0 %482  ;;  %v357_v56 = vpop.permute.xlu1 %356 }
  0xed   : > { %v579_v63 = vsel %vm572_vm9, %v570_v62, %v483_v54  ;;  %v531_v24 = vsel %vm527_vm4, %v522_v22, %v357_v56  ;;  %v935_v56 = vmov 64.0  }
  0xee   : > { %914 = vrcp.f32 %v935_v56 }
  0xef   : > { %v457_v5 = vpop.permute.xlu2 %456 }
  0xf4   : > { %v449_v60 = vpop.permute.xlu0 %448  ;;  %v507_v23 = vpop.permute.xlu1 %506 }
  0xf5   : > { %v588_v0 = vsel %vm581_vm10, %v579_v63, %v507_v23  ;;  %v565_v48 = vsel %vm563_vm8, %v556_v12, %v449_v60 }
  0xf6   : > { %861 = vmatmul.msk.f32.vlgmr.msra.gmra.mxu3 %vm599_vm11, %v588_v0  ;;  %v574_v50 = vsel %vm572_vm9, %v565_v48, %v473_v1  ;;  %v915_v1 = vpop.eup %914 }
  0xf7   : > { %v429_v16 = vpop.permute.xlu2 %428  ;;  %vm691_vm12 = vweird.f32 %v915_v1 }
  0xfc   : > { %v381_v3 = vpop.permute.xlu0 %380  ;;  %v433_v4 = vpop.permute.xlu1 %432 }
  0xfd   : > { %v560_v6 = vsel %vm554_vm7, %v551_v19, %v433_v4  ;;  %v540_v31 = vsel %vm536_vm5, %v531_v24, %v381_v3 }
  0xfe   : > { %v569_v26 = vsel %vm563_vm8, %v560_v6, %v457_v5  ;;  %v687_v5 = vmul.f32 64.0, %v915_v1 }
  0xff   : > { %v453_v20 = vpop.permute.xlu2 %452 }
 0x100   : > { %v688_v12 = vsub.f32 1.0, %v687_v5 }
 0x104   : > { %v365_v8 = vpop.permute.xlu0 %364  ;;  %v405_v11 = vpop.permute.xlu1 %404 }
 0x105   : > { %v549_v32 = vsel %vm545_vm6, %v540_v31, %v405_v11  ;;  %v535_v36 = vsel %vm527_vm4, %v526_v58, %v365_v8 }
 0x106   : > { %v558_v33 = vsel %vm554_vm7, %v549_v32, %v429_v16 }
 0x107   : > { %v477_v14 = vpop.permute.xlu2 %476  ;;  %v567_v34 = vsel %vm563_vm8, %v558_v33, %v453_v20 }
 0x108   : > { %v576_v38 = vsel %vm572_vm9, %v567_v34, %v477_v14 }
 0x10c   : > { %v497_v13 = vpop.permute.xlu0 %496  ;;  %v389_v17 = vpop.permute.xlu1 %388 }
 0x10d   : > { %v583_v2 = vsel %vm581_vm10, %v574_v50, %v497_v13  ;;  %v544_v37 = vsel %vm536_vm5, %v535_v36, %v389_v17  ;;  %v689_v50 = vmul.f32 %v915_v1, %v688_v12 }
 0x10e   : > { %856 = vmatmul.msk.f32.gmra.mxu0 %vm599_vm11, %v583_v2 }
 0x10f   : > { %v485_v44 = vpop.permute.xlu2 %484  ;;  %v690_v17 = vadd.f32 %v915_v1, %v689_v50 }
 0x111   : > { %v692_v19 = vsel %vm691_vm12, %v915_v1, %v690_v17 }
 0x114   : > { %v481_v59 = vpop.permute.xlu0 %480  ;;  %v413_v21 = vpop.permute.xlu1 %412 }
 0x115   : > { %v578_v28 = vsel %vm572_vm9, %v569_v26, %v481_v59  ;;  %v553_v40 = vsel %vm545_vm6, %v544_v37, %v413_v21 }
 0x11c   : > { %v505_v30 = vpop.permute.xlu0 %504  ;;  %v437_v27 = vpop.permute.xlu1 %436 }
 0x11d   : > { %v587_v15 = vsel %vm581_vm10, %v578_v28, %v505_v30  ;;  %v562_v42 = vsel %vm554_vm7, %v553_v40, %v437_v27 }
 0x11e   : > { %860 = vmatmul.msk.f32.gmra.mxu2 %vm599_vm11, %v587_v15 }
 0x124   : > { %v461_v35 = vpop.permute.xlu0 %460  ;;  %v501_v41 = vpop.permute.xlu1 %500 }
 0x125   : > { %v585_v25 = vsel %vm581_vm10, %v576_v38, %v501_v41  ;;  %v571_v43 = vsel %vm563_vm8, %v562_v42, %v461_v35 }
 0x126   : > { %858 = vmatmul.msk.f32.gmra.mxu1 %vm599_vm11, %v585_v25  ;;  %v580_v9 = vsel %vm572_vm9, %v571_v43, %v485_v44 }
 0x12c   : > { %v509_v45 = vpop.permute.xlu0 %508 }
 0x12d   : > { %v589_v46 = vsel %vm581_vm10, %v580_v9, %v509_v45 }
 0x12e   : > { %862 = vmatmul.msk.f32.gmra.mxu3 %vm599_vm11, %v589_v46 }
 0x133   : > { %v641_v47 = vpop.f32.mrf.mxu0 }
 0x134   : > { %v665_v52 = vsel %vm518_vm3, %v641_v47, 0.0 }
 0x151   : > { %v653_v53 = vpop.f32.mrf.mxu2 }
 0x152   : > { %v672_v62 = vsel %vm518_vm3, %v653_v53, 0.0 }
 0x154   : > { %v647_v49 = vpop.f32.mrf.mxu1 }
 0x155   : > { %v668_v55 = vsel %vm518_vm3, %v647_v49, 0.0 }
 0x179   : > { %v659_v63 = vpop.f32.mrf.mxu3 }
 0x17a   : > { %v676_v7 = vsel %vm518_vm3, %v659_v63, 0.0 }
 0x18b   : > { %v644_v39 = vpop.f32.mrf.mxu0 }
 0x18c   : > { %v666_v51 = vsel %vm518_vm3, %v644_v39, 0.0 }
 0x18d   : > { %v667_v54 = vadd.f32 %v666_v51, %v665_v52 }
 0x18f   : > { %v669_v57 = vadd.f32 %v668_v55, %v667_v54 }
 0x1a1   : > { %v656_v23 = vpop.f32.mrf.mxu2 }
 0x1a2   : > { %v674_v3 = vsel %vm518_vm3, %v656_v23, 0.0 }
 0x1a3   : > { %v650_v29 = vpop.f32.mrf.mxu1 }
 0x1a4   : > { %v670_v60 = vsel %vm518_vm3, %v650_v29, 0.0 }
 0x1a5   : > { %v671_v61 = vadd.f32 %v670_v60, %v669_v57 }
 0x1a7   : > { %v673_v0 = vadd.f32 %v672_v62, %v671_v61 }
 0x1a9   : > { %v675_v4 = vadd.f32 %v674_v3, %v673_v0  ;;  %v912_v3 = vld [vmem:[%s1401_s2] ss:$0 sm:$0xff] }
 0x1ab   : > { %v677_v10 = vadd.f32 %v676_v7, %v675_v4 }
 0x1b1   : > { %v662_v8 = vpop.f32.mrf.mxu3 }
 0x1b2   : > { %v678_v11 = vsel %vm518_vm3, %v662_v8, 0.0 }
 0x1b3   : > { %v679_v48 = vadd.f32 %v678_v11, %v677_v10  ;;  %v913_v11 = vld [vmem:[%s1402_s3] ss:$0 sm:$0xff] }
 0x1b5   : > { %v680_v13 = vrot.slane %v679_v48, 4 }
 0x1b7   : > { %v681_v16 = vadd.f32 %v680_v13, %v679_v48 }
 0x1b9   : > { %v682_v2 = vrot.slane %v681_v16, 2 }
 0x1bb   : > { %v683_v18 = vadd.f32 %v682_v2, %v681_v16 }
 0x1bd   : > { %v684_v59 = vrot.slane %v683_v18, 1 }
 0x1bf   : > { %v685_v20 = vadd.f32 %v684_v59, %v683_v18 }
 0x1c1   : > { %v693_v21 = vmul.f32 %v692_v19, %v685_v20 }
 0x1c3   : > { %v694_v6 = vsub.f32 %v641_v47, %v693_v21  ;;  %v695_v22 = vsub.f32 %v644_v39, %v693_v21  ;;  %v696_v26 = vsub.f32 %v647_v49, %v693_v21  ;;  %v697_v24 = vsub.f32 %v650_v29, %v693_v21 }
 0x1c4   : > { %v698_v28 = vsub.f32 %v653_v53, %v693_v21  ;;  %v699_v32 = vsub.f32 %v656_v23, %v693_v21  ;;  %v700_v34 = vsub.f32 %v659_v63, %v693_v21  ;;  %v701_v38 = vsub.f32 %v662_v8, %v693_v21 }
 0x1c5   : > { %v702_v30 = vmul.f32 %v694_v6, %v694_v6  ;;  %v703_v31 = vmul.f32 %v695_v22, %v695_v22  ;;  %v704_v15 = vmul.f32 %v696_v26, %v696_v26  ;;  %v705_v27 = vmul.f32 %v697_v24, %v697_v24 }
 0x1c6   : > { %v706_v35 = vmul.f32 %v698_v28, %v698_v28  ;;  %v707_v40 = vmul.f32 %v699_v32, %v699_v32  ;;  %v708_v25 = vmul.f32 %v700_v34, %v700_v34  ;;  %v709_v9 = vmul.f32 %v701_v38, %v701_v38 }
 0x1c7   : > { %v710_v33 = vsel %vm518_vm3, %v702_v30, 0.0  ;;  %v711_v14 = vsel %vm518_vm3, %v703_v31, 0.0  ;;  %v713_v36 = vsel %vm518_vm3, %v704_v15, 0.0  ;;  %v715_v41 = vsel %vm518_vm3, %v705_v27, 0.0 }
 0x1c8   : > { %v712_v58 = vadd.f32 %v711_v14, %v710_v33  ;;  %v717_v43 = vsel %vm518_vm3, %v706_v35, 0.0  ;;  %v719_v45 = vsel %vm518_vm3, %v707_v40, 0.0  ;;  %v721_v47 = vsel %vm518_vm3, %v708_v25, 0.0 }
 0x1c9   : > { %v723_v49 = vsel %vm518_vm3, %v709_v9, 0.0 }
 0x1ca   : > { %v714_v37 = vadd.f32 %v713_v36, %v712_v58 }
 0x1cc   : > { %v716_v42 = vadd.f32 %v715_v41, %v714_v37 }
 0x1ce   : > { %v718_v44 = vadd.f32 %v717_v43, %v716_v42 }
 0x1d0   : > { %v720_v46 = vadd.f32 %v719_v45, %v718_v44 }
 0x1d2   : > { %v722_v39 = vadd.f32 %v721_v47, %v720_v46 }
 0x1d4   : > { %v724_v51 = vadd.f32 %v723_v49, %v722_v39 }
 0x1d6   : > { %v725_v52 = vrot.slane %v724_v51, 4 }
 0x1d8   : > { %v726_v53 = vadd.f32 %v725_v52, %v724_v51 }
 0x1da   : > { %v727_v54 = vrot.slane %v726_v53, 2 }
 0x1dc   : > { %v728_v55 = vadd.f32 %v727_v54, %v726_v53 }
 0x1de   : > { %v729_v56 = vrot.slane %v728_v55, 1 }
 0x1e0   : > { %v730_v29 = vadd.f32 %v729_v56, %v728_v55 }
 0x1e2   : > { %v731_v57 = vmul.f32 %v730_v29, %v692_v19 }
 0x1e4   : > { %v732_v60 = vadd.f32 1e-05, %v731_v57 }
 0x1e6   : > { %916 = vrsqrt.f32 %v732_v60  ;;  %vm739_vm14 = vweird.f32 %v732_v60 }
 0x1ec   : > { %v917_v61 = vpop.eup %916 }
 0x1ed   : > { %v734_v62 = vmul.f32 %v917_v61, %v732_v60  ;;  %vm740_vm13 = vweird.f32 %v917_v61 }
 0x1ee   : > { %vm741_vm15 = vmor %vm739_vm14, %vm740_vm13 }
 0x1ef   : > { %v735_v63 = vmul.f32 %v917_v61, %v734_v62 }
 0x1f1   : > { %v736_v23 = vmul.f32 0.5, %v735_v63 }
 0x1f3   : > { %v737_v0 = vsub.f32 1.5, %v736_v23 }
 0x1f5   : > { %v738_v1 = vmul.f32 %v917_v61, %v737_v0 }
 0x1f7   : > { %v742_v4 = vsel %vm741_vm15, %v917_v61, %v738_v1 }
 0x1f8   : > { %v743_v5 = vmul.f32 %v742_v4, %v694_v6  ;;  %v744_v7 = vmul.f32 %v742_v4, %v695_v22  ;;  %v745_v8 = vmul.f32 %v742_v4, %v696_v26  ;;  %v746_v10 = vmul.f32 %v742_v4, %v697_v24 }
 0x1f9   : > { %v747_v12 = vmul.f32 %v742_v4, %v698_v28  ;;  %v748_v48 = vmul.f32 %v742_v4, %v699_v32  ;;  %v749_v13 = vmul.f32 %v742_v4, %v700_v34  ;;  %v750_v50 = vmul.f32 %v742_v4, %v701_v38 }
 0x1fa   : > { %v755_v16 = vmul.f32 %v912_v3, %v743_v5  ;;  %v756_v2 = vmul.f32 %v912_v3, %v744_v7  ;;  %v757_v17 = vmul.f32 %v912_v3, %v745_v8  ;;  %v758_v18 = vmul.f32 %v912_v3, %v746_v10 }
 0x1fb   : > { %v759_v59 = vmul.f32 %v912_v3, %v747_v12  ;;  %v760_v19 = vmul.f32 %v912_v3, %v748_v48  ;;  %v761_v20 = vmul.f32 %v912_v3, %v749_v13  ;;  %v762_v21 = vmul.f32 %v912_v3, %v750_v50 }
 0x1fc   : > { %v767_v6 = vadd.f32 %v913_v11, %v755_v16  ;;  %v768_v22 = vadd.f32 %v913_v11, %v756_v2  ;;  %v769_v26 = vadd.f32 %v913_v11, %v757_v17  ;;  %v770_v24 = vadd.f32 %v913_v11, %v758_v18 }
 0x1fd   : > { %v771_v28 = vadd.f32 %v913_v11, %v759_v59  ;;  %v772_v30 = vadd.f32 %v913_v11, %v760_v19  ;;  %v773_v31 = vadd.f32 %v913_v11, %v761_v20  ;;  %v774_v33 = vadd.f32 %v913_v11, %v762_v21 }
 0x1fe   : > { %v775_v15 = vmax.f32 %v767_v6, 0.0  ;;  %v776_v32 = vmax.f32 %v768_v22, 0.0  ;;  %v777_v27 = vmax.f32 %v769_v26, 0.0  ;;  %v778_v14 = vmax.f32 %v770_v24, 0.0 }
 0x1ff   : > { %v779_v58 = vmax.f32 %v771_v28, 0.0  ;;  %v780_v34 = vmax.f32 %v772_v30, 0.0  ;;  %v781_v35 = vmax.f32 %v773_v31, 0.0  ;;  %v782_v36 = vmax.f32 %v774_v33, 0.0 }
 0x200   : > { %783 = vst.msk [vmem:[%s197_s30] sm:$0xff] %vm518_vm3, %v775_v15 }
 0x201   : > { %784 = vst.msk [vmem:[%s197_s30 + $0x8] sm:$0xff] %vm518_vm3, %v776_v32 }
 0x202   : > { %785 = vst.msk [vmem:[%s197_s30 + $0x10] sm:$0xff] %vm518_vm3, %v777_v27 }
 0x203   : > { %786 = vst.msk [vmem:[%s197_s30 + $0x18] sm:$0xff] %vm518_vm3, %v778_v14 }
 0x204   : > { %787 = vst.msk [vmem:[%s197_s30 + $0x20] sm:$0xff] %vm518_vm3, %v779_v58 }
 0x205   : > { %788 = vst.msk [vmem:[%s197_s30 + $0x28] sm:$0xff] %vm518_vm3, %v780_v34 }
 0x206   : > { %789 = vst.msk [vmem:[%s197_s30 + $0x30] sm:$0xff] %vm518_vm3, %v781_v35 }
 0x207   : > { %790 = vst.msk [vmem:[%s197_s30 + $0x38] sm:$0xff] %vm518_vm3, %v782_v36 }
 0x208 PF: > { %s14_s15 = sadd.s32 1, %s924_s15  }
 0x209   : > { %p11_p4 = scmp.ge.s32.totalorder %s14_s15, 4  }
 0x20b   :  { %13 = sbr.rel (!%p11_p4) target bundleno = 1 (0x1), region = 66 }

</bundles_post_ra>
